<compile_context>
chip_gen: v5e
topology: v5e:2x2
jax: 0.10.0
libtpu: 0.0.40
codegen_flags: <defaults>
</compile_context>

<pallas_src>
import functools

import jax
import jax.numpy as jnp
import numpy as np
from jax.experimental import pallas as pl
from jax.experimental.pallas import tpu as pltpu

LANE = 128


def _ceil_to(x, m):
    return (x + m - 1) // m * m


def _double_conv_kernel(x_ref, w1_ref, s1_ref, b1_ref, w2_ref, s2_ref, b2_ref,
                        o_ref, pad1_ref, pad2_ref):
    """Fused (conv3x3 -> BN -> ReLU) x 2 for `nb` batch images per grid step.

    x_ref:    (nb, H, W, Cin)        input images (bf16)
    w1_ref:   (3, 3*Cin, Cmid_p)     ky-grouped stage-1 weights (bf16)
    s1_ref:   (1, Cmid_p)            folded BN scale, stage 1 (f32)
    b1_ref:   (1, Cmid_p)            folded BN shift, stage 1 (f32)
    w2_ref:   (3, 3*Cmid_p, Cout_p)  ky-grouped stage-2 weights (bf16)
    s2_ref:   (1, Cout_p)            folded BN scale, stage 2 (f32)
    b2_ref:   (1, Cout_p)            folded BN shift, stage 2 (f32)
    o_ref:    (nb, H, W, Cout)       output (f32, only the real channels)
    pad1_ref: (nb, H+2, Wp, Cin)     bf16 scratch: zero-bordered input slab
    pad2_ref: (nb, H+2, Wp, Cmid_p)  bf16 scratch: zero-bordered mid slab
    """
    nb, H, W, cout = o_ref.shape
    cmid_p = pad2_ref.shape[-1]
    cout_p = w2_ref.shape[-1]
    M = nb * H * W

    def zero_border(pad_ref):
        # Only the 1-pixel halo ring must be zero; the interior is fully
        # overwritten every step and the padded slab width beyond W+2 is
        # never read.  Zeroing each step keeps this correct on every
        # TensorCore when the batch grid axis is core-split (v7x).
        _, hp2, wp, c = pad_ref.shape
        zrow = jnp.zeros((nb, 1, wp, c), pad_ref.dtype)
        pad_ref[:, 0:1, :, :] = zrow
        pad_ref[:, H + 1:H + 2, :, :] = zrow
        zcol = jnp.zeros((nb, hp2, 1, c), pad_ref.dtype)
        pad_ref[:, :, 0:1, :] = zcol
        pad_ref[:, :, W + 1:W + 2, :] = zcol

    zero_border(pad1_ref)
    zero_border(pad2_ref)

    # Stage-1 input: place the images in the interior of the padded slab.
    pad1_ref[:, 1:H + 1, 1:W + 1, :] = x_ref[...]

    def conv_bn_relu(slab_ref, w_ref, s_ref, b_ref):
        # Per-ky grouped im2col: 3 matmuls with K = 3*C accumulated in f32.
        # No padded-to-128 channel rows are ever multiplied, and the live
        # patch buffer is 3x smaller than a 9-way concat.
        c = slab_ref.shape[-1]
        acc = None
        for ky in range(3):
            taps = [
                slab_ref[:, ky:ky + H, kx:kx + W, :].reshape(M, c)
                for kx in range(3)
            ]
            patches = jnp.concatenate(taps, axis=-1)            # (M, 3C) bf16
            part = jnp.dot(patches, w_ref[ky],
                           preferred_element_type=jnp.float32)  # f32 accumulate
            acc = part if acc is None else acc + part
        y = acc * s_ref[...] + b_ref[...]                        # folded BN (f32)
        return jnp.maximum(y, 0.0)                               # ReLU

    y1 = conv_bn_relu(pad1_ref, w1_ref, s1_ref, b1_ref)          # (M, Cmid_p)
    # Mid activation stays in VMEM; bf16 store = same rounding as reference.
    pad2_ref[:, 1:H + 1, 1:W + 1, :] = (
        y1.reshape(nb, H, W, cmid_p).astype(pad2_ref.dtype))

    y2 = conv_bn_relu(pad2_ref, w2_ref, s2_ref, b2_ref)          # (M, Cout_p)
    # Trim lane-padding channels in-kernel: only the real Cout hits HBM.
    o_ref[...] = (y2.reshape(nb, H, W, cout_p)[..., :cout]
                  .astype(o_ref.dtype))


def _double_conv_pallas(x_nhwc, w1p, s1p, b1p, w2p, s2p, b2p, *, nb, cout):
    """x_nhwc: (B, H, W, Cin) bf16 -> (B, H, W, Cout) f32."""
    B, H, W, cin = x_nhwc.shape
    cmid_p = w1p.shape[-1]
    cout_p = w2p.shape[-1]
    wp = _ceil_to(W + 2, 8)          # sublane-aligned slab width (helps v5e)
    assert B % nb == 0

    return pl.pallas_call(
        _double_conv_kernel,
        out_shape=jax.ShapeDtypeStruct((B, H, W, cout), jnp.float32),
        grid=(B // nb,),
        in_specs=[
            # nb images per grid step.
            pl.BlockSpec((nb, H, W, cin), lambda b: (b, 0, 0, 0)),
            # Grid-invariant parameters (constant index_map -> fetched once).
            pl.BlockSpec((3, 3 * cin, cmid_p), lambda b: (0, 0, 0)),
            pl.BlockSpec((1, cmid_p), lambda b: (0, 0)),
            pl.BlockSpec((1, cmid_p), lambda b: (0, 0)),
            pl.BlockSpec((3, 3 * cmid_p, cout_p), lambda b: (0, 0, 0)),
            pl.BlockSpec((1, cout_p), lambda b: (0, 0)),
            pl.BlockSpec((1, cout_p), lambda b: (0, 0)),
        ],
        out_specs=pl.BlockSpec((nb, H, W, cout), lambda b: (b, 0, 0, 0)),
        scratch_shapes=[
            pltpu.VMEM((nb, H + 2, wp, cin), jnp.bfloat16),
            pltpu.VMEM((nb, H + 2, wp, cmid_p), jnp.bfloat16),
        ],
        compiler_params=pltpu.CompilerParams(
            dimension_semantics=("parallel",),
            vmem_limit_bytes=32 * 1024 * 1024),
    )(x_nhwc, w1p, s1p, b1p, w2p, s2p, b2p)


def _pack_conv_weight(w_hwio, cin_packed, cout_packed):
    """(3,3,Cin,Cout) f32 -> (3, 3*cin_packed, cout_packed) bf16, ky-grouped.

    K ordering within a ky group is (kx, channel), matching the in-kernel
    concat order of the three kx taps.
    """
    kh, kw, ci, co = w_hwio.shape
    wp = jnp.zeros((kh, kw, cin_packed, cout_packed), jnp.float32)
    wp = wp.at[:, :, :ci, :co].set(w_hwio)
    return wp.reshape(kh, kw * cin_packed, cout_packed).astype(jnp.bfloat16)


def _pack_channel_vec(v, c_p):
    """(C,) f32 -> (1, C_p) f32, zero-padded."""
    return jnp.zeros((1, c_p), jnp.float32).at[0, :v.shape[0]].set(v)


def _pick_nb(B, H, W):
    # Aim for matmul M = nb*H*W >= ~512 to amortize per-step overhead, but keep
    # at least two grid steps so both of v7x's TensorCores get work.
    nb = min(B, max(1, 512 // max(1, H * W)))
    nb = min(nb, max(1, B // 2))
    while B % nb:
        nb -= 1
    return nb


class DoubleConvPallas:
    """(conv3x3 => BN => ReLU) * 2 — fused Pallas TPU implementation."""

    def __init__(self, in_channels, out_channels, mid_channels=None, *,
                 key=jax.random.PRNGKey(0), eps=1e-5):
        if not mid_channels:
            mid_channels = out_channels
        self.cin, self.cmid, self.cout = in_channels, mid_channels, out_channels
        # Mid/out accumulators are lane-dense (mult. of 128); Cin is NOT padded.
        self.cmid_p = _ceil_to(mid_channels, LANE)
        self.cout_p = _ceil_to(out_channels, LANE)

        k1, k2, k3, k4, k5, k6 = jax.random.split(key, 6)

        # Conv weights in HWIO (PyTorch is OIHW; pure layout choice), f32 master.
        fan1 = in_channels * 9
        fan2 = mid_channels * 9
        self.w1 = (jax.random.normal(k1, (3, 3, in_channels, mid_channels),
                                     jnp.float32) / np.sqrt(fan1))
        self.w2 = (jax.random.normal(k2, (3, 3, mid_channels, out_channels),
                                     jnp.float32) / np.sqrt(fan2))

        # Deterministic non-trivial BN params & running stats (inference mode).
        g1 = 1.0 + 0.1 * jax.random.normal(k3, (mid_channels,), jnp.float32)
        b1 = 0.1 * jax.random.normal(k4, (mid_channels,), jnp.float32)
        m1 = 0.05 * jnp.arange(mid_channels, dtype=jnp.float32)
        v1 = 1.0 + 0.02 * jnp.arange(mid_channels, dtype=jnp.float32)
        g2 = 1.0 + 0.1 * jax.random.normal(k5, (out_channels,), jnp.float32)
        b2 = 0.1 * jax.random.normal(k6, (out_channels,), jnp.float32)
        m2 = 0.03 * jnp.arange(out_channels, dtype=jnp.float32)
        v2 = 1.0 + 0.01 * jnp.arange(out_channels, dtype=jnp.float32)

        # Fold BN (inference mode) into per-channel scale/shift.
        self.scale1 = g1 / jnp.sqrt(v1 + eps)
        self.shift1 = b1 - m1 * self.scale1
        self.scale2 = g2 / jnp.sqrt(v2 + eps)
        self.shift2 = b2 - m2 * self.scale2

        # Kernel-ready parameters (one-time packing/casting).
        self.w1p = _pack_conv_weight(self.w1, self.cin, self.cmid_p)
        self.w2p = _pack_conv_weight(self.w2, self.cmid_p, self.cout_p)
        self.s1p = _pack_channel_vec(self.scale1, self.cmid_p)
        self.b1p = _pack_channel_vec(self.shift1, self.cmid_p)
        self.s2p = _pack_channel_vec(self.scale2, self.cout_p)
        self.b2p = _pack_channel_vec(self.shift2, self.cout_p)

    @functools.partial(jax.jit, static_argnums=0)
    def __call__(self, x_nchw):
        # NCHW in / NCHW out to match the PyTorch module; kernel runs in NHWC.
        # The bf16 cast fuses with the transpose (halves input HBM + VMEM).
        # TODO(synk): in a full UNet keep NHWC end-to-end and drop the transposes.
        B, _, H, W = x_nchw.shape
        x = jnp.transpose(x_nchw, (0, 2, 3, 1)).astype(jnp.bfloat16)
        nb = _pick_nb(B, H, W)
        y = _double_conv_pallas(x, self.w1p, self.s1p, self.b1p,
                                self.w2p, self.s2p, self.b2p,
                                nb=nb, cout=self.cout)
        return jnp.transpose(y, (0, 3, 1, 2))


def _bf16_round(a):
    return a.astype(jnp.bfloat16).astype(jnp.float32)


def _reference_forward(mod, x_nchw):
    """Plain-JAX reference with the same bf16-in / f32-accumulate numerics."""
    def one(x, w, scale, shift):
        y = jax.lax.conv_general_dilated(
            _bf16_round(x), _bf16_round(w),
            window_strides=(1, 1), padding=((1, 1), (1, 1)),
            dimension_numbers=("NCHW", "HWIO", "NCHW"),
            preferred_element_type=jnp.float32)
        y = y * scale[None, :, None, None] + shift[None, :, None, None]
        return jnp.maximum(y, 0.0)

    y = one(x_nchw.astype(jnp.float32), mod.w1, mod.scale1, mod.shift1)
    y = one(y, mod.w2, mod.scale2, mod.shift2)
    return y


if __name__ == "__main__":
    B, Cin, H, W = 2, 4, 16, 16
    Cout = 8

    key = jax.random.PRNGKey(0)
    kx, kp = jax.random.split(key)
    x = jax.random.normal(kx, (B, Cin, H, W), jnp.float32)  # NCHW like PyTorch

    module = DoubleConvPallas(Cin, Cout, key=kp)

    out = jax.block_until_ready(module(x))
    ref = jax.block_until_ready(_reference_forward(module, x))

    assert out.shape == (B, Cout, H, W), out.shape
    np.testing.assert_allclose(np.asarray(out), np.asarray(ref),
                               rtol=5e-3, atol=5e-3)
    print("KERNEL_OK")
</pallas_src>

<mosaic_0001>
module attributes {stable_mosaic.version = 11 : i64} {
  func.func @_double_conv_kernel(%arg0: i32, %arg1: memref<1x16x16x4xbf16, #tpu.memory_space<vmem>>, %arg2: memref<3x12x128xbf16, #tpu.memory_space<vmem>>, %arg3: memref<1x128xf32, #tpu.memory_space<vmem>>, %arg4: memref<1x128xf32, #tpu.memory_space<vmem>>, %arg5: memref<3x384x128xbf16, #tpu.memory_space<vmem>>, %arg6: memref<1x128xf32, #tpu.memory_space<vmem>>, %arg7: memref<1x128xf32, #tpu.memory_space<vmem>>, %arg8: memref<1x16x16x8xf32, #tpu.memory_space<vmem>>, %arg9: memref<1x18x24x4xbf16, #tpu.memory_space<vmem>>, %arg10: memref<1x18x24x128xbf16, #tpu.memory_space<vmem>>) attributes {dimension_semantics = [#tpu.dimension_semantics<parallel>], iteration_bounds = array<i64: 2>, scalar_prefetch = 0 : i64, scratch_operands = 2 : i64, tpu.core_type = #tpu.core_type<tc>, window_params = [{transform_indices = @transform_0, window_bounds = array<i64: 1, 16, 16, 4>}, {pipeline_mode = #tpu.pipeline_mode<synchronous>, transform_indices = @transform_1, window_bounds = array<i64: 3, 12, 128>}, {pipeline_mode = #tpu.pipeline_mode<synchronous>, transform_indices = @transform_2, window_bounds = array<i64: 1, 128>}, {pipeline_mode = #tpu.pipeline_mode<synchronous>, transform_indices = @transform_3, window_bounds = array<i64: 1, 128>}, {pipeline_mode = #tpu.pipeline_mode<synchronous>, transform_indices = @transform_4, window_bounds = array<i64: 3, 384, 128>}, {pipeline_mode = #tpu.pipeline_mode<synchronous>, transform_indices = @transform_5, window_bounds = array<i64: 1, 128>}, {pipeline_mode = #tpu.pipeline_mode<synchronous>, transform_indices = @transform_6, window_bounds = array<i64: 1, 128>}, {transform_indices = @transform_7, window_bounds = array<i64: 1, 16, 16, 8>}]} {
    %cst = arith.constant 0.000000e+00 : bf16
    %0 = vector.broadcast %cst : bf16 to vector<1x1x24x4xbf16>
    %c0 = arith.constant 0 : index
    %c0_0 = arith.constant 0 : index
    %c0_1 = arith.constant 0 : index
    %c0_2 = arith.constant 0 : index
    %1 = vector.load %arg9[%c0, %c0_0, %c0_1, %c0_2] : memref<1x18x24x4xbf16, #tpu.memory_space<vmem>>, vector<1x1x24x4xbf16>
    tpu.vector_store %arg9[%c0, %c0_0, %c0_1, %c0_2], %0 {strides = array<i32>} : memref<1x18x24x4xbf16, #tpu.memory_space<vmem>>, vector<1x1x24x4xbf16>,
    %c0_3 = arith.constant 0 : index
    %c17 = arith.constant 17 : index
    %c0_4 = arith.constant 0 : index
    %c0_5 = arith.constant 0 : index
    %2 = vector.load %arg9[%c0_3, %c17, %c0_4, %c0_5] : memref<1x18x24x4xbf16, #tpu.memory_space<vmem>>, vector<1x1x24x4xbf16>
    tpu.vector_store %arg9[%c0_3, %c17, %c0_4, %c0_5], %0 {strides = array<i32>} : memref<1x18x24x4xbf16, #tpu.memory_space<vmem>>, vector<1x1x24x4xbf16>,
    %cst_6 = arith.constant 0.000000e+00 : bf16
    %3 = vector.broadcast %cst_6 : bf16 to vector<1x18x1x4xbf16>
    %c0_7 = arith.constant 0 : index
    %c0_8 = arith.constant 0 : index
    %c0_9 = arith.constant 0 : index
    %c0_10 = arith.constant 0 : index
    %4 = vector.load %arg9[%c0_7, %c0_8, %c0_9, %c0_10] : memref<1x18x24x4xbf16, #tpu.memory_space<vmem>>, vector<1x18x1x4xbf16>
    tpu.vector_store %arg9[%c0_7, %c0_8, %c0_9, %c0_10], %3 {strides = array<i32>} : memref<1x18x24x4xbf16, #tpu.memory_space<vmem>>, vector<1x18x1x4xbf16>,
    %c0_11 = arith.constant 0 : index
    %c0_12 = arith.constant 0 : index
    %c17_13 = arith.constant 17 : index
    %c0_14 = arith.constant 0 : index
    %5 = vector.load %arg9[%c0_11, %c0_12, %c17_13, %c0_14] : memref<1x18x24x4xbf16, #tpu.memory_space<vmem>>, vector<1x18x1x4xbf16>
    tpu.vector_store %arg9[%c0_11, %c0_12, %c17_13, %c0_14], %3 {strides = array<i32>} : memref<1x18x24x4xbf16, #tpu.memory_space<vmem>>, vector<1x18x1x4xbf16>,
    %cst_15 = arith.constant 0.000000e+00 : bf16
    %6 = vector.broadcast %cst_15 : bf16 to vector<1x1x24x128xbf16>
    %c0_16 = arith.constant 0 : index
    %c0_17 = arith.constant 0 : index
    %c0_18 = arith.constant 0 : index
    %c0_19 = arith.constant 0 : index
    %7 = vector.load %arg10[%c0_16, %c0_17, %c0_18, %c0_19] : memref<1x18x24x128xbf16, #tpu.memory_space<vmem>>, vector<1x1x24x128xbf16>
    tpu.vector_store %arg10[%c0_16, %c0_17, %c0_18, %c0_19], %6 {strides = array<i32>} : memref<1x18x24x128xbf16, #tpu.memory_space<vmem>>, vector<1x1x24x128xbf16>,
    %c0_20 = arith.constant 0 : index
    %c17_21 = arith.constant 17 : index
    %c0_22 = arith.constant 0 : index
    %c0_23 = arith.constant 0 : index
    %8 = vector.load %arg10[%c0_20, %c17_21, %c0_22, %c0_23] : memref<1x18x24x128xbf16, #tpu.memory_space<vmem>>, vector<1x1x24x128xbf16>
    tpu.vector_store %arg10[%c0_20, %c17_21, %c0_22, %c0_23], %6 {strides = array<i32>} : memref<1x18x24x128xbf16, #tpu.memory_space<vmem>>, vector<1x1x24x128xbf16>,
    %cst_24 = arith.constant 0.000000e+00 : bf16
    %9 = vector.broadcast %cst_24 : bf16 to vector<1x18x1x128xbf16>
    %c0_25 = arith.constant 0 : index
    %c0_26 = arith.constant 0 : index
    %c0_27 = arith.constant 0 : index
    %c0_28 = arith.constant 0 : index
    %10 = vector.load %arg10[%c0_25, %c0_26, %c0_27, %c0_28] : memref<1x18x24x128xbf16, #tpu.memory_space<vmem>>, vector<1x18x1x128xbf16>
    tpu.vector_store %arg10[%c0_25, %c0_26, %c0_27, %c0_28], %9 {strides = array<i32>} : memref<1x18x24x128xbf16, #tpu.memory_space<vmem>>, vector<1x18x1x128xbf16>,
    %c0_29 = arith.constant 0 : index
    %c0_30 = arith.constant 0 : index
    %c17_31 = arith.constant 17 : index
    %c0_32 = arith.constant 0 : index
    %11 = vector.load %arg10[%c0_29, %c0_30, %c17_31, %c0_32] : memref<1x18x24x128xbf16, #tpu.memory_space<vmem>>, vector<1x18x1x128xbf16>
    tpu.vector_store %arg10[%c0_29, %c0_30, %c17_31, %c0_32], %9 {strides = array<i32>} : memref<1x18x24x128xbf16, #tpu.memory_space<vmem>>, vector<1x18x1x128xbf16>,
    %c0_33 = arith.constant 0 : index
    %c0_34 = arith.constant 0 : index
    %c0_35 = arith.constant 0 : index
    %c0_36 = arith.constant 0 : index
    %12 = vector.load %arg1[%c0_33, %c0_34, %c0_35, %c0_36] : memref<1x16x16x4xbf16, #tpu.memory_space<vmem>>, vector<1x16x16x4xbf16>
    %c0_37 = arith.constant 0 : index
    %c1 = arith.constant 1 : index
    %c1_38 = arith.constant 1 : index
    %c0_39 = arith.constant 0 : index
    %13 = vector.load %arg9[%c0_37, %c1, %c1_38, %c0_39] : memref<1x18x24x4xbf16, #tpu.memory_space<vmem>>, vector<1x16x16x4xbf16>
    tpu.vector_store %arg9[%c0_37, %c1, %c1_38, %c0_39], %12 {strides = array<i32>} : memref<1x18x24x4xbf16, #tpu.memory_space<vmem>>, vector<1x16x16x4xbf16>,
    %c0_40 = arith.constant 0 : index
    %c0_41 = arith.constant 0 : index
    %c0_42 = arith.constant 0 : index
    %c0_43 = arith.constant 0 : index
    %14 = vector.load %arg9[%c0_40, %c0_41, %c0_42, %c0_43] : memref<1x18x24x4xbf16, #tpu.memory_space<vmem>>, vector<1x16x16x4xbf16>
    %15 = vector.shape_cast %14 : vector<1x16x16x4xbf16> to vector<256x4xbf16>
    %c0_44 = arith.constant 0 : index
    %c0_45 = arith.constant 0 : index
    %c1_46 = arith.constant 1 : index
    %c0_47 = arith.constant 0 : index
    %16 = vector.load %arg9[%c0_44, %c0_45, %c1_46, %c0_47] : memref<1x18x24x4xbf16, #tpu.memory_space<vmem>>, vector<1x16x16x4xbf16>
    %17 = vector.shape_cast %16 : vector<1x16x16x4xbf16> to vector<256x4xbf16>
    %c0_48 = arith.constant 0 : index
    %c0_49 = arith.constant 0 : index
    %c2 = arith.constant 2 : index
    %c0_50 = arith.constant 0 : index
    %18 = vector.load %arg9[%c0_48, %c0_49, %c2, %c0_50] : memref<1x18x24x4xbf16, #tpu.memory_space<vmem>>, vector<1x16x16x4xbf16>
    %19 = vector.shape_cast %18 : vector<1x16x16x4xbf16> to vector<256x4xbf16>
    %20 = tpu.concatenate %15, %17, %19 in 1 : vector<256x4xbf16>, vector<256x4xbf16>, vector<256x4xbf16> -> vector<256x12xbf16>
    %c0_51 = arith.constant 0 : index
    %c0_52 = arith.constant 0 : index
    %c0_53 = arith.constant 0 : index
    %21 = vector.load %arg2[%c0_51, %c0_52, %c0_53] : memref<3x12x128xbf16, #tpu.memory_space<vmem>>, vector<1x12x128xbf16>
    %22 = vector.shape_cast %21 : vector<1x12x128xbf16> to vector<12x128xbf16>
    %cst_54 = arith.constant dense<0.000000e+00> : vector<256x128xf32>
    %23 = tpu.matmul %20, %22, %cst_54 {dimension_numbers = #tpu.dot_dimension_numbers<[1], [0], [0], [1], [0, 0, 1, 1], [], []>} : vector<256x12xbf16>, vector<12x128xbf16>, vector<256x128xf32> -> vector<256x128xf32>
    %c0_55 = arith.constant 0 : index
    %c1_56 = arith.constant 1 : index
    %c0_57 = arith.constant 0 : index
    %c0_58 = arith.constant 0 : index
    %24 = vector.load %arg9[%c0_55, %c1_56, %c0_57, %c0_58] : memref<1x18x24x4xbf16, #tpu.memory_space<vmem>>, vector<1x16x16x4xbf16>
    %25 = vector.shape_cast %24 : vector<1x16x16x4xbf16> to vector<256x4xbf16>
    %c0_59 = arith.constant 0 : index
    %c1_60 = arith.constant 1 : index
    %c1_61 = arith.constant 1 : index
    %c0_62 = arith.constant 0 : index
    %26 = vector.load %arg9[%c0_59, %c1_60, %c1_61, %c0_62] : memref<1x18x24x4xbf16, #tpu.memory_space<vmem>>, vector<1x16x16x4xbf16>
    %27 = vector.shape_cast %26 : vector<1x16x16x4xbf16> to vector<256x4xbf16>
    %c0_63 = arith.constant 0 : index
    %c1_64 = arith.constant 1 : index
    %c2_65 = arith.constant 2 : index
    %c0_66 = arith.constant 0 : index
    %28 = vector.load %arg9[%c0_63, %c1_64, %c2_65, %c0_66] : memref<1x18x24x4xbf16, #tpu.memory_space<vmem>>, vector<1x16x16x4xbf16>
    %29 = vector.shape_cast %28 : vector<1x16x16x4xbf16> to vector<256x4xbf16>
    %30 = tpu.concatenate %25, %27, %29 in 1 : vector<256x4xbf16>, vector<256x4xbf16>, vector<256x4xbf16> -> vector<256x12xbf16>
    %c1_67 = arith.constant 1 : index
    %c0_68 = arith.constant 0 : index
    %c0_69 = arith.constant 0 : index
    %31 = vector.load %arg2[%c1_67, %c0_68, %c0_69] : memref<3x12x128xbf16, #tpu.memory_space<vmem>>, vector<1x12x128xbf16>
    %32 = vector.shape_cast %31 : vector<1x12x128xbf16> to vector<12x128xbf16>
    %cst_70 = arith.constant dense<0.000000e+00> : vector<256x128xf32>
    %33 = tpu.matmul %30, %32, %cst_70 {dimension_numbers = #tpu.dot_dimension_numbers<[1], [0], [0], [1], [0, 0, 1, 1], [], []>} : vector<256x12xbf16>, vector<12x128xbf16>, vector<256x128xf32> -> vector<256x128xf32>
    %34 = arith.addf %23, %33 : vector<256x128xf32>
    %c0_71 = arith.constant 0 : index
    %c2_72 = arith.constant 2 : index
    %c0_73 = arith.constant 0 : index
    %c0_74 = arith.constant 0 : index
    %35 = vector.load %arg9[%c0_71, %c2_72, %c0_73, %c0_74] : memref<1x18x24x4xbf16, #tpu.memory_space<vmem>>, vector<1x16x16x4xbf16>
    %36 = vector.shape_cast %35 : vector<1x16x16x4xbf16> to vector<256x4xbf16>
    %c0_75 = arith.constant 0 : index
    %c2_76 = arith.constant 2 : index
    %c1_77 = arith.constant 1 : index
    %c0_78 = arith.constant 0 : index
    %37 = vector.load %arg9[%c0_75, %c2_76, %c1_77, %c0_78] : memref<1x18x24x4xbf16, #tpu.memory_space<vmem>>, vector<1x16x16x4xbf16>
    %38 = vector.shape_cast %37 : vector<1x16x16x4xbf16> to vector<256x4xbf16>
    %c0_79 = arith.constant 0 : index
    %c2_80 = arith.constant 2 : index
    %c2_81 = arith.constant 2 : index
    %c0_82 = arith.constant 0 : index
    %39 = vector.load %arg9[%c0_79, %c2_80, %c2_81, %c0_82] : memref<1x18x24x4xbf16, #tpu.memory_space<vmem>>, vector<1x16x16x4xbf16>
    %40 = vector.shape_cast %39 : vector<1x16x16x4xbf16> to vector<256x4xbf16>
    %41 = tpu.concatenate %36, %38, %40 in 1 : vector<256x4xbf16>, vector<256x4xbf16>, vector<256x4xbf16> -> vector<256x12xbf16>
    %c2_83 = arith.constant 2 : index
    %c0_84 = arith.constant 0 : index
    %c0_85 = arith.constant 0 : index
    %42 = vector.load %arg2[%c2_83, %c0_84, %c0_85] : memref<3x12x128xbf16, #tpu.memory_space<vmem>>, vector<1x12x128xbf16>
    %43 = vector.shape_cast %42 : vector<1x12x128xbf16> to vector<12x128xbf16>
    %cst_86 = arith.constant dense<0.000000e+00> : vector<256x128xf32>
    %44 = tpu.matmul %41, %43, %cst_86 {dimension_numbers = #tpu.dot_dimension_numbers<[1], [0], [0], [1], [0, 0, 1, 1], [], []>} : vector<256x12xbf16>, vector<12x128xbf16>, vector<256x128xf32> -> vector<256x128xf32>
    %45 = arith.addf %34, %44 : vector<256x128xf32>
    %c0_87 = arith.constant 0 : index
    %c0_88 = arith.constant 0 : index
    %46 = vector.load %arg3[%c0_87, %c0_88] : memref<1x128xf32, #tpu.memory_space<vmem>>, vector<1x128xf32>
    %47 = vector.broadcast %46 : vector<1x128xf32> to vector<256x128xf32>
    %48 = arith.mulf %45, %47 : vector<256x128xf32>
    %c0_89 = arith.constant 0 : index
    %c0_90 = arith.constant 0 : index
    %49 = vector.load %arg4[%c0_89, %c0_90] : memref<1x128xf32, #tpu.memory_space<vmem>>, vector<1x128xf32>
    %50 = vector.broadcast %49 : vector<1x128xf32> to vector<256x128xf32>
    %51 = arith.addf %48, %50 : vector<256x128xf32>
    %cst_91 = arith.constant 0.000000e+00 : f32
    %52 = vector.broadcast %cst_91 : f32 to vector<256x128xf32>
    %53 = arith.maximumf %51, %52 : vector<256x128xf32>
    %54 = vector.shape_cast %53 : vector<256x128xf32> to vector<1x16x16x128xf32>
    %55 = arith.truncf %54 : vector<1x16x16x128xf32> to vector<1x16x16x128xbf16>
    %c0_92 = arith.constant 0 : index
    %c1_93 = arith.constant 1 : index
    %c1_94 = arith.constant 1 : index
    %c0_95 = arith.constant 0 : index
    %56 = vector.load %arg10[%c0_92, %c1_93, %c1_94, %c0_95] : memref<1x18x24x128xbf16, #tpu.memory_space<vmem>>, vector<1x16x16x128xbf16>
    tpu.vector_store %arg10[%c0_92, %c1_93, %c1_94, %c0_95], %55 {strides = array<i32>} : memref<1x18x24x128xbf16, #tpu.memory_space<vmem>>, vector<1x16x16x128xbf16>,
    %c0_96 = arith.constant 0 : index
    %c0_97 = arith.constant 0 : index
    %c0_98 = arith.constant 0 : index
    %c0_99 = arith.constant 0 : index
    %57 = vector.load %arg10[%c0_96, %c0_97, %c0_98, %c0_99] : memref<1x18x24x128xbf16, #tpu.memory_space<vmem>>, vector<1x16x16x128xbf16>
    %58 = vector.shape_cast %57 : vector<1x16x16x128xbf16> to vector<256x128xbf16>
    %c0_100 = arith.constant 0 : index
    %c0_101 = arith.constant 0 : index
    %c1_102 = arith.constant 1 : index
    %c0_103 = arith.constant 0 : index
    %59 = vector.load %arg10[%c0_100, %c0_101, %c1_102, %c0_103] : memref<1x18x24x128xbf16, #tpu.memory_space<vmem>>, vector<1x16x16x128xbf16>
    %60 = vector.shape_cast %59 : vector<1x16x16x128xbf16> to vector<256x128xbf16>
    %c0_104 = arith.constant 0 : index
    %c0_105 = arith.constant 0 : index
    %c2_106 = arith.constant 2 : index
    %c0_107 = arith.constant 0 : index
    %61 = vector.load %arg10[%c0_104, %c0_105, %c2_106, %c0_107] : memref<1x18x24x128xbf16, #tpu.memory_space<vmem>>, vector<1x16x16x128xbf16>
    %62 = vector.shape_cast %61 : vector<1x16x16x128xbf16> to vector<256x128xbf16>
    %63 = tpu.concatenate %58, %60, %62 in 1 : vector<256x128xbf16>, vector<256x128xbf16>, vector<256x128xbf16> -> vector<256x384xbf16>
    %c0_108 = arith.constant 0 : index
    %c0_109 = arith.constant 0 : index
    %c0_110 = arith.constant 0 : index
    %64 = vector.load %arg5[%c0_108, %c0_109, %c0_110] : memref<3x384x128xbf16, #tpu.memory_space<vmem>>, vector<1x384x128xbf16>
    %65 = vector.shape_cast %64 : vector<1x384x128xbf16> to vector<384x128xbf16>
    %cst_111 = arith.constant dense<0.000000e+00> : vector<256x128xf32>
    %66 = tpu.matmul %63, %65, %cst_111 {dimension_numbers = #tpu.dot_dimension_numbers<[1], [0], [0], [1], [0, 0, 1, 1], [], []>} : vector<256x384xbf16>, vector<384x128xbf16>, vector<256x128xf32> -> vector<256x128xf32>
    %c0_112 = arith.constant 0 : index
    %c1_113 = arith.constant 1 : index
    %c0_114 = arith.constant 0 : index
    %c0_115 = arith.constant 0 : index
    %67 = vector.load %arg10[%c0_112, %c1_113, %c0_114, %c0_115] : memref<1x18x24x128xbf16, #tpu.memory_space<vmem>>, vector<1x16x16x128xbf16>
    %68 = vector.shape_cast %67 : vector<1x16x16x128xbf16> to vector<256x128xbf16>
    %c0_116 = arith.constant 0 : index
    %c1_117 = arith.constant 1 : index
    %c1_118 = arith.constant 1 : index
    %c0_119 = arith.constant 0 : index
    %69 = vector.load %arg10[%c0_116, %c1_117, %c1_118, %c0_119] : memref<1x18x24x128xbf16, #tpu.memory_space<vmem>>, vector<1x16x16x128xbf16>
    %70 = vector.shape_cast %69 : vector<1x16x16x128xbf16> to vector<256x128xbf16>
    %c0_120 = arith.constant 0 : index
    %c1_121 = arith.constant 1 : index
    %c2_122 = arith.constant 2 : index
    %c0_123 = arith.constant 0 : index
    %71 = vector.load %arg10[%c0_120, %c1_121, %c2_122, %c0_123] : memref<1x18x24x128xbf16, #tpu.memory_space<vmem>>, vector<1x16x16x128xbf16>
    %72 = vector.shape_cast %71 : vector<1x16x16x128xbf16> to vector<256x128xbf16>
    %73 = tpu.concatenate %68, %70, %72 in 1 : vector<256x128xbf16>, vector<256x128xbf16>, vector<256x128xbf16> -> vector<256x384xbf16>
    %c1_124 = arith.constant 1 : index
    %c0_125 = arith.constant 0 : index
    %c0_126 = arith.constant 0 : index
    %74 = vector.load %arg5[%c1_124, %c0_125, %c0_126] : memref<3x384x128xbf16, #tpu.memory_space<vmem>>, vector<1x384x128xbf16>
    %75 = vector.shape_cast %74 : vector<1x384x128xbf16> to vector<384x128xbf16>
    %cst_127 = arith.constant dense<0.000000e+00> : vector<256x128xf32>
    %76 = tpu.matmul %73, %75, %cst_127 {dimension_numbers = #tpu.dot_dimension_numbers<[1], [0], [0], [1], [0, 0, 1, 1], [], []>} : vector<256x384xbf16>, vector<384x128xbf16>, vector<256x128xf32> -> vector<256x128xf32>
    %77 = arith.addf %66, %76 : vector<256x128xf32>
    %c0_128 = arith.constant 0 : index
    %c2_129 = arith.constant 2 : index
    %c0_130 = arith.constant 0 : index
    %c0_131 = arith.constant 0 : index
    %78 = vector.load %arg10[%c0_128, %c2_129, %c0_130, %c0_131] : memref<1x18x24x128xbf16, #tpu.memory_space<vmem>>, vector<1x16x16x128xbf16>
    %79 = vector.shape_cast %78 : vector<1x16x16x128xbf16> to vector<256x128xbf16>
    %c0_132 = arith.constant 0 : index
    %c2_133 = arith.constant 2 : index
    %c1_134 = arith.constant 1 : index
    %c0_135 = arith.constant 0 : index
    %80 = vector.load %arg10[%c0_132, %c2_133, %c1_134, %c0_135] : memref<1x18x24x128xbf16, #tpu.memory_space<vmem>>, vector<1x16x16x128xbf16>
    %81 = vector.shape_cast %80 : vector<1x16x16x128xbf16> to vector<256x128xbf16>
    %c0_136 = arith.constant 0 : index
    %c2_137 = arith.constant 2 : index
    %c2_138 = arith.constant 2 : index
    %c0_139 = arith.constant 0 : index
    %82 = vector.load %arg10[%c0_136, %c2_137, %c2_138, %c0_139] : memref<1x18x24x128xbf16, #tpu.memory_space<vmem>>, vector<1x16x16x128xbf16>
    %83 = vector.shape_cast %82 : vector<1x16x16x128xbf16> to vector<256x128xbf16>
    %84 = tpu.concatenate %79, %81, %83 in 1 : vector<256x128xbf16>, vector<256x128xbf16>, vector<256x128xbf16> -> vector<256x384xbf16>
    %c2_140 = arith.constant 2 : index
    %c0_141 = arith.constant 0 : index
    %c0_142 = arith.constant 0 : index
    %85 = vector.load %arg5[%c2_140, %c0_141, %c0_142] : memref<3x384x128xbf16, #tpu.memory_space<vmem>>, vector<1x384x128xbf16>
    %86 = vector.shape_cast %85 : vector<1x384x128xbf16> to vector<384x128xbf16>
    %cst_143 = arith.constant dense<0.000000e+00> : vector<256x128xf32>
    %87 = tpu.matmul %84, %86, %cst_143 {dimension_numbers = #tpu.dot_dimension_numbers<[1], [0], [0], [1], [0, 0, 1, 1], [], []>} : vector<256x384xbf16>, vector<384x128xbf16>, vector<256x128xf32> -> vector<256x128xf32>
    %88 = arith.addf %77, %87 : vector<256x128xf32>
    %c0_144 = arith.constant 0 : index
    %c0_145 = arith.constant 0 : index
    %89 = vector.load %arg6[%c0_144, %c0_145] : memref<1x128xf32, #tpu.memory_space<vmem>>, vector<1x128xf32>
    %90 = vector.broadcast %89 : vector<1x128xf32> to vector<256x128xf32>
    %91 = arith.mulf %88, %90 : vector<256x128xf32>
    %c0_146 = arith.constant 0 : index
    %c0_147 = arith.constant 0 : index
    %92 = vector.load %arg7[%c0_146, %c0_147] : memref<1x128xf32, #tpu.memory_space<vmem>>, vector<1x128xf32>
    %93 = vector.broadcast %92 : vector<1x128xf32> to vector<256x128xf32>
    %94 = arith.addf %91, %93 : vector<256x128xf32>
    %cst_148 = arith.constant 0.000000e+00 : f32
    %95 = vector.broadcast %cst_148 : f32 to vector<256x128xf32>
    %96 = arith.maximumf %94, %95 : vector<256x128xf32>
    %97 = vector.shape_cast %96 : vector<256x128xf32> to vector<1x16x16x128xf32>
    %98 = vector.extract_strided_slice %97 {offsets = [0, 0, 0, 0], sizes = [1, 16, 16, 8], strides = [1, 1, 1, 1]} : vector<1x16x16x128xf32> to vector<1x16x16x8xf32>
    %c0_149 = arith.constant 0 : index
    %c0_150 = arith.constant 0 : index
    %c0_151 = arith.constant 0 : index
    %c0_152 = arith.constant 0 : index
    %99 = vector.load %arg8[%c0_149, %c0_150, %c0_151, %c0_152] : memref<1x16x16x8xf32, #tpu.memory_space<vmem>>, vector<1x16x16x8xf32>
    tpu.vector_store %arg8[%c0_149, %c0_150, %c0_151, %c0_152], %98 {strides = array<i32>} : memref<1x16x16x8xf32, #tpu.memory_space<vmem>>, vector<1x16x16x8xf32>,
    return
  }
  func.func @transform_0(%arg0: i32) -> (i32, i32, i32, i32) {
    %c0_i32 = arith.constant 0 : i32
    %c0_i32_0 = arith.constant 0 : i32
    %c0_i32_1 = arith.constant 0 : i32
    %c0_i32_2 = arith.constant 0 : i32
    return %arg0, %c0_i32, %c0_i32_0, %c0_i32_1 : i32, i32, i32, i32
  }
  func.func @transform_1(%arg0: i32) -> (i32, i32, i32) {
    %c0_i32 = arith.constant 0 : i32
    %c0_i32_0 = arith.constant 0 : i32
    %c0_i32_1 = arith.constant 0 : i32
    %c0_i32_2 = arith.constant 0 : i32
    return %c0_i32, %c0_i32_0, %c0_i32_1 : i32, i32, i32
  }
  func.func @transform_2(%arg0: i32) -> (i32, i32) {
    %c0_i32 = arith.constant 0 : i32
    %c0_i32_0 = arith.constant 0 : i32
    %c0_i32_1 = arith.constant 0 : i32
    return %c0_i32, %c0_i32_0 : i32, i32
  }
  func.func @transform_3(%arg0: i32) -> (i32, i32) {
    %c0_i32 = arith.constant 0 : i32
    %c0_i32_0 = arith.constant 0 : i32
    %c0_i32_1 = arith.constant 0 : i32
    return %c0_i32, %c0_i32_0 : i32, i32
  }
  func.func @transform_4(%arg0: i32) -> (i32, i32, i32) {
    %c0_i32 = arith.constant 0 : i32
    %c0_i32_0 = arith.constant 0 : i32
    %c0_i32_1 = arith.constant 0 : i32
    %c0_i32_2 = arith.constant 0 : i32
    return %c0_i32, %c0_i32_0, %c0_i32_1 : i32, i32, i32
  }
  func.func @transform_5(%arg0: i32) -> (i32, i32) {
    %c0_i32 = arith.constant 0 : i32
    %c0_i32_0 = arith.constant 0 : i32
    %c0_i32_1 = arith.constant 0 : i32
    return %c0_i32, %c0_i32_0 : i32, i32
  }
  func.func @transform_6(%arg0: i32) -> (i32, i32) {
    %c0_i32 = arith.constant 0 : i32
    %c0_i32_0 = arith.constant 0 : i32
    %c0_i32_1 = arith.constant 0 : i32
    return %c0_i32, %c0_i32_0 : i32, i32
  }
  func.func @transform_7(%arg0: i32) -> (i32, i32, i32, i32) {
    %c0_i32 = arith.constant 0 : i32
    %c0_i32_0 = arith.constant 0 : i32
    %c0_i32_1 = arith.constant 0 : i32
    %c0_i32_2 = arith.constant 0 : i32
    return %arg0, %c0_i32, %c0_i32_0, %c0_i32_1 : i32, i32, i32, i32
  }
}

</mosaic_0001>

<bundles_post_ra>
// kernel: a_call__.1
= control target key start
LH: loop header
LB: loop body
LE: loop exit
PB: predicated region body
PF: predicated region fallthrough
CT: control target
= control target key end

     0   :  { %12 = vsyncpa [#allocation5], 0  ;;  %s9989_s24 = smov 0   ;;  %s13459_s0 = inlined_call_operand.vmem [shape: bf16[2,16,16,4], index: 0, kind: input, shape index: {}]   ;;  %s13460_s1 = inlined_call_operand.vmem [shape: bf16[3,12,128], index: 1, kind: input, shape index: {}]   ;;  %s13461_s2 = inlined_call_operand.vmem [shape: f32[1,128], index: 2, kind: input, shape index: {}]   ;;  %s13462_s3 = inlined_call_operand.vmem [shape: f32[1,128], index: 3, kind: input, shape index: {}]   ;;  %s13463_s4 = inlined_call_operand.hbm [shape: bf16[3,384,128], index: 4, kind: input, shape index: {}]   ;;  %s13464_s5 = inlined_call_operand.vmem [shape: f32[1,128], index: 5, kind: input, shape index: {}]   ;;  %s13465_s6 = inlined_call_operand.vmem [shape: f32[1,128], index: 6, kind: input, shape index: {}]   ;;  %s13466_s7 = inlined_call_operand.vmem [shape: f32[2,16,16,8], index: 7, kind: output, shape index: {}]  }
   0x1 LB: > { %s221_s27 = sshll.u32 %s13463_s4, 4  ;;  %s8813_s28 = sadd.s32 4294967295, %s9941_s24   ;;  %s9941_s24 = sphi %s9989_s24, %s18_s24   ;;  %s222_s27 = int_to_ptr.hbm [resolvable:$true] %s221_s27 }
   0x2   : > { %p8815_p0 = scmp.ge.s32.totalorder %s9941_s24, 1  ;;  %p201_p1 = scmp.lt.s32.totalorder %s9941_s24, 3 }
   0x3   : > { %p9847_p2 = scmp.eq.s32.totalorder %s8813_s28, 0  ;;  %s9943_s29 = smov [#allocation4]  }
   0x4   : > { %p202_p3 = pnand %p8815_p0, %p201_p1  ;;  %s223_s30 = sshll.u32 %s9943_s29, 4  ;;  %s224_s30 = int_to_ptr.vmem [resolvable:$true] %s223_s30 }
   0x5   : > { %s9944_s8 = smov 64   ;;  %s9945_s9 = smov 4  }
   0x6   : > { %p9843_p4 = pneg %p202_p3  ;;  %253 = sbr.rel (%p202_p3) target bundleno = 1369 (0x559), region = 48 }
   0x8   : > { %p9844_p5 = pnand %p9847_p2, %p9843_p4 }
   0xa   : > { %9846 = dma.hbm_to_vmem [thread:$0]  (!%p9844_p5), %s222_s27, 9216, %s224_s30, [#allocation5], %s9944_s8, %s9944_s8, %s9945_s9  }
   0xb   : > { %9936 = dma.done.wait (%p9847_p2), [#allocation5], 9216  }
   0xc   : > { %9938 = vsyncadd (%p9847_p2), [#allocation5], 4294958080  ;;  %vm297_vm0 = vcmask 27648   ;;  %v9946_v0 = vmov 0   ;;  %vm305_vm1 = vcmask 24576   ;;  %p286_p6 = scmp.lt.s32.totalorder %s8813_s28, 1 }
   0xd   : > { %298 = vst.msk [vmem:[#allocation2] sm:$0xf] %vm297_vm0, %v9946_v0  ;;  %vm306_vm2 = vsmask.f32 256  ;;  %vm362_vm3 = vsmask.f32 7938 }
   0xe   : > { %299 = vst.msk [vmem:[#allocation2 + $0x4] sm:$0xf] %vm297_vm0, %v9946_v0  ;;  %s13578_s28 = smov (!%p286_p6, %s8813_s28), 1  ;;  %vm10008_vm4 = vmand %vm305_vm1, %vm306_vm2  ;;  %v314_v4 = vld [vmem:[#allocation2 + $0x18] sm:$0x1]  ;;  %vm1504_vm12 = vcmask 1042432  }
   0xf   : > { %300 = vst.msk [vmem:[#allocation2 + $0x8] sm:$0xf] %vm297_vm0, %v9946_v0  ;;  %s9658_s10 = sshll.u32 %s13578_s28, 7  ;;  %vm10015_vm5 = vmand %vm305_vm1, %vm362_vm3  ;;  %vm1053_vm6 = vsmask.f32 3328  ;;  %v315_v14 = vsel %vm10008_vm4, 0, %v314_v4 }
  0x10   : > { %302 = vst.msk [vmem:[#allocation2 + $0xcc] sm:$0xf] %vm297_vm0, %v9946_v0  ;;  %vm1054_vm7 = vsmask.f32 7440  ;;  %s10028_s13 = scalar_lea.vmem %s13459_s0, %s9658_s10  ;;  %v370_v11 = vld [vmem:[#allocation2 + $0x20] sm:$0x1]  ;;  %vm10058_vm10 = vmand %vm297_vm0, %vm362_vm3 }
  0x11   : > { %303 = vst.msk [vmem:[#allocation2 + $0xd0] sm:$0xf] %vm297_vm0, %v9946_v0  ;;  %v371_v15 = vsel %vm10015_vm5, 0, %v370_v11  ;;  %v538_v16 = vld [vmem:[%s10028_s13 + $0x8] sm:$0xf]  ;;  %vm10064_vm11 = vmor %vm1053_vm6, %vm1054_vm7  ;;  %vm1505_vm13 = vcmask 1046532  }
  0x12   : > { %304 = vst.msk [vmem:[#allocation2 + $0xd4] sm:$0xf] %vm297_vm0, %v9946_v0  ;;  %v539_v17 = vld [vmem:[%s10028_s13 + $0xc] sm:$0xf]  ;;  %vm568_vm8 = vsmask.f32 4368  ;;  %vm10106_vm14 = vmor %vm1504_vm12, %vm1505_vm13 }
  0x13   : > { %418 = vst [vmem:[#allocation3] sm:$0xf] %v9946_v0  ;;  %v588_v19 = vshrl.u32 %v538_v16, 16  ;;  %v596_v20 = vshrl.u32 %v539_v17, 16  ;;  %v591_v21 = vshll.u32 %v538_v16, 16  ;;  %v599_v22 = vshll.u32 %v539_v17, 16  ;;  %vm10045_vm9 = vmor %vm306_vm2, %vm568_vm8 }
  0x14   : > { %v308_v2 = vld [vmem:[#allocation2] sm:$0x1]  ;;  %419 = vst [vmem:[#allocation3 + $0x4] sm:$0xf] %v9946_v0  ;;  %v311_v23 = vld [vmem:[#allocation2 + $0xc] sm:$0x1] }
  0x15   : > { %v309_v5 = vsel %vm10008_vm4, 0, %v308_v2  ;;  %v10021_v6 = vld [vmem:[#allocation2 + $0x4] sm:$0xf]  ;;  %420 = vst [vmem:[#allocation3 + $0x8] sm:$0xf] %v9946_v0  ;;  %v590_v24 = vrot.slane %v588_v19, 7 }
  0x16   : > { %310 = vst [vmem:[#allocation2] sm:$0x1] %v309_v5  ;;  %v364_v7 = vld [vmem:[#allocation2 + $0x8] sm:$0x1]  ;;  %v1066_v8 = vshll.u32 %v10021_v6, 16  ;;  %v1070_v9 = vshrl.u32 %v10021_v6, 16 }
  0x17   : > { %v365_v10 = vsel %vm10015_vm5, 0, %v364_v7  ;;  %422 = vst [vmem:[#allocation3 + $0xcc] sm:$0xf] %v9946_v0  ;;  %v598_v25 = vrot.slane %v596_v20, 7  ;;  %v312_v26 = vsel %vm10008_vm4, 0, %v311_v23  ;;  %v594_v33 = vrot.slane %v590_v24, 4 }
  0x18   : > { %366 = vst [vmem:[#allocation2 + $0x8] sm:$0x1] %v365_v10  ;;  %v10032_v12 = vrot.slane %v1066_v8, 5  ;;  %v1072_v13 = vrot.slane %v1070_v9, 4  ;;  %v367_v28 = vld [vmem:[#allocation2 + $0x14] sm:$0x1]  ;;  %v593_v36 = vor.u32 %v591_v21, %v590_v24 }
  0x19   : > { %423 = vst [vmem:[#allocation3 + $0xd0] sm:$0xf] %v9946_v0  ;;  %v536_v34 = vld [vmem:[%s10028_s13] sm:$0xf]  ;;  %v601_v37 = vor.u32 %v599_v22, %v598_v25  ;;  %v603_v38 = vrot.slane %v598_v25, 4  ;;  %v368_v39 = vsel %vm10015_vm5, 0, %v367_v28 }
  0x1a   : > { %v1073_v18 = vor.u32 %v1072_v13, %v10032_v12  ;;  %424 = vst [vmem:[#allocation3 + $0xd4] sm:$0xf] %v9946_v0  ;;  %v537_v40 = vld [vmem:[%s10028_s13 + $0x4] sm:$0xf]  ;;  %v571_v45 = vshrl.u32 %v536_v34, 16  ;;  %v574_v48 = vshll.u32 %v536_v34, 16 }
  0x1b   : > { %316 = vst [vmem:[#allocation2 + $0x18] sm:$0x1] %v315_v14  ;;  %v602_v47 = vsel %vm10045_vm9, %v594_v33, %v601_v37  ;;  %v579_v49 = vshrl.u32 %v537_v40, 16  ;;  %v582_v50 = vshll.u32 %v537_v40, 16  ;;  %v317_v58 = vld [vmem:[#allocation2 + $0x24] sm:$0x1] }
  0x1c   : > { %372 = vst [vmem:[#allocation2 + $0x20] sm:$0x1] %v371_v15  ;;  %v1074_v31 = vrot.slane %v1073_v18, 4  ;;  %v573_v54 = vrot.slane %v571_v45, 7  ;;  %v373_v7 = vld [vmem:[#allocation2 + $0x2c] sm:$0x1] }
  0x1d   : > { %v1005_v27 = vld [vmem:[#allocation2] sm:$0xf]  ;;  %313 = vst [vmem:[#allocation2 + $0xc] sm:$0x1] %v312_v26  ;;  %v581_v57 = vrot.slane %v579_v49, 7  ;;  %v318_v10 = vsel %vm10008_vm4, 0, %v317_v58 }
  0x1e   : > { %v1057_v29 = vshrl.u32 %v1005_v27, 16  ;;  %v1060_v30 = vshll.u32 %v1005_v27, 16  ;;  %369 = vst [vmem:[#allocation2 + $0x14] sm:$0x1] %v368_v39  ;;  %v576_v62 = vor.u32 %v574_v48, %v573_v54  ;;  %v577_v2 = vrot.slane %v573_v54, 4  ;;  %s9947_s14 = smov 4  }
  0x1f   : > { %v10050_v35 = vld [vmem:[#allocation2 + $0x8] sm:$0x1]  ;;  %903 = vst.msk [vmem:[#allocation2 + $0x1c] sm:$0xf] %vm297_vm0, %v602_v47  ;;  %v584_v4 = vor.u32 %v582_v50, %v581_v57  ;;  %v586_v5 = vrot.slane %v581_v57, 4  ;;  %v374_v17 = vsel %vm10015_vm5, 0, %v373_v7 }
  0x20   : > { %v1059_v41 = vrot.slane %v1057_v29, 4  ;;  %v1062_v42 = vrot.slane %v1060_v30, 5  ;;  %v1076_v43 = vshll.u32 %v10050_v35, 16  ;;  %v540_v11 = vld [vmem:[%s10028_s13 + $0x10] sm:$0xf]  ;;  %v1509_v25 = vrot.slane %v10021_v6, 5 }
  0x21   : > { %v10086_v13 = vld [vmem:[%s10028_s13 + $0x14] sm:$0xf]  ;;  %v585_v15 = vsel %vm10045_vm9, %v577_v2, %v584_v4  ;;  %v608_v19 = vshll.u32 %v540_v11, 16  ;;  %319 = vst [vmem:[#allocation2 + $0x24] sm:$0x1] %v318_v10  ;;  %s9948_s15 = smov 8  }
  0x22   : > { %v1063_v51 = vor.u32 %v1062_v42, %v1059_v41  ;;  %v1078_v52 = vrot.slane %v1076_v43, 5  ;;  %v900_v53 = vld [vmem:[#allocation2 + $0x18] sm:$0xf]  ;;  %896 = vst.msk [vmem:[#allocation2 + $0x10] sm:$0xf] %vm297_vm0, %v585_v15  ;;  %v613_v20 = vshrl.u32 %v10086_v13, 16 }
  0x23   : > { %v901_v55 = vsel %vm10058_vm10, %v593_v36, %v900_v53  ;;  %v904_v56 = vld [vmem:[#allocation2 + $0x20] sm:$0x1]  ;;  %v616_v21 = vshll.u32 %v10086_v13, 16  ;;  %375 = vst [vmem:[#allocation2 + $0x2c] sm:$0x1] %v374_v17  ;;  %vm1843_vm15 = vcmask 31744  }
  0x24   : > { %v1064_v59 = vrot.slane %v1063_v51, 4  ;;  %v1079_v60 = vsel %vm10064_vm11, %v1074_v31, %v1078_v52  ;;  %902 = vst [vmem:[#allocation2 + $0x18] sm:$0xf] %v901_v55  ;;  %v905_v61 = vsel %vm10008_vm4, %v603_v38, %v904_v56  ;;  %v893_v63 = vld [vmem:[#allocation2 + $0xc] sm:$0xf]  ;;  %v10100_v29 = vrot.slane %v613_v20, 7 }
  0x25   : > { %v1684_v0 = vunpack.c.l.b16 %v1079_v60  ;;  %906 = vst [vmem:[#allocation2 + $0x20] sm:$0x1] %v905_v61  ;;  %v894_v9 = vsel %vm10058_vm10, %v576_v62, %v893_v63  ;;  %v897_v16 = vld [vmem:[#allocation2 + $0x14] sm:$0x1]  ;;  %vm2880_vm1 = vcmask 1045504   ;;  %vm1892_vm6 = vcmask 64512  }
  0x26   : > { %v1069_v8 = vsel %vm10064_vm11, %v1064_v59, %v10032_v12  ;;  %895 = vst [vmem:[#allocation2 + $0xc] sm:$0xf] %v894_v9  ;;  %v605_v12 = vshrl.u32 %v540_v11, 16  ;;  %v898_v18 = vsel %vm10008_vm4, %v586_v5, %v897_v16  ;;  %v3104_v23 = vld [vmem:[#allocation2 + $0x1c] sm:$0xf]  ;;  %v618_v17 = vor.u32 %v616_v21, %v10100_v29  ;;  %s9659_s23 = sshll.u32 %s13578_s28, 8 }
  0x27   : > { %v1683_v14 = vunpack.c.l.b16 %v1069_v8  ;;  %899 = vst [vmem:[#allocation2 + $0x14] sm:$0x1] %v898_v18  ;;  %v3161_v26 = vshll.u32 %v3104_v23, 16  ;;  %v3165_v27 = vshrl.u32 %v3104_v23, 16  ;;  %v3601_v28 = vrot.slane %v3104_v23, 5  ;;  %s13185_s27 = scalar_lea.vmem %s13466_s7, %s9659_s23 }
  0x28   : > { %v10097_v24 = vrot.slane %v605_v12, 7  ;;  %v907_v8 = vld [vmem:[#allocation2 + $0x24] sm:$0xf]  ;;  %v620_v23 = vrot.slane %v10100_v29, 4  ;;  %vm2847_vm7 = vcmask 97280  }
  0x29   : > { %v1715_v22 = vpack.c.b16 %v1684_v0, %v1683_v14  ;;  %v3163_v37 = vrot.slane %v3161_v26, 5  ;;  %v3167_v38 = vrot.slane %v3165_v27, 4  ;;  %v3603_v41 = vrot.slane %v3601_v28, 4  ;;  %v10110_v52 = vld [vmem:[#allocation2 + $0x10] sm:$0xf] }
  0x2a   : > { %v610_v42 = vor.u32 %v608_v19, %v10097_v24  ;;  %v611_v55 = vrot.slane %v10097_v24, 4  ;;  %v1985_v59 = vshll.u32 %v10110_v52, 16  ;;  %v1989_v60 = vshrl.u32 %v10110_v52, 16  ;;  %v911_v12 = vld [vmem:[#allocation2 + $0x2c] sm:$0x1] }
  0x2b   : > { %1731 = vrot.lane.b32.xlu1 %v1715_v22, %s9947_s14  ;;  %v3103_v30 = vld [vmem:[#allocation2 + $0x18] sm:$0xf]  ;;  %v3168_v47 = vor.u32 %v3167_v38, %v3163_v37  ;;  %v10127_v18 = vld [vmem:[#allocation2 + $0x10] sm:$0xf]  ;;  %v1440_v27 = vld [vmem:[#allocation2] sm:$0xe]  ;;  %v912_v29 = vsel %vm10008_vm4, %v620_v23, %v911_v12 }
  0x2c   : > { %v3535_v31 = vld [vmem:[#allocation2 + $0x18] sm:$0xe]  ;;  %v3135_v33 = vld [vmem:[#allocation2 + $0x20] sm:$0x1]  ;;  %v3152_v34 = vshrl.u32 %v3103_v30, 16  ;;  %v3155_v36 = vshll.u32 %v3103_v30, 16  ;;  %v908_v24 = vsel %vm10058_vm10, %v610_v42, %v907_v8 }
  0x2d   : > { %v3171_v39 = vshll.u32 %v3135_v33, 16  ;;  %v9026_v40 = vrot.slane %v3535_v31, 9  ;;  %v1927_v48 = vld [vmem:[#allocation2 + $0xc] sm:$0xf]  ;;  %v3604_v50 = vrot.slane %v3135_v33, 5  ;;  %v3169_v57 = vrot.slane %v3168_v47, 4 }
  0x2e   : > { %v3154_v43 = vrot.slane %v3152_v34, 4  ;;  %v3157_v45 = vrot.slane %v3155_v36, 5  ;;  %v1976_v53 = vshrl.u32 %v1927_v48, 16  ;;  %v1979_v54 = vshll.u32 %v1927_v48, 16  ;;  %v10113_v58 = vld [vmem:[#allocation2 + $0x14] sm:$0x1] }
  0x2f   : > { %v3173_v51 = vrot.slane %v3171_v39, 5  ;;  %v1995_v63 = vshll.u32 %v10113_v58, 16  ;;  %v3602_v0 = vsel %vm10106_vm14, %v9026_v40, %v3601_v28  ;;  %v1987_v5 = vrot.slane %v1985_v59, 5  ;;  %v1441_v19 = vld [vmem:[#allocation2 + $0xc] sm:$0xe] }
  0x30   : > { %v3158_v56 = vor.u32 %v3157_v45, %v3154_v43  ;;  %v1978_v61 = vrot.slane %v1976_v53, 4  ;;  %v1981_v62 = vrot.slane %v1979_v54, 5  ;;  %v1991_v7 = vrot.slane %v1989_v60, 4  ;;  %v10132_v26 = vld [vmem:[#allocation2 + $0x14] sm:$0x1] }
  0x31   : > { %v3174_v4 = vsel %vm10064_vm11, %v3169_v57, %v3173_v51  ;;  %v1997_v11 = vrot.slane %v1995_v63, 5  ;;  %v3605_v13 = vsel %vm10106_vm14, %v3603_v41, %v3604_v50  ;;  %v3855_v16 = vunpack.c.l.b16 %v3602_v0  ;;  %909 = vst [vmem:[#allocation2 + $0x24] sm:$0xf] %v908_v24  ;;  %v10150_v48 = vld [vmem:[#allocation2 + $0x1c] sm:$0xf] }
  0x32   : > { %v3159_v2 = vrot.slane %v3158_v56, 4  ;;  %v3776_v9 = vunpack.c.l.b16 %v3174_v4  ;;  %v1982_v10 = vor.u32 %v1981_v62, %v1978_v61  ;;  %v1992_v15 = vor.u32 %v1991_v7, %v1987_v5  ;;  %913 = vst [vmem:[#allocation2 + $0x2c] sm:$0x1] %v912_v29  ;;  %v376_v29 = vld [vmem:[#allocation2 + $0x38] sm:$0x1] }
  0x33   : > { %v3856_v30 = vunpack.c.l.b16 %v3605_v13  ;;  %v619_v31 = vsel %vm10045_vm9, %v611_v55, %v618_v17  ;;  %v8825_v21 = vrot.slane %v1441_v19, 9  ;;  %v1516_v36 = vrot.slane %v10127_v18, 5 }
  0x34   : > { %v3164_v14 = vsel %vm10064_vm11, %v3159_v2, %v3163_v37  ;;  %v1983_v22 = vrot.slane %v1982_v10, 4  ;;  %v1993_v28 = vrot.slane %v1992_v15, 4  ;;  %910 = vst.msk [vmem:[#allocation2 + $0x28] sm:$0xf] %vm297_vm0, %v619_v31  ;;  %v1929_v37 = vld [vmem:[#allocation2 + $0x18] sm:$0xf] }
  0x35   : > { %v3775_v20 = vunpack.c.l.b16 %v3164_v14  ;;  %v1519_v40 = vrot.slane %v10132_v26, 5  ;;  %v8824_v41 = vrot.slane %v1440_v27, 9  ;;  %v1517_v43 = vsel %vm10106_vm14, %v8825_v21, %v1516_v36 }
  0x36   : > { %v1988_v34 = vsel %vm10064_vm11, %v1983_v22, %v1987_v5  ;;  %v1998_v38 = vsel %vm10064_vm11, %v1993_v28, %v1997_v11  ;;  %v1518_v45 = vrot.slane %v1516_v36, 4  ;;  %v1511_v47 = vrot.slane %v1509_v25, 4  ;;  %v10170_v28 = vld [vmem:[#allocation2 + $0x20] sm:$0x1] }
  0x37   : > { %v3807_v33 = vpack.c.b16 %v3776_v9, %v3775_v20  ;;  %v2599_v39 = vunpack.c.l.b16 %v1988_v34  ;;  %v2600_v42 = vunpack.c.l.b16 %v1998_v38  ;;  %v1765_v50 = vunpack.c.l.b16 %v1517_v43  ;;  %v320_v34 = vld [vmem:[#allocation2 + $0x30] sm:$0x1] }
  0x38   : > { %v1510_v51 = vsel %vm10106_vm14, %v8824_v41, %v1509_v25  ;;  %v1512_v53 = vrot.slane %v10050_v35, 5  ;;  %v2000_v54 = vshrl.u32 %v1929_v37, 16  ;;  %v1520_v56 = vsel %vm10106_vm14, %v1518_v45, %v1519_v40  ;;  %v3536_v25 = vld [vmem:[#allocation2 + $0x24] sm:$0xe]  ;;  %v542_v45 = vld [vmem:[%s10028_s13 + $0x18] sm:$0xf] }
  0x39   : > { %3823 = vrot.lane.b32.xlu0 %v3807_v33, %s9947_s14  ;;  %v2631_v55 = vpack.c.b16 %v2600_v42, %v2599_v39  ;;  %v1763_v57 = vunpack.c.l.b16 %v1510_v51  ;;  %v2003_v59 = vshll.u32 %v1929_v37, 16  ;;  %v1766_v60 = vunpack.c.l.b16 %v1520_v56  ;;  %v3105_v0 = vld [vmem:[#allocation2 + $0x24] sm:$0xf]  ;;  %v3136_v11 = vld [vmem:[#allocation2 + $0x2c] sm:$0x1] }
  0x3a   : > { %v1513_v61 = vsel %vm10106_vm14, %v1511_v47, %v1512_v53  ;;  %v2002_v62 = vrot.slane %v2000_v54, 4  ;;  %v2009_v63 = vshll.u32 %v10150_v48, 16  ;;  %v3887_v6 = vpack.c.b16 %v3856_v30, %v3855_v16  ;;  %v543_v54 = vld [vmem:[%s10028_s13 + $0x1c] sm:$0xf] }
  0x3b   : > { %2647 = vrot.lane.b32.xlu1 %v2631_v55, %s9947_s14  ;;  %v1764_v35 = vunpack.c.l.b16 %v1513_v61  ;;  %v2005_v2 = vrot.slane %v2003_v59, 5  ;;  %v2013_v4 = vshrl.u32 %v10150_v48, 16  ;;  %v3106_v5 = vld [vmem:[#allocation2 + $0x28] sm:$0xf]  ;;  %v9027_v7 = vrot.slane %v3536_v25, 9 }
  0x3c   : > { %v3176_v8 = vshrl.u32 %v3105_v0, 16  ;;  %v3179_v9 = vshll.u32 %v3105_v0, 16  ;;  %v10164_v10 = vpack.c.b16 %v1766_v60, %v1765_v50  ;;  %v3608_v13 = vrot.slane %v3106_v5, 5  ;;  %v2359_v60 = vld [vmem:[#allocation2 + $0xc] sm:$0xe] }
  0x3d   : > { %v3185_v14 = vshll.u32 %v3106_v5, 16  ;;  %v3189_v15 = vshrl.u32 %v3106_v5, 16  ;;  %v1795_v17 = vpack.c.b16 %v1764_v35, %v1763_v57  ;;  %v3611_v12 = vrot.slane %v3136_v11, 5 }
  0x3e   : > { %v3178_v19 = vrot.slane %v3176_v8, 4  ;;  %v3181_v16 = vrot.slane %v3179_v9, 5  ;;  %v3195_v20 = vshll.u32 %v3136_v11, 16  ;;  %v3609_v22 = vsel %vm10106_vm14, %v9027_v7, %v3608_v13 }
  0x3f   : > { %v3610_v23 = vrot.slane %v3608_v13, 4  ;;  %v3187_v24 = vrot.slane %v3185_v14, 5  ;;  %v3191_v27 = vrot.slane %v3189_v15, 4  ;;  %1811 = vrot.lane.b32.xlu2 %v1795_v17, %s9948_s15  ;;  %v3857_v30 = vunpack.c.l.b16 %v3609_v22  ;;  %v10193_v17 = vld [vmem:[#allocation2 + $0x1c] sm:$0xf] }
  0x40   : > { %v3182_v31 = vor.u32 %v3181_v16, %v3178_v19  ;;  %v3197_v21 = vrot.slane %v3195_v20, 5  ;;  %v2006_v33 = vor.u32 %v2005_v2, %v2002_v62  ;;  %v2011_v38 = vrot.slane %v2009_v63, 5  ;;  %v10198_v20 = vld [vmem:[#allocation2 + $0x20] sm:$0x1] }
  0x41   : > { %3903 = vrot.lane.b32.xlu0 %v3887_v6, %s9948_s15  ;;  %v3612_v36 = vsel %vm10106_vm14, %v3610_v23, %v3611_v12  ;;  %v3192_v37 = vor.u32 %v3191_v27, %v3187_v24  ;;  %v2015_v39 = vrot.slane %v2013_v4, 4  ;;  %v2019_v43 = vshll.u32 %v10170_v28, 16  ;;  %v1442_v4 = vld [vmem:[#allocation2 + $0x18] sm:$0xe] }
  0x42   : > { %v3858_v40 = vunpack.c.l.b16 %v3612_v36  ;;  %v3183_v41 = vrot.slane %v3182_v31, 4  ;;  %v2007_v42 = vrot.slane %v2006_v33, 4  ;;  %v321_v51 = vsel %vm10008_vm4, 0, %v320_v34 }
  0x43   : > { %v3193_v47 = vrot.slane %v3192_v37, 4  ;;  %v2016_v50 = vor.u32 %v2015_v39, %v2011_v38  ;;  %v377_v53 = vsel %vm10015_vm5, 0, %v376_v29  ;;  %v2021_v59 = vrot.slane %v2019_v43, 5  ;;  %322 = vst [vmem:[#allocation2 + $0x30] sm:$0x1] %v321_v51 }
  0x44   : > { %v3888_v55 = vpack.c.b16 %v3858_v40, %v3857_v30  ;;  %v3188_v56 = vsel %vm10064_vm11, %v3183_v41, %v3187_v24  ;;  %v2012_v57 = vsel %vm10064_vm11, %v2007_v42, %v2011_v38  ;;  %378 = vst [vmem:[#allocation2 + $0x38] sm:$0x1] %v377_v53  ;;  %v622_v0 = vshrl.u32 %v542_v45, 16  ;;  %v1007_v30 = vld [vmem:[#allocation2 + $0xc] sm:$0xf] }
  0x45   : > { %v3198_v61 = vsel %vm10064_vm11, %v3193_v47, %v3197_v21  ;;  %v3777_v62 = vunpack.c.l.b16 %v3188_v56  ;;  %v2017_v63 = vrot.slane %v2016_v50, 4  ;;  %v10187_v6 = vunpack.c.l.b16 %v2012_v57 }
  0x46   : > { %3905 = vrot.lane.b32.xlu1 %v3888_v55, %s9948_s15  ;;  %v3778_v25 = vunpack.c.l.b16 %v3198_v61  ;;  %v625_v35 = vshll.u32 %v542_v45, 16  ;;  %v630_v2 = vshrl.u32 %v543_v54, 16  ;;  %v633_v7 = vshll.u32 %v543_v54, 16  ;;  %v1931_v45 = vld [vmem:[#allocation2 + $0x24] sm:$0xf] }
  0x47   : > { %v2022_v5 = vsel %vm10064_vm11, %v2017_v63, %v2021_v59  ;;  %v8904_v8 = vrot.slane %v2359_v60, 9  ;;  %v2425_v9 = vrot.slane %v10110_v52, 5  ;;  %v624_v14 = vrot.slane %v622_v0, 7  ;;  %v10218_v54 = vld [vmem:[#allocation2 + $0x28] sm:$0xf] }
  0x48   : > { %v3808_v11 = vpack.c.b16 %v3778_v25, %v3777_v62  ;;  %v2602_v13 = vunpack.c.l.b16 %v2022_v5  ;;  %v632_v15 = vrot.slane %v630_v2, 7  ;;  %v2428_v16 = vrot.slane %v10113_v58, 5  ;;  %v10225_v62 = vld [vmem:[#allocation2 + $0x2c] sm:$0x1] }
  0x49   : > { %v2426_v12 = vsel %vm10106_vm14, %v8904_v8, %v2425_v9  ;;  %v2427_v19 = vrot.slane %v2425_v9, 4  ;;  %v8826_v22 = vrot.slane %v1442_v4, 9  ;;  %v627_v52 = vor.u32 %v625_v35, %v624_v14 }
  0x4a   : > { %3825 = vrot.lane.b32.xlu0 %v3808_v11, %s9947_s14  ;;  %v2632_v23 = vpack.c.b16 %v2602_v13, %v10187_v6  ;;  %v628_v24 = vrot.slane %v624_v14, 4  ;;  %v635_v27 = vor.u32 %v633_v7, %v632_v15  ;;  %v637_v31 = vrot.slane %v632_v15, 4  ;;  %v914_v21 = vld [vmem:[#allocation2 + $0x30] sm:$0xf] }
  0x4b   : > { %v2429_v33 = vsel %vm10106_vm14, %v2427_v19, %v2428_v16  ;;  %v2679_v34 = vunpack.c.l.b16 %v2426_v12  ;;  %v1523_v29 = vrot.slane %v10193_v17, 5  ;;  %v915_v36 = vsel %vm10058_vm10, %v627_v52, %v914_v21  ;;  %v918_v37 = vld [vmem:[#allocation2 + $0x38] sm:$0x1] }
  0x4c   : > { %v636_v58 = vsel %vm10045_vm9, %v628_v24, %v635_v27  ;;  %v2680_v38 = vunpack.c.l.b16 %v2429_v33  ;;  %v1526_v39 = vrot.slane %v10198_v20, 5  ;;  %916 = vst [vmem:[#allocation2 + $0x30] sm:$0xf] %v915_v36  ;;  %v919_v40 = vsel %vm10008_vm4, %v637_v31, %v918_v37 }
  0x4d   : > { %v1524_v41 = vsel %vm10106_vm14, %v8826_v22, %v1523_v29  ;;  %v1525_v42 = vrot.slane %v1523_v29, 4  ;;  %v1081_v43 = vshrl.u32 %v1007_v30, 16  ;;  %917 = vst.msk [vmem:[#allocation2 + $0x34] sm:$0xf] %vm297_vm0, %v636_v58  ;;  %v1084_v51 = vshll.u32 %v1007_v30, 16 }
  0x4e   : > { %1813 = vrot.lane.b32.xlu1 %v10164_v10, %s9948_s15  ;;  %v2711_v47 = vpack.c.b16 %v2680_v38, %v2679_v34  ;;  %v1767_v50 = vunpack.c.l.b16 %v1524_v41  ;;  %v1090_v53 = vshll.u32 %v10127_v18, 16  ;;  %920 = vst [vmem:[#allocation2 + $0x38] sm:$0x1] %v919_v40  ;;  %v1094_v57 = vshrl.u32 %v10127_v18, 16 }
  0x4f   : > { %v1527_v55 = vsel %vm10106_vm14, %v1525_v42, %v1526_v39  ;;  %v1083_v56 = vrot.slane %v1081_v43, 4  ;;  %v1100_v59 = vshll.u32 %v10132_v26, 16  ;;  %v1086_v60 = vrot.slane %v1084_v51, 5  ;;  %v323_v43 = vld [vmem:[#allocation2 + $0x3c] sm:$0x1] }
  0x50   : > { %2727 = vrot.lane.b32.xlu2 %v2711_v47, %s9948_s15  ;;  %v1768_v10 = vunpack.c.l.b16 %v1527_v55  ;;  %v1092_v61 = vrot.slane %v1090_v53, 5  ;;  %v2024_v63 = vshrl.u32 %v1931_v45, 16  ;;  %v1096_v6 = vrot.slane %v1094_v57, 4 }
  0x51   : > { %v2027_v25 = vshll.u32 %v1931_v45, 16  ;;  %v2033_v0 = vshll.u32 %v10218_v54, 16  ;;  %v1087_v35 = vor.u32 %v1086_v60, %v1083_v56  ;;  %v1102_v2 = vrot.slane %v1100_v59, 5  ;;  %v379_v59 = vld [vmem:[#allocation2 + $0x44] sm:$0x1] }
  0x52   : > { %2649 = vrot.lane.b32.xlu0 %v2632_v23, %s9947_s14  ;;  %v2026_v4 = vrot.slane %v2024_v63, 4  ;;  %v2037_v18 = vshrl.u32 %v10218_v54, 16  ;;  %v1097_v26 = vor.u32 %v1096_v6, %v1092_v61  ;;  %v2043_v8 = vshll.u32 %v10225_v62, 16 }
  0x53   : > { %v2029_v5 = vrot.slane %v2027_v25, 5  ;;  %v2035_v7 = vrot.slane %v2033_v0, 5  ;;  %v3537_v9 = vld [vmem:[#allocation2 + $0x30] sm:$0xe]  ;;  %v10231_v13 = vpack.c.b16 %v1768_v10, %v1767_v50  ;;  %v1088_v14 = vrot.slane %v1087_v35, 4 }
  0x54   : > { %v3107_v11 = vld [vmem:[#allocation2 + $0x30] sm:$0xf]  ;;  %v2039_v15 = vrot.slane %v2037_v18, 4  ;;  %v3108_v12 = vld [vmem:[#allocation2 + $0x34] sm:$0xf]  ;;  %v9028_v19 = vrot.slane %v3537_v9, 9 }
  0x55   : > { %v3200_v16 = vshrl.u32 %v3107_v11, 16  ;;  %v3203_v22 = vshll.u32 %v3107_v11, 16  ;;  %v1098_v23 = vrot.slane %v1097_v26, 4  ;;  %v3137_v52 = vld [vmem:[#allocation2 + $0x38] sm:$0x1]  ;;  %v3615_v24 = vrot.slane %v3108_v12, 5 }
  0x56   : > { %v3209_v27 = vshll.u32 %v3108_v12, 16  ;;  %v3213_v30 = vshrl.u32 %v3108_v12, 16  ;;  %v1093_v31 = vsel %vm10064_vm11, %v1088_v14, %v1092_v61  ;;  %v3618_v21 = vrot.slane %v3137_v52, 5  ;;  %v544_v10 = vld [vmem:[%s10028_s13 + $0x20] sm:$0xf] }
  0x57   : > { %v3202_v33 = vrot.slane %v3200_v16, 4  ;;  %v3205_v34 = vrot.slane %v3203_v22, 5  ;;  %v3219_v29 = vshll.u32 %v3137_v52, 16  ;;  %v3616_v58 = vsel %vm10106_vm14, %v9028_v19, %v3615_v24  ;;  %v545_v18 = vld [vmem:[%s10028_s13 + $0x24] sm:$0xf] }
  0x58   : > { %v3617_v36 = vrot.slane %v3615_v24, 4  ;;  %v3211_v37 = vrot.slane %v3209_v27, 5  ;;  %v3215_v38 = vrot.slane %v3213_v30, 4  ;;  %v3859_v39 = vunpack.c.l.b16 %v3616_v58  ;;  %v2360_v9 = vld [vmem:[#allocation2 + $0x18] sm:$0xe] }
  0x59   : > { %v3206_v40 = vor.u32 %v3205_v34, %v3202_v33  ;;  %v3221_v41 = vrot.slane %v3219_v29, 5  ;;  %v1103_v42 = vsel %vm10064_vm11, %v1098_v23, %v1102_v2  ;;  %v1685_v50 = vunpack.c.l.b16 %v1093_v31  ;;  %v1443_v52 = vld [vmem:[#allocation2 + $0x24] sm:$0xe]  ;;  %v10260_v58 = vld [vmem:[#allocation2 + $0x2c] sm:$0x1] }
  0x5a   : > { %v3619_v45 = vsel %vm10106_vm14, %v3617_v36, %v3618_v21  ;;  %v3216_v47 = vor.u32 %v3215_v38, %v3211_v37  ;;  %v1686_v51 = vunpack.c.l.b16 %v1103_v42  ;;  %v2030_v56 = vor.u32 %v2029_v5, %v2026_v4  ;;  %v10258_v21 = vld [vmem:[#allocation2 + $0x28] sm:$0xf]  ;;  %v1009_v36 = vld [vmem:[#allocation2 + $0x18] sm:$0xf] }
  0x5b   : > { %v3860_v53 = vunpack.c.l.b16 %v3619_v45  ;;  %v3207_v55 = vrot.slane %v3206_v40, 4  ;;  %v2040_v57 = vor.u32 %v2039_v15, %v2035_v7  ;;  %v2045_v63 = vrot.slane %v2043_v8, 5 }
  0x5c   : > { %v3217_v60 = vrot.slane %v3216_v47, 4  ;;  %v1716_v61 = vpack.c.b16 %v1686_v51, %v1685_v50  ;;  %v324_v6 = vsel %vm10008_vm4, 0, %v323_v43  ;;  %v2031_v35 = vrot.slane %v2030_v56, 4 }
  0x5d   : > { %v3889_v25 = vpack.c.b16 %v3860_v53, %v3859_v39  ;;  %v3212_v0 = vsel %vm10064_vm11, %v3207_v55, %v3211_v37  ;;  %v2041_v2 = vrot.slane %v2040_v57, 4  ;;  %325 = vst [vmem:[#allocation2 + $0x3c] sm:$0x1] %v324_v6  ;;  %v380_v5 = vsel %vm10015_vm5, 0, %v379_v59  ;;  %v1933_v55 = vld [vmem:[#allocation2 + $0x30] sm:$0xf] }
  0x5e   : > { %v3222_v4 = vsel %vm10064_vm11, %v3217_v60, %v3221_v41  ;;  %v3779_v26 = vunpack.c.l.b16 %v3212_v0  ;;  %1733 = vrot.lane.b32.xlu2 %v1716_v61, %s9947_s14  ;;  %v639_v8 = vshrl.u32 %v544_v10, 16  ;;  %v2036_v14 = vsel %vm10064_vm11, %v2031_v35, %v2035_v7  ;;  %381 = vst [vmem:[#allocation2 + $0x44] sm:$0x1] %v380_v5 }
  0x5f   : > { %3907 = vrot.lane.b32.xlu1 %v3889_v25, %s9948_s15  ;;  %v3780_v11 = vunpack.c.l.b16 %v3222_v4  ;;  %v2046_v15 = vsel %vm10064_vm11, %v2041_v2, %v2045_v63  ;;  %v642_v12 = vshll.u32 %v544_v10, 16  ;;  %v2603_v19 = vunpack.c.l.b16 %v2036_v14  ;;  %v10281_v25 = vld [vmem:[#allocation2 + $0x34] sm:$0xf] }
  0x60   : > { %v2604_v16 = vunpack.c.l.b16 %v2046_v15  ;;  %v641_v22 = vrot.slane %v639_v8, 7  ;;  %v647_v23 = vshrl.u32 %v545_v18, 16  ;;  %v650_v27 = vshll.u32 %v545_v18, 16 }
  0x61   : > { %v3809_v24 = vpack.c.b16 %v3780_v11, %v3779_v26  ;;  %v8905_v30 = vrot.slane %v2360_v9, 9  ;;  %v2432_v31 = vrot.slane %v10150_v48, 5  ;;  %v2435_v39 = vrot.slane %v10170_v28, 5  ;;  %v10289_v11 = vld [vmem:[#allocation2 + $0x38] sm:$0x1] }
  0x62   : > { %v2633_v33 = vpack.c.b16 %v2604_v16, %v2603_v19  ;;  %v644_v34 = vor.u32 %v642_v12, %v641_v22  ;;  %v645_v7 = vrot.slane %v641_v22, 4  ;;  %v649_v29 = vrot.slane %v647_v23, 7 }
  0x63   : > { %3827 = vrot.lane.b32.xlu0 %v3809_v24, %s9947_s14  ;;  %v2433_v37 = vsel %vm10106_vm14, %v8905_v30, %v2432_v31  ;;  %v2434_v38 = vrot.slane %v2432_v31, 4  ;;  %v8827_v40 = vrot.slane %v1443_v52, 9  ;;  %v1530_v45 = vrot.slane %v10258_v21, 5 }
  0x64   : > { %v652_v41 = vor.u32 %v650_v27, %v649_v29  ;;  %v654_v48 = vrot.slane %v649_v29, 4  ;;  %v921_v42 = vld [vmem:[#allocation2 + $0x3c] sm:$0xf]  ;;  %v2681_v43 = vunpack.c.l.b16 %v2433_v37  ;;  %v1533_v51 = vrot.slane %v10260_v58, 5 }
  0x65   : > { %v922_v47 = vsel %vm10058_vm10, %v644_v34, %v921_v42  ;;  %v2436_v50 = vsel %vm10106_vm14, %v2434_v38, %v2435_v39  ;;  %v1105_v53 = vshrl.u32 %v1009_v36, 16  ;;  %v925_v56 = vld [vmem:[#allocation2 + $0x44] sm:$0x1]  ;;  %v1531_v59 = vsel %vm10106_vm14, %v8827_v40, %v1530_v45 }
  0x66   : > { %v653_v28 = vsel %vm10045_vm9, %v645_v7, %v652_v41  ;;  %923 = vst [vmem:[#allocation2 + $0x3c] sm:$0xf] %v922_v47  ;;  %v2682_v57 = vunpack.c.l.b16 %v2436_v50  ;;  %v1532_v10 = vrot.slane %v1530_v45, 4  ;;  %v926_v60 = vsel %vm10008_vm4, %v654_v48, %v925_v56 }
  0x67   : > { %1815 = vrot.lane.b32.xlu1 %v10231_v13, %s9948_s15  ;;  %924 = vst.msk [vmem:[#allocation2 + $0x40] sm:$0xf] %vm297_vm0, %v653_v28  ;;  %v1769_v61 = vunpack.c.l.b16 %v1531_v59  ;;  %v1107_v63 = vrot.slane %v1105_v53, 4  ;;  %v1108_v6 = vshll.u32 %v1009_v36, 16  ;;  %v1114_v2 = vshll.u32 %v10193_v17, 16 }
  0x68   : > { %927 = vst [vmem:[#allocation2 + $0x44] sm:$0x1] %v926_v60  ;;  %v2712_v0 = vpack.c.b16 %v2682_v57, %v2681_v43  ;;  %v1534_v35 = vsel %vm10106_vm14, %v1532_v10, %v1533_v51  ;;  %v1118_v18 = vshrl.u32 %v10193_v17, 16  ;;  %v1124_v26 = vshll.u32 %v10198_v20, 16  ;;  %v326_v59 = vld [vmem:[#allocation2 + $0x48] sm:$0x1] }
  0x69   : > { %v1770_v13 = vunpack.c.l.b16 %v1534_v35  ;;  %v1110_v4 = vrot.slane %v1108_v6, 5  ;;  %v2048_v5 = vshrl.u32 %v1933_v55, 16  ;;  %v1116_v8 = vrot.slane %v1114_v2, 5 }
  0x6a   : > { %2729 = vrot.lane.b32.xlu2 %v2712_v0, %s9948_s15  ;;  %v1120_v9 = vrot.slane %v1118_v18, 4  ;;  %v2051_v14 = vshll.u32 %v1933_v55, 16  ;;  %v2057_v15 = vshll.u32 %v10281_v25, 16  ;;  %v1126_v19 = vrot.slane %v1124_v26, 5  ;;  %v382_v18 = vld [vmem:[#allocation2 + $0x50] sm:$0x1] }
  0x6b   : > { %2651 = vrot.lane.b32.xlu0 %v2633_v33, %s9947_s14  ;;  %v1111_v12 = vor.u32 %v1110_v4, %v1107_v63  ;;  %v2050_v16 = vrot.slane %v2048_v5, 4  ;;  %v2061_v20 = vshrl.u32 %v10281_v25, 16  ;;  %v10294_v27 = vpack.c.b16 %v1770_v13, %v1769_v61  ;;  %v546_v13 = vld [vmem:[%s10028_s13 + $0x28] sm:$0xf] }
  0x6c   : > { %v1121_v17 = vor.u32 %v1120_v9, %v1116_v8  ;;  %v2053_v22 = vrot.slane %v2051_v14, 5  ;;  %v2059_v23 = vrot.slane %v2057_v15, 5  ;;  %v2067_v31 = vshll.u32 %v10289_v11, 16 }
  0x6d   : > { %v3538_v52 = vld [vmem:[#allocation2 + $0x3c] sm:$0xe]  ;;  %v1112_v30 = vrot.slane %v1111_v12, 4  ;;  %v2063_v2 = vrot.slane %v2061_v20, 4  ;;  %v656_v20 = vshrl.u32 %v546_v13, 16 }
  0x6e   : > { %v3109_v24 = vld [vmem:[#allocation2 + $0x3c] sm:$0xf]  ;;  %v3110_v34 = vld [vmem:[#allocation2 + $0x40] sm:$0xf]  ;;  %v9029_v7 = vrot.slane %v3538_v52, 9  ;;  %v1122_v33 = vrot.slane %v1121_v17, 4  ;;  %v2054_v35 = vor.u32 %v2053_v22, %v2050_v16 }
  0x6f   : > { %v3224_v29 = vshrl.u32 %v3109_v24, 16  ;;  %v3227_v36 = vshll.u32 %v3109_v24, 16  ;;  %v3138_v37 = vld [vmem:[#allocation2 + $0x44] sm:$0x1]  ;;  %v3622_v38 = vrot.slane %v3110_v34, 5  ;;  %v3233_v39 = vshll.u32 %v3110_v34, 16 }
  0x70   : > { %v3237_v40 = vshrl.u32 %v3110_v34, 16  ;;  %v1117_v41 = vsel %vm10064_vm11, %v1112_v30, %v1116_v8  ;;  %v3625_v48 = vrot.slane %v3138_v37, 5  ;;  %v3243_v45 = vshll.u32 %v3138_v37, 16  ;;  %v2361_v52 = vld [vmem:[#allocation2 + $0x24] sm:$0xe] }
  0x71   : > { %v3226_v42 = vrot.slane %v3224_v29, 4  ;;  %v3229_v43 = vrot.slane %v3227_v36, 5  ;;  %v3623_v47 = vsel %vm10106_vm14, %v9029_v7, %v3622_v38  ;;  %v3624_v50 = vrot.slane %v3622_v38, 4  ;;  %v1444_v37 = vld [vmem:[#allocation2 + $0x30] sm:$0xe] }
  0x72   : > { %v3235_v51 = vrot.slane %v3233_v39, 5  ;;  %v3239_v53 = vrot.slane %v3237_v40, 4  ;;  %v3861_v55 = vunpack.c.l.b16 %v3623_v47  ;;  %v3245_v56 = vrot.slane %v3243_v45, 5  ;;  %v10324_v47 = vld [vmem:[#allocation2 + $0x38] sm:$0x1] }
  0x73   : > { %v3230_v28 = vor.u32 %v3229_v43, %v3226_v42  ;;  %v1127_v57 = vsel %vm10064_vm11, %v1122_v33, %v1126_v19  ;;  %v3626_v10 = vsel %vm10106_vm14, %v3624_v50, %v3625_v48  ;;  %v1687_v61 = vunpack.c.l.b16 %v1117_v41  ;;  %v547_v19 = vld [vmem:[%s10028_s13 + $0x2c] sm:$0xf] }
  0x74   : > { %v3240_v60 = vor.u32 %v3239_v53, %v3235_v51  ;;  %v1688_v63 = vunpack.c.l.b16 %v1127_v57  ;;  %v3862_v6 = vunpack.c.l.b16 %v3626_v10  ;;  %v2069_v5 = vrot.slane %v2067_v31, 5 }
  0x75   : > { %v3231_v0 = vrot.slane %v3230_v28, 4  ;;  %v327_v8 = vsel %vm10008_vm4, 0, %v326_v59  ;;  %v2055_v15 = vrot.slane %v2054_v35, 4  ;;  %v2064_v12 = vor.u32 %v2063_v2, %v2059_v23  ;;  %v1011_v28 = vld [vmem:[#allocation2 + $0x24] sm:$0xf] }
  0x76   : > { %v3241_v4 = vrot.slane %v3240_v60, 4  ;;  %v1717_v26 = vpack.c.b16 %v1688_v63, %v1687_v61  ;;  %v3890_v9 = vpack.c.b16 %v3862_v6, %v3861_v55  ;;  %328 = vst [vmem:[#allocation2 + $0x48] sm:$0x1] %v327_v8  ;;  %v383_v22 = vsel %vm10015_vm5, 0, %v382_v18  ;;  %v1935_v8 = vld [vmem:[#allocation2 + $0x3c] sm:$0xf] }
  0x77   : > { %v3236_v14 = vsel %vm10064_vm11, %v3231_v0, %v3235_v51  ;;  %v2060_v30 = vsel %vm10064_vm11, %v2055_v15, %v2059_v23  ;;  %v2065_v31 = vrot.slane %v2064_v12, 4  ;;  %384 = vst [vmem:[#allocation2 + $0x50] sm:$0x1] %v383_v22  ;;  %v659_v34 = vshll.u32 %v546_v13, 16  ;;  %v10322_v23 = vld [vmem:[#allocation2 + $0x34] sm:$0xf] }
  0x78   : > { %v3246_v16 = vsel %vm10064_vm11, %v3241_v4, %v3245_v56  ;;  %v3781_v17 = vunpack.c.l.b16 %v3236_v14  ;;  %1735 = vrot.lane.b32.xlu2 %v1717_v26, %s9947_s14  ;;  %3909 = vrot.lane.b32.xlu1 %v3890_v9, %s9948_s15  ;;  %v2605_v7 = vunpack.c.l.b16 %v2060_v30  ;;  %v658_v29 = vrot.slane %v656_v20, 7 }
  0x79   : > { %v3782_v24 = vunpack.c.l.b16 %v3246_v16  ;;  %v664_v36 = vshrl.u32 %v547_v19, 16  ;;  %v667_v33 = vshll.u32 %v547_v19, 16  ;;  %v2070_v39 = vsel %vm10064_vm11, %v2065_v31, %v2069_v5  ;;  %v10346_v19 = vld [vmem:[#allocation2 + $0x40] sm:$0xf] }
  0x7a   : > { %v8906_v40 = vrot.slane %v2361_v52, 9  ;;  %v2439_v41 = vrot.slane %v10218_v54, 5  ;;  %v2606_v48 = vunpack.c.l.b16 %v2070_v39  ;;  %v661_v42 = vor.u32 %v659_v34, %v658_v29 }
  0x7b   : > { %v3810_v38 = vpack.c.b16 %v3782_v24, %v3781_v17  ;;  %v662_v43 = vrot.slane %v658_v29, 4  ;;  %v666_v45 = vrot.slane %v664_v36, 7  ;;  %v2442_v53 = vrot.slane %v10225_v62, 5 }
  0x7c   : > { %v2440_v50 = vsel %vm10106_vm14, %v8906_v40, %v2439_v41  ;;  %v2441_v51 = vrot.slane %v2439_v41, 4  ;;  %v8828_v55 = vrot.slane %v1444_v37, 9  ;;  %v2634_v56 = vpack.c.b16 %v2606_v48, %v2605_v7 }
  0x7d   : > { %3829 = vrot.lane.b32.xlu0 %v3810_v38, %s9947_s14  ;;  %v669_v54 = vor.u32 %v667_v33, %v666_v45  ;;  %v671_v57 = vrot.slane %v666_v45, 4  ;;  %v928_v59 = vld [vmem:[#allocation2 + $0x48] sm:$0xf]  ;;  %v2683_v10 = vunpack.c.l.b16 %v2440_v50  ;;  %v1537_v63 = vrot.slane %v10322_v23, 5 }
  0x7e   : > { %v929_v60 = vsel %vm10058_vm10, %v661_v42, %v928_v59  ;;  %v2443_v61 = vsel %vm10106_vm14, %v2441_v51, %v2442_v53  ;;  %v1540_v6 = vrot.slane %v10324_v47, 5  ;;  %v932_v0 = vld [vmem:[#allocation2 + $0x50] sm:$0x1]  ;;  %v1129_v2 = vshrl.u32 %v1011_v28, 16 }
  0x7f   : > { %v670_v62 = vsel %vm10045_vm9, %v662_v43, %v669_v54  ;;  %930 = vst [vmem:[#allocation2 + $0x48] sm:$0xf] %v929_v60  ;;  %v2684_v35 = vunpack.c.l.b16 %v2443_v61  ;;  %v1132_v18 = vshll.u32 %v1011_v28, 16  ;;  %v933_v13 = vsel %vm10008_vm4, %v671_v57, %v932_v0 }
  0x80   : > { %1817 = vrot.lane.b32.xlu1 %v10294_v27, %s9948_s15  ;;  %931 = vst.msk [vmem:[#allocation2 + $0x4c] sm:$0xf] %vm297_vm0, %v670_v62  ;;  %v1538_v4 = vsel %vm10106_vm14, %v8828_v55, %v1537_v63  ;;  %v1539_v26 = vrot.slane %v1537_v63, 4  ;;  %v1138_v5 = vshll.u32 %v10258_v21, 16  ;;  %v1131_v15 = vrot.slane %v1129_v2, 4 }
  0x81   : > { %934 = vst [vmem:[#allocation2 + $0x50] sm:$0x1] %v933_v13  ;;  %v2713_v9 = vpack.c.b16 %v2684_v35, %v2683_v10  ;;  %v1771_v14 = vunpack.c.l.b16 %v1538_v4  ;;  %v1134_v12 = vrot.slane %v1132_v18, 5  ;;  %v1142_v17 = vshrl.u32 %v10258_v21, 16  ;;  %v10364_v18 = vld [vmem:[#allocation2 + $0x44] sm:$0x1] }
  0x82   : > { %v1541_v27 = vsel %vm10106_vm14, %v1539_v26, %v1540_v6  ;;  %v1140_v16 = vrot.slane %v1138_v5, 5  ;;  %v1148_v22 = vshll.u32 %v10260_v58, 16  ;;  %v2072_v24 = vshrl.u32 %v1935_v8, 16  ;;  %v329_v13 = vld [vmem:[#allocation2 + $0x54] sm:$0x1] }
  0x83   : > { %2731 = vrot.lane.b32.xlu2 %v2713_v9, %s9948_s15  ;;  %v1772_v20 = vunpack.c.l.b16 %v1541_v27  ;;  %v1135_v52 = vor.u32 %v1134_v12, %v1131_v15  ;;  %v2075_v30 = vshll.u32 %v1935_v8, 16  ;;  %v1144_v31 = vrot.slane %v1142_v17, 4  ;;  %v385_v27 = vld [vmem:[#allocation2 + $0x5c] sm:$0x1] }
  0x84   : > { %v2081_v34 = vshll.u32 %v10346_v19, 16  ;;  %v2085_v7 = vshrl.u32 %v10346_v19, 16  ;;  %v1150_v36 = vrot.slane %v1148_v22, 5  ;;  %v2074_v33 = vrot.slane %v2072_v24, 4 }
  0x85   : > { %2653 = vrot.lane.b32.xlu0 %v2634_v56, %s9947_s14  ;;  %v1136_v29 = vrot.slane %v1135_v52, 4  ;;  %v2077_v37 = vrot.slane %v2075_v30, 5  ;;  %v10356_v58 = vpack.c.b16 %v1772_v20, %v1771_v14  ;;  %v1145_v39 = vor.u32 %v1144_v31, %v1140_v16  ;;  %v548_v52 = vld [vmem:[%s10028_s13 + $0x30] sm:$0xf] }
  0x86   : > { %v3539_v21 = vld [vmem:[#allocation2 + $0x48] sm:$0xe]  ;;  %v2083_v40 = vrot.slane %v2081_v34, 5  ;;  %v2087_v41 = vrot.slane %v2085_v7, 4  ;;  %v2091_v22 = vshll.u32 %v10364_v18, 16  ;;  %v330_v20 = vsel %vm10008_vm4, 0, %v329_v13 }
  0x87   : > { %v3111_v38 = vld [vmem:[#allocation2 + $0x48] sm:$0xf]  ;;  %v3112_v48 = vld [vmem:[#allocation2 + $0x4c] sm:$0xf]  ;;  %v9030_v42 = vrot.slane %v3539_v21, 9  ;;  %v1141_v50 = vsel %vm10064_vm11, %v1136_v29, %v1140_v16  ;;  %v1146_v56 = vrot.slane %v1145_v39, 4  ;;  %v2078_v15 = vor.u32 %v2077_v37, %v2074_v33 }
  0x88   : > { %v3248_v43 = vshrl.u32 %v3111_v38, 16  ;;  %v3251_v45 = vshll.u32 %v3111_v38, 16  ;;  %v3139_v51 = vld [vmem:[#allocation2 + $0x50] sm:$0x1]  ;;  %v3629_v53 = vrot.slane %v3112_v48, 5  ;;  %v3257_v55 = vshll.u32 %v3112_v48, 16 }
  0x89   : > { %v3261_v28 = vshrl.u32 %v3112_v48, 16  ;;  %v3632_v54 = vrot.slane %v3139_v51, 5  ;;  %v3267_v10 = vshll.u32 %v3139_v51, 16  ;;  %v1151_v2 = vsel %vm10064_vm11, %v1146_v56, %v1150_v36  ;;  %331 = vst [vmem:[#allocation2 + $0x54] sm:$0x1] %v330_v20 }
  0x8a   : > { %v3250_v57 = vrot.slane %v3248_v43, 4  ;;  %v3253_v59 = vrot.slane %v3251_v45, 5  ;;  %v3630_v60 = vsel %vm10106_vm14, %v9030_v42, %v3629_v53  ;;  %v3631_v61 = vrot.slane %v3629_v53, 4  ;;  %v549_v7 = vld [vmem:[%s10028_s13 + $0x34] sm:$0xf] }
  0x8b   : > { %v3259_v63 = vrot.slane %v3257_v55, 5  ;;  %v3263_v6 = vrot.slane %v3261_v28, 4  ;;  %v3863_v62 = vunpack.c.l.b16 %v3630_v60  ;;  %v3269_v35 = vrot.slane %v3267_v10, 5  ;;  %v2362_v21 = vld [vmem:[#allocation2 + $0x30] sm:$0xe] }
  0x8c   : > { %v3254_v0 = vor.u32 %v3253_v59, %v3250_v57  ;;  %v3633_v4 = vsel %vm10106_vm14, %v3631_v61, %v3632_v54  ;;  %v1689_v5 = vunpack.c.l.b16 %v1141_v50  ;;  %v1690_v8 = vunpack.c.l.b16 %v1151_v2  ;;  %v1445_v42 = vld [vmem:[#allocation2 + $0x3c] sm:$0xe]  ;;  %v10385_v53 = vld [vmem:[#allocation2 + $0x40] sm:$0xf] }
  0x8d   : > { %v3264_v26 = vor.u32 %v3263_v6, %v3259_v63  ;;  %v3864_v9 = vunpack.c.l.b16 %v3633_v4  ;;  %v2088_v12 = vor.u32 %v2087_v41, %v2083_v40  ;;  %v2079_v31 = vrot.slane %v2078_v15, 4  ;;  %v10390_v6 = vld [vmem:[#allocation2 + $0x44] sm:$0x1] }
  0x8e   : > { %v3255_v14 = vrot.slane %v3254_v0, 4  ;;  %v1718_v17 = vpack.c.b16 %v1690_v8, %v1689_v5  ;;  %v2093_v33 = vrot.slane %v2091_v22, 5  ;;  %v386_v37 = vsel %vm10015_vm5, 0, %v385_v27 }
  0x8f   : > { %v3265_v16 = vrot.slane %v3264_v26, 4  ;;  %v3891_v24 = vpack.c.b16 %v3864_v9, %v3863_v62  ;;  %v2089_v34 = vrot.slane %v2088_v12, 4  ;;  %v2084_v39 = vsel %vm10064_vm11, %v2079_v31, %v2083_v40  ;;  %387 = vst [vmem:[#allocation2 + $0x5c] sm:$0x1] %v386_v37  ;;  %v1937_v9 = vld [vmem:[#allocation2 + $0x48] sm:$0xf] }
  0x90   : > { %v3260_v30 = vsel %vm10064_vm11, %v3255_v14, %v3259_v63  ;;  %1737 = vrot.lane.b32.xlu2 %v1718_v17, %s9947_s14  ;;  %v673_v41 = vshrl.u32 %v548_v52, 16  ;;  %v676_v48 = vshll.u32 %v548_v52, 16  ;;  %v2607_v45 = vunpack.c.l.b16 %v2084_v39  ;;  %v935_v2 = vld [vmem:[#allocation2 + $0x54] sm:$0xf]  ;;  %v10416_v37 = vld [vmem:[#allocation2 + $0x50] sm:$0x1] }
  0x91   : > { %v3270_v29 = vsel %vm10064_vm11, %v3265_v16, %v3269_v35  ;;  %v3783_v36 = vunpack.c.l.b16 %v3260_v30  ;;  %3911 = vrot.lane.b32.xlu1 %v3891_v24, %s9948_s15  ;;  %v2094_v43 = vsel %vm10064_vm11, %v2089_v34, %v2093_v33  ;;  %v681_v50 = vshrl.u32 %v549_v7, 16  ;;  %v10409_v24 = vld [vmem:[#allocation2 + $0x4c] sm:$0xf] }
  0x92   : > { %v3784_v38 = vunpack.c.l.b16 %v3270_v29  ;;  %v684_v51 = vshll.u32 %v549_v7, 16  ;;  %v2608_v28 = vunpack.c.l.b16 %v2094_v43  ;;  %v675_v56 = vrot.slane %v673_v41, 7 }
  0x93   : > { %v8907_v54 = vrot.slane %v2362_v21, 9  ;;  %v683_v57 = vrot.slane %v681_v50, 7  ;;  %v2446_v59 = vrot.slane %v10281_v25, 5  ;;  %v2449_v40 = vrot.slane %v10289_v11, 5  ;;  %v1013_v25 = vld [vmem:[#allocation2 + $0x30] sm:$0xf] }
  0x94   : > { %v3811_v55 = vpack.c.b16 %v3784_v38, %v3783_v36  ;;  %v8829_v10 = vrot.slane %v1445_v42, 9  ;;  %v2635_v60 = vpack.c.b16 %v2608_v28, %v2607_v45  ;;  %v678_v61 = vor.u32 %v676_v48, %v675_v56 }
  0x95   : > { %v679_v63 = vrot.slane %v675_v56, 4  ;;  %v1544_v62 = vrot.slane %v10385_v53, 5  ;;  %v686_v0 = vor.u32 %v684_v51, %v683_v57  ;;  %v688_v35 = vrot.slane %v683_v57, 4 }
  0x96   : > { %3831 = vrot.lane.b32.xlu0 %v3811_v55, %s9947_s14  ;;  %v2447_v13 = vsel %vm10106_vm14, %v8907_v54, %v2446_v59  ;;  %v2448_v4 = vrot.slane %v2446_v59, 4  ;;  %v936_v11 = vsel %vm10058_vm10, %v678_v61, %v935_v2  ;;  %v939_v15 = vld [vmem:[#allocation2 + $0x5c] sm:$0x1]  ;;  %v1547_v27 = vrot.slane %v10390_v6, 5 }
  0x97   : > { %v2685_v26 = vunpack.c.l.b16 %v2447_v13  ;;  %v1545_v5 = vsel %vm10106_vm14, %v8829_v10, %v1544_v62  ;;  %v1546_v8 = vrot.slane %v1544_v62, 4  ;;  %v687_v14 = vsel %vm10045_vm9, %v679_v63, %v686_v0  ;;  %937 = vst [vmem:[#allocation2 + $0x54] sm:$0xf] %v936_v11 }
  0x98   : > { %v2450_v12 = vsel %vm10106_vm14, %v2448_v4, %v2449_v40  ;;  %v1773_v16 = vunpack.c.l.b16 %v1545_v5  ;;  %938 = vst.msk [vmem:[#allocation2 + $0x58] sm:$0xf] %vm297_vm0, %v687_v14  ;;  %v940_v17 = vsel %vm10008_vm4, %v688_v35, %v939_v15  ;;  %v1153_v20 = vshrl.u32 %v1013_v25, 16 }
  0x99   : > { %1819 = vrot.lane.b32.xlu1 %v10356_v58, %s9948_s15  ;;  %v2686_v22 = vunpack.c.l.b16 %v2450_v12  ;;  %v1156_v52 = vshll.u32 %v1013_v25, 16  ;;  %941 = vst [vmem:[#allocation2 + $0x5c] sm:$0x1] %v940_v17  ;;  %v1548_v30 = vsel %vm10106_vm14, %v1546_v8, %v1547_v27  ;;  %v1162_v31 = vshll.u32 %v10322_v23, 16 }
  0x9a   : > { %v1166_v34 = vshrl.u32 %v10322_v23, 16  ;;  %v1172_v58 = vshll.u32 %v10324_v47, 16  ;;  %v1774_v29 = vunpack.c.l.b16 %v1548_v30  ;;  %v1155_v36 = vrot.slane %v1153_v20, 4  ;;  %v332_v20 = vld [vmem:[#allocation2 + $0x60] sm:$0x1] }
  0x9b   : > { %v2714_v7 = vpack.c.b16 %v2686_v22, %v2685_v26  ;;  %v1158_v33 = vrot.slane %v1156_v52, 5  ;;  %v1164_v21 = vrot.slane %v1162_v31, 5  ;;  %v2096_v39 = vshrl.u32 %v1937_v9, 16 }
  0x9c   : > { %v1168_v38 = vrot.slane %v1166_v34, 4  ;;  %v1174_v48 = vrot.slane %v1172_v58, 5  ;;  %v2099_v42 = vshll.u32 %v1937_v9, 16  ;;  %v2105_v23 = vshll.u32 %v10409_v24, 16  ;;  %v388_v58 = vld [vmem:[#allocation2 + $0x68] sm:$0x1] }
  0x9d   : > { %2733 = vrot.lane.b32.xlu2 %v2714_v7, %s9948_s15  ;;  %v1159_v41 = vor.u32 %v1158_v33, %v1155_v36  ;;  %v2098_v47 = vrot.slane %v2096_v39, 4  ;;  %v2109_v45 = vshrl.u32 %v10409_v24, 16  ;;  %v2115_v50 = vshll.u32 %v10416_v37, 16 }
  0x9e   : > { %2655 = vrot.lane.b32.xlu0 %v2635_v60, %s9947_s14  ;;  %v1169_v43 = vor.u32 %v1168_v38, %v1164_v21  ;;  %v3540_v51 = vld [vmem:[#allocation2 + $0x54] sm:$0xe]  ;;  %v10423_v28 = vpack.c.b16 %v1774_v29, %v1773_v16  ;;  %v2101_v54 = vrot.slane %v2099_v42, 5  ;;  %v2107_v34 = vrot.slane %v2105_v23, 5  ;;  %v551_v42 = vld [vmem:[%s10028_s13 + $0x3c] sm:$0xf] }
  0x9f   : > { %v3113_v55 = vld [vmem:[#allocation2 + $0x54] sm:$0xf]  ;;  %v1160_v56 = vrot.slane %v1159_v41, 4  ;;  %v3114_v57 = vld [vmem:[#allocation2 + $0x58] sm:$0xf]  ;;  %v9031_v59 = vrot.slane %v3540_v51, 9 }
  0xa0   : > { %v3272_v40 = vshrl.u32 %v3113_v55, 16  ;;  %v3275_v10 = vshll.u32 %v3113_v55, 16  ;;  %v1170_v60 = vrot.slane %v1169_v43, 4  ;;  %v3140_v61 = vld [vmem:[#allocation2 + $0x5c] sm:$0x1]  ;;  %v3636_v63 = vrot.slane %v3114_v57, 5 }
  0xa1   : > { %v3281_v62 = vshll.u32 %v3114_v57, 16  ;;  %v3285_v0 = vshrl.u32 %v3114_v57, 16  ;;  %v1165_v35 = vsel %vm10064_vm11, %v1160_v56, %v1164_v21  ;;  %v3639_v2 = vrot.slane %v3140_v61, 5  ;;  %v550_v21 = vld [vmem:[%s10028_s13 + $0x38] sm:$0xf] }
  0xa2   : > { %v3274_v13 = vrot.slane %v3272_v40, 4  ;;  %v3277_v4 = vrot.slane %v3275_v10, 5  ;;  %v3291_v25 = vshll.u32 %v3140_v61, 16  ;;  %v3637_v11 = vsel %vm10106_vm14, %v9031_v59, %v3636_v63  ;;  %v1446_v57 = vld [vmem:[#allocation2 + $0x48] sm:$0xe] }
  0xa3   : > { %v3638_v26 = vrot.slane %v3636_v63, 4  ;;  %v3283_v5 = vrot.slane %v3281_v62, 5  ;;  %v3287_v8 = vrot.slane %v3285_v0, 4  ;;  %v3865_v9 = vunpack.c.l.b16 %v3637_v11  ;;  %v10447_v61 = vld [vmem:[#allocation2 + $0x4c] sm:$0xf] }
  0xa4   : > { %v3278_v14 = vor.u32 %v3277_v4, %v3274_v13  ;;  %v3293_v15 = vrot.slane %v3291_v25, 5  ;;  %v1175_v12 = vsel %vm10064_vm11, %v1170_v60, %v1174_v48  ;;  %v1691_v17 = vunpack.c.l.b16 %v1165_v35 }
  0xa5   : > { %v3640_v27 = vsel %vm10106_vm14, %v3638_v26, %v3639_v2  ;;  %v3288_v16 = vor.u32 %v3287_v8, %v3283_v5  ;;  %v1692_v22 = vunpack.c.l.b16 %v1175_v12  ;;  %v2102_v31 = vor.u32 %v2101_v54, %v2098_v47  ;;  %v10450_v2 = vld [vmem:[#allocation2 + $0x50] sm:$0x1]  ;;  %v1015_v26 = vld [vmem:[#allocation2 + $0x3c] sm:$0xf] }
  0xa6   : > { %v3866_v52 = vunpack.c.l.b16 %v3640_v27  ;;  %v3279_v30 = vrot.slane %v3278_v14, 4  ;;  %v2111_v36 = vrot.slane %v2109_v45, 4  ;;  %v2117_v33 = vrot.slane %v2115_v50, 5  ;;  %v2363_v50 = vld [vmem:[#allocation2 + $0x3c] sm:$0xe] }
  0xa7   : > { %v3289_v7 = vrot.slane %v3288_v16, 4  ;;  %v1719_v29 = vpack.c.b16 %v1692_v22, %v1691_v17  ;;  %v2103_v41 = vrot.slane %v2102_v31, 4  ;;  %v333_v48 = vsel %vm10008_vm4, 0, %v332_v20 }
  0xa8   : > { %v3892_v38 = vpack.c.b16 %v3866_v52, %v3865_v9  ;;  %v3284_v39 = vsel %vm10064_vm11, %v3279_v30, %v3283_v5  ;;  %v2112_v23 = vor.u32 %v2111_v36, %v2107_v34  ;;  %334 = vst [vmem:[#allocation2 + $0x60] sm:$0x1] %v333_v48  ;;  %v389_v45 = vsel %vm10015_vm5, 0, %v388_v58 }
  0xa9   : > { %v3294_v43 = vsel %vm10064_vm11, %v3289_v7, %v3293_v15  ;;  %v3785_v47 = vunpack.c.l.b16 %v3284_v39  ;;  %1739 = vrot.lane.b32.xlu2 %v1719_v29, %s9947_s14  ;;  %v2108_v55 = vsel %vm10064_vm11, %v2103_v41, %v2107_v34  ;;  %390 = vst [vmem:[#allocation2 + $0x68] sm:$0x1] %v389_v45  ;;  %v690_v56 = vshrl.u32 %v550_v21, 16  ;;  %v1939_v7 = vld [vmem:[#allocation2 + $0x54] sm:$0xf] }
  0xaa   : > { %3913 = vrot.lane.b32.xlu1 %v3892_v38, %s9948_s15  ;;  %v3786_v51 = vunpack.c.l.b16 %v3294_v43  ;;  %v693_v54 = vshll.u32 %v550_v21, 16  ;;  %v2113_v59 = vrot.slane %v2112_v23, 4  ;;  %v2609_v40 = vunpack.c.l.b16 %v2108_v55  ;;  %v10472_v38 = vld [vmem:[#allocation2 + $0x58] sm:$0xf]  ;;  %v10480_v55 = vld [vmem:[#allocation2 + $0x5c] sm:$0x1] }
  0xab   : > { %v698_v10 = vshrl.u32 %v551_v42, 16  ;;  %v701_v60 = vshll.u32 %v551_v42, 16  ;;  %v692_v62 = vrot.slane %v690_v56, 7  ;;  %v8908_v0 = vrot.slane %v2363_v50, 9 }
  0xac   : > { %v3812_v63 = vpack.c.b16 %v3786_v51, %v3785_v47  ;;  %v2453_v35 = vrot.slane %v10346_v19, 5  ;;  %v2118_v13 = vsel %vm10064_vm11, %v2113_v59, %v2117_v33  ;;  %v2456_v25 = vrot.slane %v10364_v18, 5 }
  0xad   : > { %v700_v4 = vrot.slane %v698_v10, 7  ;;  %v8830_v11 = vrot.slane %v1446_v57, 9  ;;  %v2610_v5 = vunpack.c.l.b16 %v2118_v13  ;;  %v695_v8 = vor.u32 %v693_v54, %v692_v62 }
  0xae   : > { %3833 = vrot.lane.b32.xlu0 %v3812_v63, %s9947_s14  ;;  %v696_v9 = vrot.slane %v692_v62, 4  ;;  %v2454_v14 = vsel %vm10106_vm14, %v8908_v0, %v2453_v35  ;;  %v2455_v12 = vrot.slane %v2453_v35, 4  ;;  %v1551_v22 = vrot.slane %v10447_v61, 5 }
  0xaf   : > { %v703_v15 = vor.u32 %v701_v60, %v700_v4  ;;  %v705_v19 = vrot.slane %v700_v4, 4  ;;  %v2687_v27 = vunpack.c.l.b16 %v2454_v14  ;;  %v2636_v16 = vpack.c.b16 %v2610_v5, %v2609_v40  ;;  %v942_v17 = vld [vmem:[#allocation2 + $0x60] sm:$0xf]  ;;  %v335_v40 = vld [vmem:[#allocation2 + $0x6c] sm:$0x1] }
  0xb0   : > { %v1554_v18 = vrot.slane %v10450_v2, 5  ;;  %v1177_v20 = vshrl.u32 %v1015_v26, 16  ;;  %v943_v30 = vsel %vm10058_vm10, %v695_v8, %v942_v17  ;;  %v946_v31 = vld [vmem:[#allocation2 + $0x68] sm:$0x1]  ;;  %v2457_v34 = vsel %vm10106_vm14, %v2455_v12, %v2456_v25 }
  0xb1   : > { %v704_v52 = vsel %vm10045_vm9, %v696_v9, %v703_v15  ;;  %v1180_v58 = vshll.u32 %v1015_v26, 16  ;;  %944 = vst [vmem:[#allocation2 + $0x60] sm:$0xf] %v943_v30  ;;  %v947_v29 = vsel %vm10008_vm4, %v705_v19, %v946_v31  ;;  %v2688_v36 = vunpack.c.l.b16 %v2457_v34 }
  0xb2   : > { %1821 = vrot.lane.b32.xlu1 %v10423_v28, %s9948_s15  ;;  %v1552_v33 = vsel %vm10106_vm14, %v8830_v11, %v1551_v22  ;;  %v1553_v21 = vrot.slane %v1551_v22, 4  ;;  %945 = vst.msk [vmem:[#allocation2 + $0x64] sm:$0xf] %vm297_vm0, %v704_v52  ;;  %v1179_v41 = vrot.slane %v1177_v20, 4  ;;  %v1186_v42 = vshll.u32 %v10385_v53, 16 }
  0xb3   : > { %v1775_v39 = vunpack.c.l.b16 %v1552_v33  ;;  %v1182_v48 = vrot.slane %v1180_v58, 5  ;;  %948 = vst [vmem:[#allocation2 + $0x68] sm:$0x1] %v947_v29  ;;  %v2715_v28 = vpack.c.b16 %v2688_v36, %v2687_v27  ;;  %v1190_v47 = vshrl.u32 %v10385_v53, 16 }
  0xb4   : > { %v1555_v43 = vsel %vm10106_vm14, %v1553_v21, %v1554_v18  ;;  %v1196_v23 = vshll.u32 %v10390_v6, 16  ;;  %v1188_v51 = vrot.slane %v1186_v42, 5  ;;  %v2120_v56 = vshrl.u32 %v1939_v7, 16 }
  0xb5   : > { %v1776_v45 = vunpack.c.l.b16 %v1555_v43  ;;  %v1183_v50 = vor.u32 %v1182_v48, %v1179_v41  ;;  %2735 = vrot.lane.b32.xlu2 %v2715_v28, %s9948_s15  ;;  %v1192_v54 = vrot.slane %v1190_v47, 4  ;;  %v2123_v57 = vshll.u32 %v1939_v7, 16  ;;  %v552_v43 = vld [vmem:[%s10028_s13 + $0x40] sm:$0xf] }
  0xb6   : > { %2657 = vrot.lane.b32.xlu0 %v2636_v16, %s9947_s14  ;;  %v2129_v59 = vshll.u32 %v10472_v38, 16  ;;  %v1198_v60 = vrot.slane %v1196_v23, 5  ;;  %v2122_v53 = vrot.slane %v2120_v56, 4  ;;  %v2133_v6 = vshrl.u32 %v10472_v38, 16 }
  0xb7   : > { %v1184_v10 = vrot.slane %v1183_v50, 4  ;;  %v1193_v63 = vor.u32 %v1192_v54, %v1188_v51  ;;  %v2125_v62 = vrot.slane %v2123_v57, 5  ;;  %v2139_v35 = vshll.u32 %v10480_v55, 16 }
  0xb8   : > { %v10486_v0 = vrot.slane %v2129_v59, 5  ;;  %v3541_v13 = vld [vmem:[#allocation2 + $0x60] sm:$0xe]  ;;  %v10489_v25 = vpack.c.b16 %v1776_v45, %v1775_v39  ;;  %v2135_v26 = vrot.slane %v2133_v6, 4  ;;  %v336_v5 = vsel %vm10008_vm4, 0, %v335_v40  ;;  %v1732_v40 = vpop.permute.xlu1 %1731 }
  0xb9   : > { %v3115_v4 = vld [vmem:[#allocation2 + $0x60] sm:$0xf]  ;;  %v1189_v11 = vsel %vm10064_vm11, %v1184_v10, %v1188_v51  ;;  %v3116_v8 = vld [vmem:[#allocation2 + $0x64] sm:$0xf]  ;;  %v9032_v9 = vrot.slane %v3541_v13, 9  ;;  %v1194_v19 = vrot.slane %v1193_v63, 4  ;;  %v2126_v28 = vor.u32 %v2125_v62, %v2122_v53  ;;  %v10508_v62 = vpop.permute.xlu2 %1811 }
  0xba   : > { %v3296_v14 = vshrl.u32 %v3115_v4, 16  ;;  %v3299_v15 = vshll.u32 %v3115_v4, 16  ;;  %v3141_v12 = vld [vmem:[#allocation2 + $0x68] sm:$0x1]  ;;  %v3643_v27 = vrot.slane %v3116_v8, 5  ;;  %v3305_v16 = vshll.u32 %v3116_v8, 16 }
  0xbb   : > { %v3309_v17 = vshrl.u32 %v3116_v8, 16  ;;  %v1693_v22 = vunpack.c.l.b16 %v1189_v11  ;;  %v3646_v18 = vrot.slane %v3141_v12, 5  ;;  %v3315_v30 = vshll.u32 %v3141_v12, 16  ;;  %337 = vst [vmem:[#allocation2 + $0x6c] sm:$0x1] %v336_v5  ;;  %v9660_v63 = vld [vmem:[#allocation2] sm:$0xff] }
  0xbc   : > { %v3298_v20 = vrot.slane %v3296_v14, 4  ;;  %v3301_v52 = vrot.slane %v3299_v15, 5  ;;  %v3644_v31 = vsel %vm10106_vm14, %v9032_v9, %v3643_v27  ;;  %v3645_v34 = vrot.slane %v3643_v27, 4  ;;  %v391_v39 = vld [vmem:[#allocation2 + $0x74] sm:$0x1] }
  0xbd   : > { %v3307_v58 = vrot.slane %v3305_v16, 5  ;;  %v3311_v7 = vrot.slane %v3309_v17, 4  ;;  %v3867_v29 = vunpack.c.l.b16 %v3644_v31  ;;  %v3317_v33 = vrot.slane %v3315_v30, 5  ;;  %v553_v59 = vld [vmem:[%s10028_s13 + $0x44] sm:$0xf] }
  0xbe   : > { %v3302_v36 = vor.u32 %v3301_v52, %v3298_v20  ;;  %v1199_v21 = vsel %vm10064_vm11, %v1194_v19, %v1198_v60  ;;  %v3647_v41 = vsel %vm10106_vm14, %v3645_v34, %v3646_v18  ;;  %v2136_v45 = vor.u32 %v2135_v26, %v10486_v0  ;;  %v9008_v26 = vld [vmem:[%s13460_s1] sm:$0xf]  ;;  %v9676_v15 = vld [vmem:[%s13460_s1] sm:$0x30]  ;;  %v2364_v19 = vld [vmem:[#allocation2 + $0x48] sm:$0xe] }
  0xbf   : > { %v3312_v48 = vor.u32 %v3311_v7, %v3307_v58  ;;  %v1694_v42 = vunpack.c.l.b16 %v1199_v21  ;;  %v3868_v47 = vunpack.c.l.b16 %v3647_v41  ;;  %v2141_v50 = vrot.slane %v2139_v35, 5  ;;  %v8988_v52 = vld [vmem:[%s13460_s1 + $0x8] sm:$0xf]  ;;  %v9693_v30 = vld [vmem:[%s13460_s1 + $0x8] sm:$0x30] }
  0xc0   : > { %v3303_v23 = vrot.slane %v3302_v36, 4  ;;  %v2127_v54 = vrot.slane %v2126_v28, 4  ;;  %v392_v57 = vsel %vm10015_vm5, 0, %v391_v39  ;;  %v2137_v6 = vrot.slane %v2136_v45, 4  ;;  %v10538_v7 = vld [vmem:[#allocation2 + $0x58] sm:$0xf] }
  0xc1   : > { %v3313_v51 = vrot.slane %v3312_v48, 4  ;;  %v1720_v56 = vpack.c.b16 %v1694_v42, %v1693_v22  ;;  %v3893_v10 = vpack.c.b16 %v3868_v47, %v3867_v29  ;;  %393 = vst [vmem:[#allocation2 + $0x74] sm:$0x1] %v392_v57  ;;  %v707_v53 = vshrl.u32 %v552_v43, 16  ;;  %v1447_v29 = vld [vmem:[#allocation2 + $0x54] sm:$0xe] }
  0xc2   : > { %v3308_v60 = vsel %vm10064_vm11, %v3303_v23, %v3307_v58  ;;  %v2132_v4 = vsel %vm10064_vm11, %v2127_v54, %v10486_v0  ;;  %v710_v11 = vshll.u32 %v552_v43, 16  ;;  %v2142_v8 = vsel %vm10064_vm11, %v2137_v6, %v2141_v50  ;;  %v949_v16 = vld [vmem:[#allocation2 + $0x6c] sm:$0xf]  ;;  %v10545_v41 = vld [vmem:[#allocation2 + $0x5c] sm:$0x1] }
  0xc3   : > { %v3318_v35 = vsel %vm10064_vm11, %v3313_v51, %v3317_v33  ;;  %v3787_v13 = vunpack.c.l.b16 %v3308_v60  ;;  %1741 = vrot.lane.b32.xlu2 %v1720_v56, %s9947_s14  ;;  %3915 = vrot.lane.b32.xlu1 %v3893_v10, %s9948_s15  ;;  %v10522_v9 = vunpack.c.l.b16 %v2132_v4  ;;  %v709_v14 = vrot.slane %v707_v53, 7  ;;  %v9694_v53 = vld [vmem:[#allocation2 + $0x18] sm:$0xff] }
  0xc4   : > { %v3788_v5 = vunpack.c.l.b16 %v3318_v35  ;;  %v10527_v0 = vunpack.c.l.b16 %v2142_v8  ;;  %v715_v12 = vshrl.u32 %v553_v59, 16  ;;  %v718_v27 = vshll.u32 %v553_v59, 16  ;;  %v2648_v59 = vpop.permute.xlu1 %2647 }
  0xc5   : > { %v712_v22 = vor.u32 %v710_v11, %v709_v14  ;;  %v713_v18 = vrot.slane %v709_v14, 4  ;;  %v1846_v20 = vsel %vm1843_vm15, %v9660_v63, %v1732_v40  ;;  %v9009_v58 = vor.u32 %v9676_v15, %v9008_v26  ;;  %v1017_v40 = vld [vmem:[#allocation2 + $0x48] sm:$0xf]  ;;  %v2728_v63 = vpop.permute.xlu2 %2727 }
  0xc6   : > { %v3813_v17 = vpack.c.b16 %v3788_v5, %v3787_v13  ;;  %v2637_v31 = vpack.c.b16 %v10527_v0, %v10522_v9  ;;  %v717_v34 = vrot.slane %v715_v12, 7  ;;  %v8909_v33 = vrot.slane %v2364_v19, 9  ;;  %v10571_v19 = vld [vmem:[#allocation2 + $0x60] sm:$0xf] }
  0xc7   : > { %v950_v36 = vsel %vm10058_vm10, %v712_v22, %v949_v16  ;;  %v2460_v21 = vrot.slane %v10409_v24, 5  ;;  %v2463_v39 = vrot.slane %v10416_v37, 5  ;;  %v3011_v43 = vsel %vm2880_vm1, %v9009_v58, 0  ;;  %v9677_v24 = vld [vmem:[#allocation2 + $0xc] sm:$0xff] }
  0xc8   : > { %3835 = vrot.lane.b32.xlu0 %v3813_v17, %s9947_s14  ;;  %v720_v48 = vor.u32 %v718_v27, %v717_v34  ;;  %v722_v42 = vrot.slane %v717_v34, 4  ;;  %951 = vst [vmem:[#allocation2 + $0x6c] sm:$0xf] %v950_v36  ;;  %v953_v28 = vld [vmem:[#allocation2 + $0x74] sm:$0x1]  ;;  %v8989_v47 = vor.u32 %v9693_v30, %v8988_v52  ;;  %3020 = vmatpush.bf16.msra.mxu1 %v3011_v43  ;;  %v8831_v50 = vrot.slane %v1447_v29, 9 }
  0xc9   : > { %v2461_v23 = vsel %vm10106_vm14, %v8909_v33, %v2460_v21  ;;  %v2462_v45 = vrot.slane %v2460_v21, 4  ;;  %v1558_v51 = vrot.slane %v10538_v7, 5  ;;  %v1561_v57 = vrot.slane %v10545_v41, 5 }
  0xca   : > { %v721_v37 = vsel %vm10045_vm9, %v713_v18, %v720_v48  ;;  %v954_v56 = vsel %vm10008_vm4, %v722_v42, %v953_v28  ;;  %v2689_v54 = vunpack.c.l.b16 %v2461_v23  ;;  %v1894_v4 = vsel %vm1892_vm6, %v1846_v20, %v10508_v62 }
  0xcb   : > { %1823 = vrot.lane.b32.xlu1 %v10489_v25, %s9948_s15  ;;  %952 = vst.msk [vmem:[#allocation2 + $0x70] sm:$0xf] %vm297_vm0, %v721_v37  ;;  %v2464_v10 = vsel %vm10106_vm14, %v2462_v45, %v2463_v39  ;;  %v1559_v60 = vsel %vm10106_vm14, %v8831_v50, %v1558_v51  ;;  %v1560_v6 = vrot.slane %v1558_v51, 4  ;;  %v3824_v25 = vpop.permute.xlu0 %3823  ;;  %9010 = vmatmul.msk.bf16.vlgmr.msra.gmra.mxu1 %vm2847_vm7, %v1894_v4  ;;  %v2882_v26 = vsel %vm2880_vm1, %v8989_v47, 0 }
  0xcc   : > { %955 = vst [vmem:[#allocation2 + $0x74] sm:$0x1] %v954_v56  ;;  %v2690_v35 = vunpack.c.l.b16 %v2464_v10  ;;  %v1777_v13 = vunpack.c.l.b16 %v1559_v60  ;;  %v2761_v5 = vsel %vm1843_vm15, %v9677_v24, %v2648_v59  ;;  %2891 = vmatpush.bf16.msra.mxu0 %v2882_v26  ;;  %v1201_v15 = vshrl.u32 %v1017_v40, 16 }
  0xcd   : > { %v1562_v11 = vsel %vm10106_vm14, %v1560_v6, %v1561_v57  ;;  %v2808_v14 = vsel %vm1892_vm6, %v2761_v5, %v2728_v63  ;;  %v10575_v12 = vsel %vm1843_vm15, %v9694_v53, %v3824_v25  ;;  %v1204_v27 = vshll.u32 %v1017_v40, 16  ;;  %v10589_v6 = vld [vmem:[#allocation2 + $0x64] sm:$0xf]  ;;  %v338_v25 = vld [vmem:[#allocation2 + $0x78] sm:$0x1] }
  0xce   : > { %v2716_v8 = vpack.c.b16 %v2690_v35, %v2689_v54  ;;  %v1778_v9 = vunpack.c.l.b16 %v1562_v11  ;;  %v1210_v16 = vshll.u32 %v10447_v61, 16  ;;  %v1203_v52 = vrot.slane %v1201_v15, 4 }
  0xcf   : > { %v3542_v62 = vld [vmem:[#allocation2 + $0x6c] sm:$0xe]  ;;  %8990 = vmatmul.msk.bf16.vlgmr.msra.gmra.mxu0 %vm2847_vm7, %v2808_v14  ;;  %v1206_v30 = vrot.slane %v1204_v27, 5  ;;  %v1214_v34 = vshrl.u32 %v10447_v61, 16  ;;  %v1220_v33 = vshll.u32 %v10450_v2, 16  ;;  %v2144_v21 = vshrl.u32 %v10571_v19, 16 }
  0xd0   : > { %2659 = vrot.lane.b32.xlu0 %v2637_v31, %s9947_s14  ;;  %v3117_v0 = vld [vmem:[#allocation2 + $0x6c] sm:$0xf]  ;;  %v9033_v17 = vrot.slane %v3542_v62, 9  ;;  %2737 = vrot.lane.b32.xlu2 %v2716_v8, %s9948_s15  ;;  %v10579_v20 = vpack.c.b16 %v1778_v9, %v1777_v13  ;;  %v1212_v31 = vrot.slane %v1210_v16, 5  ;;  %v10595_v13 = vld [vmem:[#allocation2 + $0x68] sm:$0x1] }
  0xd1   : > { %v3320_v22 = vshrl.u32 %v3117_v0, 16  ;;  %v3323_v18 = vshll.u32 %v3117_v0, 16  ;;  %v1207_v43 = vor.u32 %v1206_v30, %v1203_v52  ;;  %v1216_v50 = vrot.slane %v1214_v34, 4  ;;  %v394_v9 = vld [vmem:[#allocation2 + $0x80] sm:$0x1]  ;;  %v10612_v30 = vpop.permute.xlu1 %3905 }
  0xd2   : > { %v3118_v58 = vld [vmem:[#allocation2 + $0x70] sm:$0xf]  ;;  %v1222_v60 = vrot.slane %v1220_v33, 5  ;;  %v2146_v4 = vrot.slane %v2144_v21, 4  ;;  %v2147_v15 = vshll.u32 %v10571_v19, 16  ;;  %v2153_v62 = vshll.u32 %v10589_v6, 16 }
  0xd3   : > { %v3322_v29 = vrot.slane %v3320_v22, 4  ;;  %v3325_v36 = vrot.slane %v3323_v18, 5  ;;  %v3142_v39 = vld [vmem:[#allocation2 + $0x74] sm:$0x1]  ;;  %v3650_v48 = vrot.slane %v3118_v58, 5  ;;  %v3329_v42 = vshll.u32 %v3118_v58, 16 }
  0xd4   : > { %v3333_v28 = vshrl.u32 %v3118_v58, 16  ;;  %v3653_v47 = vrot.slane %v3142_v39, 5  ;;  %v3339_v45 = vshll.u32 %v3142_v39, 16  ;;  %v1208_v57 = vrot.slane %v1207_v43, 4  ;;  %v554_v27 = vld [vmem:[%s10028_s13 + $0x48] sm:$0xf] }
  0xd5   : > { %v3326_v23 = vor.u32 %v3325_v36, %v3322_v29  ;;  %v3651_v51 = vsel %vm10106_vm14, %v9033_v17, %v3650_v48  ;;  %v3652_v61 = vrot.slane %v3650_v48, 4  ;;  %v3331_v24 = vrot.slane %v3329_v42, 5  ;;  %v555_v52 = vld [vmem:[%s10028_s13 + $0x4c] sm:$0xf]  ;;  %v9110_v19 = vld [vmem:[%s13460_s1 + $0x10] sm:$0xf]  ;;  %v3904_v42 = vpop.permute.xlu0 %3903 }
  0xd6   : > { %v3335_v37 = vrot.slane %v3333_v28, 4  ;;  %v3869_v56 = vunpack.c.l.b16 %v3651_v51  ;;  %v3341_v2 = vrot.slane %v3339_v45, 5  ;;  %v1217_v10 = vor.u32 %v1216_v50, %v1212_v31  ;;  %v9710_v36 = vld [vmem:[%s13460_s1 + $0x10] sm:$0x30] }
  0xd7   : > { %v3327_v54 = vrot.slane %v3326_v23, 4  ;;  %v3654_v59 = vsel %vm10106_vm14, %v3652_v61, %v3653_v47  ;;  %v1213_v35 = vsel %vm10064_vm11, %v1208_v57, %v1212_v31  ;;  %v2157_v0 = vshrl.u32 %v10589_v6, 16  ;;  %v2365_v28 = vld [vmem:[#allocation2 + $0x54] sm:$0xe] }
  0xd8   : > { %v3336_v40 = vor.u32 %v3335_v37, %v3331_v24  ;;  %v3870_v53 = vunpack.c.l.b16 %v3654_v59  ;;  %v1218_v5 = vrot.slane %v1217_v10, 4  ;;  %v1695_v8 = vunpack.c.l.b16 %v1213_v35 }
  0xd9   : > { %v3332_v63 = vsel %vm10064_vm11, %v3327_v54, %v3331_v24  ;;  %v2163_v22 = vshll.u32 %v10595_v13, 16  ;;  %v339_v18 = vsel %vm10008_vm4, 0, %v338_v25  ;;  %v2149_v58 = vrot.slane %v2147_v15, 5  ;;  %v1448_v25 = vld [vmem:[#allocation2 + $0x60] sm:$0xe] }
  0xda   : > { %v3337_v11 = vrot.slane %v3336_v40, 4  ;;  %v3789_v26 = vunpack.c.l.b16 %v3332_v63  ;;  %v3894_v14 = vpack.c.b16 %v3870_v53, %v3869_v56  ;;  %v1223_v17 = vsel %vm10064_vm11, %v1218_v5, %v1222_v60  ;;  %340 = vst [vmem:[#allocation2 + $0x78] sm:$0x1] %v339_v18  ;;  %v10624_v60 = vld [vmem:[#allocation2 + $0x64] sm:$0xf] }
  0xdb   : > { %v1696_v34 = vunpack.c.l.b16 %v1223_v17  ;;  %v2155_v29 = vrot.slane %v2153_v62, 5  ;;  %v2159_v33 = vrot.slane %v2157_v0, 4  ;;  %v2165_v21 = vrot.slane %v2163_v22, 5  ;;  %v1734_v0 = vpop.permute.xlu2 %1733 }
  0xdc   : > { %v3342_v16 = vsel %vm10064_vm11, %v3337_v11, %v3341_v2  ;;  %3917 = vrot.lane.b32.xlu1 %v3894_v14, %s9948_s15  ;;  %v395_v39 = vsel %vm10015_vm5, 0, %v394_v9  ;;  %v724_v48 = vshrl.u32 %v554_v27, 16  ;;  %v2150_v23 = vor.u32 %v2149_v58, %v2146_v4  ;;  %v10633_v9 = vld [vmem:[#allocation2 + $0x68] sm:$0x1]  ;;  %v9661_v14 = vld [vmem:[#allocation2 + $0xc] sm:$0xff] }
  0xdd   : > { %v3790_v31 = vunpack.c.l.b16 %v3342_v16  ;;  %v1721_v47 = vpack.c.b16 %v1696_v34, %v1695_v8  ;;  %396 = vst [vmem:[#allocation2 + $0x80] sm:$0x1] %v395_v39  ;;  %v727_v45 = vshll.u32 %v554_v27, 16  ;;  %v2160_v50 = vor.u32 %v2159_v33, %v2155_v29  ;;  %v1019_v27 = vld [vmem:[#allocation2 + $0x54] sm:$0xf] }
  0xde   : > { %v726_v51 = vrot.slane %v724_v48, 7  ;;  %v732_v61 = vshrl.u32 %v555_v52, 16  ;;  %v735_v24 = vshll.u32 %v555_v52, 16  ;;  %v2151_v37 = vrot.slane %v2150_v23, 4  ;;  %v9695_v48 = vld [vmem:[#allocation2 + $0x24] sm:$0xff] }
  0xdf   : > { %v3814_v43 = vpack.c.b16 %v3790_v31, %v3789_v26  ;;  %1743 = vrot.lane.b32.xlu2 %v1721_v47, %s9947_s14  ;;  %v9111_v56 = vor.u32 %v9710_v36, %v9110_v19  ;;  %v3984_v54 = vsel %vm1892_vm6, %v10575_v12, %v3904_v42  ;;  %v8910_v2 = vrot.slane %v2365_v28, 9 }
  0xe0   : > { %v2161_v57 = vrot.slane %v2160_v50, 4  ;;  %v729_v59 = vor.u32 %v727_v45, %v726_v51  ;;  %v730_v40 = vrot.slane %v726_v51, 4  ;;  %v734_v10 = vrot.slane %v732_v61, 7 }
  0xe1   : > { %3837 = vrot.lane.b32.xlu0 %v3814_v43, %s9947_s14  ;;  %v2156_v53 = vsel %vm10064_vm11, %v2151_v37, %v2155_v29  ;;  %v4056_v63 = vsel %vm2880_vm1, %v9111_v56, 0  ;;  %v2467_v35 = vrot.slane %v10472_v38, 5  ;;  %v2470_v4 = vrot.slane %v10480_v55, 5  ;;  %v956_v8 = vld [vmem:[#allocation2 + $0x78] sm:$0xf]  ;;  %v3826_v56 = vpop.permute.xlu0 %3825 }
  0xe2   : > { %v2166_v12 = vsel %vm10064_vm11, %v2161_v57, %v2165_v21  ;;  %v2613_v11 = vunpack.c.l.b16 %v2156_v53  ;;  %v737_v26 = vor.u32 %v735_v24, %v734_v10  ;;  %v739_v5 = vrot.slane %v734_v10, 4  ;;  %4065 = vmatpush.bf16.msra.mxu2 %v4056_v63  ;;  %v1943_v43 = vld [vmem:[#allocation2 + $0x6c] sm:$0xf] }
  0xe3   : > { %v2614_v15 = vunpack.c.l.b16 %v2166_v12  ;;  %v957_v38 = vsel %vm10058_vm10, %v729_v59, %v956_v8  ;;  %v2468_v55 = vsel %vm10106_vm14, %v8910_v2, %v2467_v35  ;;  %v2469_v62 = vrot.slane %v2467_v35, 4 }
  0xe4   : > { %1825 = vrot.lane.b32.xlu1 %v10579_v20, %s9948_s15  ;;  %v738_v16 = vsel %vm10045_vm9, %v730_v40, %v737_v26  ;;  %958 = vst [vmem:[#allocation2 + $0x78] sm:$0xf] %v957_v38  ;;  %v960_v17 = vld [vmem:[#allocation2 + $0x80] sm:$0x1]  ;;  %v2691_v22 = vunpack.c.l.b16 %v2468_v55  ;;  %v8832_v18 = vrot.slane %v1448_v25, 9  ;;  %v1565_v52 = vrot.slane %v10624_v60, 5  ;;  %v1814_v20 = vpop.permute.xlu1 %1813 }
  0xe5   : > { %v2638_v19 = vpack.c.b16 %v2614_v15, %v2613_v11  ;;  %959 = vst.msk [vmem:[#allocation2 + $0x7c] sm:$0xf] %vm297_vm0, %v738_v16  ;;  %v961_v31 = vsel %vm10008_vm4, %v739_v5, %v960_v17  ;;  %9112 = vmatmul.msk.bf16.vlgmr.msra.gmra.mxu2 %vm2847_vm7, %v3984_v54  ;;  %v2471_v34 = vsel %vm10106_vm14, %v2469_v62, %v2470_v4  ;;  %v1568_v58 = vrot.slane %v10633_v9, 5 }
  0xe6   : > { %962 = vst [vmem:[#allocation2 + $0x80] sm:$0x1] %v961_v31  ;;  %v2692_v29 = vunpack.c.l.b16 %v2471_v34  ;;  %v1566_v36 = vsel %vm10106_vm14, %v8832_v18, %v1565_v52  ;;  %v1567_v33 = vrot.slane %v1565_v52, 4  ;;  %v1849_v21 = vsel %vm1843_vm15, %v9661_v14, %v1734_v0  ;;  %v10670_v31 = vld [vmem:[#allocation2 + $0x70] sm:$0xf] }
  0xe7   : > { %v1779_v39 = vunpack.c.l.b16 %v1566_v36  ;;  %v1896_v42 = vsel %vm1892_vm6, %v1849_v21, %v1814_v20  ;;  %v1225_v28 = vshrl.u32 %v1019_v27, 16  ;;  %v1228_v45 = vshll.u32 %v1019_v27, 16 }
  0xe8   : > { %v2717_v47 = vpack.c.b16 %v2692_v29, %v2691_v22  ;;  %v1569_v23 = vsel %vm10106_vm14, %v1567_v33, %v1568_v58  ;;  %9011 = vmatmul.msk.bf16.gmra.mxu1 %vm2847_vm7, %v1896_v42  ;;  %v1234_v50 = vshll.u32 %v10538_v7, 16  ;;  %v1238_v24 = vshrl.u32 %v10538_v7, 16 }
  0xe9   : > { %2661 = vrot.lane.b32.xlu0 %v2638_v19, %s9947_s14  ;;  %v1780_v51 = vunpack.c.l.b16 %v1569_v23  ;;  %v1227_v61 = vrot.slane %v1225_v28, 4  ;;  %v1244_v37 = vshll.u32 %v10545_v41, 16  ;;  %v1230_v54 = vrot.slane %v1228_v45, 5 }
  0xea   : > { %2739 = vrot.lane.b32.xlu2 %v2717_v47, %s9948_s15  ;;  %v1236_v2 = vrot.slane %v1234_v50, 5  ;;  %v2168_v57 = vshrl.u32 %v1943_v43, 16  ;;  %v2171_v59 = vshll.u32 %v1943_v43, 16  ;;  %v10666_v63 = vsel %vm1843_vm15, %v9695_v48, %v3826_v56  ;;  %v10678_v47 = vld [vmem:[#allocation2 + $0x74] sm:$0x1] }
  0xeb   : > { %v3543_v40 = vld [vmem:[#allocation2 + $0x78] sm:$0xe]  ;;  %v10663_v53 = vpack.c.b16 %v1780_v51, %v1779_v39  ;;  %v1240_v35 = vrot.slane %v1238_v24, 4  ;;  %v1246_v4 = vrot.slane %v1244_v37, 5  ;;  %v1231_v11 = vor.u32 %v1230_v54, %v1227_v61  ;;  %v341_v24 = vld [vmem:[#allocation2 + $0x84] sm:$0x1]  ;;  %v2730_v54 = vpop.permute.xlu2 %2729 }
  0xec   : > { %v3119_v10 = vld [vmem:[#allocation2 + $0x78] sm:$0xf]  ;;  %v3120_v25 = vld [vmem:[#allocation2 + $0x7c] sm:$0xf]  ;;  %v9034_v7 = vrot.slane %v3543_v40, 9  ;;  %v2170_v36 = vrot.slane %v2168_v57, 4 }
  0xed   : > { %v3344_v12 = vshrl.u32 %v3119_v10, 16  ;;  %v3347_v41 = vshll.u32 %v3119_v10, 16  ;;  %v3143_v26 = vld [vmem:[#allocation2 + $0x80] sm:$0x1]  ;;  %v3657_v5 = vrot.slane %v3120_v25, 5  ;;  %v3353_v8 = vshll.u32 %v3120_v25, 16  ;;  %v10687_v10 = vpop.permute.xlu1 %3907 }
  0xee   : > { %v3357_v14 = vshrl.u32 %v3120_v25, 16  ;;  %v1241_v15 = vor.u32 %v1240_v35, %v1236_v2  ;;  %v3660_v38 = vrot.slane %v3143_v26, 5  ;;  %v3363_v0 = vshll.u32 %v3143_v26, 16  ;;  %v397_v37 = vld [vmem:[#allocation2 + $0x8c] sm:$0x1] }
  0xef   : > { %v3346_v55 = vrot.slane %v3344_v12, 4  ;;  %v3349_v62 = vrot.slane %v3347_v41, 5  ;;  %v3658_v27 = vsel %vm10106_vm14, %v9034_v7, %v3657_v5  ;;  %v3659_v16 = vrot.slane %v3657_v5, 4  ;;  %v556_v56 = vld [vmem:[%s10028_s13 + $0x50] sm:$0xf]  ;;  %v9678_v41 = vld [vmem:[#allocation2 + $0x18] sm:$0xff] }
  0xf0   : > { %v3355_v17 = vrot.slane %v3353_v8, 5  ;;  %v3359_v22 = vrot.slane %v3357_v14, 4  ;;  %v3871_v18 = vunpack.c.l.b16 %v3658_v27  ;;  %v3365_v20 = vrot.slane %v3363_v0, 5  ;;  %v557_v12 = vld [vmem:[%s10028_s13 + $0x54] sm:$0xf]  ;;  %v2650_v14 = vpop.permute.xlu0 %2649 }
  0xf1   : > { %v3350_v52 = vor.u32 %v3349_v62, %v3346_v55  ;;  %v1232_v19 = vrot.slane %v1231_v11, 4  ;;  %v3661_v34 = vsel %vm10106_vm14, %v3659_v16, %v3660_v38  ;;  %v1242_v29 = vrot.slane %v1241_v15, 4  ;;  %v2366_v15 = vld [vmem:[#allocation2 + $0x60] sm:$0xe] }
  0xf2   : > { %v3360_v58 = vor.u32 %v3359_v22, %v3355_v17  ;;  %v3872_v33 = vunpack.c.l.b16 %v3661_v34  ;;  %v2173_v48 = vrot.slane %v2171_v59, 5  ;;  %v2177_v23 = vshll.u32 %v10670_v31, 16 }
  0xf3   : > { %v3351_v21 = vrot.slane %v3350_v52, 4  ;;  %v1237_v39 = vsel %vm10064_vm11, %v1232_v19, %v1236_v2  ;;  %v1247_v28 = vsel %vm10064_vm11, %v1242_v29, %v1246_v4  ;;  %v2181_v40 = vshrl.u32 %v10670_v31, 16 }
  0xf4   : > { %v3361_v42 = vrot.slane %v3360_v58, 4  ;;  %v1697_v43 = vunpack.c.l.b16 %v1237_v39  ;;  %v3895_v45 = vpack.c.b16 %v3872_v33, %v3871_v18  ;;  %v1698_v51 = vunpack.c.l.b16 %v1247_v28  ;;  %v1449_v18 = vld [vmem:[#allocation2 + $0x6c] sm:$0xe]  ;;  %v10704_v58 = vld [vmem:[#allocation2 + $0x70] sm:$0xf] }
  0xf5   : > { %v3356_v50 = vsel %vm10064_vm11, %v3351_v21, %v3355_v17  ;;  %v2174_v61 = vor.u32 %v2173_v48, %v2170_v36  ;;  %v2179_v59 = vrot.slane %v2177_v23, 5  ;;  %v2187_v7 = vshll.u32 %v10678_v47, 16  ;;  %v10707_v39 = vld [vmem:[#allocation2 + $0x74] sm:$0x1] }
  0xf6   : > { %v3366_v2 = vsel %vm10064_vm11, %v3361_v42, %v3365_v20  ;;  %v3791_v57 = vunpack.c.l.b16 %v3356_v50  ;;  %3919 = vrot.lane.b32.xlu1 %v3895_v45, %s9948_s15  ;;  %v1722_v4 = vpack.c.b16 %v1698_v51, %v1697_v43  ;;  %v2183_v11 = vrot.slane %v2181_v40, 4  ;;  %v9662_v50 = vld [vmem:[#allocation2 + $0x18] sm:$0xff]  ;;  %v1021_v40 = vld [vmem:[#allocation2 + $0x60] sm:$0xf] }
  0xf7   : > { %v3792_v35 = vunpack.c.l.b16 %v3366_v2  ;;  %v2175_v25 = vrot.slane %v2174_v61, 4  ;;  %v342_v26 = vsel %vm10008_vm4, 0, %v341_v24  ;;  %v398_v5 = vsel %vm10015_vm5, 0, %v397_v37  ;;  %v1736_v24 = vpop.permute.xlu2 %1735 }
  0xf8   : > { %v741_v8 = vshrl.u32 %v556_v56, 16  ;;  %1745 = vrot.lane.b32.xlu2 %v1722_v4, %s9947_s14  ;;  %v2189_v62 = vrot.slane %v2187_v7, 5  ;;  %343 = vst [vmem:[#allocation2 + $0x84] sm:$0x1] %v342_v26  ;;  %v744_v0 = vshll.u32 %v556_v56, 16  ;;  %v2184_v27 = vor.u32 %v2183_v11, %v2179_v59 }
  0xf9   : > { %v3815_v38 = vpack.c.b16 %v3792_v35, %v3791_v57  ;;  %v2180_v55 = vsel %vm10064_vm11, %v2175_v25, %v2179_v59  ;;  %399 = vst [vmem:[#allocation2 + $0x8c] sm:$0x1] %v398_v5  ;;  %v749_v22 = vshrl.u32 %v557_v12, 16  ;;  %v752_v52 = vshll.u32 %v557_v12, 16  ;;  %v1816_v59 = vpop.permute.xlu1 %1815  ;;  %v1945_v26 = vld [vmem:[#allocation2 + $0x78] sm:$0xf] }
  0xfa   : > { %v2615_v16 = vunpack.c.l.b16 %v2180_v55  ;;  %v743_v17 = vrot.slane %v741_v8, 7  ;;  %v2764_v20 = vsel %vm1843_vm15, %v9678_v41, %v2650_v14  ;;  %v3986_v19 = vsel %vm1892_vm6, %v10666_v63, %v10612_v30  ;;  %v9696_v14 = vld [vmem:[#allocation2 + $0x30] sm:$0xff] }
  0xfb   : > { %3839 = vrot.lane.b32.xlu0 %v3815_v38, %s9947_s14  ;;  %v8911_v34 = vrot.slane %v2366_v15, 9  ;;  %v2185_v29 = vrot.slane %v2184_v27, 4  ;;  %v751_v21 = vrot.slane %v749_v22, 7  ;;  %9113 = vmatmul.msk.bf16.gmra.mxu2 %vm2847_vm7, %v3986_v19  ;;  %v2810_v48 = vsel %vm1892_vm6, %v2764_v20, %v2730_v54  ;;  %v3828_v20 = vpop.permute.xlu0 %3827 }
  0xfc   : > { %v746_v36 = vor.u32 %v744_v0, %v743_v17  ;;  %v747_v33 = vrot.slane %v743_v17, 4  ;;  %v2474_v42 = vrot.slane %v10589_v6, 5  ;;  %v2477_v28 = vrot.slane %v10595_v13, 5  ;;  %8991 = vmatmul.msk.bf16.gmra.mxu0 %vm2847_vm7, %v2810_v48 }
  0xfd   : > { %v8833_v43 = vrot.slane %v1449_v18, 9  ;;  %v2190_v30 = vsel %vm10064_vm11, %v2185_v29, %v2189_v62  ;;  %v754_v63 = vor.u32 %v752_v52, %v751_v21  ;;  %v756_v23 = vrot.slane %v751_v21, 4  ;;  %v10743_v18 = vld [vmem:[#allocation2 + $0x80] sm:$0x1] }
  0xfe   : > { %v1572_v45 = vrot.slane %v10704_v58, 5  ;;  %1827 = vrot.lane.b32.xlu1 %v10663_v53, %s9948_s15  ;;  %v2616_v51 = vunpack.c.l.b16 %v2190_v30  ;;  %v2475_v6 = vsel %vm10106_vm14, %v8911_v34, %v2474_v42  ;;  %v2476_v61 = vrot.slane %v2474_v42, 4 }
  0xff   : > { %v1575_v13 = vrot.slane %v10707_v39, 5  ;;  %v755_v37 = vsel %vm10045_vm9, %v747_v33, %v754_v63  ;;  %v963_v56 = vld [vmem:[#allocation2 + $0x84] sm:$0xf]  ;;  %v2693_v54 = vunpack.c.l.b16 %v2475_v6  ;;  %v1852_v11 = vsel %vm1843_vm15, %v9662_v50, %v1736_v24 }
 0x100   : > { %v1573_v2 = vsel %vm10106_vm14, %v8833_v43, %v1572_v45  ;;  %v1574_v57 = vrot.slane %v1572_v45, 4  ;;  %v2639_v53 = vpack.c.b16 %v2616_v51, %v2615_v16  ;;  %v964_v35 = vsel %vm10058_vm10, %v746_v36, %v963_v56  ;;  %966 = vst.msk [vmem:[#allocation2 + $0x88] sm:$0xf] %vm297_vm0, %v755_v37  ;;  %v967_v4 = vld [vmem:[#allocation2 + $0x8c] sm:$0x1] }
 0x101   : > { %v2478_v25 = vsel %vm10106_vm14, %v2476_v61, %v2477_v28  ;;  %965 = vst [vmem:[#allocation2 + $0x84] sm:$0xf] %v964_v35  ;;  %v968_v7 = vsel %vm10008_vm4, %v756_v23, %v967_v4  ;;  %v1781_v5 = vunpack.c.l.b16 %v1573_v2  ;;  %v1898_v15 = vsel %vm1892_vm6, %v1852_v11, %v1816_v59  ;;  %v10740_v16 = vld [vmem:[#allocation2 + $0x7c] sm:$0xf] }
 0x102   : > { %v2694_v12 = vunpack.c.l.b16 %v2478_v25  ;;  %v1576_v41 = vsel %vm10106_vm14, %v1574_v57, %v1575_v13  ;;  %969 = vst [vmem:[#allocation2 + $0x8c] sm:$0x1] %v968_v7  ;;  %v1249_v38 = vshrl.u32 %v1021_v40, 16  ;;  %9012 = vmatmul.msk.bf16.gmra.mxu1 %vm2847_vm7, %v1898_v15  ;;  %v1252_v62 = vshll.u32 %v1021_v40, 16 }
 0x103   : > { %2663 = vrot.lane.b32.xlu0 %v2639_v53, %s9947_s14  ;;  %v1782_v8 = vunpack.c.l.b16 %v1576_v41  ;;  %v1258_v0 = vshll.u32 %v10624_v60, 16  ;;  %v1262_v27 = vshrl.u32 %v10624_v60, 16  ;;  %v1268_v22 = vshll.u32 %v10633_v9, 16 }
 0x104   : > { %v2718_v55 = vpack.c.b16 %v2694_v12, %v2693_v54  ;;  %v1251_v17 = vrot.slane %v1249_v38, 4  ;;  %v2192_v52 = vshrl.u32 %v1945_v26, 16  ;;  %v1254_v19 = vrot.slane %v1252_v62, 5 }
 0x105   : > { %v1260_v34 = vrot.slane %v1258_v0, 5  ;;  %v1264_v29 = vrot.slane %v1262_v27, 4  ;;  %v2195_v36 = vshll.u32 %v1945_v26, 16  ;;  %v10746_v33 = vpack.c.b16 %v1782_v8, %v1781_v5  ;;  %v344_v0 = vld [vmem:[#allocation2 + $0x90] sm:$0x1] }
 0x106   : > { %2741 = vrot.lane.b32.xlu2 %v2718_v55, %s9948_s15  ;;  %v10749_v21 = vsel %vm1843_vm15, %v9696_v14, %v3828_v20  ;;  %v1270_v60 = vrot.slane %v1268_v22, 5  ;;  %v2194_v48 = vrot.slane %v2192_v52, 4  ;;  %v2201_v9 = vshll.u32 %v10740_v16, 16  ;;  %v2732_v14 = vpop.permute.xlu2 %2731  ;;  %v10762_v20 = vpop.permute.xlu1 %3909 }
 0x107   : > { %v3122_v42 = vld [vmem:[#allocation2 + $0x88] sm:$0xf]  ;;  %v2197_v28 = vrot.slane %v2195_v36, 5  ;;  %v2205_v43 = vshrl.u32 %v10740_v16, 16  ;;  %v2211_v30 = vshll.u32 %v10743_v18, 16  ;;  %v1255_v51 = vor.u32 %v1254_v19, %v1251_v17 }
 0x108   : > { %v3544_v63 = vld [vmem:[#allocation2 + $0x84] sm:$0xe]  ;;  %v3664_v23 = vrot.slane %v3122_v42, 5  ;;  %v3377_v50 = vshll.u32 %v3122_v42, 16  ;;  %v1265_v6 = vor.u32 %v1264_v29, %v1260_v34  ;;  %v3381_v56 = vshrl.u32 %v3122_v42, 16 }
 0x109   : > { %v3121_v45 = vld [vmem:[#allocation2 + $0x84] sm:$0xf]  ;;  %v3144_v61 = vld [vmem:[#allocation2 + $0x8c] sm:$0x1]  ;;  %v9035_v13 = vrot.slane %v3544_v63, 9  ;;  %v1256_v41 = vrot.slane %v1255_v51, 4  ;;  %v2198_v38 = vor.u32 %v2197_v28, %v2194_v48 }
 0x10a   : > { %v3368_v24 = vshrl.u32 %v3121_v45, 16  ;;  %v3371_v37 = vshll.u32 %v3121_v45, 16  ;;  %v3666_v54 = vrot.slane %v3664_v23, 4  ;;  %v3667_v2 = vrot.slane %v3144_v61, 5  ;;  %v400_v63 = vld [vmem:[#allocation2 + $0x98] sm:$0x1] }
 0x10b   : > { %v3379_v57 = vrot.slane %v3377_v50, 5  ;;  %v3387_v59 = vshll.u32 %v3144_v61, 16  ;;  %v3665_v40 = vsel %vm10106_vm14, %v9035_v13, %v3664_v23  ;;  %v3383_v4 = vrot.slane %v3381_v56, 4  ;;  %v558_v23 = vld [vmem:[%s10028_s13 + $0x58] sm:$0xf]  ;;  %v2652_v61 = vpop.permute.xlu0 %2651 }
 0x10c   : > { %v3370_v53 = vrot.slane %v3368_v24, 4  ;;  %v3373_v35 = vrot.slane %v3371_v37, 5  ;;  %v3668_v25 = vsel %vm10106_vm14, %v3666_v54, %v3667_v2  ;;  %v3873_v7 = vunpack.c.l.b16 %v3665_v40  ;;  %v2367_v56 = vld [vmem:[#allocation2 + $0x6c] sm:$0xe] }
 0x10d   : > { %v3389_v12 = vrot.slane %v3387_v59, 5  ;;  %v3874_v11 = vunpack.c.l.b16 %v3668_v25  ;;  %v3384_v5 = vor.u32 %v3383_v4, %v3379_v57  ;;  %v1266_v8 = vrot.slane %v1265_v6, 4  ;;  %v10786_v25 = vld [vmem:[#allocation2 + $0x7c] sm:$0xf] }
 0x10e   : > { %v3374_v26 = vor.u32 %v3373_v35, %v3370_v53  ;;  %v1261_v15 = vsel %vm10064_vm11, %v1256_v41, %v1260_v34  ;;  %v2203_v55 = vrot.slane %v2201_v9, 5  ;;  %v2207_v62 = vrot.slane %v2205_v43, 4  ;;  %v559_v9 = vld [vmem:[%s10028_s13 + $0x5c] sm:$0xf]  ;;  %v9679_v43 = vld [vmem:[#allocation2 + $0x24] sm:$0xff] }
 0x10f   : > { %v3896_v27 = vpack.c.b16 %v3874_v11, %v3873_v7  ;;  %v3385_v22 = vrot.slane %v3384_v5, 4  ;;  %v1271_v52 = vsel %vm10064_vm11, %v1266_v8, %v1270_v60  ;;  %v1699_v19 = vunpack.c.l.b16 %v1261_v15  ;;  %v1450_v7 = vld [vmem:[#allocation2 + $0x78] sm:$0xe]  ;;  %v10791_v5 = vld [vmem:[#allocation2 + $0x80] sm:$0x1]  ;;  %v9663_v8 = vld [vmem:[#allocation2 + $0x24] sm:$0xff] }
 0x110   : > { %v3375_v17 = vrot.slane %v3374_v26, 4  ;;  %v1700_v29 = vunpack.c.l.b16 %v1271_v52  ;;  %v2199_v36 = vrot.slane %v2198_v38, 4  ;;  %v2208_v42 = vor.u32 %v2207_v62, %v2203_v55 }
 0x111   : > { %3921 = vrot.lane.b32.xlu1 %v3896_v27, %s9948_s15  ;;  %v3390_v48 = vsel %vm10064_vm11, %v3385_v22, %v3389_v12  ;;  %v2213_v28 = vrot.slane %v2211_v30, 5  ;;  %v345_v60 = vsel %vm10008_vm4, 0, %v344_v0  ;;  %v401_v37 = vsel %vm10015_vm5, 0, %v400_v63 }
 0x112   : > { %v3380_v34 = vsel %vm10064_vm11, %v3375_v17, %v3379_v57  ;;  %v3794_v50 = vunpack.c.l.b16 %v3390_v48  ;;  %v1723_v51 = vpack.c.b16 %v1700_v29, %v1699_v19  ;;  %v2204_v6 = vsel %vm10064_vm11, %v2199_v36, %v2203_v55  ;;  %346 = vst [vmem:[#allocation2 + $0x90] sm:$0x1] %v345_v60  ;;  %v1738_v55 = vpop.permute.xlu2 %1737  ;;  %v1818_v29 = vpop.permute.xlu1 %1817 }
 0x113   : > { %v3793_v45 = vunpack.c.l.b16 %v3380_v34  ;;  %v2209_v13 = vrot.slane %v2208_v42, 4  ;;  %v10775_v24 = vunpack.c.l.b16 %v2204_v6  ;;  %v758_v30 = vshrl.u32 %v558_v23, 16  ;;  %402 = vst [vmem:[#allocation2 + $0x98] sm:$0x1] %v401_v37 }
 0x114   : > { %1747 = vrot.lane.b32.xlu2 %v1723_v51, %s9947_s14  ;;  %v761_v2 = vshll.u32 %v558_v23, 16  ;;  %v766_v57 = vshrl.u32 %v559_v9, 16  ;;  %v769_v59 = vshll.u32 %v559_v9, 16  ;;  %v2767_v35 = vsel %vm1843_vm15, %v9679_v43, %v2652_v61  ;;  %v1947_v51 = vld [vmem:[#allocation2 + $0x84] sm:$0xf] }
 0x115   : > { %v3816_v54 = vpack.c.b16 %v3794_v50, %v3793_v45  ;;  %v2214_v40 = vsel %vm10064_vm11, %v2209_v13, %v2213_v28  ;;  %v760_v53 = vrot.slane %v758_v30, 7  ;;  %v3988_v4 = vsel %vm1892_vm6, %v10749_v21, %v10687_v10  ;;  %v9697_v45 = vld [vmem:[#allocation2 + $0x3c] sm:$0xff] }
 0x116   : > { %v2618_v12 = vunpack.c.l.b16 %v2214_v40  ;;  %v768_v41 = vrot.slane %v766_v57, 7  ;;  %9114 = vmatmul.msk.bf16.gmra.mxu2 %vm2847_vm7, %v3988_v4  ;;  %v2812_v11 = vsel %vm1892_vm6, %v2767_v35, %v2732_v14  ;;  %v8912_v26 = vrot.slane %v2367_v56, 9  ;;  %v3830_v57 = vpop.permute.xlu0 %3829  ;;  %v10825_v35 = vld [vmem:[#allocation2 + $0x8c] sm:$0x1] }
 0x117   : > { %3841 = vrot.lane.b32.xlu0 %v3816_v54, %s9947_s14  ;;  %v763_v15 = vor.u32 %v761_v2, %v760_v53  ;;  %v764_v38 = vrot.slane %v760_v53, 4  ;;  %8992 = vmatmul.msk.bf16.gmra.mxu0 %vm2847_vm7, %v2812_v11  ;;  %v2481_v10 = vrot.slane %v10670_v31, 5  ;;  %v2484_v21 = vrot.slane %v10678_v47, 5  ;;  %v10823_v2 = vld [vmem:[#allocation2 + $0x88] sm:$0xf] }
 0x118   : > { %v2640_v62 = vpack.c.b16 %v2618_v12, %v10775_v24  ;;  %v771_v0 = vor.u32 %v769_v59, %v768_v41  ;;  %v773_v27 = vrot.slane %v768_v41, 4  ;;  %v8834_v17 = vrot.slane %v1450_v7, 9 }
 0x119   : > { %1829 = vrot.lane.b32.xlu1 %v10746_v33, %s9948_s15  ;;  %v970_v14 = vld [vmem:[#allocation2 + $0x90] sm:$0xf]  ;;  %v2482_v22 = vsel %vm10106_vm14, %v8912_v26, %v2481_v10  ;;  %v2483_v52 = vrot.slane %v2481_v10, 4  ;;  %v1579_v19 = vrot.slane %v10786_v25, 5  ;;  %v1582_v31 = vrot.slane %v10791_v5, 5 }
 0x11a   : > { %v772_v47 = vsel %vm10045_vm9, %v764_v38, %v771_v0  ;;  %v971_v36 = vsel %vm10058_vm10, %v763_v15, %v970_v14  ;;  %v2695_v42 = vunpack.c.l.b16 %v2482_v22  ;;  %v1855_v63 = vsel %vm1843_vm15, %v9663_v8, %v1738_v55  ;;  %v1023_v33 = vld [vmem:[#allocation2 + $0x6c] sm:$0xf]  ;;  %v974_v23 = vld [vmem:[#allocation2 + $0x98] sm:$0x1] }
 0x11b   : > { %972 = vst [vmem:[#allocation2 + $0x90] sm:$0xf] %v971_v36  ;;  %v2485_v34 = vsel %vm10106_vm14, %v2483_v52, %v2484_v21  ;;  %v1580_v48 = vsel %vm10106_vm14, %v8834_v17, %v1579_v19  ;;  %v1581_v28 = vrot.slane %v1579_v19, 4  ;;  %v975_v60 = vsel %vm10008_vm4, %v773_v27, %v974_v23 }
 0x11c   : > { %973 = vst.msk [vmem:[#allocation2 + $0x94] sm:$0xf] %vm297_vm0, %v772_v47  ;;  %v2696_v9 = vunpack.c.l.b16 %v2485_v34  ;;  %v1783_v43 = vunpack.c.l.b16 %v1580_v48  ;;  %v1900_v50 = vsel %vm1892_vm6, %v1855_v63, %v1818_v29  ;;  %v1273_v61 = vshrl.u32 %v1023_v33, 16 }
 0x11d   : > { %976 = vst [vmem:[#allocation2 + $0x98] sm:$0x1] %v975_v60  ;;  %v1583_v6 = vsel %vm10106_vm14, %v1581_v28, %v1582_v31  ;;  %9013 = vmatmul.msk.bf16.gmra.mxu1 %vm2847_vm7, %v1900_v50  ;;  %v1276_v13 = vshll.u32 %v1023_v33, 16  ;;  %v1282_v24 = vshll.u32 %v10704_v58, 16  ;;  %v1286_v56 = vshrl.u32 %v10704_v58, 16  ;;  %v2734_v50 = vpop.permute.xlu2 %2733 }
 0x11e   : > { %v2719_v37 = vpack.c.b16 %v2696_v9, %v2695_v42  ;;  %v1784_v30 = vunpack.c.l.b16 %v1583_v6  ;;  %v1292_v54 = vshll.u32 %v10707_v39, 16  ;;  %v1275_v59 = vrot.slane %v1273_v61, 4 }
 0x11f   : > { %2665 = vrot.lane.b32.xlu0 %v2640_v62, %s9947_s14  ;;  %v1278_v40 = vrot.slane %v1276_v13, 5  ;;  %v1284_v53 = vrot.slane %v1282_v24, 5  ;;  %v2216_v4 = vshrl.u32 %v1947_v51, 16  ;;  %v10829_v7 = vsel %vm1843_vm15, %v9697_v45, %v3830_v57  ;;  %v403_v57 = vld [vmem:[#allocation2 + $0xa4] sm:$0x1] }
 0x120   : > { %2743 = vrot.lane.b32.xlu2 %v2719_v37, %s9948_s15  ;;  %v1288_v12 = vrot.slane %v1286_v56, 4  ;;  %v1294_v41 = vrot.slane %v1292_v54, 5  ;;  %v2219_v11 = vshll.u32 %v1947_v51, 16  ;;  %v2225_v39 = vshll.u32 %v10823_v2, 16  ;;  %v347_v54 = vld [vmem:[#allocation2 + $0x9c] sm:$0x1] }
 0x121   : > { %v1279_v58 = vor.u32 %v1278_v40, %v1275_v59  ;;  %v2218_v26 = vrot.slane %v2216_v4, 4  ;;  %v2229_v8 = vshrl.u32 %v10823_v2, 16  ;;  %v10833_v10 = vpack.c.b16 %v1784_v30, %v1783_v43 }
 0x122   : > { %v3545_v15 = vld [vmem:[#allocation2 + $0x90] sm:$0xe]  ;;  %v1289_v21 = vor.u32 %v1288_v12, %v1284_v53  ;;  %v2221_v55 = vrot.slane %v2219_v11, 5  ;;  %v2235_v62 = vshll.u32 %v10825_v35, 16  ;;  %v2227_v40 = vrot.slane %v2225_v39, 5  ;;  %v10845_v11 = vpop.permute.xlu1 %3911 }
 0x123   : > { %v3123_v38 = vld [vmem:[#allocation2 + $0x90] sm:$0xf]  ;;  %v3124_v0 = vld [vmem:[#allocation2 + $0x94] sm:$0xf]  ;;  %v9036_v27 = vrot.slane %v3545_v15, 9  ;;  %v1280_v22 = vrot.slane %v1279_v58, 4 }
 0x124   : > { %v3392_v17 = vshrl.u32 %v3123_v38, 16  ;;  %v3395_v14 = vshll.u32 %v3123_v38, 16  ;;  %v3145_v52 = vld [vmem:[#allocation2 + $0x98] sm:$0x1]  ;;  %v3671_v19 = vrot.slane %v3124_v0, 5  ;;  %v3401_v31 = vshll.u32 %v3124_v0, 16 }
 0x125   : > { %v3405_v29 = vshrl.u32 %v3124_v0, 16  ;;  %v1290_v47 = vrot.slane %v1289_v21, 4  ;;  %v3674_v36 = vrot.slane %v3145_v52, 5  ;;  %v3411_v33 = vshll.u32 %v3145_v52, 16  ;;  %v560_v12 = vld [vmem:[%s10028_s13 + $0x60] sm:$0xf] }
 0x126   : > { %v3394_v42 = vrot.slane %v3392_v17, 4  ;;  %v3397_v63 = vrot.slane %v3395_v14, 5  ;;  %v3672_v23 = vsel %vm10106_vm14, %v9036_v27, %v3671_v19  ;;  %v3673_v34 = vrot.slane %v3671_v19, 4  ;;  %v561_v21 = vld [vmem:[%s10028_s13 + $0x64] sm:$0xf]  ;;  %v9680_v0 = vld [vmem:[#allocation2 + $0x30] sm:$0xff] }
 0x127   : > { %v3403_v48 = vrot.slane %v3401_v31, 5  ;;  %v3407_v28 = vrot.slane %v3405_v29, 4  ;;  %v3875_v60 = vunpack.c.l.b16 %v3672_v23  ;;  %v3413_v43 = vrot.slane %v3411_v33, 5  ;;  %v2368_v52 = vld [vmem:[#allocation2 + $0x78] sm:$0xe] }
 0x128   : > { %v3398_v9 = vor.u32 %v3397_v63, %v3394_v42  ;;  %v1285_v45 = vsel %vm10064_vm11, %v1280_v22, %v1284_v53  ;;  %v3675_v51 = vsel %vm10106_vm14, %v3673_v34, %v3674_v36  ;;  %v1295_v61 = vsel %vm10064_vm11, %v1290_v47, %v1294_v41  ;;  %v10863_v23 = vld [vmem:[#allocation2 + $0x88] sm:$0xf] }
 0x129   : > { %v3408_v6 = vor.u32 %v3407_v28, %v3403_v48  ;;  %v1701_v13 = vunpack.c.l.b16 %v1285_v45  ;;  %v3876_v24 = vunpack.c.l.b16 %v3675_v51  ;;  %v1702_v30 = vunpack.c.l.b16 %v1295_v61  ;;  %v9664_v45 = vld [vmem:[#allocation2 + $0x30] sm:$0xff] }
 0x12a   : > { %v3399_v37 = vrot.slane %v3398_v9, 4  ;;  %v2222_v56 = vor.u32 %v2221_v55, %v2218_v26  ;;  %v2231_v53 = vrot.slane %v2229_v8, 4  ;;  %v2237_v4 = vrot.slane %v2235_v62, 5  ;;  %v2654_v8 = vpop.permute.xlu0 %2653  ;;  %v10871_v9 = vld [vmem:[#allocation2 + $0x8c] sm:$0x1] }
 0x12b   : > { %v3409_v59 = vrot.slane %v3408_v6, 4  ;;  %v3897_v58 = vpack.c.b16 %v3876_v24, %v3875_v60  ;;  %v1724_v41 = vpack.c.b16 %v1702_v30, %v1701_v13  ;;  %v348_v39 = vsel %vm10008_vm4, 0, %v347_v54  ;;  %v1740_v24 = vpop.permute.xlu2 %1739 }
 0x12c   : > { %v3404_v15 = vsel %vm10064_vm11, %v3399_v37, %v3403_v48  ;;  %v2223_v38 = vrot.slane %v2222_v56, 4  ;;  %v2232_v27 = vor.u32 %v2231_v53, %v2227_v40  ;;  %349 = vst [vmem:[#allocation2 + $0x9c] sm:$0x1] %v348_v39  ;;  %v404_v14 = vsel %vm10015_vm5, 0, %v403_v57 }
 0x12d   : > { %v3414_v26 = vsel %vm10064_vm11, %v3409_v59, %v3413_v43  ;;  %v3795_v55 = vunpack.c.l.b16 %v3404_v15  ;;  %3923 = vrot.lane.b32.xlu1 %v3897_v58, %s9948_s15  ;;  %1749 = vrot.lane.b32.xlu2 %v1724_v41, %s9947_s14  ;;  %v775_v22 = vshrl.u32 %v560_v12, 16  ;;  %405 = vst [vmem:[#allocation2 + $0xa4] sm:$0x1] %v404_v14  ;;  %v778_v29 = vshll.u32 %v560_v12, 16  ;;  %v1451_v43 = vld [vmem:[#allocation2 + $0x84] sm:$0xe] }
 0x12e   : > { %v3796_v62 = vunpack.c.l.b16 %v3414_v26  ;;  %v2228_v17 = vsel %vm10064_vm11, %v2223_v38, %v2227_v40  ;;  %v2233_v19 = vrot.slane %v2232_v27, 4  ;;  %v783_v47 = vshrl.u32 %v561_v21, 16  ;;  %v1025_v58 = vld [vmem:[#allocation2 + $0x78] sm:$0xf] }
 0x12f   : > { %v10860_v31 = vunpack.c.l.b16 %v2228_v17  ;;  %v777_v42 = vrot.slane %v775_v22, 7  ;;  %v786_v63 = vshll.u32 %v561_v21, 16  ;;  %v2770_v33 = vsel %vm1843_vm15, %v9680_v0, %v2654_v8  ;;  %v9698_v8 = vld [vmem:[#allocation2 + $0x48] sm:$0xff] }
 0x130   : > { %v3817_v36 = vpack.c.b16 %v3796_v62, %v3795_v55  ;;  %v2238_v34 = vsel %vm10064_vm11, %v2233_v19, %v2237_v4  ;;  %v785_v48 = vrot.slane %v783_v47, 7  ;;  %v3990_v28 = vsel %vm1892_vm6, %v10829_v7, %v10762_v20 }
 0x131   : > { %v2814_v60 = vsel %vm1892_vm6, %v2770_v33, %v2734_v50  ;;  %v2620_v51 = vunpack.c.l.b16 %v2238_v34  ;;  %v780_v6 = vor.u32 %v778_v29, %v777_v42  ;;  %v781_v61 = vrot.slane %v777_v42, 4  ;;  %9115 = vmatmul.msk.bf16.gmra.mxu2 %vm2847_vm7, %v3990_v28  ;;  %v10907_v42 = vld [vmem:[#allocation2 + $0x98] sm:$0x1] }
 0x132   : > { %3843 = vrot.lane.b32.xlu0 %v3817_v36, %s9947_s14  ;;  %v8913_v13 = vrot.slane %v2368_v52, 9  ;;  %v788_v37 = vor.u32 %v786_v63, %v785_v48  ;;  %v790_v30 = vrot.slane %v785_v48, 4  ;;  %8993 = vmatmul.msk.bf16.gmra.mxu0 %vm2847_vm7, %v2814_v60  ;;  %v2488_v20 = vrot.slane %v10740_v16, 5  ;;  %v1820_v16 = vpop.permute.xlu1 %1819  ;;  %v3832_v33 = vpop.permute.xlu0 %3831 }
 0x133   : > { %v2491_v7 = vrot.slane %v10743_v18, 5  ;;  %v2641_v50 = vpack.c.b16 %v2620_v51, %v10860_v31  ;;  %v8835_v56 = vrot.slane %v1451_v43, 9  ;;  %v1586_v54 = vrot.slane %v10863_v23, 5  ;;  %v977_v40 = vld [vmem:[#allocation2 + $0x9c] sm:$0xf] }
 0x134   : > { %v1589_v57 = vrot.slane %v10871_v9, 5  ;;  %v789_v59 = vsel %vm10045_vm9, %v781_v61, %v788_v37  ;;  %v2489_v53 = vsel %vm10106_vm14, %v8913_v13, %v2488_v20  ;;  %v2490_v4 = vrot.slane %v2488_v20, 4  ;;  %v981_v15 = vld [vmem:[#allocation2 + $0xa4] sm:$0x1]  ;;  %v10903_v31 = vld [vmem:[#allocation2 + $0x94] sm:$0xf] }
 0x135   : > { %v1858_v12 = vsel %vm1843_vm15, %v9664_v45, %v1740_v24  ;;  %1831 = vrot.lane.b32.xlu1 %v10833_v10, %s9948_s15  ;;  %v978_v18 = vsel %vm10058_vm10, %v780_v6, %v977_v40  ;;  %980 = vst.msk [vmem:[#allocation2 + $0xa0] sm:$0xf] %vm297_vm0, %v789_v59  ;;  %v2697_v41 = vunpack.c.l.b16 %v2489_v53  ;;  %v1587_v38 = vsel %vm10106_vm14, %v8835_v56, %v1586_v54  ;;  %v1949_v10 = vld [vmem:[#allocation2 + $0x90] sm:$0xf] }
 0x136   : > { %v1588_v21 = vrot.slane %v1586_v54, 4  ;;  %979 = vst [vmem:[#allocation2 + $0x9c] sm:$0xf] %v978_v18  ;;  %v982_v0 = vsel %vm10008_vm4, %v790_v30, %v981_v15  ;;  %v2492_v26 = vsel %vm10106_vm14, %v2490_v4, %v2491_v7  ;;  %v1785_v55 = vunpack.c.l.b16 %v1587_v38 }
 0x137   : > { %983 = vst [vmem:[#allocation2 + $0xa4] sm:$0x1] %v982_v0  ;;  %v2698_v27 = vunpack.c.l.b16 %v2492_v26  ;;  %v1902_v62 = vsel %vm1892_vm6, %v1858_v12, %v1820_v16  ;;  %v1297_v17 = vshrl.u32 %v1025_v58, 16  ;;  %v1300_v22 = vshll.u32 %v1025_v58, 16 }
 0x138   : > { %v1590_v39 = vsel %vm10106_vm14, %v1588_v21, %v1589_v57  ;;  %9014 = vmatmul.msk.bf16.gmra.mxu1 %vm2847_vm7, %v1902_v62  ;;  %v1306_v52 = vshll.u32 %v10786_v25, 16  ;;  %v1310_v19 = vshrl.u32 %v10786_v25, 16  ;;  %v1316_v36 = vshll.u32 %v10791_v5, 16 }
 0x139   : > { %v1786_v14 = vunpack.c.l.b16 %v1590_v39  ;;  %v2720_v29 = vpack.c.b16 %v2698_v27, %v2697_v41  ;;  %v1299_v47 = vrot.slane %v1297_v17, 4  ;;  %v2240_v63 = vshrl.u32 %v1949_v10, 16 }
 0x13a   : > { %2667 = vrot.lane.b32.xlu0 %v2641_v50, %s9947_s14  ;;  %v1302_v34 = vrot.slane %v1300_v22, 5  ;;  %v1308_v48 = vrot.slane %v1306_v52, 5  ;;  %v1312_v28 = vrot.slane %v1310_v19, 4  ;;  %v10913_v25 = vsel %vm1843_vm15, %v9698_v8, %v3832_v33  ;;  %v350_v22 = vld [vmem:[#allocation2 + $0xa8] sm:$0x1]  ;;  %v2736_v52 = vpop.permute.xlu2 %2735 }
 0x13b   : > { %2745 = vrot.lane.b32.xlu2 %v2720_v29, %s9948_s15  ;;  %v10910_v60 = vpack.c.b16 %v1786_v14, %v1785_v55  ;;  %v1318_v43 = vrot.slane %v1316_v36, 5  ;;  %v2242_v45 = vrot.slane %v2240_v63, 4  ;;  %v2243_v6 = vshll.u32 %v1949_v10, 16 }
 0x13c   : > { %v3126_v51 = vld [vmem:[#allocation2 + $0xa0] sm:$0xf]  ;;  %v2249_v5 = vshll.u32 %v10903_v31, 16  ;;  %v2253_v61 = vshrl.u32 %v10903_v31, 16  ;;  %v2259_v13 = vshll.u32 %v10907_v42, 16  ;;  %v1303_v7 = vor.u32 %v1302_v34, %v1299_v47 }
 0x13d   : > { %v3546_v24 = vld [vmem:[#allocation2 + $0x9c] sm:$0xe]  ;;  %v3678_v37 = vrot.slane %v3126_v51, 5  ;;  %v3425_v20 = vshll.u32 %v3126_v51, 16  ;;  %v1313_v50 = vor.u32 %v1312_v28, %v1308_v48  ;;  %v3429_v40 = vshrl.u32 %v3126_v51, 16 }
 0x13e   : > { %v3125_v30 = vld [vmem:[#allocation2 + $0x9c] sm:$0xf]  ;;  %v3146_v56 = vld [vmem:[#allocation2 + $0xa4] sm:$0x1]  ;;  %v9037_v54 = vrot.slane %v3546_v24, 9  ;;  %v1304_v26 = vrot.slane %v1303_v7, 4 }
 0x13f   : > { %v3416_v57 = vshrl.u32 %v3125_v30, 16  ;;  %v3419_v59 = vshll.u32 %v3125_v30, 16  ;;  %v3680_v53 = vrot.slane %v3678_v37, 4  ;;  %v3681_v4 = vrot.slane %v3146_v56, 5  ;;  %v406_v51 = vld [vmem:[#allocation2 + $0xb0] sm:$0x1] }
 0x140   : > { %v3427_v12 = vrot.slane %v3425_v20, 5  ;;  %v3435_v16 = vshll.u32 %v3146_v56, 16  ;;  %v3679_v58 = vsel %vm10106_vm14, %v9037_v54, %v3678_v37  ;;  %v3431_v41 = vrot.slane %v3429_v40, 4  ;;  %v562_v24 = vld [vmem:[%s10028_s13 + $0x68] sm:$0xf]  ;;  %v10927_v37 = vpop.permute.xlu1 %3913  ;;  %v9681_v30 = vld [vmem:[#allocation2 + $0x3c] sm:$0xff]  ;;  %v2656_v56 = vpop.permute.xlu0 %2655 }
 0x141   : > { %v3418_v18 = vrot.slane %v3416_v57, 4  ;;  %v3421_v15 = vrot.slane %v3419_v59, 5  ;;  %v3682_v38 = vsel %vm10106_vm14, %v3680_v53, %v3681_v4  ;;  %v3877_v21 = vunpack.c.l.b16 %v3679_v58 }
 0x142   : > { %v3437_v0 = vrot.slane %v3435_v16, 5  ;;  %v3878_v55 = vunpack.c.l.b16 %v3682_v38  ;;  %v3432_v27 = vor.u32 %v3431_v41, %v3427_v12  ;;  %v1314_v39 = vrot.slane %v1313_v50, 4  ;;  %v2369_v16 = vld [vmem:[#allocation2 + $0x84] sm:$0xe] }
 0x143   : > { %v3422_v10 = vor.u32 %v3421_v15, %v3418_v18  ;;  %v1309_v8 = vsel %vm10064_vm11, %v1304_v26, %v1308_v48  ;;  %v2245_v62 = vrot.slane %v2243_v6, 5  ;;  %v2251_v17 = vrot.slane %v2249_v5, 5 }
 0x144   : > { %v2255_v14 = vrot.slane %v2253_v61, 4  ;;  %v3898_v19 = vpack.c.b16 %v3878_v55, %v3877_v21  ;;  %v3433_v47 = vrot.slane %v3432_v27, 4  ;;  %v1319_v36 = vsel %vm10064_vm11, %v1314_v39, %v1318_v43  ;;  %v563_v61 = vld [vmem:[%s10028_s13 + $0x6c] sm:$0xf]  ;;  %v10950_v55 = vld [vmem:[#allocation2 + $0x94] sm:$0xf] }
 0x145   : > { %v3423_v29 = vrot.slane %v3422_v10, 4  ;;  %v1703_v63 = vunpack.c.l.b16 %v1309_v8  ;;  %v1704_v33 = vunpack.c.l.b16 %v1319_v36  ;;  %v2246_v34 = vor.u32 %v2245_v62, %v2242_v45  ;;  %v1452_v10 = vld [vmem:[#allocation2 + $0x90] sm:$0xe] }
 0x146   : > { %v2256_v28 = vor.u32 %v2255_v14, %v2251_v17  ;;  %3925 = vrot.lane.b32.xlu1 %v3898_v19, %s9948_s15  ;;  %v3438_v6 = vsel %vm10064_vm11, %v3433_v47, %v3437_v0  ;;  %v2261_v5 = vrot.slane %v2259_v13, 5  ;;  %v351_v43 = vsel %vm10008_vm4, 0, %v350_v22  ;;  %v9665_v14 = vld [vmem:[#allocation2 + $0x3c] sm:$0xff] }
 0x147   : > { %v3428_v48 = vsel %vm10064_vm11, %v3423_v29, %v3427_v12  ;;  %v3798_v20 = vunpack.c.l.b16 %v3438_v6  ;;  %v1725_v7 = vpack.c.b16 %v1704_v33, %v1703_v63  ;;  %v2247_v50 = vrot.slane %v2246_v34, 4  ;;  %352 = vst [vmem:[#allocation2 + $0xa8] sm:$0x1] %v351_v43 }
 0x148   : > { %v3797_v45 = vunpack.c.l.b16 %v3428_v48  ;;  %v2257_v54 = vrot.slane %v2256_v28, 4  ;;  %v407_v57 = vsel %vm10015_vm5, 0, %v406_v51  ;;  %v792_v59 = vshrl.u32 %v562_v24, 16  ;;  %v1822_v51 = vpop.permute.xlu1 %1821 }
 0x149   : > { %v795_v40 = vshll.u32 %v562_v24, 16  ;;  %1751 = vrot.lane.b32.xlu2 %v1725_v7, %s9947_s14  ;;  %v2252_v13 = vsel %vm10064_vm11, %v2247_v50, %v2251_v17  ;;  %408 = vst [vmem:[#allocation2 + $0xb0] sm:$0x1] %v407_v57  ;;  %v800_v4 = vshrl.u32 %v563_v61, 16  ;;  %v803_v12 = vshll.u32 %v563_v61, 16 }
 0x14a   : > { %v3818_v53 = vpack.c.b16 %v3798_v20, %v3797_v45  ;;  %v2262_v58 = vsel %vm10064_vm11, %v2257_v54, %v2261_v5  ;;  %v2621_v18 = vunpack.c.l.b16 %v2252_v13  ;;  %v794_v15 = vrot.slane %v792_v59, 7  ;;  %v10955_v17 = vld [vmem:[#allocation2 + $0x98] sm:$0x1]  ;;  %v1027_v24 = vld [vmem:[#allocation2 + $0x84] sm:$0xf] }
 0x14b   : > { %v2773_v41 = vsel %vm1843_vm15, %v9681_v30, %v2656_v56  ;;  %v2622_v38 = vunpack.c.l.b16 %v2262_v58  ;;  %v802_v21 = vrot.slane %v800_v4, 7  ;;  %v3992_v0 = vsel %vm1892_vm6, %v10913_v25, %v10845_v11  ;;  %v9699_v20 = vld [vmem:[#allocation2 + $0x54] sm:$0xff]  ;;  %v1951_v7 = vld [vmem:[#allocation2 + $0x9c] sm:$0xf]  ;;  %v10983_v4 = vld [vmem:[#allocation2 + $0xa0] sm:$0xf] }
 0x14c   : > { %3845 = vrot.lane.b32.xlu0 %v3818_v53, %s9947_s14  ;;  %v2816_v26 = vsel %vm1892_vm6, %v2773_v41, %v2736_v52  ;;  %v797_v27 = vor.u32 %v795_v40, %v794_v15  ;;  %v798_v39 = vrot.slane %v794_v15, 4  ;;  %9116 = vmatmul.msk.bf16.gmra.mxu2 %vm2847_vm7, %v3992_v0  ;;  %v8914_v8 = vrot.slane %v2369_v16, 9  ;;  %v1742_v52 = vpop.permute.xlu2 %1741 }
 0x14d   : > { %8994 = vmatmul.msk.bf16.gmra.mxu0 %vm2847_vm7, %v2816_v26  ;;  %v2495_v62 = vrot.slane %v10823_v2, 5  ;;  %v2642_v22 = vpack.c.b16 %v2622_v38, %v2621_v18  ;;  %v805_v19 = vor.u32 %v803_v12, %v802_v21  ;;  %v807_v11 = vrot.slane %v802_v21, 4  ;;  %v3834_v12 = vpop.permute.xlu0 %3833 }
 0x14e   : > { %v2498_v25 = vrot.slane %v10825_v35, 5  ;;  %1833 = vrot.lane.b32.xlu1 %v10910_v60, %s9948_s15  ;;  %v984_v29 = vld [vmem:[#allocation2 + $0xa8] sm:$0xf]  ;;  %v8836_v63 = vrot.slane %v1452_v10, 9  ;;  %v1593_v2 = vrot.slane %v10950_v55, 5  ;;  %v1596_v35 = vrot.slane %v10955_v17, 5 }
 0x14f   : > { %v2496_v47 = vsel %vm10106_vm14, %v8914_v8, %v2495_v62  ;;  %v2497_v36 = vrot.slane %v2495_v62, 4  ;;  %v806_v33 = vsel %vm10045_vm9, %v798_v39, %v805_v19  ;;  %v985_v34 = vsel %vm10058_vm10, %v797_v27, %v984_v29 }
 0x150   : > { %v2699_v28 = vunpack.c.l.b16 %v2496_v47  ;;  %986 = vst [vmem:[#allocation2 + $0xa8] sm:$0xf] %v985_v34  ;;  %v988_v60 = vld [vmem:[#allocation2 + $0xb0] sm:$0x1]  ;;  %v1594_v6 = vsel %vm10106_vm14, %v8836_v63, %v1593_v2  ;;  %v1595_v5 = vrot.slane %v1593_v2, 4  ;;  %v1861_v43 = vsel %vm1843_vm15, %v9665_v14, %v1742_v52 }
 0x151   : > { %v2499_v48 = vsel %vm10106_vm14, %v2497_v36, %v2498_v25  ;;  %987 = vst.msk [vmem:[#allocation2 + $0xac] sm:$0xf] %vm297_vm0, %v806_v33  ;;  %v989_v61 = vsel %vm10008_vm4, %v807_v11, %v988_v60  ;;  %v1787_v45 = vunpack.c.l.b16 %v1594_v6  ;;  %v1904_v56 = vsel %vm1892_vm6, %v1861_v43, %v1822_v51 }
 0x152   : > { %v2700_v30 = vunpack.c.l.b16 %v2499_v48  ;;  %990 = vst [vmem:[#allocation2 + $0xb0] sm:$0x1] %v989_v61  ;;  %v1597_v50 = vsel %vm10106_vm14, %v1595_v5, %v1596_v35  ;;  %v1321_v54 = vshrl.u32 %v1027_v24, 16  ;;  %v1324_v57 = vshll.u32 %v1027_v24, 16  ;;  %9015 = vmatmul.msk.bf16.gmra.mxu1 %vm2847_vm7, %v1904_v56 }
 0x153   : > { %v1788_v40 = vunpack.c.l.b16 %v1597_v50  ;;  %v1330_v53 = vshll.u32 %v10863_v23, 16  ;;  %v1334_v13 = vshrl.u32 %v10863_v23, 16  ;;  %v1340_v18 = vshll.u32 %v10871_v9, 16 }
 0x154   : > { %2669 = vrot.lane.b32.xlu0 %v2642_v22, %s9947_s14  ;;  %v2721_v59 = vpack.c.b16 %v2700_v30, %v2699_v28  ;;  %v1323_v16 = vrot.slane %v1321_v54, 4  ;;  %v1326_v58 = vrot.slane %v1324_v57, 5  ;;  %v2264_v15 = vshrl.u32 %v1951_v7, 16  ;;  %v2738_v54 = vpop.permute.xlu2 %2737 }
 0x155   : > { %v10988_v41 = vsel %vm1843_vm15, %v9699_v20, %v3834_v12  ;;  %v1332_v38 = vrot.slane %v1330_v53, 5  ;;  %v1336_v21 = vrot.slane %v1334_v13, 4  ;;  %v2267_v0 = vshll.u32 %v1951_v7, 16  ;;  %v353_v13 = vld [vmem:[#allocation2 + $0xb4] sm:$0x1] }
 0x156   : > { %2747 = vrot.lane.b32.xlu2 %v2721_v59, %s9948_s15  ;;  %v1327_v26 = vor.u32 %v1326_v58, %v1323_v16  ;;  %v1342_v10 = vrot.slane %v1340_v18, 5  ;;  %v2266_v27 = vrot.slane %v2264_v15, 4  ;;  %v2273_v23 = vshll.u32 %v10983_v4, 16  ;;  %v409_v15 = vld [vmem:[#allocation2 + $0xbc] sm:$0x1] }
 0x157   : > { %v3547_v39 = vld [vmem:[#allocation2 + $0xa8] sm:$0xe]  ;;  %v10991_v62 = vpack.c.b16 %v1788_v40, %v1787_v45  ;;  %v1337_v14 = vor.u32 %v1336_v21, %v1332_v38  ;;  %v2269_v9 = vrot.slane %v2267_v0, 5  ;;  %v2277_v22 = vshrl.u32 %v10983_v4, 16  ;;  %v10998_v45 = vld [vmem:[#allocation2 + $0xa4] sm:$0x1] }
 0x158   : > { %v3127_v8 = vld [vmem:[#allocation2 + $0xa8] sm:$0xf]  ;;  %v3128_v19 = vld [vmem:[#allocation2 + $0xac] sm:$0xf]  ;;  %v9038_v11 = vrot.slane %v3547_v39, 9  ;;  %v1328_v29 = vrot.slane %v1327_v26, 4 }
 0x159   : > { %v3440_v25 = vshrl.u32 %v3127_v8, 16  ;;  %v3443_v52 = vshll.u32 %v3127_v8, 16  ;;  %v3147_v47 = vld [vmem:[#allocation2 + $0xb0] sm:$0x1]  ;;  %v3685_v36 = vrot.slane %v3128_v19, 5  ;;  %v3449_v63 = vshll.u32 %v3128_v19, 16 }
 0x15a   : > { %v3453_v2 = vshrl.u32 %v3128_v19, 16  ;;  %v1338_v33 = vrot.slane %v1337_v14, 4  ;;  %v3688_v34 = vrot.slane %v3147_v47, 5  ;;  %v3459_v51 = vshll.u32 %v3147_v47, 16  ;;  %v564_v39 = vld [vmem:[%s10028_s13 + $0x70] sm:$0xf]  ;;  %v2658_v19 = vpop.permute.xlu0 %2657 }
 0x15b   : > { %v3442_v28 = vrot.slane %v3440_v25, 4  ;;  %v3445_v35 = vrot.slane %v3443_v52, 5  ;;  %v3686_v24 = vsel %vm10106_vm14, %v9038_v11, %v3685_v36  ;;  %v3687_v60 = vrot.slane %v3685_v36, 4  ;;  %v9682_v8 = vld [vmem:[#allocation2 + $0x48] sm:$0xff]  ;;  %v2370_v47 = vld [vmem:[#allocation2 + $0x90] sm:$0xe] }
 0x15c   : > { %v3451_v48 = vrot.slane %v3449_v63, 5  ;;  %v3455_v6 = vrot.slane %v3453_v2, 4  ;;  %v3879_v5 = vunpack.c.l.b16 %v3686_v24  ;;  %v3461_v61 = vrot.slane %v3459_v51, 5  ;;  %v1453_v24 = vld [vmem:[#allocation2 + $0x9c] sm:$0xe] }
 0x15d   : > { %v3446_v43 = vor.u32 %v3445_v35, %v3442_v28  ;;  %v1333_v30 = vsel %vm10064_vm11, %v1328_v29, %v1332_v38  ;;  %v3689_v20 = vsel %vm10106_vm14, %v3687_v60, %v3688_v34  ;;  %v1343_v50 = vsel %vm10064_vm11, %v1338_v33, %v1342_v10  ;;  %v11005_v38 = vpop.permute.xlu1 %3915 }
 0x15e   : > { %v3456_v7 = vor.u32 %v3455_v6, %v3451_v48  ;;  %v1705_v56 = vunpack.c.l.b16 %v1333_v30  ;;  %v3880_v57 = vunpack.c.l.b16 %v3689_v20  ;;  %v1706_v40 = vunpack.c.l.b16 %v1343_v50  ;;  %v11035_v50 = vld [vmem:[#allocation2 + $0xa4] sm:$0x1] }
 0x15f   : > { %v3447_v59 = vrot.slane %v3446_v43, 4  ;;  %v2270_v53 = vor.u32 %v2269_v9, %v2266_v27  ;;  %v2275_v16 = vrot.slane %v2273_v23, 5  ;;  %v2279_v58 = vrot.slane %v2277_v22, 4  ;;  %v565_v22 = vld [vmem:[%s10028_s13 + $0x74] sm:$0xf] }
 0x160   : > { %v3457_v12 = vrot.slane %v3456_v7, 4  ;;  %v2283_v18 = vshll.u32 %v10998_v45, 16  ;;  %v3899_v21 = vpack.c.b16 %v3880_v57, %v3879_v5  ;;  %v1726_v26 = vpack.c.b16 %v1706_v40, %v1705_v56  ;;  %v11030_v43 = vld [vmem:[#allocation2 + $0xa0] sm:$0xf]  ;;  %v9666_v56 = vld [vmem:[#allocation2 + $0x48] sm:$0xff] }
 0x161   : > { %v3452_v0 = vsel %vm10064_vm11, %v3447_v59, %v3451_v48  ;;  %v2271_v10 = vrot.slane %v2270_v53, 4  ;;  %v2280_v9 = vor.u32 %v2279_v58, %v2275_v16  ;;  %v354_v52 = vsel %vm10008_vm4, 0, %v353_v13  ;;  %v1029_v40 = vld [vmem:[#allocation2 + $0x90] sm:$0xf] }
 0x162   : > { %v3462_v27 = vsel %vm10064_vm11, %v3457_v12, %v3461_v61  ;;  %v3799_v14 = vunpack.c.l.b16 %v3452_v0  ;;  %v2285_v23 = vrot.slane %v2283_v18, 5  ;;  %3927 = vrot.lane.b32.xlu1 %v3899_v21, %s9948_s15  ;;  %1753 = vrot.lane.b32.xlu2 %v1726_v26, %s9947_s14  ;;  %v410_v29 = vsel %vm10015_vm5, 0, %v409_v15  ;;  %355 = vst [vmem:[#allocation2 + $0xb4] sm:$0x1] %v354_v52  ;;  %v11059_v52 = vld [vmem:[#allocation2 + $0xac] sm:$0xf] }
 0x163   : > { %v3800_v11 = vunpack.c.l.b16 %v3462_v27  ;;  %v2276_v25 = vsel %vm10064_vm11, %v2271_v10, %v2275_v16  ;;  %v2281_v36 = vrot.slane %v2280_v9, 4  ;;  %v809_v2 = vshrl.u32 %v564_v39, 16  ;;  %411 = vst [vmem:[#allocation2 + $0xbc] sm:$0x1] %v410_v29 }
 0x164   : > { %v11021_v63 = vunpack.c.l.b16 %v2276_v25  ;;  %v812_v33 = vshll.u32 %v564_v39, 16  ;;  %v817_v28 = vshrl.u32 %v565_v22, 16  ;;  %v820_v35 = vshll.u32 %v565_v22, 16  ;;  %v1953_v39 = vld [vmem:[#allocation2 + $0xa8] sm:$0xf] }
 0x165   : > { %v3819_v34 = vpack.c.b16 %v3800_v11, %v3799_v14  ;;  %v2776_v51 = vsel %vm1843_vm15, %v9682_v8, %v2658_v19  ;;  %v2286_v60 = vsel %vm10064_vm11, %v2281_v36, %v2285_v23  ;;  %v811_v48 = vrot.slane %v809_v2, 7  ;;  %v1824_v15 = vpop.permute.xlu1 %1823  ;;  %v9700_v11 = vld [vmem:[#allocation2 + $0x60] sm:$0xff] }
 0x166   : > { %v3994_v6 = vsel %vm1892_vm6, %v10988_v41, %v10927_v37  ;;  %v2818_v5 = vsel %vm1892_vm6, %v2776_v51, %v2738_v54  ;;  %v2624_v61 = vunpack.c.l.b16 %v2286_v60  ;;  %v819_v30 = vrot.slane %v817_v28, 7  ;;  %v1744_v54 = vpop.permute.xlu2 %1743  ;;  %v356_v51 = vld [vmem:[#allocation2 + $0xc0] sm:$0x1] }
 0x167   : > { %3847 = vrot.lane.b32.xlu0 %v3819_v34, %s9947_s14  ;;  %9117 = vmatmul.msk.bf16.gmra.mxu2 %vm2847_vm7, %v3994_v6  ;;  %v8915_v20 = vrot.slane %v2370_v47, 9  ;;  %v2502_v7 = vrot.slane %v10903_v31, 5  ;;  %v814_v57 = vor.u32 %v812_v33, %v811_v48  ;;  %v815_v59 = vrot.slane %v811_v48, 4  ;;  %v3836_v47 = vpop.permute.xlu0 %3835  ;;  %v11068_v48 = vld [vmem:[#allocation2 + $0xb0] sm:$0x1] }
 0x168   : > { %8995 = vmatmul.msk.bf16.gmra.mxu0 %vm2847_vm7, %v2818_v5  ;;  %v2505_v37 = vrot.slane %v10907_v42, 5  ;;  %v8837_v41 = vrot.slane %v1453_v24, 9  ;;  %v822_v53 = vor.u32 %v820_v35, %v819_v30  ;;  %v824_v13 = vrot.slane %v819_v30, 4 }
 0x169   : > { %v2503_v12 = vsel %vm10106_vm14, %v8915_v20, %v2502_v7  ;;  %v2643_v16 = vpack.c.b16 %v2624_v61, %v11021_v63  ;;  %v2504_v31 = vrot.slane %v2502_v7, 4  ;;  %v1600_v58 = vrot.slane %v11030_v43, 5  ;;  %v991_v21 = vld [vmem:[#allocation2 + $0xb4] sm:$0xf] }
 0x16a   : > { %v1603_v18 = vrot.slane %v11035_v50, 5  ;;  %1835 = vrot.lane.b32.xlu1 %v10991_v62, %s9948_s15  ;;  %v823_v42 = vsel %vm10045_vm9, %v815_v59, %v822_v53  ;;  %v2701_v0 = vunpack.c.l.b16 %v2503_v12  ;;  %v1864_v26 = vsel %vm1843_vm15, %v9666_v56, %v1744_v54  ;;  %v995_v27 = vld [vmem:[#allocation2 + $0xbc] sm:$0x1] }
 0x16b   : > { %v1345_v10 = vshrl.u32 %v1029_v40, 16  ;;  %v992_v8 = vsel %vm10058_vm10, %v814_v57, %v991_v21  ;;  %994 = vst.msk [vmem:[#allocation2 + $0xb8] sm:$0xf] %vm297_vm0, %v823_v42  ;;  %v2506_v14 = vsel %vm10106_vm14, %v2504_v31, %v2505_v37  ;;  %v1601_v62 = vsel %vm10106_vm14, %v8837_v41, %v1600_v58 }
 0x16c   : > { %v1602_v9 = vrot.slane %v1600_v58, 4  ;;  %993 = vst [vmem:[#allocation2 + $0xb4] sm:$0xf] %v992_v8  ;;  %v996_v23 = vsel %vm10008_vm4, %v824_v13, %v995_v27  ;;  %v2702_v22 = vunpack.c.l.b16 %v2506_v14  ;;  %v1789_v19 = vunpack.c.l.b16 %v1601_v62 }
 0x16d   : > { %v1906_v25 = vsel %vm1892_vm6, %v1864_v26, %v1824_v15  ;;  %997 = vst [vmem:[#allocation2 + $0xbc] sm:$0x1] %v996_v23  ;;  %v1347_v36 = vrot.slane %v1345_v10, 4  ;;  %v1348_v63 = vshll.u32 %v1029_v40, 16  ;;  %v1354_v2 = vshll.u32 %v10950_v55, 16 }
 0x16e   : > { %v1604_v29 = vsel %vm10106_vm14, %v1602_v9, %v1603_v18  ;;  %9016 = vmatmul.msk.bf16.gmra.mxu1 %vm2847_vm7, %v1906_v25  ;;  %v2722_v33 = vpack.c.b16 %v2702_v22, %v2701_v0  ;;  %v1358_v28 = vshrl.u32 %v10950_v55, 16  ;;  %v1364_v35 = vshll.u32 %v10955_v17, 16  ;;  %v2740_v25 = vpop.permute.xlu2 %2739 }
 0x16f   : > { %2671 = vrot.lane.b32.xlu0 %v2643_v16, %s9947_s14  ;;  %v1790_v34 = vunpack.c.l.b16 %v1604_v29  ;;  %v1350_v24 = vrot.slane %v1348_v63, 5  ;;  %v1356_v60 = vrot.slane %v1354_v2, 5  ;;  %v2288_v6 = vshrl.u32 %v1953_v39, 16  ;;  %v2660_v29 = vpop.permute.xlu0 %2659 }
 0x170   : > { %v2291_v5 = vshll.u32 %v1953_v39, 16  ;;  %2749 = vrot.lane.b32.xlu2 %v2722_v33, %s9948_s15  ;;  %v11074_v30 = vsel %vm1843_vm15, %v9700_v11, %v3836_v47  ;;  %v1360_v20 = vrot.slane %v1358_v28, 4  ;;  %v2297_v7 = vshll.u32 %v11059_v52, 16  ;;  %v11085_v33 = vpop.permute.xlu1 %3917 }
 0x171   : > { %v11071_v61 = vpack.c.b16 %v1790_v34, %v1789_v19  ;;  %v1351_v55 = vor.u32 %v1350_v24, %v1347_v36  ;;  %v1366_v56 = vrot.slane %v1364_v35, 5  ;;  %v2290_v17 = vrot.slane %v2288_v6, 4  ;;  %v412_v24 = vld [vmem:[#allocation2 + $0xc8] sm:$0x1] }
 0x172   : > { %v2293_v57 = vrot.slane %v2291_v5, 5  ;;  %v3130_v59 = vld [vmem:[#allocation2 + $0xb8] sm:$0xf]  ;;  %v2299_v37 = vrot.slane %v2297_v7, 5  ;;  %v2301_v41 = vshrl.u32 %v11059_v52, 16  ;;  %v2307_v54 = vshll.u32 %v11068_v48, 16 }
 0x173   : > { %v357_v40 = vsel %vm10008_vm4, 0, %v356_v51  ;;  %v3548_v53 = vld [vmem:[#allocation2 + $0xb4] sm:$0xe]  ;;  %v3692_v13 = vrot.slane %v3130_v59, 5  ;;  %v3473_v16 = vshll.u32 %v3130_v59, 16  ;;  %v1361_v31 = vor.u32 %v1360_v20, %v1356_v60 }
 0x174   : > { %v3129_v12 = vld [vmem:[#allocation2 + $0xb4] sm:$0xf]  ;;  %v2294_v58 = vor.u32 %v2293_v57, %v2290_v17  ;;  %v3148_v18 = vld [vmem:[#allocation2 + $0xbc] sm:$0x1]  ;;  %v9039_v15 = vrot.slane %v3548_v53, 9  ;;  %v3477_v0 = vshrl.u32 %v3130_v59, 16 }
 0x175   : > { %v3464_v42 = vshrl.u32 %v3129_v12, 16  ;;  %v3467_v21 = vshll.u32 %v3129_v12, 16  ;;  %v3694_v26 = vrot.slane %v3692_v13, 4  ;;  %v3695_v10 = vrot.slane %v3148_v18, 5  ;;  %358 = vst [vmem:[#allocation2 + $0xc0] sm:$0x1] %v357_v40 }
 0x176   : > { %v3475_v39 = vrot.slane %v3473_v16, 5  ;;  %v3483_v8 = vshll.u32 %v3148_v18, 16  ;;  %v3693_v27 = vsel %vm10106_vm14, %v9039_v15, %v3692_v13  ;;  %v3479_v9 = vrot.slane %v3477_v0, 4  ;;  %v566_v40 = vld [vmem:[%s10028_s13 + $0x78] sm:$0xf] }
 0x177   : > { %v3466_v14 = vrot.slane %v3464_v42, 4  ;;  %v3469_v62 = vrot.slane %v3467_v21, 5  ;;  %v3696_v23 = vsel %vm10106_vm14, %v3694_v26, %v3695_v10  ;;  %v3881_v22 = vunpack.c.l.b16 %v3693_v27  ;;  %v567_v53 = vld [vmem:[%s10028_s13 + $0x7c] sm:$0xf]  ;;  %v9683_v13 = vld [vmem:[#allocation2 + $0x54] sm:$0xff]  ;;  %v1746_v27 = vpop.permute.xlu2 %1745 }
 0x178   : > { %v3485_v19 = vrot.slane %v3483_v8, 5  ;;  %v1352_v11 = vrot.slane %v1351_v55, 4  ;;  %v3882_v47 = vunpack.c.l.b16 %v3696_v23  ;;  %v3480_v63 = vor.u32 %v3479_v9, %v3475_v39  ;;  %v1454_v0 = vld [vmem:[#allocation2 + $0xa8] sm:$0xe] }
 0x179   : > { %v3470_v36 = vor.u32 %v3469_v62, %v3466_v14  ;;  %v1362_v2 = vrot.slane %v1361_v31, 4  ;;  %v2295_v28 = vrot.slane %v2294_v58, 4  ;;  %v2303_v35 = vrot.slane %v2301_v41, 4  ;;  %v2371_v58 = vld [vmem:[#allocation2 + $0x9c] sm:$0xe]  ;;  %v3838_v14 = vpop.permute.xlu0 %3837 }
 0x17a   : > { %v1357_v34 = vsel %vm10064_vm11, %v1352_v11, %v1356_v60  ;;  %v2309_v51 = vrot.slane %v2307_v54, 5  ;;  %v3900_v6 = vpack.c.b16 %v3882_v47, %v3881_v22  ;;  %v3481_v20 = vrot.slane %v3480_v63, 4  ;;  %v11115_v11 = vld [vmem:[#allocation2 + $0xb0] sm:$0x1]  ;;  %v1826_v47 = vpop.permute.xlu1 %1825 }
 0x17b   : > { %v3471_v5 = vrot.slane %v3470_v36, 4  ;;  %v1367_v7 = vsel %vm10064_vm11, %v1362_v2, %v1366_v56  ;;  %v1707_v55 = vunpack.c.l.b16 %v1357_v34  ;;  %v2300_v57 = vsel %vm10064_vm11, %v2295_v28, %v2299_v37 }
 0x17c   : > { %v1708_v17 = vunpack.c.l.b16 %v1367_v7  ;;  %v2304_v59 = vor.u32 %v2303_v35, %v2299_v37  ;;  %3929 = vrot.lane.b32.xlu1 %v3900_v6, %s9948_s15  ;;  %v3486_v41 = vsel %vm10064_vm11, %v3481_v20, %v3485_v19  ;;  %v11100_v54 = vunpack.c.l.b16 %v2300_v57  ;;  %v11113_v19 = vld [vmem:[#allocation2 + $0xac] sm:$0xf]  ;;  %v9667_v35 = vld [vmem:[#allocation2 + $0x54] sm:$0xff]  ;;  %v1031_v57 = vld [vmem:[#allocation2 + $0x9c] sm:$0xf] }
 0x17d   : > { %v3476_v60 = vsel %vm10064_vm11, %v3471_v5, %v3475_v39  ;;  %v413_v56 = vsel %vm10015_vm5, 0, %v412_v24  ;;  %v3802_v16 = vunpack.c.l.b16 %v3486_v41  ;;  %v826_v18 = vshrl.u32 %v566_v40, 16  ;;  %v1955_v41 = vld [vmem:[#allocation2 + $0xb4] sm:$0xf] }
 0x17e   : > { %v3801_v12 = vunpack.c.l.b16 %v3476_v60  ;;  %v1727_v31 = vpack.c.b16 %v1708_v17, %v1707_v55  ;;  %v2305_v37 = vrot.slane %v2304_v59, 4  ;;  %414 = vst [vmem:[#allocation2 + $0xc8] sm:$0x1] %v413_v56  ;;  %v829_v15 = vshll.u32 %v566_v40, 16  ;;  %v9701_v17 = vld [vmem:[#allocation2 + $0x6c] sm:$0xff] }
 0x17f   : > { %v834_v42 = vshrl.u32 %v567_v53, 16  ;;  %v837_v21 = vshll.u32 %v567_v53, 16  ;;  %v2779_v39 = vsel %vm1843_vm15, %v9683_v13, %v2660_v29  ;;  %v3996_v8 = vsel %vm1892_vm6, %v11074_v30, %v11005_v38  ;;  %v998_v29 = vld [vmem:[#allocation2 + $0xc0] sm:$0xf] }
 0x180   : > { %v3820_v26 = vpack.c.b16 %v3802_v16, %v3801_v12  ;;  %1755 = vrot.lane.b32.xlu2 %v1727_v31, %s9947_s14  ;;  %v2310_v10 = vsel %vm10064_vm11, %v2305_v37, %v2309_v51  ;;  %v828_v9 = vrot.slane %v826_v18, 7  ;;  %9118 = vmatmul.msk.bf16.gmra.mxu2 %vm2847_vm7, %v3996_v8  ;;  %v2820_v22 = vsel %vm1892_vm6, %v2779_v39, %v2740_v25 }
 0x181   : > { %v2626_v62 = vunpack.c.l.b16 %v2310_v10  ;;  %v836_v23 = vrot.slane %v834_v42, 7  ;;  %8996 = vmatmul.msk.bf16.gmra.mxu0 %vm2847_vm7, %v2820_v22  ;;  %v8916_v38 = vrot.slane %v2371_v58, 9  ;;  %v2509_v30 = vrot.slane %v10983_v4, 5  ;;  %v11156_v42 = vpop.permute.xlu2 %2741 }
 0x182   : > { %3849 = vrot.lane.b32.xlu0 %v3820_v26, %s9947_s14  ;;  %v2512_v36 = vrot.slane %v10998_v45, 5  ;;  %v8838_v63 = vrot.slane %v1454_v0, 9  ;;  %v831_v34 = vor.u32 %v829_v15, %v828_v9  ;;  %v832_v25 = vrot.slane %v828_v9, 4  ;;  %v11154_v15 = vld [vmem:[#allocation2 + $0xb8] sm:$0xf]  ;;  %v2662_v0 = vpop.permute.xlu0 %2661 }
 0x183   : > { %v2644_v2 = vpack.c.b16 %v2626_v62, %v11100_v54  ;;  %v839_v28 = vor.u32 %v837_v21, %v836_v23  ;;  %v841_v51 = vrot.slane %v836_v23, 4  ;;  %v2510_v24 = vsel %vm10106_vm14, %v8916_v38, %v2509_v30  ;;  %v9684_v21 = vld [vmem:[#allocation2 + $0x60] sm:$0xff] }
 0x184   : > { %v2511_v6 = vrot.slane %v2509_v30, 4  ;;  %v1607_v5 = vrot.slane %v11113_v19, 5  ;;  %1837 = vrot.lane.b32.xlu1 %v11071_v61, %s9948_s15  ;;  %v999_v45 = vsel %vm10058_vm10, %v831_v34, %v998_v29  ;;  %v2703_v7 = vunpack.c.l.b16 %v2510_v24 }
 0x185   : > { %v840_v4 = vsel %vm10045_vm9, %v832_v25, %v839_v28  ;;  %v1002_v20 = vld [vmem:[#allocation2 + $0xc8] sm:$0x1]  ;;  %v1610_v55 = vrot.slane %v11115_v11, 5  ;;  %1000 = vst [vmem:[#allocation2 + $0xc0] sm:$0xf] %v999_v45  ;;  %v1867_v60 = vsel %vm1843_vm15, %v9667_v35, %v1746_v27  ;;  %v1369_v12 = vshrl.u32 %v1031_v57, 16  ;;  %v11160_v27 = vpop.permute.xlu1 %3919 }
 0x186   : > { %v1003_v59 = vsel %vm10008_vm4, %v841_v51, %v1002_v20  ;;  %v2513_v40 = vsel %vm10106_vm14, %v2511_v6, %v2512_v36  ;;  %v11138_v61 = vsel %vm10106_vm14, %v8838_v63, %v1607_v5  ;;  %v1609_v53 = vrot.slane %v1607_v5, 4  ;;  %1001 = vst.msk [vmem:[#allocation2 + $0xc4] sm:$0xf] %vm297_vm0, %v840_v4  ;;  %v11169_v20 = vpop.f32.mrf.mxu1 }
 0x187   : > { %v2704_v44 = vunpack.c.l.b16 %v2513_v40  ;;  %v1791_v13 = vunpack.c.l.b16 %v11138_v61  ;;  %1004 = vst [vmem:[#allocation2 + $0xc8] sm:$0x1] %v1003_v59  ;;  %v1908_v56 = vsel %vm1892_vm6, %v1867_v60, %v1826_v47  ;;  %v1372_v16 = vshll.u32 %v1031_v57, 16 }
 0x188   : > { %v11145_v54 = vsel %vm10106_vm14, %v1609_v53, %v1610_v55  ;;  %v11149_v37 = vsel %vm1843_vm15, %v9701_v17, %v3838_v14  ;;  %9017 = vmatmul.msk.bf16.gmra.mxu1 %vm2847_vm7, %v1908_v56  ;;  %v1378_v58 = vshll.u32 %v11030_v43, 16  ;;  %v1382_v18 = vshrl.u32 %v11030_v43, 16 }
 0x189   : > { %v2723_v31 = vpack.c.b16 %v2704_v44, %v2703_v7  ;;  %v1371_v26 = vrot.slane %v1369_v12, 4  ;;  %v1374_v10 = vrot.slane %v1372_v16, 5  ;;  %v1388_v39 = vshll.u32 %v11035_v50, 16  ;;  %v11175_v16 = vld [vmem:[#allocation2 + $0xbc] sm:$0x1] }
 0x18a   : > { %2673 = vrot.lane.b32.xlu0 %v2644_v2, %s9947_s14  ;;  %v2312_v8 = vshrl.u32 %v1955_v41, 16  ;;  %v1792_v14 = vunpack.c.l.b16 %v11145_v54  ;;  %v1380_v43 = vrot.slane %v1378_v58, 5  ;;  %v1384_v62 = vrot.slane %v1382_v18, 4 }
 0x18b   : > { %2751 = vrot.lane.b32.xlu2 %v2723_v31, %s9948_s15  ;;  %v2315_v9 = vshll.u32 %v1955_v41, 16  ;;  %v1375_v23 = vor.u32 %v1374_v10, %v1371_v26  ;;  %v1390_v22 = vrot.slane %v1388_v39, 5  ;;  %v2321_v29 = vshll.u32 %v11154_v15, 16  ;;  %v11183_v26 = vpop.permute.xlu0 %3839 }
 0x18c   : > { %v2314_v47 = vrot.slane %v2312_v8, 4  ;;  %v3549_v38 = vld [vmem:[#allocation2 + $0xc0] sm:$0xe]  ;;  %v1385_v36 = vor.u32 %v1384_v62, %v1380_v43  ;;  %v2325_v50 = vshrl.u32 %v11154_v15, 16  ;;  %v11167_v2 = vsel %vm1843_vm15, %v9684_v21, %v2662_v0  ;;  %v11181_v0 = vpop.permute.xlu2 %1747 }
 0x18d   : > { %v3131_v30 = vld [vmem:[#allocation2 + $0xc0] sm:$0xf]  ;;  %v2317_v63 = vrot.slane %v2315_v9, 5  ;;  %v3132_v34 = vld [vmem:[#allocation2 + $0xc4] sm:$0xf]  ;;  %v9040_v25 = vrot.slane %v3549_v38, 9  ;;  %v2822_v3 = vsel %vm1892_vm6, %v11167_v2, %v11156_v42 }
 0x18e   : > { %v3488_v28 = vshrl.u32 %v3131_v30, 16  ;;  %v3491_v35 = vshll.u32 %v3131_v30, 16  ;;  %v1376_v51 = vrot.slane %v1375_v23, 4  ;;  %v3149_v24 = vld [vmem:[#allocation2 + $0xc8] sm:$0x1]  ;;  %v3699_v6 = vrot.slane %v3132_v34, 5 }
 0x18f   : > { %v3497_v5 = vshll.u32 %v3132_v34, 16  ;;  %v3501_v4 = vshrl.u32 %v3132_v34, 16  ;;  %v1386_v45 = vrot.slane %v1385_v36, 4  ;;  %v3702_v7 = vrot.slane %v3149_v24, 5  ;;  %v415_v9 = vld [vmem:[#allocation2 + $0xd4] sm:$0x1] }
 0x190   : > { %v3490_v55 = vrot.slane %v3488_v28, 4  ;;  %v3493_v17 = vrot.slane %v3491_v35, 5  ;;  %v3507_v57 = vshll.u32 %v3149_v24, 16  ;;  %v3700_v59 = vsel %vm10106_vm14, %v9040_v25, %v3699_v6  ;;  %v3550_v34 = vld [vmem:[#allocation2 + $0xcc] sm:$0xe]  ;;  %v11188_v25 = vpop.f32.mrf.mxu0 }
 0x191   : > { %v3701_v40 = vrot.slane %v3699_v6, 4  ;;  %v3499_v53 = vrot.slane %v3497_v5, 5  ;;  %v3503_v44 = vrot.slane %v3501_v4, 4  ;;  %v3883_v60 = vunpack.c.l.b16 %v3700_v59  ;;  %v3134_v24 = vld [vmem:[#allocation2 + $0xd0] sm:$0xf]  ;;  %8997 = vmatmul.msk.bf16.gmra.mxu0 %vm2847_vm7, %v2822_v3 }
 0x192   : > { %v3494_v41 = vor.u32 %v3493_v17, %v3490_v55  ;;  %v3509_v56 = vrot.slane %v3507_v57, 5  ;;  %v1381_v12 = vsel %vm10064_vm11, %v1376_v51, %v1380_v43  ;;  %v1391_v18 = vsel %vm10064_vm11, %v1386_v45, %v1390_v22  ;;  %v11185_v43 = vpop.permute.xlu1 %1827 }
 0x193   : > { %v3703_v31 = vsel %vm10106_vm14, %v3701_v40, %v3702_v7  ;;  %v3504_v58 = vor.u32 %v3503_v44, %v3499_v53  ;;  %v1709_v21 = vunpack.c.l.b16 %v1381_v12  ;;  %v1710_v8 = vunpack.c.l.b16 %v1391_v18  ;;  %v11207_v40 = vpop.f32.mrf.mxu1  ;;  %v11226_v2 = vpop.permute.xlu0 %2663  ;;  %v9668_v18 = vld [vmem:[#allocation2 + $0x60] sm:$0xff] }
 0x194   : > { %v3884_v10 = vunpack.c.l.b16 %v3703_v31  ;;  %v3495_v39 = vrot.slane %v3494_v41, 4  ;;  %v2318_v62 = vor.u32 %v2317_v63, %v2314_v47  ;;  %v2323_v38 = vrot.slane %v2321_v29, 5  ;;  %v2372_v29 = vld [vmem:[#allocation2 + $0xa8] sm:$0xe]  ;;  %v1455_v41 = vld [vmem:[#allocation2 + $0xb4] sm:$0xe]  ;;  %v11224_v42 = vpop.permute.xlu2 %2743 }
 0x195   : > { %v3505_v23 = vrot.slane %v3504_v58, 4  ;;  %v2327_v30 = vrot.slane %v2325_v50, 4  ;;  %v2331_v36 = vshll.u32 %v11175_v16, 16  ;;  %v1728_v35 = vpack.c.b16 %v1710_v8, %v1709_v21  ;;  %v11231_v58 = vld [vmem:[#allocation2 + $0xbc] sm:$0x1] }
 0x196   : > { %v3901_v22 = vpack.c.b16 %v3884_v10, %v3883_v60  ;;  %v3500_v28 = vsel %vm10064_vm11, %v3495_v39, %v3499_v53  ;;  %v2319_v51 = vrot.slane %v2318_v62, 4  ;;  %v416_v45 = vsel %vm10015_vm5, 0, %v415_v9  ;;  %v11222_v60 = vld [vmem:[#allocation2 + $0xb8] sm:$0xf]  ;;  %v11237_v62 = vpop.f32.mrf.mxu2 }
 0x197   : > { %v3510_v47 = vsel %vm10064_vm11, %v3505_v23, %v3509_v56  ;;  %v3803_v63 = vunpack.c.l.b16 %v3500_v28  ;;  %v2328_v6 = vor.u32 %v2327_v30, %v2323_v38  ;;  %v2333_v5 = vrot.slane %v2331_v36, 5  ;;  %1757 = vrot.lane.b32.xlu2 %v1728_v35, %s9947_s14  ;;  %417 = vst [vmem:[#allocation2 + $0xd4] sm:$0x1] %v416_v45  ;;  %v9702_v36 = vld [vmem:[#allocation2 + $0x78] sm:$0xff]  ;;  %v1033_v45 = vld [vmem:[#allocation2 + $0xa8] sm:$0xf] }
 0x198   : > { %3931 = vrot.lane.b32.xlu1 %v3901_v22, %s9948_s15  ;;  %v3804_v50 = vunpack.c.l.b16 %v3510_v47  ;;  %v2324_v4 = vsel %vm10064_vm11, %v2319_v51, %v2323_v38  ;;  %v9041_v7 = vrot.slane %v3550_v34, 9  ;;  %v1809_v55 = vpack.c.b16 %v1792_v14, %v1791_v13  ;;  %v359_v13 = vld [vmem:[#allocation2 + $0xcc] sm:$0x1]  ;;  %v11246_v35 = vpop.f32.mrf.mxu0 }
 0x199   : > { %v2329_v17 = vrot.slane %v2328_v6, 4  ;;  %v3706_v57 = vrot.slane %v3134_v24, 5  ;;  %v3998_v59 = vsel %vm1892_vm6, %v11149_v37, %v11085_v33  ;;  %v8917_v61 = vrot.slane %v2372_v29, 9 }
 0x19a   : > { %v3821_v53 = vpack.c.b16 %v3804_v50, %v3803_v63  ;;  %9119 = vmatmul.msk.bf16.gmra.mxu2 %vm2847_vm7, %v3998_v59  ;;  %v2516_v54 = vrot.slane %v11059_v52, 5  ;;  %v2627_v44 = vunpack.c.l.b16 %v2324_v4  ;;  %v2519_v37 = vrot.slane %v11068_v48, 5  ;;  %v11233_v21 = vpop.permute.xlu1 %3921 }
 0x19b   : > { %v2334_v14 = vsel %vm10064_vm11, %v2329_v17, %v2333_v5  ;;  %v11218_v33 = vsel %vm10106_vm14, %v9041_v7, %v3706_v57  ;;  %v3708_v56 = vrot.slane %v3706_v57, 4  ;;  %v360_v10 = vsel %vm10008_vm4, 0, %v359_v13  ;;  %v11254_v7 = vpop.f32.mrf.mxu1  ;;  %v9774_v17 = vld [vmem:[#allocation4 + $0xf8] sm:$0xff] }
 0x19c   : > { %3851 = vrot.lane.b32.xlu0 %v3821_v53, %s9947_s14  ;;  %v2628_v52 = vunpack.c.l.b16 %v2334_v14  ;;  %v2517_v12 = vsel %vm10106_vm14, %v8917_v61, %v2516_v54  ;;  %v2518_v31 = vrot.slane %v2516_v54, 4  ;;  %v3521_v39 = vshll.u32 %v3134_v24, 16  ;;  %361 = vst [vmem:[#allocation2 + $0xcc] sm:$0x1] %v360_v10  ;;  %v11268_v13 = vpop.permute.xlu2 %1749  ;;  %v11270_v14 = vpop.permute.xlu0 %3841  ;;  %6623 = vmatpush.bf16.msra.mxu3 %v9774_v17 }
 0x19d   : > { %v2705_v48 = vunpack.c.l.b16 %v2517_v12  ;;  %v3525_v8 = vshrl.u32 %v3134_v24, 16  ;;  %v3885_v9 = vunpack.c.l.b16 %v11218_v33  ;;  %v8839_v38 = vrot.slane %v1455_v41, 9 }
 0x19e   : > { %v2520_v23 = vsel %vm10106_vm14, %v2518_v31, %v2519_v37  ;;  %v1614_v30 = vrot.slane %v11222_v60, 5  ;;  %v11243_v22 = vrot.slane %v3521_v39, 5  ;;  %v1617_v1 = vrot.slane %v11231_v58, 5  ;;  %v3150_v24 = vld [vmem:[#allocation2 + $0xd4] sm:$0x1] }
 0x19f   : > { %v2706_v34 = vunpack.c.l.b16 %v2520_v23  ;;  %v3527_v28 = vrot.slane %v3525_v8, 4  ;;  %v2645_v51 = vpack.c.b16 %v2628_v52, %v2627_v44  ;;  %v1870_v6 = vsel %vm1843_vm15, %v9668_v18, %v11181_v0  ;;  %v1957_v18 = vld [vmem:[#allocation2 + $0xc0] sm:$0xf] }
 0x1a0   : > { %1839 = vrot.lane.b32.xlu1 %v1809_v55, %s9948_s15  ;;  %v1615_v47 = vsel %vm10106_vm14, %v8839_v38, %v1614_v30  ;;  %v1616_v63 = vrot.slane %v1614_v30, 4  ;;  %v3709_v5 = vrot.slane %v3150_v24, 5  ;;  %v3531_v4 = vshll.u32 %v3150_v24, 16  ;;  %v11286_v38 = vld [vmem:[#allocation2 + $0xc4] sm:$0xf] }
 0x1a1   : > { %v2724_v29 = vpack.c.b16 %v2706_v34, %v2705_v48  ;;  %v3528_v50 = vor.u32 %v3527_v28, %v11243_v22  ;;  %v1793_v57 = vunpack.c.l.b16 %v1615_v47  ;;  %v11260_v59 = vsel %vm1843_vm15, %v9702_v36, %v11183_v26  ;;  %v11284_v48 = vpop.f32.mrf.mxu2  ;;  %v11288_v30 = vld [vmem:[#allocation2 + $0xc8] sm:$0x1]  ;;  %v9685_v47 = vld [vmem:[#allocation2 + $0x6c] sm:$0xff] }
 0x1a2   : > { %v1618_v55 = vsel %vm10106_vm14, %v1616_v63, %v1617_v1  ;;  %v1910_v0 = vsel %vm1892_vm6, %v1870_v6, %v11185_v43  ;;  %v3710_v53 = vsel %vm10106_vm14, %v3708_v56, %v3709_v5  ;;  %v3533_v61 = vrot.slane %v3531_v4, 5  ;;  %v11274_v37 = vpop.permute.xlu1 %1829  ;;  %v9782_v1 = vld [vmem:[#allocation4 + $0x138] sm:$0xff]  ;;  %v9772_v4 = vld [vmem:[#allocation4 + $0xe8] sm:$0xff] }
 0x1a3   : > { %2753 = vrot.lane.b32.xlu2 %v2724_v29, %s9948_s15  ;;  %v3529_v3 = vrot.slane %v3528_v50, 4  ;;  %v1794_v54 = vunpack.c.l.b16 %v1618_v55  ;;  %9018 = vmatmul.msk.bf16.gmra.mxu1 %vm2847_vm7, %v1910_v0  ;;  %v3886_v26 = vunpack.c.l.b16 %v3710_v53  ;;  %v1393_v44 = vshrl.u32 %v1033_v45, 16  ;;  %v3133_v41 = vld [vmem:[#allocation2 + $0xcc] sm:$0xf]  ;;  %v11294_v50 = vpop.f32.mrf.mxu1 }
 0x1a4   : > { %2675 = vrot.lane.b32.xlu0 %v2645_v51, %s9947_s14  ;;  %v1396_v33 = vshll.u32 %v1033_v45, 16  ;;  %v1402_v43 = vshll.u32 %v11113_v19, 16  ;;  %v11280_v56 = vadd.f32 %v11169_v20, %v11188_v25  ;;  %v1406_v12 = vshrl.u32 %v11113_v19, 16  ;;  %v9773_v25 = vld [vmem:[#allocation4 + $0xf0] sm:$0xff]  ;;  %v11290_v19 = vpop.f32.mrf.mxu0  ;;  %6712 = vmatpush.bf16.msrb.mxu0 %v9782_v1 }
 0x1a5   : > { %v3534_v52 = vsel %vm10064_vm11, %v3529_v3, %v3533_v61  ;;  %v1412_v31 = vshll.u32 %v11115_v11, 16  ;;  %v3902_v10 = vpack.c.b16 %v3886_v26, %v3885_v9  ;;  %v3512_v39 = vshrl.u32 %v3133_v41, 16  ;;  %6624 = vmatpush.bf16.msra.mxu3 %v9773_v25  ;;  %v11300_v26 = vpop.permute.xlu0 %2665  ;;  %v2373_v25 = vld [vmem:[#allocation2 + $0xb4] sm:$0xe] }
 0x1a6   : > { %v3515_v8 = vshll.u32 %v3133_v41, 16  ;;  %v1810_v23 = vpack.c.b16 %v1794_v54, %v1793_v57  ;;  %v1395_v36 = vrot.slane %v1393_v44, 4  ;;  %v1398_v34 = vrot.slane %v1396_v33, 5  ;;  %v11298_v54 = vpop.permute.xlu2 %2745 }
 0x1a7   : > { %v1404_v28 = vrot.slane %v1402_v43, 5  ;;  %v1408_v20 = vrot.slane %v1406_v12, 4  ;;  %v3514_v11 = vrot.slane %v3512_v39, 4  ;;  %v1414_v9 = vrot.slane %v1412_v31, 5 }
 0x1a8   : > { %3933 = vrot.lane.b32.xlu1 %v3902_v10, %s9948_s15  ;;  %v3517_v51 = vrot.slane %v3515_v8, 5  ;;  %v2336_v24 = vshrl.u32 %v1957_v18, 16  ;;  %v1399_v63 = vor.u32 %v1398_v34, %v1395_v36  ;;  %v2339_v5 = vshll.u32 %v1957_v18, 16 }
 0x1a9   : > { %v1409_v6 = vor.u32 %v1408_v20, %v1404_v28  ;;  %v2345_v29 = vshll.u32 %v11286_v38, 16  ;;  %v2349_v55 = vshrl.u32 %v11286_v38, 16  ;;  %v2355_v57 = vshll.u32 %v11288_v30, 16  ;;  %6625 = vmatpush.bf16.msra.mxu3 %v9772_v4  ;;  %v11310_v8 = vpop.f32.mrf.mxu2  ;;  %v430_v20 = vld [vmem:[#allocation3 + $0xc] sm:$0x1] }
 0x1aa   : > { %v3518_v45 = vor.u32 %v3517_v51, %v3514_v11  ;;  %v2338_v17 = vrot.slane %v2336_v24, 4  ;;  %v1400_v0 = vrot.slane %v1399_v63, 4  ;;  %v2341_v3 = vrot.slane %v2339_v5, 5  ;;  %v11308_v39 = vpop.permute.xlu1 %3923  ;;  %v9771_v24 = vld [vmem:[#allocation4 + $0xe0] sm:$0xff] }
 0x1ab   : > { %v1410_v53 = vrot.slane %v1409_v6, 4  ;;  %v2347_v61 = vrot.slane %v2345_v29, 5  ;;  %v3806_v33 = vunpack.c.l.b16 %v3534_v52  ;;  %v2351_v43 = vrot.slane %v2349_v55, 4 }
 0x1ac   : > { %v3519_v44 = vrot.slane %v3518_v45, 4  ;;  %v2785_v41 = vsel %vm1843_vm15, %v9685_v47, %v11226_v2  ;;  %v1405_v12 = vsel %vm10064_vm11, %v1400_v0, %v1404_v28  ;;  %v2342_v18 = vor.u32 %v2341_v3, %v2338_v17  ;;  %v11318_v28 = vld [vmem:[%s13461_s2] ss:$0 sm:$0xff]  ;;  %v9734_v47 = vld [vmem:[#allocation4 + $0x38] sm:$0xff]  ;;  %v11325_v63 = vpop.f32.mrf.mxu0  ;;  %v11347_v17 = vpop.f32.mrf.mxu1 }
 0x1ad   : > { %v1415_v31 = vsel %vm10064_vm11, %v1410_v53, %v1414_v9  ;;  %v2357_v10 = vrot.slane %v2355_v57, 5  ;;  %v1711_v36 = vunpack.c.l.b16 %v1405_v12  ;;  %v2352_v2 = vor.u32 %v2351_v43, %v2347_v61  ;;  %6626 = vmatpush.bf16.msra.mxu3 %v9771_v24  ;;  %7034 = vmatpush.bf16.msrb.mxu2 %v9734_v47  ;;  %v9770_v0 = vld [vmem:[#allocation4 + $0xd8] sm:$0xff]  ;;  %v1035_v43 = vld [vmem:[#allocation2 + $0xb4] sm:$0xf] }
 0x1ae   : > { %v3524_v52 = vsel %vm10064_vm11, %v3519_v44, %v11243_v22  ;;  %v1712_v34 = vunpack.c.l.b16 %v1415_v31  ;;  %v2343_v11 = vrot.slane %v2342_v18, 4  ;;  %v4000_v51 = vsel %vm1892_vm6, %v11260_v59, %v11160_v27  ;;  %v9669_v22 = vld [vmem:[#allocation2 + $0x6c] sm:$0xff]  ;;  %v11334_v27 = vld [vmem:[%s13462_s3] ss:$0 sm:$0xff]  ;;  %v11373_v31 = vpop.permute.xlu2 %1751 }
 0x1af   : > { %v3805_v1 = vunpack.c.l.b16 %v3524_v52  ;;  %v2824_v9 = vsel %vm1892_vm6, %v2785_v41, %v11224_v42  ;;  %v2353_v5 = vrot.slane %v2352_v2, 4  ;;  %9120 = vmatmul.msk.bf16.gmra.mxu2 %vm2847_vm7, %v4000_v51  ;;  %vm425_vm0 = vcmask 1040384   ;;  %v9703_v42 = vld [vmem:[#allocation2 + $0x84] sm:$0xff] }
 0x1b0   : > { %1841 = vrot.lane.b32.xlu1 %v1810_v23, %s9948_s15  ;;  %v1729_v6 = vpack.c.b16 %v1712_v34, %v1711_v36  ;;  %v4147_v29 = vadd.f32 %v11237_v62, %v11280_v56  ;;  %v2348_v4 = vsel %vm10064_vm11, %v2343_v11, %v2347_v61  ;;  %v3025_v23 = vadd.f32 %v11207_v40, %v11246_v35  ;;  %vm11343_vm4 = vmand %vm425_vm0, %vm306_vm2  ;;  %v485_v56 = vld [vmem:[#allocation3 + $0x14] sm:$0x1]  ;;  %v11379_v36 = vpop.permute.xlu0 %3843 }
 0x1b1   : > { %v3822_v59 = vpack.c.b16 %v3806_v33, %v3805_v1  ;;  %8998 = vmatmul.msk.bf16.gmra.mxu0 %vm2847_vm7, %v2824_v9  ;;  %v13490_v45 = vmov 0  ;;  %v8918_v62 = vrot.slane %v2373_v25, 9  ;;  %v2358_v55 = vsel %vm10064_vm11, %v2353_v5, %v2357_v10  ;;  %vm11362_vm5 = vmand %vm425_vm0, %vm362_vm3  ;;  %6627 = vmatpush.bf16.msra.mxu3 %v9770_v0  ;;  %v9686_v9 = vld [vmem:[#allocation2 + $0x78] sm:$0xff]  ;;  %v9790_v5 = vld [vmem:[#allocation4 + $0x178] sm:$0xff] }
 0x1b2   : > { %v13491_v45 = vsel %vm11343_vm4, 4294967295, %v13490_v45  ;;  %1759 = vrot.lane.b32.xlu2 %v1729_v6, %s9947_s14  ;;  %v2629_v57 = vunpack.c.l.b16 %v2348_v4  ;;  %v431_v40 = vsel %vm11343_vm4, 0, %v430_v20  ;;  %v4183_v35 = vmul.f32 %v11318_v28, %v4147_v29  ;;  %v9769_v29 = vld [vmem:[#allocation4 + $0xd0] sm:$0xff]  ;;  %6801 = vmatpush.bf16.msrb.mxu1 %v9790_v5  ;;  %v9768_v0 = vld [vmem:[#allocation4 + $0xc8] sm:$0xff] }
 0x1b3   : > { %13492 = vst [vmem:[#allocation7_spill] sm:$0xff] %v13491_v45  ;;  %vm4636_vm2 = vcmask 1043456   ;;  %3853 = vrot.lane.b32.xlu0 %v3822_v59, %s9947_s14  ;;  %v2630_v53 = vunpack.c.l.b16 %v2358_v55  ;;  %v2523_v3 = vrot.slane %v11154_v15, 5  ;;  %v2526_v61 = vrot.slane %v11175_v16, 5  ;;  %v488_v5 = vld [vmem:[#allocation3 + $0x20] sm:$0x1] }
 0x1b4   : > { %432 = vst [vmem:[#allocation3 + $0xc] sm:$0x1] %v431_v40  ;;  %v1873_v44 = vsel %vm1843_vm15, %v9669_v22, %v11268_v13  ;;  %v13493_v33 = vmov 0  ;;  %v4219_v41 = vadd.f32 %v11334_v27, %v4183_v35  ;;  %v3964_v12 = vsel %vm1843_vm15, %v9703_v42, %v11270_v14  ;;  %v11381_v14 = vpop.f32.mrf.mxu2  ;;  %v11390_v42 = vpop.f32.mrf.mxu0  ;;  %v433_v35 = vld [vmem:[#allocation3 + $0x18] sm:$0x1]  ;;  %vm11408_vm8 = vmand %vm4636_vm2, %vm362_vm3 }
 0x1b5   : > { %v13494_v33 = vsel %vm11362_vm5, 4294967295, %v13493_v33  ;;  %v1912_v15 = vsel %vm1892_vm6, %v1873_v44, %v11274_v37  ;;  %v486_v16 = vsel %vm11362_vm5, 0, %v485_v56  ;;  %v2646_v13 = vpack.c.b16 %v2630_v53, %v2629_v57  ;;  %v11394_v56 = vpop.f32.mrf.mxu1  ;;  %6628 = vmatpush.bf16.msra.mxu3 %v9769_v29 }
 0x1b6   : > { %13495 = vst [vmem:[#allocation8_spill] sm:$0xff] %v13494_v33  ;;  %v2524_v18 = vsel %vm10106_vm14, %v8918_v62, %v2523_v3  ;;  %v2525_v10 = vrot.slane %v2523_v3, 4  ;;  %9019 = vmatmul.msk.bf16.gmra.mxu1 %vm2847_vm7, %v1912_v15  ;;  %v4148_v52 = vadd.f32 %v11284_v48, %v3025_v23  ;;  %v4251_v37 = vmax.f32 %v4219_v41, 0.0  ;;  %v11388_v48 = vpop.permute.xlu1 %1831 }
 0x1b7   : > { %487 = vst [vmem:[#allocation3 + $0x14] sm:$0x1] %v486_v16  ;;  %v2707_v34 = vunpack.c.l.b16 %v2524_v18  ;;  %v1417_v2 = vshrl.u32 %v1035_v43, 16  ;;  %v1420_v20 = vshll.u32 %v1035_v43, 16  ;;  %v1426_v11 = vshll.u32 %v11222_v60, 16  ;;  %v9670_v18 = vld [vmem:[#allocation2 + $0x78] sm:$0xff] }
 0x1b8   : > { %v2527_v25 = vsel %vm10106_vm14, %v2525_v10, %v2526_v61  ;;  %v4184_v1 = vmul.f32 %v11318_v28, %v4148_v52  ;;  %v1430_v51 = vshrl.u32 %v11222_v60, 16  ;;  %v4283_v22 = vpack.c.bf16 %v4251_v37, %v4251_v37  ;;  %v2374_v16 = vld [vmem:[#allocation2 + $0xc0] sm:$0xe] }
 0x1b9   : > { %v2708_v24 = vunpack.c.l.b16 %v2527_v25  ;;  %v1419_v47 = vrot.slane %v1417_v2, 4  ;;  %v1422_v6 = vrot.slane %v1420_v20, 5  ;;  %v1428_v4 = vrot.slane %v1426_v11, 5  ;;  %v11422_v20 = vpop.permute.xlu2 %2747  ;;  %6629 = vmatpush.bf16.msra.mxu3 %v9768_v0  ;;  %v9767_v25 = vld [vmem:[#allocation4 + $0xc0] sm:$0xff] }
 0x1ba   : > { %v4220_v59 = vadd.f32 %v11334_v27, %v4184_v1  ;;  %v1432_v23 = vrot.slane %v1430_v51, 4  ;;  %v1436_v62 = vshll.u32 %v11231_v58, 16  ;;  %v4316_v60 = vshrl.u32 %v4283_v22, 16 }
 0x1bb   : > { %v4319_v55 = vshll.u32 %v4283_v22, 16  ;;  %v2725_v57 = vpack.c.b16 %v2708_v24, %v2707_v34  ;;  %v1423_v40 = vor.u32 %v1422_v6, %v1419_v47  ;;  %2677 = vrot.lane.b32.xlu0 %v2646_v13, %s9947_s14  ;;  %v2788_v44 = vsel %vm1843_vm15, %v9686_v9, %v11300_v26  ;;  %v4638_v26 = vld [vmem:[#allocation3 + $0xc] sm:$0xf]  ;;  %v2668_v9 = vpop.permute.xlu0 %2667  ;;  %v9742_v22 = vld [vmem:[#allocation4 + $0x78] sm:$0xff] }
 0x1bc   : > { %v4252_v53 = vmax.f32 %v4220_v59, 0.0  ;;  %v1433_v3 = vor.u32 %v1432_v23, %v1428_v4  ;;  %v1438_v61 = vrot.slane %v1436_v62, 5  ;;  %v11399_v43 = vrot.slane %v4316_v60, 7  ;;  %v2905_v29 = vpop.f32.mrf.mxu0 }
 0x1bd   : > { %2755 = vrot.lane.b32.xlu2 %v2725_v57, %s9948_s15  ;;  %v1424_v58 = vrot.slane %v1423_v40, 4  ;;  %v3028_v41 = vadd.f32 %v11254_v7, %v11290_v19  ;;  %v4002_v15 = vsel %vm1892_vm6, %v3964_v12, %v11233_v21  ;;  %v2826_v37 = vsel %vm1892_vm6, %v2788_v44, %v11298_v54  ;;  %v11416_v19 = vpop.f32.mrf.mxu2  ;;  %v9781_v21 = vld [vmem:[#allocation4 + $0x130] sm:$0xff]  ;;  %6630 = vmatpush.bf16.msra.mxu3 %v9767_v25 }
 0x1be   : > { %v4284_v10 = vpack.c.bf16 %v4252_v53, %v4252_v53  ;;  %v1434_v52 = vrot.slane %v1433_v3, 4  ;;  %v434_v7 = vsel %vm11343_vm4, 0, %v433_v35  ;;  %v4321_v12 = vor.u32 %v4319_v55, %v11399_v43  ;;  %6713 = vmatpush.bf16.msrb.mxu0 %v9781_v21  ;;  %v11435_v60 = vpop.permute.xlu1 %3925  ;;  %v11437_v55 = vpop.f32.mrf.mxu1  ;;  %v9733_v57 = vld [vmem:[#allocation4 + $0x30] sm:$0xff]  ;;  %v4642_v35 = vld [vmem:[#allocation3 + $0x14] sm:$0x1] }
 0x1bf   : > { %v1429_v34 = vsel %vm10064_vm11, %v1424_v58, %v1428_v4  ;;  %435 = vst [vmem:[#allocation3 + $0x18] sm:$0x1] %v434_v7  ;;  %v4149_v2 = vadd.f32 %v11310_v8, %v3028_v41  ;;  %9121 = vmatmul.msk.bf16.gmra.mxu2 %vm2847_vm7, %v4002_v15  ;;  %v8919_v6 = vrot.slane %v2374_v16, 9  ;;  %v2530_v4 = vrot.slane %v11286_v38, 5  ;;  %v436_v38 = vld [vmem:[#allocation3 + $0x24] sm:$0x1] }
 0x1c0   : > { %v4324_v1 = vshrl.u32 %v4284_v10, 16  ;;  %v4327_v54 = vshll.u32 %v4284_v10, 16  ;;  %v1439_v11 = vsel %vm10064_vm11, %v1434_v52, %v1438_v61  ;;  %v1713_v51 = vunpack.c.l.b16 %v1429_v34  ;;  %7035 = vmatpush.bf16.msrb.mxu2 %v9733_v57  ;;  %v9704_v7 = vld [vmem:[#allocation2 + $0x90] sm:$0xff] }
 0x1c1   : > { %v4639_v24 = vsel %vm11408_vm8, %v4321_v12, %v4638_v26  ;;  %v1714_v47 = vunpack.c.l.b16 %v1439_v11  ;;  %v4185_v8 = vmul.f32 %v11318_v28, %v4149_v2  ;;  %8999 = vmatmul.msk.bf16.gmra.mxu0 %vm2847_vm7, %v2826_v37  ;;  %v2533_v23 = vrot.slane %v11288_v30, 5  ;;  %7123 = vmatpush.bf16.msrb.mxu3 %v9742_v22  ;;  %v491_v12 = vld [vmem:[#allocation3 + $0x2c] sm:$0x1]  ;;  %v439_v11 = vld [vmem:[#allocation3 + $0x30] sm:$0x1] }
 0x1c2   : > { %4640 = vst [vmem:[#allocation3 + $0xc] sm:$0xf] %v4639_v24  ;;  %v4326_v59 = vrot.slane %v4324_v1, 7  ;;  %v1876_v62 = vsel %vm1843_vm15, %v9670_v18, %v11373_v31  ;;  %v4322_v40 = vrot.slane %v11399_v43, 4  ;;  %v3030_v3 = vadd.f32 %v11294_v50, %v11325_v63  ;;  %v9687_v18 = vld [vmem:[#allocation2 + $0x84] sm:$0xff]  ;;  %v1754_v1 = vpop.permute.xlu2 %1753 }
 0x1c3   : > { %v1730_v0 = vpack.c.b16 %v1714_v47, %v1713_v51  ;;  %v4221_v53 = vadd.f32 %v11334_v27, %v4185_v8  ;;  %v2531_v31 = vsel %vm10106_vm14, %v8919_v6, %v2530_v4  ;;  %v2532_v44 = vrot.slane %v2530_v4, 4  ;;  %v9789_v51 = vld [vmem:[#allocation4 + $0x170] sm:$0xff]  ;;  %v494_v4 = vld [vmem:[#allocation3 + $0x38] sm:$0x1] }
 0x1c4   : > { %v4329_v30 = vor.u32 %v4327_v54, %v4326_v59  ;;  %v4331_v61 = vrot.slane %v4326_v59, 4  ;;  %v2709_v58 = vunpack.c.l.b16 %v2531_v31  ;;  %v1914_v41 = vsel %vm1892_vm6, %v1876_v62, %v11388_v48  ;;  %v2908_v54 = vpop.f32.mrf.mxu0  ;;  %6802 = vmatpush.bf16.msrb.mxu1 %v9789_v51 }
 0x1c5   : > { %1761 = vrot.lane.b32.xlu2 %v1730_v0, %s9947_s14  ;;  %v4253_v43 = vmax.f32 %v4221_v53, 0.0  ;;  %v489_v50 = vsel %vm11362_vm5, 0, %v488_v5  ;;  %v2534_v16 = vsel %vm10106_vm14, %v2532_v44, %v2533_v23  ;;  %v437_v26 = vsel %vm11343_vm4, 0, %v436_v38  ;;  %v4079_v48 = vpop.f32.mrf.mxu2  ;;  %v9671_v5 = vld [vmem:[#allocation2 + $0x84] sm:$0xff] }
 0x1c6   : > { %v4330_v63 = vsel %vm10045_vm9, %v4322_v40, %v4329_v30  ;;  %v4643_v15 = vsel %vm11343_vm4, %v4331_v61, %v4642_v35  ;;  %9020 = vmatmul.msk.bf16.gmra.mxu1 %vm2847_vm7, %v1914_v41  ;;  %490 = vst [vmem:[#allocation3 + $0x20] sm:$0x1] %v489_v50  ;;  %v2710_v52 = vunpack.c.l.b16 %v2534_v16  ;;  %v4150_v37 = vadd.f32 %v11381_v14, %v3030_v3  ;;  %v11465_v14 = vpop.permute.xlu0 %3845  ;;  %v3039_v8 = vpop.f32.mrf.mxu1  ;;  %v4645_v23 = vld [vmem:[#allocation3 + $0x18] sm:$0xf] }
 0x1c7   : > { %4641 = vst [vmem:[#allocation3 + $0x10] sm:$0xf] %v4330_v63  ;;  %v4285_v10 = vpack.c.bf16 %v4253_v43, %v4253_v43  ;;  %v3033_v21 = vadd.f32 %v11347_v17, %v11390_v42  ;;  %v2791_v22 = vsel %vm1843_vm15, %v9687_v18, %v2668_v9  ;;  %v3035_v47 = vadd.f32 %v11394_v56, %v2905_v29 }
 0x1c8   : > { %4644 = vst [vmem:[#allocation3 + $0x14] sm:$0x1] %v4643_v15  ;;  %v2726_v2 = vpack.c.b16 %v2710_v52, %v2709_v58  ;;  %v4186_v25 = vmul.f32 %v11318_v28, %v4150_v37  ;;  %v492_v59 = vsel %vm11362_vm5, 0, %v491_v12  ;;  %v440_v56 = vsel %vm11343_vm4, 0, %v439_v11 }
 0x1c9   : > { %v4333_v34 = vshrl.u32 %v4285_v10, 16  ;;  %438 = vst [vmem:[#allocation3 + $0x24] sm:$0x1] %v437_v26  ;;  %v4151_v24 = vadd.f32 %v11416_v19, %v3033_v21  ;;  %v4336_v42 = vshll.u32 %v4285_v10, 16  ;;  %v1834_v19 = vpop.permute.xlu1 %1833  ;;  %v4152_v62 = vadd.f32 %v4079_v48, %v3035_v47  ;;  %v442_v48 = vld [vmem:[#allocation3 + $0x3c] sm:$0x1] }
 0x1ca   : > { %v4222_v6 = vadd.f32 %v11334_v27, %v4186_v25  ;;  %493 = vst [vmem:[#allocation3 + $0x2c] sm:$0x1] %v492_v59  ;;  %v3967_v57 = vsel %vm1843_vm15, %v9704_v7, %v11379_v36  ;;  %v3038_v35 = vadd.f32 %v11437_v55, %v2908_v54  ;;  %v2828_v0 = vsel %vm1892_vm6, %v2791_v22, %v11422_v20  ;;  %v11499_v52 = vpop.permute.xlu2 %2749 }
 0x1cb   : > { %v11468_v17 = vrot.slane %v4333_v34, 7  ;;  %v4187_v9 = vmul.f32 %v11318_v28, %v4151_v24  ;;  %441 = vst [vmem:[#allocation3 + $0x30] sm:$0x1] %v440_v56  ;;  %v4188_v38 = vmul.f32 %v11318_v28, %v4152_v62  ;;  %v495_v61 = vsel %vm11362_vm5, 0, %v494_v4  ;;  %v9688_v56 = vld [vmem:[#allocation2 + $0x90] sm:$0xff] }
 0x1cc   : > { %v4254_v40 = vmax.f32 %v4222_v6, 0.0  ;;  %v1879_v44 = vsel %vm1843_vm15, %v9671_v5, %v1754_v1  ;;  %496 = vst [vmem:[#allocation3 + $0x38] sm:$0x1] %v495_v61  ;;  %v4004_v20 = vsel %vm1892_vm6, %v3967_v57, %v11308_v39  ;;  %v2910_v63 = vpop.f32.mrf.mxu0  ;;  %v443_v7 = vsel %vm11343_vm4, 0, %v442_v48 }
 0x1cd   : > { %v4338_v29 = vor.u32 %v4336_v42, %v11468_v17  ;;  %2757 = vrot.lane.b32.xlu2 %v2726_v2, %s9948_s15  ;;  %v4223_v53 = vadd.f32 %v11334_v27, %v4187_v9  ;;  %v4082_v30 = vpop.f32.mrf.mxu2  ;;  %v4224_v58 = vadd.f32 %v11334_v27, %v4188_v38  ;;  %v1916_v16 = vsel %vm1892_vm6, %v1879_v44, %v1834_v19  ;;  %v4649_v12 = vld [vmem:[#allocation3 + $0x20] sm:$0x1] }
 0x1ce   : > { %v9751_v3 = vld [vmem:[#allocation3 + $0xc] sm:$0xff]  ;;  %v4286_v36 = vpack.c.bf16 %v4254_v40, %v4254_v40  ;;  %v4153_v55 = vadd.f32 %v4082_v30, %v3038_v35  ;;  %v11497_v26 = vpop.f32.mrf.mxu1  ;;  %v4339_v21 = vrot.slane %v11468_v17, 4  ;;  %v2670_v25 = vpop.permute.xlu0 %2669  ;;  %444 = vst [vmem:[#allocation3 + $0x3c] sm:$0x1] %v443_v7  ;;  %v3040_v51 = vadd.f32 %v3039_v8, %v2910_v63  ;;  %v9705_v8 = vld [vmem:[#allocation2 + $0x9c] sm:$0xff] }
 0x1cf   : > { %v4646_v31 = vsel %vm11408_vm8, %v4338_v29, %v4645_v23  ;;  %v4255_v43 = vmax.f32 %v4223_v53, 0.0  ;;  %6631 = vmatmul.bf16.vlgmr.msra.gmra.mxu3 %v9751_v3  ;;  %9122 = vmatmul.msk.bf16.gmra.mxu2 %vm2847_vm7, %v4004_v20  ;;  %v4256_v18 = vmax.f32 %v4224_v58, 0.0 }
 0x1d0   : > { %4647 = vst [vmem:[#allocation3 + $0x18] sm:$0xf] %v4646_v31  ;;  %v4341_v41 = vshrl.u32 %v4286_v36, 16  ;;  %v4189_v50 = vmul.f32 %v11318_v28, %v4153_v55  ;;  %v4344_v10 = vshll.u32 %v4286_v36, 16  ;;  %v4652_v59 = vld [vmem:[#allocation3 + $0x24] sm:$0xf] }
 0x1d1   : > { %9000 = vmatmul.msk.bf16.gmra.mxu0 %vm2847_vm7, %v2828_v0  ;;  %v4287_v15 = vpack.c.bf16 %v4255_v43, %v4255_v43  ;;  %v4288_v2 = vpack.c.bf16 %v4256_v18, %v4256_v18  ;;  %v4656_v29 = vld [vmem:[#allocation3 + $0x2c] sm:$0x1]  ;;  %v497_v31 = vld [vmem:[#allocation3 + $0x44] sm:$0x1] }
 0x1d2   : > { %v4343_v39 = vrot.slane %v4341_v41, 7  ;;  %v4225_v37 = vadd.f32 %v11334_v27, %v4189_v50  ;;  %v9741_v0 = vld [vmem:[#allocation4 + $0x70] sm:$0xff]  ;;  %v9780_v36 = vld [vmem:[#allocation4 + $0x128] sm:$0xff]  ;;  %v498_v43 = vsel %vm11362_vm5, 0, %v497_v31  ;;  %v2794_v50 = vsel %vm1843_vm15, %v9688_v56, %v2670_v25  ;;  %v4659_v63 = vld [vmem:[#allocation3 + $0x30] sm:$0xf] }
 0x1d3   : > { %v4350_v34 = vshrl.u32 %v4287_v15, 16  ;;  %v4353_v24 = vshll.u32 %v4287_v15, 16  ;;  %v4358_v47 = vshrl.u32 %v4288_v2, 16  ;;  %v4361_v62 = vshll.u32 %v4288_v2, 16  ;;  %7124 = vmatpush.bf16.msrb.mxu3 %v9741_v0  ;;  %v9672_v15 = vld [vmem:[#allocation2 + $0x90] sm:$0xff]  ;;  %6714 = vmatpush.bf16.msrb.mxu0 %v9780_v36  ;;  %v9689_v56 = vld [vmem:[#allocation2 + $0x9c] sm:$0xff] }
 0x1d4   : > { %v4346_v1 = vor.u32 %v4344_v10, %v4343_v39  ;;  %v4348_v54 = vrot.slane %v4343_v39, 4  ;;  %v4257_v11 = vmax.f32 %v4225_v37, 0.0  ;;  %v11506_v42 = vpop.permute.xlu1 %3927  ;;  %v2913_v35 = vpop.f32.mrf.mxu0  ;;  %499 = vst [vmem:[#allocation3 + $0x44] sm:$0x1] %v498_v43  ;;  %v9732_v31 = vld [vmem:[#allocation4 + $0x28] sm:$0xff] }
 0x1d5   : > { %v4352_v22 = vrot.slane %v4350_v34, 7  ;;  %v4084_v6 = vpop.f32.mrf.mxu2  ;;  %v4360_v19 = vrot.slane %v4358_v47, 7  ;;  %v3043_v10 = vadd.f32 %v11497_v26, %v2913_v35  ;;  %7036 = vmatpush.bf16.msrb.mxu2 %v9732_v31 }
 0x1d6   : > { %9021 = vmatmul.msk.bf16.gmra.mxu1 %vm2847_vm7, %v1916_v16  ;;  %v4347_v17 = vsel %vm10045_vm9, %v4339_v21, %v4346_v1  ;;  %v4650_v5 = vsel %vm11343_vm4, %v4348_v54, %v4649_v12  ;;  %v4289_v4 = vpack.c.bf16 %v4257_v11, %v4257_v11  ;;  %v4154_v23 = vadd.f32 %v4084_v6, %v3040_v51  ;;  %v3044_v61 = vpop.f32.mrf.mxu1 }
 0x1d7   : > { %4648 = vst [vmem:[#allocation3 + $0x1c] sm:$0xf] %v4347_v17  ;;  %v4355_v9 = vor.u32 %v4353_v24, %v4352_v22  ;;  %v4356_v53 = vrot.slane %v4352_v22, 4  ;;  %v4363_v38 = vor.u32 %v4361_v62, %v4360_v19  ;;  %v4365_v30 = vrot.slane %v4360_v19, 4 }
 0x1d8   : > { %4651 = vst [vmem:[#allocation3 + $0x20] sm:$0x1] %v4650_v5  ;;  %v4367_v57 = vshrl.u32 %v4289_v4, 16  ;;  %v4190_v40 = vmul.f32 %v11318_v28, %v4154_v23  ;;  %v4370_v55 = vshll.u32 %v4289_v4, 16  ;;  %v3970_v16 = vsel %vm1843_vm15, %v9705_v8, %v11465_v14 }
 0x1d9   : > { %v4653_v3 = vsel %vm11408_vm8, %v4355_v9, %v4652_v59  ;;  %v4364_v58 = vsel %vm10045_vm9, %v4356_v53, %v4363_v38  ;;  %v4657_v41 = vsel %vm11343_vm4, %v4365_v30, %v4656_v29  ;;  %v3848_v37 = vpop.permute.xlu0 %3847  ;;  %v2830_v21 = vsel %vm1892_vm6, %v2794_v50, %v11499_v52 }
 0x1da   : > { %4654 = vst [vmem:[#allocation3 + $0x24] sm:$0xf] %v4653_v3  ;;  %v4369_v44 = vrot.slane %v4367_v57, 7  ;;  %v4226_v20 = vadd.f32 %v11334_v27, %v4190_v40  ;;  %v1756_v48 = vpop.permute.xlu2 %1755  ;;  %v4006_v14 = vsel %vm1892_vm6, %v3970_v16, %v11435_v60  ;;  %v4663_v60 = vld [vmem:[#allocation3 + $0x38] sm:$0x1]  ;;  %v9706_v40 = vld [vmem:[#allocation2 + $0xa8] sm:$0xff] }
 0x1db   : > { %4655 = vst [vmem:[#allocation3 + $0x28] sm:$0xf] %v4364_v58  ;;  %v1882_v1 = vsel %vm1843_vm15, %v9672_v15, %v1756_v48  ;;  %v3973_v43 = vsel %vm1843_vm15, %v9706_v40, %v3848_v37  ;;  %v9690_v40 = vld [vmem:[#allocation2 + $0xa8] sm:$0xff] }
 0x1dc   : > { %v4372_v18 = vor.u32 %v4370_v55, %v4369_v44  ;;  %v4258_v39 = vmax.f32 %v4226_v20, 0.0  ;;  %4658 = vst [vmem:[#allocation3 + $0x2c] sm:$0x1] %v4657_v41  ;;  %v1836_v26 = vpop.permute.xlu1 %1835  ;;  %v2915_v52 = vpop.f32.mrf.mxu0  ;;  %v4373_v17 = vrot.slane %v4369_v44, 4  ;;  %v4666_v44 = vld [vmem:[#allocation3 + $0x3c] sm:$0xf] }
 0x1dd   : > { %v4087_v7 = vpop.f32.mrf.mxu2  ;;  %v1918_v51 = vsel %vm1892_vm6, %v1882_v1, %v1836_v26  ;;  %v3045_v23 = vadd.f32 %v3044_v61, %v2915_v52  ;;  %v445_v61 = vld [vmem:[#allocation3 + $0x48] sm:$0x1] }
 0x1de   : > { %v4660_v12 = vsel %vm11408_vm8, %v4372_v18, %v4659_v63  ;;  %v9752_v34 = vld [vmem:[#allocation3 + $0x18] sm:$0xff]  ;;  %v4290_v2 = vpack.c.bf16 %v4258_v39, %v4258_v39  ;;  %v4155_v25 = vadd.f32 %v4087_v7, %v3043_v10  ;;  %v3047_v6 = vpop.f32.mrf.mxu1  ;;  %v446_v20 = vsel %vm11343_vm4, 0, %v445_v61 }
 0x1df   : > { %4661 = vst [vmem:[#allocation3 + $0x30] sm:$0xf] %v4660_v12  ;;  %9123 = vmatmul.msk.bf16.gmra.mxu2 %vm2847_vm7, %v4006_v14  ;;  %6636 = vmatmul.bf16.gmra.mxu3 %v9752_v34  ;;  %v4008_v7 = vsel %vm1892_vm6, %v3973_v43, %v11506_v42  ;;  %v9673_v12 = vld [vmem:[#allocation2 + $0x9c] sm:$0xff] }
 0x1e0   : > { %v4375_v54 = vshrl.u32 %v4290_v2, 16  ;;  %v4191_v11 = vmul.f32 %v11318_v28, %v4155_v25  ;;  %v4378_v24 = vshll.u32 %v4290_v2, 16  ;;  %447 = vst [vmem:[#allocation3 + $0x48] sm:$0x1] %v446_v20 }
 0x1e1   : > { %9001 = vmatmul.msk.bf16.gmra.mxu0 %vm2847_vm7, %v2830_v21  ;;  %v2672_v29 = vpop.permute.xlu0 %2671 }
 0x1e2   : > { %v4377_v22 = vrot.slane %v4375_v54, 7  ;;  %v4227_v47 = vadd.f32 %v11334_v27, %v4191_v11  ;;  %v2797_v36 = vsel %vm1843_vm15, %v9689_v56, %v2672_v29  ;;  %v9753_v41 = vld [vmem:[#allocation3 + $0x24] sm:$0xff] }
 0x1e3   : > { %v4670_v54 = vld [vmem:[#allocation3 + $0x44] sm:$0x1]  ;;  %v12018_v13 = vld [vmem:[#allocation3 + $0x28] sm:$0xf] }
 0x1e4   : > { %v4380_v5 = vor.u32 %v4378_v24, %v4377_v22  ;;  %v4382_v59 = vrot.slane %v4377_v22, 4  ;;  %v4259_v4 = vmax.f32 %v4227_v47, 0.0  ;;  %v500_v22 = vld [vmem:[#allocation3 + $0x50] sm:$0x1]  ;;  %v9788_v24 = vld [vmem:[#allocation4 + $0x168] sm:$0xff] }
 0x1e5   : > { %v4089_v9 = vpop.f32.mrf.mxu2  ;;  %v2752_v35 = vpop.permute.xlu2 %2751  ;;  %6803 = vmatpush.bf16.msrb.mxu1 %v9788_v24 }
 0x1e6   : > { %9022 = vmatmul.msk.bf16.gmra.mxu1 %vm2847_vm7, %v1918_v51  ;;  %v4381_v8 = vsel %vm10045_vm9, %v4373_v17, %v4380_v5  ;;  %v4664_v19 = vsel %vm11343_vm4, %v4382_v59, %v4663_v60  ;;  %v4291_v62 = vpack.c.bf16 %v4259_v4, %v4259_v4  ;;  %v4156_v57 = vadd.f32 %v4089_v9, %v3045_v23  ;;  %v2918_v53 = vpop.f32.mrf.mxu0  ;;  %v3049_v15 = vpop.f32.mrf.mxu1 }
 0x1e7   : > { %4662 = vst [vmem:[#allocation3 + $0x34] sm:$0xf] %v4381_v8  ;;  %v3048_v50 = vadd.f32 %v3047_v6, %v2918_v53  ;;  %v2832_v18 = vsel %vm1892_vm6, %v2797_v36, %v2752_v35  ;;  %v501_v17 = vsel %vm11362_vm5, 0, %v500_v22  ;;  %v9731_v22 = vld [vmem:[#allocation4 + $0x20] sm:$0xff] }
 0x1e8   : > { %4665 = vst [vmem:[#allocation3 + $0x38] sm:$0x1] %v4664_v19  ;;  %v4384_v0 = vshrl.u32 %v4291_v62, 16  ;;  %v4192_v3 = vmul.f32 %v11318_v28, %v4156_v57  ;;  %v4387_v30 = vshll.u32 %v4291_v62, 16  ;;  %v9707_v62 = vld [vmem:[#allocation2 + $0xb4] sm:$0xff]  ;;  %7037 = vmatpush.bf16.msrb.mxu2 %v9731_v22 }
 0x1e9   : > { %502 = vst [vmem:[#allocation3 + $0x50] sm:$0x1] %v501_v17  ;;  %v9708_v17 = vld [vmem:[#allocation2 + $0xc0] sm:$0xff]  ;;  %v9775_v22 = vld [vmem:[#allocation4 + $0x100] sm:$0xff] }
 0x1ea   : > { %v4386_v38 = vrot.slane %v4384_v0, 7  ;;  %v4228_v55 = vadd.f32 %v11334_v27, %v4192_v3  ;;  %v448_v3 = vld [vmem:[#allocation3 + $0x54] sm:$0x1] }
 0x1eb   : > { %v449_v61 = vsel %vm11343_vm4, 0, %v448_v3  ;;  %v9778_v3 = vld [vmem:[#allocation4 + $0x118] sm:$0xff] }
 0x1ec   : > { %v4389_v58 = vor.u32 %v4387_v30, %v4386_v38  ;;  %v4260_v63 = vmax.f32 %v4228_v55, 0.0  ;;  %v4390_v11 = vrot.slane %v4386_v38, 4  ;;  %v9787_v38 = vld [vmem:[#allocation4 + $0x160] sm:$0xff]  ;;  %v4673_v30 = vld [vmem:[#allocation3 + $0x48] sm:$0xf] }
 0x1ed   : > { %v4092_v16 = vpop.f32.mrf.mxu2  ;;  %450 = vst [vmem:[#allocation3 + $0x54] sm:$0x1] %v449_v61  ;;  %6804 = vmatpush.bf16.msrb.mxu1 %v9787_v38  ;;  %v451_v61 = vld [vmem:[#allocation3 + $0x60] sm:$0x1] }
 0x1ee   : > { %v4667_v48 = vsel %vm11408_vm8, %v4389_v58, %v4666_v44  ;;  %v4157_v39 = vadd.f32 %v4092_v16, %v3048_v50  ;;  %v11552_v10 = vpop.permute.xlu1 %3929  ;;  %v4292_v37 = vpack.c.bf16 %v4260_v63, %v4260_v63  ;;  %v2920_v2 = vpop.f32.mrf.mxu0  ;;  %v9754_v55 = vld [vmem:[#allocation3 + $0x30] sm:$0xff] }
 0x1ef   : > { %4668 = vst [vmem:[#allocation3 + $0x3c] sm:$0xf] %v4667_v48  ;;  %9124 = vmatmul.msk.bf16.gmra.mxu2 %vm2847_vm7, %v4008_v7  ;;  %6641 = vmatmul.bf16.gmra.mxu3 %v9753_v41  ;;  %v3050_v51 = vadd.f32 %v3049_v15, %v2920_v2  ;;  %v3052_v19 = vpop.f32.mrf.mxu1 }
 0x1f0   : > { %v4193_v21 = vmul.f32 %v11318_v28, %v4157_v39  ;;  %v4392_v34 = vshrl.u32 %v4292_v37, 16  ;;  %v4395_v26 = vshll.u32 %v4292_v37, 16  ;;  %v4677_v37 = vld [vmem:[#allocation3 + $0x50] sm:$0x1] }
 0x1f1   : > { %9002 = vmatmul.msk.bf16.gmra.mxu0 %vm2847_vm7, %v2832_v18  ;;  %v1758_v25 = vpop.permute.xlu2 %1757 }
 0x1f2   : > { %v4229_v14 = vadd.f32 %v11334_v27, %v4193_v21  ;;  %v4394_v1 = vrot.slane %v4392_v34, 7  ;;  %v1885_v47 = vsel %vm1843_vm15, %v9673_v12, %v1758_v25 }
 0x1f4   : > { %v3850_v42 = vpop.permute.xlu0 %3849  ;;  %v4261_v52 = vmax.f32 %v4229_v14, 0.0  ;;  %v4397_v60 = vor.u32 %v4395_v26, %v4394_v1  ;;  %v4399_v6 = vrot.slane %v4394_v1, 4  ;;  %v9740_v26 = vld [vmem:[#allocation4 + $0x68] sm:$0xff] }
 0x1f5   : > { %v4094_v5 = vpop.f32.mrf.mxu2  ;;  %v3976_v31 = vsel %vm1843_vm15, %v9707_v62, %v3850_v42  ;;  %7125 = vmatpush.bf16.msrb.mxu3 %v9740_v26 }
 0x1f6   : > { %v4293_v59 = vpack.c.bf16 %v4261_v52, %v4261_v52  ;;  %v4158_v4 = vadd.f32 %v4094_v5, %v3050_v51  ;;  %v1838_v23 = vpop.permute.xlu1 %1837  ;;  %v4398_v9 = vsel %vm10045_vm9, %v4390_v11, %v4397_v60  ;;  %v4671_v8 = vsel %vm11343_vm4, %v4399_v6, %v4670_v54  ;;  %v9786_v54 = vld [vmem:[#allocation4 + $0x158] sm:$0xff]  ;;  %v503_v11 = vld [vmem:[#allocation3 + $0x5c] sm:$0x1] }
 0x1f7   : > { %v1920_v56 = vsel %vm1892_vm6, %v1885_v47, %v1838_v23  ;;  %4669 = vst [vmem:[#allocation3 + $0x40] sm:$0xf] %v4398_v9  ;;  %v4010_v15 = vsel %vm1892_vm6, %v3976_v31, %v11552_v10  ;;  %v3054_v48 = vpop.f32.mrf.mxu1  ;;  %v504_v52 = vsel %vm11362_vm5, 0, %v503_v11  ;;  %v9779_v51 = vld [vmem:[#allocation4 + $0x120] sm:$0xff]  ;;  %6805 = vmatpush.bf16.msrb.mxu1 %v9786_v54  ;;  %v9785_v47 = vld [vmem:[#allocation4 + $0x150] sm:$0xff]  ;;  %v9674_v23 = vld [vmem:[#allocation2 + $0xa8] sm:$0xff] }
 0x1f8   : > { %v4401_v29 = vshrl.u32 %v4293_v59, 16  ;;  %v4194_v57 = vmul.f32 %v11318_v28, %v4158_v4  ;;  %9023 = vmatmul.msk.bf16.gmra.mxu1 %vm2847_vm7, %v1920_v56  ;;  %4672 = vst [vmem:[#allocation3 + $0x44] sm:$0x1] %v4671_v8  ;;  %v4404_v0 = vshll.u32 %v4293_v59, 16  ;;  %6715 = vmatpush.bf16.msrb.mxu0 %v9779_v51  ;;  %v9727_v51 = vld [vmem:[#allocation4] sm:$0xff] }
 0x1f9   : > { %505 = vst [vmem:[#allocation3 + $0x5c] sm:$0x1] %v504_v52 }
 0x1fa   : > { %v4403_v35 = vrot.slane %v4401_v29, 7  ;;  %v4230_v53 = vadd.f32 %v11334_v27, %v4194_v57  ;;  %v9784_v57 = vld [vmem:[#allocation4 + $0x148] sm:$0xff] }
 0x1fb   : > { %6806 = vmatpush.bf16.msrb.mxu1 %v9785_v47 }
 0x1fc   : > { %v2674_v36 = vpop.permute.xlu0 %2673  ;;  %v4406_v44 = vor.u32 %v4404_v0, %v4403_v35  ;;  %v4262_v20 = vmax.f32 %v4230_v53, 0.0  ;;  %v4407_v12 = vrot.slane %v4403_v35, 4  ;;  %6716 = vmatpush.bf16.msrb.mxu0 %v9778_v3 }
 0x1fd   : > { %v2754_v43 = vpop.permute.xlu2 %2753  ;;  %v2800_v58 = vsel %vm1843_vm15, %v9690_v40, %v2674_v36  ;;  %v9730_v40 = vld [vmem:[#allocation4 + $0x18] sm:$0xff] }
 0x1fe   : > { %v2834_v41 = vsel %vm1892_vm6, %v2800_v58, %v2754_v43  ;;  %v4674_v50 = vsel %vm11408_vm8, %v4406_v44, %v4673_v30  ;;  %v4294_v63 = vpack.c.bf16 %v4262_v20, %v4262_v20  ;;  %v2923_v16 = vpop.f32.mrf.mxu0  ;;  %v9755_v8 = vld [vmem:[#allocation3 + $0x3c] sm:$0xff]  ;;  %v4680_v58 = vld [vmem:[#allocation3 + $0x54] sm:$0xf]  ;;  %7038 = vmatpush.bf16.msrb.mxu2 %v9730_v40  ;;  %v454_v40 = vld [vmem:[#allocation3 + $0x6c] sm:$0x1] }
 0x1ff   : > { %4675 = vst [vmem:[#allocation3 + $0x48] sm:$0xf] %v4674_v50  ;;  %9125 = vmatmul.msk.bf16.gmra.mxu2 %vm2847_vm7, %v4010_v15  ;;  %6646 = vmatmul.bf16.gmra.mxu3 %v9754_v55  ;;  %v3053_v21 = vadd.f32 %v3052_v19, %v2923_v16  ;;  %v452_v55 = vsel %vm11343_vm4, 0, %v451_v61  ;;  %v9783_v20 = vld [vmem:[#allocation4 + $0x140] sm:$0xff] }
 0x200   : > { %v4409_v18 = vshrl.u32 %v4294_v63, 16  ;;  %v4412_v7 = vshll.u32 %v4294_v63, 16  ;;  %6807 = vmatpush.bf16.msrb.mxu1 %v9784_v57  ;;  %453 = vst [vmem:[#allocation3 + $0x60] sm:$0x1] %v452_v55  ;;  %v9691_v63 = vld [vmem:[#allocation2 + $0xb4] sm:$0xff] }
 0x201   : > { %9003 = vmatmul.msk.bf16.gmra.mxu0 %vm2847_vm7, %v2834_v41  ;;  %v9729_v41 = vld [vmem:[#allocation4 + $0x10] sm:$0xff]  ;;  %v4684_v52 = vld [vmem:[#allocation3 + $0x5c] sm:$0x1]  ;;  %v5615_v57 = vld [vmem:[#allocation3 + $0x10] sm:$0xf] }
 0x202   : > { %v4411_v39 = vrot.slane %v4409_v18, 7  ;;  %v506_v18 = vld [vmem:[#allocation3 + $0x68] sm:$0x1]  ;;  %7039 = vmatpush.bf16.msrb.mxu2 %v9729_v41  ;;  %v509_v41 = vld [vmem:[#allocation3 + $0x74] sm:$0x1] }
 0x203   : > { %v4097_v25 = vpop.f32.mrf.mxu2 }
 0x204   : > { %v4414_v34 = vor.u32 %v4412_v7, %v4411_v39  ;;  %v4416_v2 = vrot.slane %v4411_v39, 4  ;;  %v4159_v14 = vadd.f32 %v4097_v25, %v3053_v21  ;;  %6808 = vmatpush.bf16.msrb.mxu1 %v9783_v20  ;;  %v507_v7 = vsel %vm11362_vm5, 0, %v506_v18 }
 0x205   : > { %v11590_v59 = vpop.f32.mrf.mxu1  ;;  %508 = vst [vmem:[#allocation3 + $0x68] sm:$0x1] %v507_v7  ;;  %v510_v18 = vsel %vm11362_vm5, 0, %v509_v41  ;;  %v6046_v7 = vld [vmem:[#allocation3 + $0xc] sm:$0xe] }
 0x206   : > { %v4415_v10 = vsel %vm10045_vm9, %v4407_v12, %v4414_v34  ;;  %v4678_v1 = vsel %vm11343_vm4, %v4416_v2, %v4677_v37  ;;  %v4195_v42 = vmul.f32 %v11318_v28, %v4159_v14  ;;  %v2925_v24 = vpop.f32.mrf.mxu0  ;;  %v427_v37 = vld [vmem:[#allocation3] sm:$0x1]  ;;  %511 = vst [vmem:[#allocation3 + $0x74] sm:$0x1] %v510_v18 }
 0x207   : > { %4676 = vst [vmem:[#allocation3 + $0x4c] sm:$0xf] %v4415_v10  ;;  %v3055_v4 = vadd.f32 %v3054_v48, %v2925_v24  ;;  %v9728_v34 = vld [vmem:[#allocation4 + $0x8] sm:$0xff]  ;;  %v428_v25 = vsel %vm11343_vm4, 0, %v427_v37 }
 0x208   : > { %4679 = vst [vmem:[#allocation3 + $0x50] sm:$0x1] %v4678_v1  ;;  %v4231_v60 = vadd.f32 %v11334_v27, %v4195_v42  ;;  %v9776_v2 = vld [vmem:[#allocation4 + $0x108] sm:$0xff]  ;;  %7040 = vmatpush.bf16.msrb.mxu2 %v9728_v34 }
 0x209   : > { %429 = vst [vmem:[#allocation3] sm:$0x1] %v428_v25 }
 0x20a   : > { %v3932_v6 = vpop.permute.xlu1 %3931  ;;  %v4263_v5 = vmax.f32 %v4231_v60, 0.0 }
 0x20b   : > { %v4099_v19 = vpop.f32.mrf.mxu2 }
 0x20c   : > { %v1760_v9 = vpop.permute.xlu2 %1759  ;;  %v4295_v62 = vpack.c.bf16 %v4263_v5, %v4263_v5  ;;  %v4160_v56 = vadd.f32 %v4099_v19, %v3055_v4  ;;  %7041 = vmatpush.bf16.msrb.mxu2 %v9727_v51 }
 0x20d   : > { %v1888_v38 = vsel %vm1843_vm15, %v9674_v23, %v1760_v9  ;;  %v3059_v39 = vpop.f32.mrf.mxu1 }
 0x20e   : > { %v3852_v29 = vpop.permute.xlu0 %3851  ;;  %v4418_v0 = vshrl.u32 %v4295_v62, 16  ;;  %v4196_v53 = vmul.f32 %v11318_v28, %v4160_v56  ;;  %v4421_v36 = vshll.u32 %v4295_v62, 16  ;;  %v9777_v28 = vld [vmem:[#allocation4 + $0x110] sm:$0xff]  ;;  %v2928_v26 = vpop.f32.mrf.mxu0 }
 0x20f   : > { %v3979_v35 = vsel %vm1843_vm15, %v9708_v17, %v3852_v29  ;;  %6651 = vmatmul.bf16.gmra.mxu3 %v9755_v8  ;;  %6717 = vmatpush.bf16.msrb.mxu0 %v9777_v28  ;;  %v3058_v17 = vadd.f32 %v11590_v59, %v2928_v26  ;;  %v9756_v5 = vld [vmem:[#allocation3 + $0x48] sm:$0xff]  ;;  %v5672_v28 = vshll.u32 %v5615_v57, 16 }
 0x210   : > { %v4012_v30 = vsel %vm1892_vm6, %v3979_v35, %v3932_v6  ;;  %v4420_v31 = vrot.slane %v4418_v0, 7  ;;  %v4232_v44 = vadd.f32 %v11334_v27, %v4196_v53  ;;  %v9675_v6 = vld [vmem:[#allocation2 + $0xb4] sm:$0xff]  ;;  %v11620_v59 = vld [vmem:[%s13461_s2] ss:$0 sm:$0xff]  ;;  %v455_v0 = vsel %vm11343_vm4, 0, %v454_v40  ;;  %v9709_v53 = vld [vmem:[#allocation2 + $0xcc] sm:$0xff] }
 0x211   : > { %9126 = vmatmul.msk.bf16.gmra.mxu2 %vm2847_vm7, %v4012_v30  ;;  %456 = vst [vmem:[#allocation3 + $0x6c] sm:$0x1] %v455_v0 }
 0x212   : > { %v1840_v43 = vpop.permute.xlu1 %1839  ;;  %v4423_v15 = vor.u32 %v4421_v36, %v4420_v31  ;;  %v4264_v16 = vmax.f32 %v4232_v44, 0.0  ;;  %v4424_v24 = vrot.slane %v4420_v31, 4  ;;  %v6112_v31 = vrot.slane %v5615_v57, 5 }
 0x213   : > { %v1922_v50 = vsel %vm1892_vm6, %v1888_v38, %v1840_v43  ;;  %6718 = vmatpush.bf16.msrb.mxu0 %v9776_v2  ;;  %v11630_v38 = vld [vmem:[%s13462_s3] ss:$0 sm:$0xff]  ;;  %v5676_v43 = vshrl.u32 %v5615_v57, 16  ;;  %v11643_v2 = vrot.slane %v5672_v28, 5 }
 0x214   : > { %9024 = vmatmul.msk.bf16.gmra.mxu1 %vm2847_vm7, %v1922_v50  ;;  %v4681_v27 = vsel %vm11408_vm8, %v4423_v15, %v4680_v58  ;;  %v4296_v48 = vpack.c.bf16 %v4264_v16, %v4264_v16  ;;  %v9739_v58 = vld [vmem:[#allocation4 + $0x60] sm:$0xff]  ;;  %v5646_v15 = vld [vmem:[#allocation3 + $0x14] sm:$0x1] }
 0x215   : > { %4682 = vst [vmem:[#allocation3 + $0x54] sm:$0xf] %v4681_v27  ;;  %7126 = vmatpush.bf16.msrb.mxu3 %v9739_v58  ;;  %v6115_v34 = vrot.slane %v5646_v15, 5  ;;  %v5678_v25 = vrot.slane %v5676_v43, 4  ;;  %v4691_v43 = vld [vmem:[#allocation3 + $0x68] sm:$0x1] }
 0x216   : > { %v2676_v12 = vpop.permute.xlu0 %2675  ;;  %v4426_v10 = vshrl.u32 %v4296_v48, 16  ;;  %v4429_v11 = vshll.u32 %v4296_v48, 16  ;;  %v2930_v35 = vpop.f32.mrf.mxu0  ;;  %v6114_v48 = vrot.slane %v6112_v31, 4 }
 0x217   : > { %v2756_v21 = vpop.permute.xlu2 %2755  ;;  %v2803_v14 = vsel %vm1843_vm15, %v9691_v63, %v2676_v12  ;;  %6719 = vmatpush.bf16.msrb.mxu0 %v9775_v22  ;;  %v3060_v44 = vadd.f32 %v3059_v39, %v2930_v35  ;;  %v5614_v12 = vld [vmem:[#allocation3 + $0xc] sm:$0xf]  ;;  %v5682_v35 = vshll.u32 %v5646_v15, 16 }
 0x218   : > { %v2836_v1 = vsel %vm1892_vm6, %v2803_v14, %v2756_v21  ;;  %v4428_v54 = vrot.slane %v4426_v10, 7  ;;  %v9692_v14 = vld [vmem:[#allocation2 + $0xc0] sm:$0xff]  ;;  %v5666_v51 = vshll.u32 %v5614_v12, 16 }
 0x219   : > { %9004 = vmatmul.msk.bf16.gmra.mxu0 %vm2847_vm7, %v2836_v1  ;;  %v5684_v41 = vrot.slane %v5682_v35, 5 }
 0x21a   : > { %v3934_v42 = vpop.permute.xlu1 %3933  ;;  %v4431_v47 = vor.u32 %v4429_v11, %v4428_v54  ;;  %v4433_v60 = vrot.slane %v4428_v54, 4  ;;  %v4687_v54 = vld [vmem:[#allocation3 + $0x60] sm:$0xf]  ;;  %v9208_v11 = vrot.slane %v6046_v7, 9  ;;  %v5668_v40 = vrot.slane %v5666_v51, 5 }
 0x21c   : > { %v4432_v4 = vsel %vm10045_vm9, %v4424_v24, %v4431_v47  ;;  %v4685_v23 = vsel %vm11343_vm4, %v4433_v60, %v4684_v52  ;;  %v5663_v52 = vshrl.u32 %v5614_v12, 16 }
 0x21d   : > { %v4102_v9 = vpop.f32.mrf.mxu2  ;;  %4683 = vst [vmem:[#allocation3 + $0x58] sm:$0xf] %v4432_v4 }
 0x21e   : > { %v4161_v19 = vadd.f32 %v4102_v9, %v3058_v17  ;;  %4686 = vst [vmem:[#allocation3 + $0x5c] sm:$0x1] %v4685_v23  ;;  %v6113_v17 = vsel %vm10106_vm14, %v9208_v11, %v6112_v31  ;;  %v5665_v57 = vrot.slane %v5663_v52, 4 }
 0x21f   : > { %v1762_v8 = vpop.permute.xlu2 %1761  ;;  %6656 = vmatmul.bf16.gmra.mxu3 %v9756_v5  ;;  %v5679_v5 = vor.u32 %v5678_v25, %v11643_v2  ;;  %v6366_v0 = vunpack.c.l.b16 %v6113_v17 }
 0x220   : > { %v1891_v62 = vsel %vm1843_vm15, %v9675_v6, %v1762_v8  ;;  %v4197_v56 = vmul.f32 %v11620_v59, %v4161_v19  ;;  %v11623_v29 = vpop.f32.mrf.mxu1  ;;  %v5669_v58 = vor.u32 %v5668_v40, %v5665_v57 }
 0x222   : > { %v1842_v3 = vpop.permute.xlu1 %1841  ;;  %v4233_v30 = vadd.f32 %v11630_v38, %v4197_v56  ;;  %v5670_v11 = vrot.slane %v5669_v58, 4 }
 0x223   : > { %v1924_v61 = vsel %vm1892_vm6, %v1891_v62, %v1842_v3  ;;  %v11654_v62 = vld [vmem:[#allocation3 + $0x1c] sm:$0xf]  ;;  %v457_v3 = vld [vmem:[#allocation3 + $0x78] sm:$0x1] }
 0x224   : > { %9025 = vmatmul.msk.bf16.gmra.mxu1 %vm2847_vm7, %v1924_v61  ;;  %v4265_v36 = vmax.f32 %v4233_v30, 0.0  ;;  %v9757_v60 = vld [vmem:[#allocation3 + $0x54] sm:$0xff]  ;;  %v5680_v30 = vrot.slane %v5679_v5, 4  ;;  %v6119_v61 = vrot.slane %v11654_v62, 5  ;;  %v458_v31 = vsel %vm11343_vm4, 0, %v457_v3 }
 0x225   : > { %v3854_v55 = vpop.permute.xlu0 %3853  ;;  %v4104_v20 = vpop.f32.mrf.mxu2  ;;  %459 = vst [vmem:[#allocation3 + $0x78] sm:$0x1] %v458_v31  ;;  %v5700_v12 = vshrl.u32 %v11654_v62, 16 }
 0x226   : > { %v3982_v50 = vsel %vm1843_vm15, %v9709_v53, %v3854_v55  ;;  %v4297_v63 = vpack.c.bf16 %v4265_v36, %v4265_v36  ;;  %v4162_v16 = vadd.f32 %v4104_v20, %v3060_v44  ;;  %v5685_v7 = vsel %vm10064_vm11, %v5680_v30, %v5684_v41 }
 0x227   : > { %v4014_v27 = vsel %vm1892_vm6, %v3982_v50, %v3934_v42  ;;  %v6116_v42 = vsel %vm10106_vm14, %v6114_v48, %v6115_v34  ;;  %v2758_v22 = vpop.permute.xlu2 %2757  ;;  %v512_v34 = vld [vmem:[#allocation3 + $0x80] sm:$0x1] }
 0x228   : > { %9127 = vmatmul.msk.bf16.gmra.mxu2 %vm2847_vm7, %v4014_v27  ;;  %v4435_v39 = vshrl.u32 %v4297_v63, 16  ;;  %v4198_v37 = vmul.f32 %v11620_v59, %v4162_v16  ;;  %v11641_v21 = vpop.f32.mrf.mxu1  ;;  %v4438_v1 = vshll.u32 %v4297_v63, 16  ;;  %v6367_v9 = vunpack.c.l.b16 %v6116_v42  ;;  %v5616_v63 = vld [vmem:[#allocation3 + $0x18] sm:$0xf]  ;;  %v9711_v27 = vld [vmem:[#allocation3] sm:$0xff] }
 0x229   : > { %v5687_v52 = vshrl.u32 %v5616_v63, 16  ;;  %v5690_v51 = vshll.u32 %v5616_v63, 16  ;;  %v460_v63 = vld [vmem:[#allocation3 + $0x84] sm:$0x1] }
 0x22a   : > { %v4437_v10 = vrot.slane %v4435_v39, 7  ;;  %v4234_v26 = vadd.f32 %v11630_v38, %v4198_v37  ;;  %v6398_v36 = vpack.c.b16 %v6367_v9, %v6366_v0  ;;  %v11664_v39 = vld [vmem:[#allocation3 + $0x20] sm:$0x1]  ;;  %v5696_v37 = vshll.u32 %v11654_v62, 16 }
 0x22b   : > { %v6122_v42 = vrot.slane %v11664_v39, 5  ;;  %v5702_v9 = vrot.slane %v5700_v12, 4  ;;  %v5692_v62 = vrot.slane %v5690_v51, 5  ;;  %v515_v51 = vld [vmem:[#allocation3 + $0x8c] sm:$0x1] }
 0x22c   : > { %v4440_v24 = vor.u32 %v4438_v1, %v4437_v10  ;;  %v4266_v47 = vmax.f32 %v4234_v26, 0.0  ;;  %v4441_v15 = vrot.slane %v4437_v10, 4  ;;  %v6047_v26 = vld [vmem:[#allocation3 + $0x18] sm:$0xe] }
 0x22d   : > { %v2678_v6 = vpop.permute.xlu0 %2677 }
 0x22e   : > { %v2806_v4 = vsel %vm1843_vm15, %v9692_v14, %v2678_v6  ;;  %v4688_v23 = vsel %vm11408_vm8, %v4440_v24, %v4687_v54  ;;  %v4298_v8 = vpack.c.bf16 %v4266_v47, %v4266_v47  ;;  %v2933_v19 = vpop.f32.mrf.mxu0  ;;  %v513_v54 = vsel %vm11362_vm5, 0, %v512_v34 }
 0x22f   : > { %v2838_v56 = vsel %vm1892_vm6, %v2806_v4, %v2758_v22  ;;  %4689 = vst [vmem:[#allocation3 + $0x60] sm:$0xf] %v4688_v23  ;;  %6661 = vmatmul.bf16.gmra.mxu3 %v9757_v60  ;;  %v3063_v20 = vadd.f32 %v11623_v29, %v2933_v19  ;;  %v6121_v29 = vrot.slane %v6119_v61, 4  ;;  %v5675_v24 = vsel %vm10064_vm11, %v5670_v11, %v11643_v2  ;;  %v5618_v11 = vld [vmem:[#allocation3 + $0x24] sm:$0xf] }
 0x230   : > { %9005 = vmatmul.msk.bf16.gmra.mxu0 %vm2847_vm7, %v2838_v56  ;;  %v4443_v53 = vshrl.u32 %v4298_v8, 16  ;;  %v4446_v55 = vshll.u32 %v4298_v8, 16  ;;  %v6303_v47 = vunpack.c.l.b16 %v5685_v7  ;;  %v9209_v60 = vrot.slane %v6047_v26, 9  ;;  %514 = vst [vmem:[#allocation3 + $0x80] sm:$0x1] %v513_v54 }
 0x231   : > { %v6123_v6 = vsel %vm10106_vm14, %v6121_v29, %v6122_v42  ;;  %v11687_v23 = vrot.slane %v5696_v37, 5  ;;  %v5689_v19 = vrot.slane %v5687_v52, 4  ;;  %v6302_v56 = vunpack.c.l.b16 %v5675_v24  ;;  %v9738_v52 = vld [vmem:[#allocation4 + $0x58] sm:$0xff] }
 0x232   : > { %v4445_v44 = vrot.slane %v4443_v53, 7  ;;  %v4107_v50 = vpop.f32.mrf.mxu2  ;;  %v6120_v2 = vsel %vm10106_vm14, %v9209_v60, %v6119_v61  ;;  %v6369_v35 = vunpack.c.l.b16 %v6123_v6  ;;  %v9712_v24 = vld [vmem:[#allocation3 + $0xc] sm:$0xff]  ;;  %7127 = vmatpush.bf16.msrb.mxu3 %v9738_v52 }
 0x233   : > { %v11662_v28 = vpop.f32.mrf.mxu1  ;;  %v4163_v48 = vadd.f32 %v4107_v50, %v3063_v20  ;;  %v6334_v0 = vpack.c.b16 %v6303_v47, %v6302_v56  ;;  %v5703_v30 = vor.u32 %v5702_v9, %v11687_v23  ;;  %v5706_v20 = vshll.u32 %v11664_v39, 16  ;;  %v11697_v50 = vld [vmem:[#allocation3 + $0x2c] sm:$0x1] }
 0x234   : > { %6809 = vmatmul.bf16.vlgmr.msrb.gmra.mxu1 %v6398_v36  ;;  %v4448_v16 = vor.u32 %v4446_v55, %v4445_v44  ;;  %v4450_v18 = vrot.slane %v4445_v44, 4  ;;  %v6048_v36 = vld [vmem:[#allocation3 + $0x24] sm:$0xe]  ;;  %v6368_v44 = vunpack.c.l.b16 %v6120_v2  ;;  %v5693_v55 = vor.u32 %v5692_v62, %v5689_v19 }
 0x235   : > { %v4199_v10 = vmul.f32 %v11620_v59, %v4163_v48  ;;  %v5704_v29 = vrot.slane %v5703_v30, 4  ;;  %v5708_v34 = vrot.slane %v5706_v20, 5  ;;  %v5714_v19 = vshll.u32 %v5618_v11, 16 }
 0x236   : > { %v4449_v25 = vsel %vm10045_vm9, %v4441_v15, %v4448_v16  ;;  %v4692_v14 = vsel %vm11343_vm4, %v4450_v18, %v4691_v43  ;;  %v2935_v1 = vpop.f32.mrf.mxu0  ;;  %v5619_v43 = vld [vmem:[#allocation3 + $0x28] sm:$0xf]  ;;  %v4694_v15 = vld [vmem:[#allocation3 + $0x6c] sm:$0xf]  ;;  %v6399_v16 = vpack.c.b16 %v6369_v35, %v6368_v44  ;;  %v9210_v18 = vrot.slane %v6048_v36, 9 }
 0x237   : > { %4690 = vst [vmem:[#allocation3 + $0x64] sm:$0xf] %v4449_v25  ;;  %v4235_v22 = vadd.f32 %v11630_v38, %v4199_v10  ;;  %v3065_v5 = vadd.f32 %v11641_v21, %v2935_v1  ;;  %v5694_v12 = vrot.slane %v5693_v55, 4  ;;  %v6129_v10 = vrot.slane %v11697_v50, 5  ;;  %v4698_v35 = vld [vmem:[#allocation3 + $0x74] sm:$0x1] }
 0x238   : > { %4693 = vst [vmem:[#allocation3 + $0x68] sm:$0x1] %v4692_v14  ;;  %7042 = vmatmul.bf16.vlgmr.msrb.gmra.mxu2 %v9711_v27  ;;  %v461_v27 = vsel %vm11343_vm4, 0, %v460_v63  ;;  %v6126_v14 = vrot.slane %v5619_v43, 5  ;;  %v5720_v42 = vshll.u32 %v5619_v43, 16  ;;  %v5709_v47 = vsel %vm10064_vm11, %v5704_v29, %v5708_v34 }
 0x239   : > { %v4267_v17 = vmax.f32 %v4235_v22, 0.0  ;;  %462 = vst [vmem:[#allocation3 + $0x84] sm:$0x1] %v461_v27  ;;  %v5730_v34 = vshll.u32 %v11697_v50, 16 }
 0x23a   : > { %v4109_v8 = vpop.f32.mrf.mxu2  ;;  %v6128_v9 = vrot.slane %v6126_v14, 4 }
 0x23b   : > { %v11685_v4 = vpop.f32.mrf.mxu1  ;;  %v4299_v57 = vpack.c.bf16 %v4267_v17, %v4267_v17  ;;  %v4164_v40 = vadd.f32 %v4109_v8, %v3065_v5  ;;  %v516_v17 = vsel %vm11362_vm5, 0, %v515_v51  ;;  %v6127_v5 = vsel %vm10106_vm14, %v9210_v18, %v6126_v14 }
 0x23c   : > { %v5711_v8 = vshrl.u32 %v5618_v11, 16  ;;  %517 = vst [vmem:[#allocation3 + $0x8c] sm:$0x1] %v516_v17  ;;  %v6370_v29 = vunpack.c.l.b16 %v6127_v5 }
 0x23d   : > { %v4452_v53 = vshrl.u32 %v4299_v57, 16  ;;  %v4200_v3 = vmul.f32 %v11620_v59, %v4164_v40  ;;  %v4455_v61 = vshll.u32 %v4299_v57, 16  ;;  %v5699_v57 = vsel %vm10064_vm11, %v5694_v12, %v11687_v23 }
 0x23e   : > { %v2938_v21 = vpop.f32.mrf.mxu0  ;;  %v9758_v31 = vld [vmem:[#allocation3 + $0x60] sm:$0xff]  ;;  %v6304_v55 = vunpack.c.l.b16 %v5699_v57  ;;  %v6130_v23 = vsel %vm10106_vm14, %v6128_v9, %v6129_v10 }
 0x23f   : > { %v11694_v58 = vrot.slane %v4452_v53, 7  ;;  %v4236_v41 = vadd.f32 %v11630_v38, %v4200_v3  ;;  %6666 = vmatmul.bf16.gmra.mxu3 %v9758_v31  ;;  %v3068_v7 = vadd.f32 %v11662_v28, %v2938_v21  ;;  %v5724_v28 = vshrl.u32 %v5619_v43, 16 }
 0x240   : > { %6720 = vmatmul.bf16.vlgmr.msrb.gmra.mxu0 %v6334_v0  ;;  %v6305_v0 = vunpack.c.l.b16 %v5709_v47  ;;  %v11720_v53 = vrot.slane %v5720_v42, 5  ;;  %v5713_v43 = vrot.slane %v5711_v8, 4  ;;  %v5732_v47 = vrot.slane %v5730_v34, 5 }
 0x241   : > { %v4457_v48 = vor.u32 %v4455_v61, %v11694_v58  ;;  %v4268_v39 = vmax.f32 %v4236_v41, 0.0  ;;  %v4458_v40 = vrot.slane %v11694_v58, 4  ;;  %v5726_v3 = vrot.slane %v5724_v28, 4 }
 0x242   : > { %v4112_v25 = vpop.f32.mrf.mxu2  ;;  %v5716_v61 = vrot.slane %v5714_v19, 5  ;;  %v6335_v18 = vpack.c.b16 %v6305_v0, %v6304_v55 }
 0x243   : > { %v11703_v37 = vpop.f32.mrf.mxu1  ;;  %v4695_v1 = vsel %vm11408_vm8, %v4457_v48, %v4694_v15  ;;  %v4300_v26 = vpack.c.bf16 %v4268_v39, %v4268_v39  ;;  %v4165_v54 = vadd.f32 %v4112_v25, %v3068_v7  ;;  %v6371_v48 = vunpack.c.l.b16 %v6130_v23 }
 0x244   : > { %6814 = vmatmul.bf16.gmra.mxu1 %v6399_v16  ;;  %4696 = vst [vmem:[#allocation3 + $0x6c] sm:$0xf] %v4695_v1  ;;  %v11732_v16 = vld [vmem:[#allocation3 + $0x34] sm:$0xf]  ;;  %v5717_v12 = vor.u32 %v5716_v61, %v5713_v43 }
 0x245   : > { %v4460_v22 = vshrl.u32 %v4300_v26, 16  ;;  %v4201_v60 = vmul.f32 %v11620_v59, %v4165_v54  ;;  %v4463_v56 = vshll.u32 %v4300_v26, 16  ;;  %v6133_v1 = vrot.slane %v11732_v16, 5  ;;  %v463_v26 = vld [vmem:[#allocation3 + $0x90] sm:$0x1] }
 0x246   : > { %v2940_v6 = vpop.f32.mrf.mxu0  ;;  %v4701_v54 = vld [vmem:[#allocation3 + $0x78] sm:$0xf]  ;;  %v464_v42 = vsel %vm11343_vm4, 0, %v463_v26  ;;  %v6400_v52 = vpack.c.b16 %v6371_v48, %v6370_v29 }
 0x247   : > { %v4462_v62 = vrot.slane %v4460_v22, 7  ;;  %v4237_v2 = vadd.f32 %v11630_v38, %v4201_v60  ;;  %v3070_v36 = vadd.f32 %v11685_v4, %v2940_v6  ;;  %v5727_v4 = vor.u32 %v5726_v3, %v11720_v53  ;;  %465 = vst [vmem:[#allocation3 + $0x90] sm:$0x1] %v464_v42  ;;  %v6049_v6 = vld [vmem:[#allocation3 + $0x30] sm:$0xe]  ;;  %v9713_v3 = vld [vmem:[#allocation3 + $0x18] sm:$0xff] }
 0x248   : > { %7047 = vmatmul.bf16.gmra.mxu2 %v9712_v24  ;;  %v5718_v24 = vrot.slane %v5717_v12, 4  ;;  %v9211_v55 = vrot.slane %v6049_v6, 9 }
 0x249   : > { %v4465_v21 = vor.u32 %v4463_v56, %v4462_v62  ;;  %v4467_v30 = vrot.slane %v4462_v62, 4  ;;  %v4269_v31 = vmax.f32 %v4237_v2, 0.0  ;;  %v5728_v11 = vrot.slane %v5727_v4, 4  ;;  %v11750_v62 = vld [vmem:[#allocation3 + $0x38] sm:$0x1] }
 0x24a   : > { %v4114_v20 = vpop.f32.mrf.mxu2  ;;  %v6135_v56 = vrot.slane %v6133_v1, 4  ;;  %v5744_v2 = vshll.u32 %v11732_v16, 16  ;;  %v6136_v23 = vrot.slane %v11750_v62, 5  ;;  %v6134_v34 = vsel %vm10106_vm14, %v9211_v55, %v6133_v1 }
 0x24b   : > { %v11723_v44 = vpop.f32.mrf.mxu1  ;;  %v4466_v58 = vsel %vm10045_vm9, %v4458_v40, %v4465_v21  ;;  %v4699_v41 = vsel %vm11343_vm4, %v4467_v30, %v4698_v35  ;;  %v4301_v63 = vpack.c.bf16 %v4269_v31, %v4269_v31  ;;  %v4166_v15 = vadd.f32 %v4114_v20, %v3070_v36  ;;  %v518_v35 = vld [vmem:[#allocation3 + $0x98] sm:$0x1] }
 0x24c   : > { %4697 = vst [vmem:[#allocation3 + $0x70] sm:$0xf] %v4466_v58  ;;  %v5733_v57 = vsel %vm10064_vm11, %v5728_v11, %v5732_v47  ;;  %v5748_v40 = vshrl.u32 %v11732_v16, 16  ;;  %v5723_v21 = vsel %vm10064_vm11, %v5718_v24, %v11720_v53  ;;  %v519_v36 = vsel %vm11362_vm5, 0, %v518_v35  ;;  %v11782_v47 = vld [vmem:[#allocation3 + $0x40] sm:$0xf] }
 0x24d   : > { %4700 = vst [vmem:[#allocation3 + $0x74] sm:$0x1] %v4699_v41  ;;  %v4469_v27 = vshrl.u32 %v4301_v63, 16  ;;  %v4202_v39 = vmul.f32 %v11620_v59, %v4166_v15  ;;  %v4472_v14 = vshll.u32 %v4301_v63, 16  ;;  %v6307_v41 = vunpack.c.l.b16 %v5733_v57  ;;  %v4705_v15 = vld [vmem:[#allocation3 + $0x80] sm:$0x1] }
 0x24e   : > { %v2943_v7 = vpop.f32.mrf.mxu0  ;;  %520 = vst [vmem:[#allocation3 + $0x98] sm:$0x1] %v519_v36  ;;  %v6137_v4 = vsel %vm10106_vm14, %v6135_v56, %v6136_v23  ;;  %v11767_v16 = vrot.slane %v5744_v2, 5  ;;  %v6306_v12 = vunpack.c.l.b16 %v5723_v21  ;;  %v466_v56 = vld [vmem:[#allocation3 + $0x9c] sm:$0x1]  ;;  %v5768_v23 = vshll.u32 %v11782_v47, 16 }
 0x24f   : > { %v11736_v25 = vrot.slane %v4469_v27, 7  ;;  %v4238_v10 = vadd.f32 %v11630_v38, %v4202_v39  ;;  %v3073_v50 = vadd.f32 %v11703_v37, %v2943_v7  ;;  %v5620_v37 = vld [vmem:[#allocation3 + $0x30] sm:$0xf]  ;;  %v11788_v2 = vld [vmem:[#allocation3 + $0x44] sm:$0x1]  ;;  %v467_v35 = vsel %vm11343_vm4, 0, %v466_v56 }
 0x250   : > { %6725 = vmatmul.bf16.gmra.mxu0 %v6335_v18  ;;  %v5735_v20 = vshrl.u32 %v5620_v37, 16  ;;  %v5738_v43 = vshll.u32 %v5620_v37, 16  ;;  %v5750_v18 = vrot.slane %v5748_v40, 4  ;;  %v4708_v37 = vld [vmem:[#allocation3 + $0x84] sm:$0xf]  ;;  %v6140_v40 = vrot.slane %v11782_v47, 5 }
 0x251   : > { %v4474_v28 = vor.u32 %v4472_v14, %v11736_v25  ;;  %v4270_v51 = vmax.f32 %v4238_v10, 0.0  ;;  %v4475_v53 = vrot.slane %v11736_v25, 4  ;;  %468 = vst [vmem:[#allocation3 + $0x9c] sm:$0x1] %v467_v35 }
 0x252   : > { %v11744_v22 = vpop.f32.mrf.mxu3  ;;  %v4117_v60 = vpop.f32.mrf.mxu2  ;;  %v5737_v25 = vrot.slane %v5735_v20, 4  ;;  %v5740_v10 = vrot.slane %v5738_v43, 5  ;;  %v5751_v24 = vor.u32 %v5750_v18, %v11767_v16  ;;  %v5772_v20 = vshrl.u32 %v11782_v47, 16  ;;  %v9737_v18 = vld [vmem:[#allocation4 + $0x50] sm:$0xff] }
 0x253   : > { %v4702_v17 = vsel %vm11408_vm8, %v4474_v28, %v4701_v54  ;;  %v4302_v5 = vpack.c.bf16 %v4270_v51, %v4270_v51  ;;  %v4167_v9 = vadd.f32 %v4117_v60, %v3073_v50  ;;  %v11748_v8 = vpop.f32.mrf.mxu1  ;;  %v9759_v19 = vld [vmem:[#allocation3 + $0x6c] sm:$0xff]  ;;  %v6373_v28 = vunpack.c.l.b16 %v6137_v4  ;;  %7128 = vmatpush.bf16.msrb.mxu3 %v9737_v18 }
 0x254   : > { %6819 = vmatmul.bf16.gmra.mxu1 %v6400_v52  ;;  %4703 = vst [vmem:[#allocation3 + $0x78] sm:$0xf] %v4702_v17  ;;  %6671 = vmatmul.bf16.gmra.mxu3 %v9759_v19  ;;  %v6372_v60 = vunpack.c.l.b16 %v6134_v34  ;;  %v5741_v6 = vor.u32 %v5740_v10, %v5737_v25  ;;  %v5754_v17 = vshll.u32 %v11750_v62, 16  ;;  %v5752_v21 = vrot.slane %v5751_v24, 4 }
 0x255   : > { %v4477_v0 = vshrl.u32 %v4302_v5, 16  ;;  %v4203_v30 = vmul.f32 %v11620_v59, %v4167_v9  ;;  %v4480_v58 = vshll.u32 %v4302_v5, 16  ;;  %v6142_v4 = vrot.slane %v6140_v40, 4 }
 0x256   : > { %v2945_v31 = vpop.f32.mrf.mxu0  ;;  %v6401_v57 = vpack.c.b16 %v6373_v28, %v6372_v60 }
 0x257   : > { %v4479_v61 = vrot.slane %v4477_v0, 7  ;;  %v4239_v63 = vadd.f32 %v11630_v38, %v4203_v30  ;;  %v3075_v7 = vadd.f32 %v11723_v44, %v2945_v31  ;;  %v6336_v44 = vpack.c.b16 %v6307_v41, %v6306_v12 }
 0x258   : > { %7052 = vmatmul.bf16.gmra.mxu2 %v9713_v3  ;;  %v5742_v30 = vrot.slane %v5741_v6, 4  ;;  %v5756_v31 = vrot.slane %v5754_v17, 5 }
 0x259   : > { %v4482_v27 = vor.u32 %v4480_v58, %v4479_v61  ;;  %v4484_v48 = vrot.slane %v4479_v61, 4  ;;  %v4271_v39 = vmax.f32 %v4239_v63, 0.0  ;;  %v6050_v63 = vld [vmem:[#allocation3 + $0x3c] sm:$0xe] }
 0x25a   : > { %v11770_v29 = vpop.f32.mrf.mxu3  ;;  %v4119_v14 = vpop.f32.mrf.mxu2 }
 0x25b   : > { %v4483_v26 = vsel %vm10045_vm9, %v4475_v53, %v4482_v27  ;;  %v4706_v54 = vsel %vm11343_vm4, %v4484_v48, %v4705_v15  ;;  %v4303_v11 = vpack.c.bf16 %v4271_v39, %v4271_v39  ;;  %v4168_v42 = vadd.f32 %v4119_v14, %v3075_v7  ;;  %v11779_v50 = vpop.f32.mrf.mxu1  ;;  %v5622_v53 = vld [vmem:[#allocation3 + $0x3c] sm:$0xf]  ;;  %v521_v27 = vld [vmem:[#allocation3 + $0xa4] sm:$0x1] }
 0x25c   : > { %4704 = vst [vmem:[#allocation3 + $0x7c] sm:$0xf] %v4483_v26  ;;  %v5747_v15 = vsel %vm10064_vm11, %v5742_v30, %v11767_v16  ;;  %v9714_v39 = vld [vmem:[#allocation3 + $0x24] sm:$0xff]  ;;  %v5757_v7 = vsel %vm10064_vm11, %v5752_v21, %v5756_v31  ;;  %v522_v14 = vsel %vm11362_vm5, 0, %v521_v27  ;;  %v5759_v25 = vshrl.u32 %v5622_v53, 16 }
 0x25d   : > { %4707 = vst [vmem:[#allocation3 + $0x80] sm:$0x1] %v4706_v54  ;;  %v4486_v52 = vshrl.u32 %v4303_v11, 16  ;;  %v4204_v51 = vmul.f32 %v11620_v59, %v4168_v42  ;;  %v4489_v9 = vshll.u32 %v4303_v11, 16  ;;  %v5762_v10 = vshll.u32 %v5622_v53, 16 }
 0x25e   : > { %v2948_v1 = vpop.f32.mrf.mxu0  ;;  %v11810_v26 = vrot.slane %v5768_v23, 5  ;;  %v5774_v16 = vrot.slane %v5772_v20, 4  ;;  %523 = vst [vmem:[#allocation3 + $0xa4] sm:$0x1] %v522_v14  ;;  %v6309_v24 = vunpack.c.l.b16 %v5757_v7  ;;  %v5778_v23 = vshll.u32 %v11788_v2, 16 }
 0x25f   : > { %v11785_v5 = vrot.slane %v4486_v52, 7  ;;  %v4240_v19 = vadd.f32 %v11630_v38, %v4204_v51  ;;  %v3078_v62 = vadd.f32 %v11748_v8, %v2948_v1  ;;  %v6143_v8 = vrot.slane %v11788_v2, 5  ;;  %v4712_v51 = vld [vmem:[#allocation3 + $0x8c] sm:$0x1]  ;;  %v469_v53 = vld [vmem:[#allocation3 + $0xa8] sm:$0x1] }
 0x260   : > { %6730 = vmatmul.bf16.gmra.mxu0 %v6336_v44  ;;  %v9212_v44 = vrot.slane %v6050_v63, 9  ;;  %v6308_v1 = vunpack.c.l.b16 %v5747_v15  ;;  %v5775_v35 = vor.u32 %v5774_v16, %v11810_v26  ;;  %v4715_v15 = vld [vmem:[#allocation3 + $0x90] sm:$0xf]  ;;  %v470_v18 = vsel %vm11343_vm4, 0, %v469_v53 }
 0x261   : > { %v4491_v0 = vor.u32 %v4489_v9, %v11785_v5  ;;  %v4272_v3 = vmax.f32 %v4240_v19, 0.0  ;;  %v4492_v52 = vrot.slane %v11785_v5, 4  ;;  %v6144_v47 = vsel %vm10106_vm14, %v6142_v4, %v6143_v8  ;;  %v11831_v8 = vld [vmem:[#allocation3 + $0x4c] sm:$0xf]  ;;  %471 = vst [vmem:[#allocation3 + $0xa8] sm:$0x1] %v470_v18 }
 0x262   : > { %v4122_v36 = vpop.f32.mrf.mxu2  ;;  %v11795_v55 = vpop.f32.mrf.mxu3  ;;  %v6141_v19 = vsel %vm10106_vm14, %v9212_v44, %v6140_v40  ;;  %v6337_v30 = vpack.c.b16 %v6309_v24, %v6308_v1  ;;  %v5780_v7 = vrot.slane %v5778_v23, 5  ;;  %v6147_v14 = vrot.slane %v11831_v8, 5  ;;  %v11843_v44 = vld [vmem:[#allocation3 + $0x50] sm:$0x1] }
 0x263   : > { %v4709_v43 = vsel %vm11408_vm8, %v4491_v0, %v4708_v37  ;;  %v4304_v61 = vpack.c.bf16 %v4272_v3, %v4272_v3  ;;  %v4169_v58 = vadd.f32 %v4122_v36, %v3078_v62  ;;  %v9760_v41 = vld [vmem:[#allocation3 + $0x78] sm:$0xff]  ;;  %v3082_v28 = vpop.f32.mrf.mxu1  ;;  %v5761_v37 = vrot.slane %v5759_v25, 4  ;;  %v524_v1 = vld [vmem:[#allocation3 + $0xb0] sm:$0x1] }
 0x264   : > { %6824 = vmatmul.bf16.gmra.mxu1 %v6401_v57  ;;  %4710 = vst [vmem:[#allocation3 + $0x84] sm:$0xf] %v4709_v43  ;;  %6676 = vmatmul.bf16.gmra.mxu3 %v9760_v41  ;;  %v5764_v57 = vrot.slane %v5762_v10, 5  ;;  %v6374_v20 = vunpack.c.l.b16 %v6141_v19 }
 0x265   : > { %v4494_v48 = vshrl.u32 %v4304_v61, 16  ;;  %v4205_v12 = vmul.f32 %v11620_v59, %v4169_v58  ;;  %v4497_v11 = vshll.u32 %v4304_v61, 16  ;;  %v5776_v61 = vrot.slane %v5775_v35, 4 }
 0x266   : > { %v2950_v34 = vpop.f32.mrf.mxu0  ;;  %v5765_v43 = vor.u32 %v5764_v57, %v5761_v37  ;;  %v6150_v37 = vrot.slane %v11843_v44, 5 }
 0x267   : > { %v4496_v54 = vrot.slane %v4494_v48, 7  ;;  %v4241_v42 = vadd.f32 %v11630_v38, %v4205_v12  ;;  %v3080_v9 = vadd.f32 %v11779_v50, %v2950_v34  ;;  %v6375_v50 = vunpack.c.l.b16 %v6144_v47  ;;  %v9715_v47 = vld [vmem:[#allocation3 + $0x30] sm:$0xff] }
 0x268   : > { %7057 = vmatmul.bf16.gmra.mxu2 %v9714_v39  ;;  %v5766_v12 = vrot.slane %v5765_v43, 4 }
 0x269   : > { %v4499_v60 = vor.u32 %v4497_v11, %v4496_v54  ;;  %v4501_v6 = vrot.slane %v4496_v54, 4  ;;  %v4273_v17 = vmax.f32 %v4241_v42, 0.0  ;;  %v6402_v4 = vpack.c.b16 %v6375_v50, %v6374_v20  ;;  %v4719_v50 = vld [vmem:[#allocation3 + $0x98] sm:$0x1] }
 0x26a   : > { %v4124_v56 = vpop.f32.mrf.mxu2  ;;  %v11820_v5 = vpop.f32.mrf.mxu3  ;;  %v5781_v54 = vsel %vm10064_vm11, %v5776_v61, %v5780_v7 }
 0x26b   : > { %v4500_v0 = vsel %vm10045_vm9, %v4492_v52, %v4499_v60  ;;  %v4713_v3 = vsel %vm11343_vm4, %v4501_v6, %v4712_v51  ;;  %v4305_v62 = vpack.c.bf16 %v4273_v17, %v4273_v17  ;;  %v4170_v21 = vadd.f32 %v4124_v56, %v3080_v9  ;;  %v3084_v48 = vpop.f32.mrf.mxu1 }
 0x26c   : > { %4711 = vst [vmem:[#allocation3 + $0x88] sm:$0xf] %v4500_v0  ;;  %v5792_v52 = vshll.u32 %v11831_v8, 16  ;;  %v5796_v51 = vshrl.u32 %v11831_v8, 16  ;;  %v525_v17 = vsel %vm11362_vm5, 0, %v524_v1  ;;  %v5771_v9 = vsel %vm10064_vm11, %v5766_v12, %v11810_v26 }
 0x26d   : > { %4714 = vst [vmem:[#allocation3 + $0x8c] sm:$0x1] %v4713_v3  ;;  %v4503_v40 = vshrl.u32 %v4305_v62, 16  ;;  %v4206_v31 = vmul.f32 %v11620_v59, %v4170_v21  ;;  %v4506_v41 = vshll.u32 %v4305_v62, 16  ;;  %v6311_v19 = vunpack.c.l.b16 %v5781_v54  ;;  %v6051_v3 = vld [vmem:[#allocation3 + $0x48] sm:$0xe] }
 0x26e   : > { %v2953_v36 = vpop.f32.mrf.mxu0  ;;  %v6149_v56 = vrot.slane %v6147_v14, 4  ;;  %526 = vst [vmem:[#allocation3 + $0xb0] sm:$0x1] %v525_v17  ;;  %v6310_v43 = vunpack.c.l.b16 %v5771_v9  ;;  %v9213_v61 = vrot.slane %v6051_v3, 9  ;;  %v5802_v54 = vshll.u32 %v11843_v44, 16 }
 0x26f   : > { %v11828_v58 = vrot.slane %v4503_v40, 7  ;;  %v4242_v63 = vadd.f32 %v11630_v38, %v4206_v31  ;;  %v3083_v39 = vadd.f32 %v3082_v28, %v2953_v36  ;;  %v5624_v28 = vld [vmem:[#allocation3 + $0x48] sm:$0xf]  ;;  %v11856_v40 = vrot.slane %v5792_v52, 5  ;;  %v472_v1 = vld [vmem:[#allocation3 + $0xb4] sm:$0x1] }
 0x270   : > { %6735 = vmatmul.bf16.gmra.mxu0 %v6337_v30  ;;  %v5783_v62 = vshrl.u32 %v5624_v28, 16  ;;  %v5786_v30 = vshll.u32 %v5624_v28, 16  ;;  %v5798_v31 = vrot.slane %v5796_v51, 4  ;;  %v6338_v7 = vpack.c.b16 %v6311_v19, %v6310_v43  ;;  %v5627_v51 = vld [vmem:[#allocation3 + $0x58] sm:$0xf] }
 0x271   : > { %v4508_v27 = vor.u32 %v4506_v41, %v11828_v58  ;;  %v4274_v2 = vmax.f32 %v4242_v63, 0.0  ;;  %v4509_v21 = vrot.slane %v11828_v58, 4  ;;  %v6151_v41 = vsel %vm10106_vm14, %v6149_v56, %v6150_v37 }
 0x272   : > { %v4127_v34 = vpop.f32.mrf.mxu2  ;;  %v11837_v25 = vpop.f32.mrf.mxu3  ;;  %v5804_v56 = vrot.slane %v5802_v54, 5 }
 0x273   : > { %v4716_v10 = vsel %vm11408_vm8, %v4508_v27, %v4715_v15  ;;  %v4306_v16 = vpack.c.bf16 %v4274_v2, %v4274_v2  ;;  %v4171_v11 = vadd.f32 %v4127_v34, %v3083_v39  ;;  %v9761_v42 = vld [vmem:[#allocation3 + $0x84] sm:$0xff]  ;;  %v6148_v27 = vsel %vm10106_vm14, %v9213_v61, %v6147_v14  ;;  %v9716_v61 = vld [vmem:[#allocation3 + $0x3c] sm:$0xff] }
 0x274   : > { %6829 = vmatmul.bf16.gmra.mxu1 %v6402_v4  ;;  %4717 = vst [vmem:[#allocation3 + $0x90] sm:$0xf] %v4716_v10  ;;  %6681 = vmatmul.bf16.gmra.mxu3 %v9761_v42  ;;  %v5785_v2 = vrot.slane %v5783_v62, 4  ;;  %v5799_v39 = vor.u32 %v5798_v31, %v11856_v40  ;;  %v6377_v34 = vunpack.c.l.b16 %v6151_v41  ;;  %v6376_v52 = vunpack.c.l.b16 %v6148_v27 }
 0x275   : > { %v4511_v24 = vshrl.u32 %v4306_v16, 16  ;;  %v4207_v60 = vmul.f32 %v11620_v59, %v4171_v11  ;;  %v4514_v35 = vshll.u32 %v4306_v16, 16  ;;  %v3087_v18 = vpop.f32.mrf.mxu1  ;;  %v5626_v11 = vld [vmem:[#allocation3 + $0x54] sm:$0xf] }
 0x276   : > { %v2955_v6 = vpop.f32.mrf.mxu0  ;;  %v6403_v9 = vpack.c.b16 %v6377_v34, %v6376_v52  ;;  %v5807_v3 = vshrl.u32 %v5626_v11, 16  ;;  %v5810_v62 = vshll.u32 %v5626_v11, 16  ;;  %v4726_v34 = vld [vmem:[#allocation3 + $0xa4] sm:$0x1] }
 0x277   : > { %v4513_v57 = vrot.slane %v4511_v24, 7  ;;  %v4243_v0 = vadd.f32 %v11630_v38, %v4207_v60  ;;  %v3085_v20 = vadd.f32 %v3084_v48, %v2955_v6  ;;  %v5788_v48 = vrot.slane %v5786_v30, 5  ;;  %v4722_v24 = vld [vmem:[#allocation3 + $0x9c] sm:$0xf] }
 0x278   : > { %7062 = vmatmul.bf16.gmra.mxu2 %v9715_v47  ;;  %v5800_v60 = vrot.slane %v5799_v39, 4  ;;  %v473_v6 = vsel %vm11343_vm4, 0, %v472_v1  ;;  %v5809_v27 = vrot.slane %v5807_v3, 4 }
 0x279   : > { %v4516_v26 = vor.u32 %v4514_v35, %v4513_v57  ;;  %v4518_v36 = vrot.slane %v4513_v57, 4  ;;  %v4275_v23 = vmax.f32 %v4243_v0, 0.0  ;;  %v5789_v47 = vor.u32 %v5788_v48, %v5785_v2  ;;  %474 = vst [vmem:[#allocation3 + $0xb4] sm:$0x1] %v473_v6  ;;  %v6052_v57 = vld [vmem:[#allocation3 + $0x54] sm:$0xe] }
 0x27a   : > { %v4129_v63 = vpop.f32.mrf.mxu2  ;;  %v11860_v8 = vpop.f32.mrf.mxu3  ;;  %v6154_v35 = vrot.slane %v5627_v51, 5  ;;  %v5812_v2 = vrot.slane %v5810_v62, 5 }
 0x27b   : > { %v4517_v58 = vsel %vm10045_vm9, %v4509_v21, %v4516_v26  ;;  %v4720_v53 = vsel %vm11343_vm4, %v4518_v36, %v4719_v50  ;;  %v4307_v15 = vpack.c.bf16 %v4275_v23, %v4275_v23  ;;  %v4172_v4 = vadd.f32 %v4129_v63, %v3085_v20  ;;  %v11884_v63 = vld [vmem:[#allocation3 + $0x5c] sm:$0x1] }
 0x27c   : > { %4718 = vst [vmem:[#allocation3 + $0x94] sm:$0xf] %v4517_v58  ;;  %v5790_v26 = vrot.slane %v5789_v47, 4  ;;  %v5805_v36 = vsel %vm10064_vm11, %v5800_v60, %v5804_v56  ;;  %v5816_v23 = vshll.u32 %v5627_v51, 16  ;;  %v5820_v20 = vshrl.u32 %v5627_v51, 16 }
 0x27d   : > { %4721 = vst [vmem:[#allocation3 + $0x98] sm:$0x1] %v4720_v53  ;;  %v4520_v12 = vshrl.u32 %v4307_v15, 16  ;;  %v4208_v10 = vmul.f32 %v11620_v59, %v4172_v4  ;;  %v4523_v28 = vshll.u32 %v4307_v15, 16  ;;  %v9214_v58 = vrot.slane %v6052_v57, 9  ;;  %v3089_v53 = vpop.f32.mrf.mxu1 }
 0x27e   : > { %v2958_v16 = vpop.f32.mrf.mxu0  ;;  %v5795_v15 = vsel %vm10064_vm11, %v5790_v26, %v11856_v40  ;;  %v5822_v54 = vrot.slane %v5820_v20, 4  ;;  %v527_v51 = vld [vmem:[#allocation3 + $0xbc] sm:$0x1]  ;;  %v11909_v57 = vld [vmem:[%s13461_s2] ss:$0 sm:$0xff] }
 0x27f   : > { %v11871_v42 = vrot.slane %v4520_v12, 7  ;;  %v4244_v14 = vadd.f32 %v11630_v38, %v4208_v10  ;;  %v3088_v19 = vadd.f32 %v3087_v18, %v2958_v16  ;;  %v6156_v18 = vrot.slane %v6154_v35, 4  ;;  %v4729_v20 = vld [vmem:[#allocation3 + $0xa8] sm:$0xf] }
 0x280   : > { %6740 = vmatmul.bf16.gmra.mxu0 %v6338_v7  ;;  %v6313_v7 = vunpack.c.l.b16 %v5805_v36  ;;  %v6157_v10 = vrot.slane %v11884_v63, 5  ;;  %v11892_v16 = vrot.slane %v5816_v23, 5  ;;  %v6312_v1 = vunpack.c.l.b16 %v5795_v15  ;;  %v5629_v23 = vld [vmem:[#allocation3 + $0x64] sm:$0xf] }
 0x281   : > { %v4525_v17 = vor.u32 %v4523_v28, %v11871_v42  ;;  %v4276_v44 = vmax.f32 %v4244_v14, 0.0  ;;  %v9736_v14 = vld [vmem:[#allocation4 + $0x48] sm:$0xff]  ;;  %v528_v60 = vsel %vm11362_vm5, 0, %v527_v51  ;;  %v5826_v36 = vshll.u32 %v11884_v63, 16 }
 0x282   : > { %v4132_v37 = vpop.f32.mrf.mxu2  ;;  %v11877_v0 = vpop.f32.mrf.mxu3  ;;  %7129 = vmatpush.bf16.msrb.mxu3 %v9736_v14  ;;  %v5823_v3 = vor.u32 %v5822_v54, %v11892_v16  ;;  %529 = vst [vmem:[#allocation3 + $0xbc] sm:$0x1] %v528_v60  ;;  %v9717_v54 = vld [vmem:[#allocation3 + $0x48] sm:$0xff]  ;;  %v6053_v14 = vld [vmem:[#allocation3 + $0x60] sm:$0xe] }
 0x283   : > { %v4723_v21 = vsel %vm11408_vm8, %v4525_v17, %v4722_v24  ;;  %v4308_v50 = vpack.c.bf16 %v4276_v44, %v4276_v44  ;;  %v4173_v30 = vadd.f32 %v4132_v37, %v3088_v19  ;;  %v9762_v31 = vld [vmem:[#allocation3 + $0x90] sm:$0xff]  ;;  %v6155_v24 = vsel %vm10106_vm14, %v9214_v58, %v6154_v35 }
 0x284   : > { %6834 = vmatmul.bf16.gmra.mxu1 %v6403_v9  ;;  %4724 = vst [vmem:[#allocation3 + $0x9c] sm:$0xf] %v4723_v21  ;;  %6686 = vmatmul.bf16.gmra.mxu3 %v9762_v31  ;;  %v6339_v19 = vpack.c.b16 %v6313_v7, %v6312_v1  ;;  %v6378_v62 = vunpack.c.l.b16 %v6155_v24  ;;  %v5813_v21 = vor.u32 %v5812_v2, %v5809_v27  ;;  %v11916_v31 = vld [vmem:[%s13462_s3] ss:$0 sm:$0xff]  ;;  %v475_v27 = vld [vmem:[#allocation3 + $0xc0] sm:$0x1] }
 0x285   : > { %v4528_v43 = vshrl.u32 %v4308_v50, 16  ;;  %v4209_v41 = vmul.f32 %v11620_v59, %v4173_v30  ;;  %v4531_v39 = vshll.u32 %v4308_v50, 16  ;;  %v4526_v59 = vrot.slane %v11871_v42, 4 }
 0x286   : > { %v2960_v4 = vpop.f32.mrf.mxu0  ;;  %v5814_v15 = vrot.slane %v5813_v21, 4  ;;  %v5840_v1 = vshll.u32 %v5629_v23, 16  ;;  %v5844_v24 = vshrl.u32 %v5629_v23, 16 }
 0x287   : > { %v4530_v48 = vrot.slane %v4528_v43, 7  ;;  %v4245_v12 = vadd.f32 %v11630_v38, %v4209_v41  ;;  %v3090_v52 = vadd.f32 %v3089_v53, %v2960_v4  ;;  %v6158_v38 = vsel %vm10106_vm14, %v6156_v18, %v6157_v10 }
 0x288   : > { %7067 = vmatmul.bf16.gmra.mxu2 %v9716_v61  ;;  %v6379_v37 = vunpack.c.l.b16 %v6158_v38  ;;  %v5824_v53 = vrot.slane %v5823_v3, 4  ;;  %v6161_v4 = vrot.slane %v5629_v23, 5 }
 0x289   : > { %v4533_v11 = vor.u32 %v4531_v39, %v4530_v48  ;;  %v4535_v40 = vrot.slane %v4530_v48, 4  ;;  %v4277_v28 = vmax.f32 %v4245_v12, 0.0  ;;  %v5828_v39 = vrot.slane %v5826_v36, 5 }
 0x28a   : > { %v4134_v42 = vpop.f32.mrf.mxu2  ;;  %v11898_v47 = vpop.f32.mrf.mxu3  ;;  %v6404_v41 = vpack.c.b16 %v6379_v37, %v6378_v62  ;;  %v476_v12 = vsel %vm11343_vm4, 0, %v475_v27  ;;  %v6163_v51 = vrot.slane %v6161_v4, 4  ;;  %v9215_v62 = vrot.slane %v6053_v14, 9 }
 0x28b   : > { %v4534_v6 = vsel %vm10045_vm9, %v4526_v59, %v4533_v11  ;;  %v4727_v17 = vsel %vm11343_vm4, %v4535_v40, %v4726_v34  ;;  %v4309_v9 = vpack.c.bf16 %v4277_v28, %v4277_v28  ;;  %v4174_v44 = vadd.f32 %v4134_v42, %v3090_v52  ;;  %v5628_v59 = vld [vmem:[#allocation3 + $0x60] sm:$0xf]  ;;  %v11931_v28 = vld [vmem:[#allocation3 + $0x68] sm:$0x1]  ;;  %477 = vst [vmem:[#allocation3 + $0xc0] sm:$0x1] %v476_v12 }
 0x28c   : > { %4725 = vst [vmem:[#allocation3 + $0xa0] sm:$0xf] %v4534_v6  ;;  %v5819_v11 = vsel %vm10064_vm11, %v5814_v15, %v11892_v16  ;;  %v5829_v40 = vsel %vm10064_vm11, %v5824_v53, %v5828_v39  ;;  %v5831_v60 = vshrl.u32 %v5628_v59, 16  ;;  %v5834_v6 = vshll.u32 %v5628_v59, 16  ;;  %v5631_v59 = vld [vmem:[#allocation3 + $0x70] sm:$0xf] }
 0x28d   : > { %4728 = vst [vmem:[#allocation3 + $0xa4] sm:$0x1] %v4727_v17  ;;  %v4537_v56 = vshrl.u32 %v4309_v9, 16  ;;  %v4210_v35 = vmul.f32 %v11909_v57, %v4174_v44  ;;  %v4540_v30 = vshll.u32 %v4309_v9, 16  ;;  %v4733_v17 = vld [vmem:[#allocation3 + $0xb0] sm:$0x1]  ;;  %v6314_v16 = vunpack.c.l.b16 %v5819_v11 }
 0x28e   : > { %v6315_v44 = vunpack.c.l.b16 %v5829_v40  ;;  %v5846_v36 = vrot.slane %v5844_v24, 4  ;;  %v5850_v11 = vshll.u32 %v11931_v28, 16  ;;  %v530_v40 = vld [vmem:[#allocation3 + $0xc8] sm:$0x1]  ;;  %v6168_v24 = vrot.slane %v5631_v59, 5 }
 0x28f   : > { %v4539_v50 = vrot.slane %v4537_v56, 7  ;;  %v4246_v26 = vadd.f32 %v11916_v31, %v4210_v35  ;;  %v6164_v56 = vrot.slane %v11931_v28, 5 }
 0x290   : > { %6745 = vmatmul.bf16.gmra.mxu0 %v6339_v19  ;;  %v6340_v53 = vpack.c.b16 %v6315_v44, %v6314_v16  ;;  %v5852_v16 = vrot.slane %v5850_v11, 5  ;;  %v5630_v44 = vld [vmem:[#allocation3 + $0x6c] sm:$0xf] }
 0x291   : > { %v3092_v43 = vpop.f32.mrf.mxu1  ;;  %v4542_v61 = vor.u32 %v4540_v30, %v4539_v50  ;;  %v4278_v58 = vmax.f32 %v4246_v26, 0.0  ;;  %v4543_v37 = vrot.slane %v4539_v50, 4  ;;  %v6165_v30 = vsel %vm10106_vm14, %v6163_v51, %v6164_v56  ;;  %v5654_v56 = vld [vmem:[#allocation3 + $0x74] sm:$0x1] }
 0x292   : > { %v11920_v18 = vpop.f32.mrf.mxu3  ;;  %v11937_v26 = vrot.slane %v5840_v1, 5  ;;  %v5833_v50 = vrot.slane %v5831_v60, 4  ;;  %v6381_v27 = vunpack.c.l.b16 %v6165_v30  ;;  %v6170_v30 = vrot.slane %v6168_v24, 4 }
 0x293   : > { %v4730_v2 = vsel %vm11408_vm8, %v4542_v61, %v4729_v20  ;;  %v4310_v48 = vpack.c.bf16 %v4278_v58, %v4278_v58  ;;  %v9763_v63 = vld [vmem:[#allocation3 + $0x9c] sm:$0xff]  ;;  %v5836_v61 = vrot.slane %v5834_v6, 5  ;;  %v6162_v58 = vsel %vm10106_vm14, %v9215_v62, %v6161_v4 }
 0x294   : > { %6839 = vmatmul.bf16.gmra.mxu1 %v6404_v41  ;;  %v4137_v7 = vpop.f32.mrf.mxu2  ;;  %4731 = vst [vmem:[#allocation3 + $0xa8] sm:$0xf] %v4730_v2  ;;  %6691 = vmatmul.bf16.gmra.mxu3 %v9763_v63  ;;  %v6380_v63 = vunpack.c.l.b16 %v6162_v58  ;;  %v6171_v58 = vrot.slane %v5654_v56, 5 }
 0x295   : > { %v4545_v34 = vshrl.u32 %v4310_v48, 16  ;;  %v4548_v42 = vshll.u32 %v4310_v48, 16  ;;  %v5837_v12 = vor.u32 %v5836_v61, %v5833_v50 }
 0x296   : > { %v2963_v10 = vpop.f32.mrf.mxu0  ;;  %v6405_v4 = vpack.c.b16 %v6381_v27, %v6380_v63 }
 0x297   : > { %v3093_v52 = vadd.f32 %v3092_v43, %v2963_v10  ;;  %v4547_v38 = vrot.slane %v4545_v34, 7 }
 0x298   : > { %7072 = vmatmul.bf16.gmra.mxu2 %v9717_v54 }
 0x299   : > { %v3094_v9 = vpop.f32.mrf.mxu1  ;;  %v4175_v19 = vadd.f32 %v4137_v7, %v3093_v52  ;;  %v4550_v35 = vor.u32 %v4548_v42, %v4547_v38  ;;  %v4552_v3 = vrot.slane %v4547_v38, 4  ;;  %v5847_v7 = vor.u32 %v5846_v36, %v11937_v26 }
 0x29a   : > { %v11939_v23 = vpop.f32.mrf.mxu3  ;;  %v531_v52 = vsel %vm11362_vm5, 0, %v530_v40  ;;  %v5838_v42 = vrot.slane %v5837_v12, 4  ;;  %v6172_v12 = vsel %vm10106_vm14, %v6170_v30, %v6171_v58  ;;  %v482_v58 = vld [vmem:[#allocation3 + $0x8] sm:$0x1] }
 0x29b   : > { %v4211_v21 = vmul.f32 %v11909_v57, %v4175_v19  ;;  %v4551_v20 = vsel %vm10045_vm9, %v4543_v37, %v4550_v35  ;;  %v4734_v43 = vsel %vm11343_vm4, %v4552_v3, %v4733_v17  ;;  %v5848_v1 = vrot.slane %v5847_v7, 4  ;;  %532 = vst [vmem:[#allocation3 + $0xc8] sm:$0x1] %v531_v52  ;;  %v4736_v19 = vld [vmem:[#allocation3 + $0xb4] sm:$0xf] }
 0x29c   : > { %4732 = vst [vmem:[#allocation3 + $0xac] sm:$0xf] %v4551_v20  ;;  %v4139_v2 = vpop.f32.mrf.mxu2  ;;  %v5864_v37 = vshll.u32 %v5631_v59, 16  ;;  %v5868_v35 = vshrl.u32 %v5631_v59, 16  ;;  %v5843_v36 = vsel %vm10064_vm11, %v5838_v42, %v11937_v26  ;;  %v6054_v20 = vld [vmem:[#allocation3 + $0x6c] sm:$0xe] }
 0x29d   : > { %v4247_v41 = vadd.f32 %v11916_v31, %v4211_v21  ;;  %4735 = vst [vmem:[#allocation3 + $0xb0] sm:$0x1] %v4734_v43  ;;  %v5853_v21 = vsel %vm10064_vm11, %v5848_v1, %v5852_v16  ;;  %v5855_v43 = vshrl.u32 %v5630_v44, 16  ;;  %v9216_v26 = vrot.slane %v6054_v20, 9 }
 0x29e   : > { %v2965_v15 = vpop.f32.mrf.mxu0  ;;  %v11965_v27 = vrot.slane %v5864_v37, 5 }
 0x29f   : > { %v4279_v48 = vmax.f32 %v4247_v41, 0.0  ;;  %v3095_v39 = vadd.f32 %v3094_v9, %v2965_v15  ;;  %v9718_v9 = vld [vmem:[#allocation3 + $0x54] sm:$0xff]  ;;  %v6317_v15 = vunpack.c.l.b16 %v5853_v21  ;;  %v6169_v52 = vsel %vm10106_vm14, %v9216_v26, %v6168_v24 }
 0x2a0   : > { %6750 = vmatmul.bf16.gmra.mxu0 %v6340_v53  ;;  %v5858_v53 = vshll.u32 %v5630_v44, 16  ;;  %v5874_v44 = vshll.u32 %v5654_v56, 16  ;;  %v6382_v37 = vunpack.c.l.b16 %v6169_v52  ;;  %v9822_v56 = vld [vmem:[#allocation4 + $0x1f8] sm:$0xff] }
 0x2a1   : > { %v4311_v34 = vpack.c.bf16 %v4279_v48, %v4279_v48  ;;  %v3097_v10 = vpop.f32.mrf.mxu1  ;;  %v4176_v54 = vadd.f32 %v4139_v2, %v3095_v39  ;;  %v5870_v2 = vrot.slane %v5868_v35, 4  ;;  %v9735_v48 = vld [vmem:[#allocation4 + $0x40] sm:$0xff]  ;;  %v9750_v39 = vld [vmem:[#allocation4 + $0xb8] sm:$0xff]  ;;  %8400 = vmatpush.bf16.msra.mxu2 %v9822_v56 }
 0x2a2   : > { %v11953_v38 = vpop.f32.mrf.mxu3  ;;  %7130 = vmatpush.bf16.msrb.mxu3 %v9735_v48  ;;  %7212 = vmatpush.bf16.msra.mxu0 %v9750_v39  ;;  %v5633_v35 = vld [vmem:[#allocation3 + $0x7c] sm:$0xf]  ;;  %v483_v39 = vsel %vm11362_vm5, 0, %v482_v58 }
 0x2a3   : > { %v4554_v14 = vshrl.u32 %v4311_v34, 16  ;;  %v4212_v51 = vmul.f32 %v11909_v57, %v4176_v54  ;;  %v9764_v60 = vld [vmem:[#allocation3 + $0xa8] sm:$0xff]  ;;  %v4557_v17 = vshll.u32 %v4311_v34, 16  ;;  %v6316_v34 = vunpack.c.l.b16 %v5843_v36  ;;  %v5632_v36 = vld [vmem:[#allocation3 + $0x78] sm:$0xf] }
 0x2a4   : > { %6844 = vmatmul.bf16.gmra.mxu1 %v6405_v4  ;;  %6696 = vmatmul.bf16.gmra.mxu3 %v9764_v60  ;;  %v5857_v54 = vrot.slane %v5855_v43, 4  ;;  %v6383_v60 = vunpack.c.l.b16 %v6172_v12  ;;  %v5876_v43 = vrot.slane %v5874_v44, 5  ;;  %v5892_v48 = vshrl.u32 %v5633_v35, 16  ;;  %484 = vst [vmem:[#allocation3 + $0x8] sm:$0x1] %v483_v39 }
 0x2a5   : > { %v4556_v6 = vrot.slane %v4554_v14, 7  ;;  %v4248_v28 = vadd.f32 %v11916_v31, %v4212_v51  ;;  %v5860_v14 = vrot.slane %v5858_v53, 5  ;;  %v4740_v51 = vld [vmem:[#allocation3 + $0xbc] sm:$0x1]  ;;  %v6341_v42 = vpack.c.b16 %v6317_v15, %v6316_v34  ;;  %v6055_v15 = vld [vmem:[#allocation3 + $0x78] sm:$0xe] }
 0x2a6   : > { %v5879_v26 = vshrl.u32 %v5632_v36, 16  ;;  %v5882_v12 = vshll.u32 %v5632_v36, 16 }
 0x2a7   : > { %v4559_v3 = vor.u32 %v4557_v17, %v4556_v6  ;;  %v4280_v62 = vmax.f32 %v4248_v28, 0.0  ;;  %v5871_v17 = vor.u32 %v5870_v2, %v11965_v27  ;;  %v4560_v28 = vrot.slane %v4556_v6, 4 }
 0x2a8   : > { %7077 = vmatmul.bf16.gmra.mxu2 %v9718_v9  ;;  %v6406_v6 = vpack.c.b16 %v6383_v60, %v6382_v37  ;;  %v5888_v2 = vshll.u32 %v5633_v35, 16  ;;  %v5881_v44 = vrot.slane %v5879_v26, 4 }
 0x2a9   : > { %v4737_v50 = vsel %vm11408_vm8, %v4559_v3, %v4736_v19  ;;  %v4312_v61 = vpack.c.bf16 %v4280_v62, %v4280_v62  ;;  %v11963_v41 = vpop.f32.mrf.mxu1  ;;  %v5872_v30 = vrot.slane %v5871_v17, 4  ;;  %v5894_v17 = vrot.slane %v5892_v48, 4 }
 0x2aa   : > { %4738 = vst [vmem:[#allocation3 + $0xb4] sm:$0xf] %v4737_v50  ;;  %v11969_v59 = vpop.f32.mrf.mxu3  ;;  %v6175_v50 = vrot.slane %v5633_v35, 5  ;;  %v11992_v60 = vrot.slane %v5888_v2, 5 }
 0x2ab   : > { %v4562_v7 = vshrl.u32 %v4312_v61, 16  ;;  %v4142_v63 = vpop.f32.mrf.mxu2  ;;  %v4565_v40 = vshll.u32 %v4312_v61, 16 }
 0x2ad   : > { %v4564_v11 = vrot.slane %v4562_v7, 7  ;;  %v2968_v4 = vpop.f32.mrf.mxu0 }
 0x2ae   : > { %v3098_v1 = vadd.f32 %v3097_v10, %v2968_v4  ;;  %v5861_v10 = vor.u32 %v5860_v14, %v5857_v54  ;;  %v5655_v4 = vld [vmem:[#allocation3 + $0x80] sm:$0x1]  ;;  %v9217_v14 = vrot.slane %v6055_v15, 9 }
 0x2af   : > { %v4567_v9 = vor.u32 %v4565_v40, %v4564_v11  ;;  %v4569_v16 = vrot.slane %v4564_v11, 4  ;;  %v9719_v11 = vld [vmem:[#allocation3 + $0x60] sm:$0xff]  ;;  %v5877_v40 = vsel %vm10064_vm11, %v5872_v30, %v5876_v43  ;;  %v5898_v15 = vshll.u32 %v5655_v4, 16 }
 0x2b0   : > { %6755 = vmatmul.bf16.gmra.mxu0 %v6341_v42  ;;  %v4177_v19 = vadd.f32 %v4142_v63, %v3098_v1  ;;  %v5862_v63 = vrot.slane %v5861_v10, 4  ;;  %v6176_v10 = vsel %vm10106_vm14, %v9217_v14, %v6175_v50 }
 0x2b1   : > { %v4568_v3 = vsel %vm10045_vm9, %v4560_v28, %v4567_v9  ;;  %v4741_v24 = vsel %vm11343_vm4, %v4569_v16, %v4740_v51  ;;  %v11978_v62 = vpop.f32.mrf.mxu1  ;;  %v6177_v51 = vrot.slane %v6175_v50, 4  ;;  %v6178_v16 = vrot.slane %v5655_v4, 5 }
 0x2b2   : > { %4739 = vst [vmem:[#allocation3 + $0xb8] sm:$0xf] %v4568_v3  ;;  %v4213_v21 = vmul.f32 %v11909_v57, %v4177_v19  ;;  %v11981_v61 = vpop.f32.mrf.mxu3  ;;  %v5867_v52 = vsel %vm10064_vm11, %v5862_v63, %v11965_v27  ;;  %v5884_v19 = vrot.slane %v5882_v12, 5  ;;  %v9814_v3 = vld [vmem:[#allocation4 + $0x1b8] sm:$0xff]  ;;  %v6384_v63 = vunpack.c.l.b16 %v6176_v10 }
 0x2b3   : > { %4742 = vst [vmem:[#allocation3 + $0xbc] sm:$0x1] %v4741_v24  ;;  %v4144_v20 = vpop.f32.mrf.mxu2  ;;  %v6318_v27 = vunpack.c.l.b16 %v5867_v52  ;;  %8311 = vmatpush.bf16.msra.mxu1 %v9814_v3 }
 0x2b4   : > { %v4249_v53 = vadd.f32 %v11916_v31, %v4213_v21  ;;  %6849 = vmatmul.bf16.gmra.mxu1 %v6406_v6  ;;  %v6179_v21 = vsel %vm10106_vm14, %v6177_v51, %v6178_v16  ;;  %v5900_v51 = vrot.slane %v5898_v15, 5 }
 0x2b5   : > { %v2970_v7 = vpop.f32.mrf.mxu0  ;;  %v6385_v39 = vunpack.c.l.b16 %v6179_v21  ;;  %v13467_v21 = vrot.slane %v12018_v13, 5 }
 0x2b6   : > { %v4281_v34 = vmax.f32 %v4249_v53, 0.0  ;;  %v3100_v54 = vadd.f32 %v11963_v41, %v2970_v7  ;;  %v6319_v41 = vunpack.c.l.b16 %v5877_v40  ;;  %v5885_v53 = vor.u32 %v5884_v19, %v5881_v44  ;;  %v12006_v7 = vld [vmem:[#allocation3 + $0x88] sm:$0xf]  ;;  %v4750_v44 = vld [vmem:[#allocation3] sm:$0xf] }
 0x2b7   : > { %v6407_v14 = vpack.c.b16 %v6385_v39, %v6384_v63  ;;  %v4751_v19 = vld [vmem:[#allocation3 + $0x4] sm:$0xf]  ;;  %v5916_v10 = vshrl.u32 %v12006_v7, 16  ;;  %v4802_v15 = vshll.u32 %v4750_v44, 16 }
 0x2b8   : > { %v4313_v1 = vpack.c.bf16 %v4281_v34, %v4281_v34  ;;  %v4178_v42 = vadd.f32 %v4144_v20, %v3100_v54  ;;  %7082 = vmatmul.bf16.gmra.mxu2 %v9719_v11  ;;  %v5895_v20 = vor.u32 %v5894_v17, %v11992_v60  ;;  %v6342_v58 = vpack.c.b16 %v6319_v41, %v6318_v27  ;;  %v12011_v54 = vld [vmem:[#allocation3 + $0x84] sm:$0xe] }
 0x2b9   : > { %v11994_v28 = vpop.f32.mrf.mxu1  ;;  %v9765_v9 = vld [vmem:[#allocation3 + $0xb4] sm:$0xff]  ;;  %v5886_v40 = vrot.slane %v5885_v53, 4  ;;  %v4799_v53 = vshrl.u32 %v4750_v44, 16 }
 0x2ba   : > { %v4571_v37 = vshrl.u32 %v4313_v1, 16  ;;  %v4214_v35 = vmul.f32 %v11909_v57, %v4178_v42  ;;  %6701 = vmatmul.bf16.gmra.mxu3 %v9765_v9  ;;  %v12001_v6 = vpop.f32.mrf.mxu3  ;;  %v4574_v36 = vshll.u32 %v4313_v1, 16  ;;  %v4743_v57 = vld [vmem:[#allocation3 + $0xc0] sm:$0xf]  ;;  %v5896_v34 = vrot.slane %v5895_v20, 4 }
 0x2bb   : > { %v7043_v24 = vpop.f32.mrf.mxu2  ;;  %v12020_v42 = vld [vmem:[#allocation3 + $0x8c] sm:$0x1]  ;;  %v5891_v9 = vsel %vm10064_vm11, %v5886_v40, %v11992_v60 }
 0x2bc   : > { %v4573_v30 = vrot.slane %v4571_v37, 7  ;;  %v4250_v56 = vadd.f32 %v11916_v31, %v4214_v35  ;;  %v5901_v16 = vsel %vm10064_vm11, %v5896_v34, %v5900_v51  ;;  %v4747_v37 = vld [vmem:[#allocation3 + $0xc8] sm:$0x1]  ;;  %v6185_v63 = vrot.slane %v12020_v42, 5 }
 0x2bd   : > { %v6721_v43 = vpop.f32.mrf.mxu0  ;;  %v5918_v34 = vrot.slane %v5916_v10, 4  ;;  %v9749_v40 = vld [vmem:[#allocation4 + $0xb0] sm:$0xff] }
 0x2be   : > { %v4576_v2 = vor.u32 %v4574_v36, %v4573_v30  ;;  %v4282_v48 = vmax.f32 %v4250_v56, 0.0  ;;  %v6722_v50 = vadd.f32 %v6721_v43, %v11744_v22  ;;  %v6182_v22 = vrot.slane %v12006_v7, 5  ;;  %v5634_v43 = vld [vmem:[#allocation3 + $0x84] sm:$0xf]  ;;  %7213 = vmatpush.bf16.msra.mxu0 %v9749_v40 }
 0x2bf   : > { %v4577_v36 = vrot.slane %v4573_v30, 4 }
 0x2c0   : > { %v4744_v26 = vsel %vm11408_vm8, %v4576_v2, %v4743_v57  ;;  %v4314_v31 = vpack.c.bf16 %v4282_v48, %v4282_v48  ;;  %6760 = vmatmul.bf16.gmra.mxu0 %v6342_v58  ;;  %v6811_v12 = vadd.f32 %v11978_v62, %v6722_v50  ;;  %v9218_v62 = vrot.slane %v12011_v54, 9  ;;  %v9720_v57 = vld [vmem:[#allocation3 + $0x6c] sm:$0xff] }
 0x2c1   : > { %4745 = vst [vmem:[#allocation3 + $0xc0] sm:$0xf] %v4744_v26  ;;  %v12013_v11 = vpop.f32.mrf.mxu1  ;;  %v6184_v3 = vrot.slane %v6182_v22, 4  ;;  %v12036_v58 = vld [vmem:[#allocation4 + $0x238] sm:$0xff]  ;;  %v4808_v2 = vshll.u32 %v4751_v19, 16  ;;  %v4812_v48 = vshrl.u32 %v4751_v19, 16  ;;  %v6321_v54 = vunpack.c.l.b16 %v5901_v16 }
 0x2c2   : > { %v4579_v4 = vshrl.u32 %v4314_v31, 16  ;;  %v12016_v52 = vadd.f32 %v7043_v24, %v6811_v12  ;;  %v4582_v41 = vshll.u32 %v4314_v31, 16  ;;  %v12030_v27 = vpop.f32.mrf.mxu3  ;;  %v5912_v24 = vshll.u32 %v12006_v7, 16  ;;  %9831 = vmatpush.bf16.msra.mxu3 %v12036_v58 }
 0x2c3   : > { %v7045_v1 = vpop.f32.mrf.mxu2  ;;  %v5903_v26 = vshrl.u32 %v5634_v43, 16  ;;  %v5906_v31 = vshll.u32 %v5634_v43, 16  ;;  %v12055_v44 = vrot.slane %v4808_v2, 5  ;;  %v4814_v19 = vrot.slane %v4812_v48, 4  ;;  %v12072_v48 = vld [vmem:[#allocation3 + $0x94] sm:$0xf] }
 0x2c4   : > { %v4581_v17 = vrot.slane %v4579_v4, 7  ;;  %6854 = vmatmul.bf16.gmra.mxu1 %v6407_v14  ;;  %v12047_v12 = vrot.slane %v5912_v24, 5  ;;  %v7335_v4 = vld [vmem:[#allocation3 + $0x2c] sm:$0x1]  ;;  %v7809_v14 = vrot.slane %v13467_v21, 4  ;;  %v6183_v16 = vsel %vm10106_vm14, %v9218_v62, %v6182_v22 }
 0x2c5   : > { %v6723_v35 = vpop.f32.mrf.mxu0  ;;  %v5908_v24 = vrot.slane %v5906_v31, 5  ;;  %v7810_v10 = vrot.slane %v7335_v4, 5  ;;  %v5922_v2 = vshll.u32 %v12020_v42, 16 }
 0x2c6   : > { %v4584_v60 = vor.u32 %v4582_v41, %v4581_v17  ;;  %v4586_v56 = vrot.slane %v4581_v17, 4  ;;  %v6724_v20 = vadd.f32 %v6723_v35, %v11770_v29  ;;  %v4801_v17 = vrot.slane %v4799_v53, 4  ;;  %v4782_v35 = vld [vmem:[#allocation3 + $0x8] sm:$0x1] }
 0x2c7   : > { %v4804_v41 = vrot.slane %v4802_v15, 5  ;;  %v4815_v53 = vor.u32 %v4814_v19, %v12055_v44  ;;  %v4818_v15 = vshll.u32 %v4782_v35, 16  ;;  %v12068_v7 = vsel %vm10106_vm14, %v7809_v14, %v7810_v10  ;;  %v5636_v19 = vld [vmem:[#allocation3 + $0x90] sm:$0xf]  ;;  %v12083_v10 = vld [vmem:[#allocation3 + $0x98] sm:$0x1] }
 0x2c8   : > { %v4585_v50 = vsel %vm10045_vm9, %v4577_v36, %v4584_v60  ;;  %v4748_v39 = vsel %vm11343_vm4, %v4586_v56, %v4747_v37  ;;  %v6813_v30 = vadd.f32 %v11994_v28, %v6724_v20  ;;  %7087 = vmatmul.bf16.gmra.mxu2 %v9720_v57  ;;  %v6186_v28 = vsel %vm10106_vm14, %v6184_v3, %v6185_v63  ;;  %v4753_v57 = vld [vmem:[#allocation3 + $0x10] sm:$0xf] }
 0x2c9   : > { %4746 = vst [vmem:[#allocation3 + $0xc4] sm:$0xf] %v4585_v50  ;;  %v12045_v29 = vpop.f32.mrf.mxu1  ;;  %v6320_v37 = vunpack.c.l.b16 %v5891_v9  ;;  %v5905_v3 = vrot.slane %v5903_v26, 4  ;;  %v6387_v56 = vunpack.c.l.b16 %v6186_v28  ;;  %v5919_v20 = vor.u32 %v5918_v34, %v12047_v12  ;;  %v9821_v34 = vld [vmem:[#allocation4 + $0x1f0] sm:$0xff] }
 0x2ca   : > { %4749 = vst [vmem:[#allocation3 + $0xc8] sm:$0x1] %v4748_v39  ;;  %v12049_v32 = vadd.f32 %v7045_v1, %v6813_v30  ;;  %v12063_v43 = vpop.f32.mrf.mxu3  ;;  %v4805_v9 = vor.u32 %v4804_v41, %v4801_v17  ;;  %v4832_v39 = vshll.u32 %v4753_v57, 16  ;;  %v4820_v4 = vrot.slane %v4818_v15, 5  ;;  %8401 = vmatpush.bf16.msra.mxu2 %v9821_v34  ;;  %v9813_v34 = vld [vmem:[#allocation4 + $0x1b0] sm:$0xff] }
 0x2cb   : > { %v7048_v51 = vpop.f32.mrf.mxu2  ;;  %v6343_v60 = vpack.c.b16 %v6321_v54, %v6320_v37  ;;  %v5909_v26 = vor.u32 %v5908_v24, %v5905_v3  ;;  %v5920_v31 = vrot.slane %v5919_v20, 4  ;;  %v4752_v54 = vld [vmem:[#allocation3 + $0xc] sm:$0xf]  ;;  %v6189_v14 = vrot.slane %v12072_v48, 5  ;;  %8312 = vmatpush.bf16.msra.mxu1 %v9813_v34 }
 0x2cc   : > { %v4806_v40 = vrot.slane %v4805_v9, 4  ;;  %v5924_v42 = vrot.slane %v5922_v2, 5  ;;  %v4836_v17 = vshrl.u32 %v4753_v57, 16  ;;  %v4823_v37 = vshrl.u32 %v4752_v54, 16 }
 0x2cd   : > { %v6726_v1 = vpop.f32.mrf.mxu0  ;;  %v4826_v35 = vshll.u32 %v4752_v54, 16  ;;  %v5910_v3 = vrot.slane %v5909_v26, 4  ;;  %v6191_v20 = vrot.slane %v6189_v14, 4  ;;  %v12091_v57 = vrot.slane %v4832_v39, 5 }
 0x2ce   : > { %v6727_v36 = vadd.f32 %v6726_v1, %v11795_v55  ;;  %v6386_v55 = vunpack.c.l.b16 %v6183_v16  ;;  %v9721_v16 = vld [vmem:[#allocation3 + $0x78] sm:$0xff]  ;;  %v5925_v24 = vsel %vm10064_vm11, %v5920_v31, %v5924_v42  ;;  %v5927_v15 = vshrl.u32 %v5636_v19, 16 }
 0x2cf   : > { %v5915_v9 = vsel %vm10064_vm11, %v5910_v3, %v12047_v12  ;;  %v4825_v42 = vrot.slane %v4823_v37, 4 }
 0x2d0   : > { %6765 = vmatmul.bf16.gmra.mxu0 %v6343_v60  ;;  %v6816_v22 = vadd.f32 %v12013_v11, %v6727_v36  ;;  %v9766_v62 = vld [vmem:[#allocation3 + $0xc0] sm:$0xff]  ;;  %v6408_v63 = vpack.c.b16 %v6387_v56, %v6386_v55  ;;  %v4816_v11 = vrot.slane %v4815_v53, 4  ;;  %v5940_v36 = vshrl.u32 %v12072_v48, 16  ;;  %v6057_v53 = vld [vmem:[#allocation3 + $0x90] sm:$0xe] }
 0x2d1   : > { %v12074_v50 = vpop.f32.mrf.mxu1  ;;  %6706 = vmatmul.bf16.gmra.mxu3 %v9766_v62  ;;  %v4811_v60 = vsel %vm10064_vm11, %v4806_v40, %v12055_v44  ;;  %v6323_v55 = vunpack.c.l.b16 %v5925_v24  ;;  %v6192_v44 = vrot.slane %v12083_v10, 5  ;;  %v6322_v12 = vunpack.c.l.b16 %v5915_v9 }
 0x2d2   : > { %v12076_v30 = vadd.f32 %v7048_v51, %v6816_v22  ;;  %v5936_v51 = vshll.u32 %v12072_v48, 16  ;;  %v4821_v56 = vsel %vm10064_vm11, %v4816_v11, %v4820_v4  ;;  %v4838_v22 = vrot.slane %v4836_v17, 4  ;;  %v4783_v4 = vld [vmem:[#allocation3 + $0x14] sm:$0x1] }
 0x2d3   : > { %v7050_v28 = vpop.f32.mrf.mxu2  ;;  %v5930_v48 = vshll.u32 %v5636_v19, 16  ;;  %v5439_v26 = vunpack.c.l.b16 %v4821_v56  ;;  %v5942_v31 = vrot.slane %v5940_v36, 4  ;;  %v9219_v40 = vrot.slane %v6057_v53, 9  ;;  %v4754_v19 = vld [vmem:[#allocation3 + $0x18] sm:$0xf] }
 0x2d4   : > { %6859 = vmatmul.bf16.gmra.mxu1 %v6408_v63  ;;  %v12102_v39 = vrot.slane %v5936_v51, 5  ;;  %v6193_v11 = vsel %vm10106_vm14, %v6191_v20, %v6192_v44  ;;  %v4828_v17 = vrot.slane %v4826_v35, 5  ;;  %v4755_v20 = vld [vmem:[#allocation3 + $0x1c] sm:$0xf]  ;;  %v4842_v37 = vshll.u32 %v4783_v4, 16 }
 0x2d5   : > { %v6728_v41 = vpop.f32.mrf.mxu0  ;;  %v5932_v3 = vrot.slane %v5930_v48, 5  ;;  %v4847_v35 = vshrl.u32 %v4754_v19, 16  ;;  %v5946_v53 = vshll.u32 %v12083_v10, 16  ;;  %v4856_v48 = vshll.u32 %v4755_v20, 16 }
 0x2d6   : > { %v6729_v1 = vadd.f32 %v6728_v41, %v11820_v5  ;;  %v4839_v41 = vor.u32 %v4838_v22, %v12091_v57  ;;  %v5943_v56 = vor.u32 %v5942_v31, %v12102_v39  ;;  %v12115_v22 = vld [vmem:[#allocation3 + $0xa0] sm:$0xf]  ;;  %v4829_v44 = vor.u32 %v4828_v17, %v4825_v42  ;;  %v9722_v17 = vld [vmem:[#allocation3 + $0x84] sm:$0xff] }
 0x2d7   : > { %v12100_v2 = vpop.f32.mrf.mxu3  ;;  %v6196_v10 = vrot.slane %v12115_v22, 5  ;;  %v4849_v4 = vrot.slane %v4847_v35, 4 }
 0x2d8   : > { %v6818_v5 = vadd.f32 %v12045_v29, %v6729_v1  ;;  %7092 = vmatmul.bf16.gmra.mxu2 %v9721_v16  ;;  %v5438_v29 = vunpack.c.l.b16 %v4811_v60  ;;  %v6190_v1 = vsel %vm10106_vm14, %v9219_v40, %v6189_v14  ;;  %v5929_v16 = vrot.slane %v5927_v15, 4 }
 0x2d9   : > { %v12097_v62 = vpop.f32.mrf.mxu1  ;;  %v6389_v60 = vunpack.c.l.b16 %v6193_v11  ;;  %v6388_v9 = vunpack.c.l.b16 %v6190_v1  ;;  %v4850_v14 = vshll.u32 %v4754_v19, 16  ;;  %v5944_v34 = vrot.slane %v5943_v56, 4 }
 0x2da   : > { %v12104_v63 = vadd.f32 %v7050_v28, %v6818_v5  ;;  %v6344_v28 = vpack.c.b16 %v6323_v55, %v6322_v12  ;;  %v5470_v36 = vpack.c.b16 %v5439_v26, %v5438_v29  ;;  %v5933_v55 = vor.u32 %v5932_v3, %v5929_v16 }
 0x2db   : > { %v7053_v54 = vpop.f32.mrf.mxu2  ;;  %v4860_v29 = vshrl.u32 %v4755_v20, 16  ;;  %v6409_v31 = vpack.c.b16 %v6389_v60, %v6388_v9  ;;  %v5948_v40 = vrot.slane %v5946_v53, 5  ;;  %v4844_v11 = vrot.slane %v4842_v37, 5  ;;  %v5638_v20 = vld [vmem:[#allocation3 + $0x9c] sm:$0xf] }
 0x2dc   : > { %13498 = vst [vmem:[#allocation9_spill] sm:$0xff] %v12104_v63  ;;  %v4852_v19 = vrot.slane %v4850_v14, 5  ;;  %v12124_v1 = vrot.slane %v4856_v48, 5  ;;  %v6198_v56 = vrot.slane %v6196_v10, 4  ;;  %v5964_v37 = vshrl.u32 %v12115_v22, 16 }
 0x2dd   : > { %v6731_v51 = vpop.f32.mrf.mxu0  ;;  %v4862_v42 = vrot.slane %v4860_v29, 4  ;;  %v5949_v16 = vsel %vm10064_vm11, %v5944_v34, %v5948_v40  ;;  %v6058_v9 = vld [vmem:[#allocation3 + $0x9c] sm:$0xe]  ;;  %v5951_v34 = vshrl.u32 %v5638_v20, 16  ;;  %v4757_v40 = vld [vmem:[#allocation3 + $0x28] sm:$0xf] }
 0x2de   : > { %v6732_v24 = vadd.f32 %v6731_v51, %v11837_v25  ;;  %v4853_v53 = vor.u32 %v4852_v19, %v4849_v4  ;;  %v9220_v4 = vrot.slane %v6058_v9, 9 }
 0x2df   : > { %v12119_v25 = vpop.f32.mrf.mxu3  ;;  %v5953_v9 = vrot.slane %v5951_v34, 4 }
 0x2e0   : > { %6770 = vmatmul.bf16.gmra.mxu0 %v6344_v28  ;;  %v6821_v5 = vadd.f32 %v12074_v50, %v6732_v24  ;;  %v4840_v50 = vrot.slane %v4839_v41, 4  ;;  %v5934_v28 = vrot.slane %v5933_v55, 4  ;;  %v4830_v41 = vrot.slane %v4829_v44, 4  ;;  %v12131_v24 = vld [vmem:[#allocation3 + $0xa4] sm:$0x1] }
 0x2e1   : > { %v12117_v15 = vpop.f32.mrf.mxu1  ;;  %7131 = vmatmul.bf16.vlgmr.msrb.gmra.mxu3 %v5470_v36  ;;  %v12133_v36 = vld [vmem:[#allocation4 + $0x230] sm:$0xff]  ;;  %v6199_v44 = vrot.slane %v12131_v24, 5 }
 0x2e2   : > { %v12121_v26 = vadd.f32 %v7053_v54, %v6821_v5  ;;  %v4845_v3 = vsel %vm10064_vm11, %v4840_v50, %v4844_v11  ;;  %v5939_v60 = vsel %vm10064_vm11, %v5934_v28, %v12102_v39  ;;  %v4835_v5 = vsel %vm10064_vm11, %v4830_v41, %v12091_v57  ;;  %9832 = vmatpush.bf16.msra.mxu3 %v12133_v36  ;;  %v9748_v50 = vld [vmem:[#allocation4 + $0xa8] sm:$0xff] }
 0x2e3   : > { %v7055_v12 = vpop.f32.mrf.mxu2  ;;  %v6325_v39 = vunpack.c.l.b16 %v5949_v16  ;;  %v5441_v55 = vunpack.c.l.b16 %v4845_v3  ;;  %v5954_v57 = vshll.u32 %v5638_v20, 16  ;;  %v6200_v19 = vsel %vm10106_vm14, %v6198_v56, %v6199_v44  ;;  %7214 = vmatpush.bf16.msra.mxu0 %v9748_v50  ;;  %v4756_v41 = vld [vmem:[#allocation3 + $0x24] sm:$0xf] }
 0x2e4   : > { %13499 = vst [vmem:[#allocation10_spill] sm:$0xff] %v12121_v26  ;;  %6864 = vmatmul.bf16.gmra.mxu1 %v6409_v31  ;;  %v6324_v31 = vunpack.c.l.b16 %v5939_v60  ;;  %v5966_v28 = vrot.slane %v5964_v37, 4  ;;  %v4880_v3 = vshll.u32 %v4757_v40, 16  ;;  %v4884_v60 = vshrl.u32 %v4757_v40, 16 }
 0x2e5   : > { %v6733_v51 = vpop.f32.mrf.mxu0  ;;  %v5956_v21 = vrot.slane %v5954_v57, 5  ;;  %v4854_v37 = vrot.slane %v4853_v53, 4 }
 0x2e6   : > { %v6734_v54 = vadd.f32 %v6733_v51, %v11860_v8  ;;  %v5960_v8 = vshll.u32 %v12115_v22, 16  ;;  %v4784_v22 = vld [vmem:[#allocation3 + $0x20] sm:$0x1]  ;;  %v4886_v57 = vrot.slane %v4884_v60, 4 }
 0x2e7   : > { %v12148_v48 = vpop.f32.mrf.mxu3 }
 0x2e8   : > { %v6823_v35 = vadd.f32 %v12097_v62, %v6734_v54  ;;  %7097 = vmatmul.bf16.gmra.mxu2 %v9722_v17  ;;  %v4863_v62 = vor.u32 %v4862_v42, %v12124_v1  ;;  %v12155_v51 = vrot.slane %v5960_v8, 5  ;;  %v5440_v54 = vunpack.c.l.b16 %v4835_v5 }
 0x2e9   : > { %v12145_v14 = vpop.f32.mrf.mxu1  ;;  %v4866_v17 = vshll.u32 %v4784_v22, 16  ;;  %v6345_v42 = vpack.c.b16 %v6325_v39, %v6324_v31  ;;  %v12162_v22 = vld [vmem:[#allocation3 + $0xac] sm:$0xf]  ;;  %v4874_v31 = vshll.u32 %v4756_v41, 16 }
 0x2ea   : > { %v12151_v29 = vadd.f32 %v7055_v12, %v6823_v35  ;;  %v6197_v12 = vsel %vm10106_vm14, %v9220_v4, %v6196_v10  ;;  %v6391_v35 = vunpack.c.l.b16 %v6200_v19  ;;  %v5471_v56 = vpack.c.b16 %v5441_v55, %v5440_v54  ;;  %v9820_v4 = vld [vmem:[#allocation4 + $0x1e8] sm:$0xff] }
 0x2eb   : > { %v7058_v11 = vpop.f32.mrf.mxu2  ;;  %v5967_v8 = vor.u32 %v5966_v28, %v12155_v51  ;;  %v4864_v5 = vrot.slane %v4863_v62, 4  ;;  %v6390_v39 = vunpack.c.l.b16 %v6197_v12  ;;  %v4871_v10 = vshrl.u32 %v4756_v41, 16  ;;  %8402 = vmatpush.bf16.msra.mxu2 %v9820_v4  ;;  %v4785_v41 = vld [vmem:[#allocation3 + $0x2c] sm:$0x1] }
 0x2ec   : > { %13500 = vst [vmem:[#allocation11_spill] sm:$0xff] %v12151_v29  ;;  %v4868_v34 = vrot.slane %v4866_v17, 5  ;;  %v12169_v55 = vrot.slane %v4880_v3, 5  ;;  %v4859_v54 = vsel %vm10064_vm11, %v4854_v37, %v12124_v1  ;;  %v6203_v17 = vrot.slane %v12162_v22, 5  ;;  %v4758_v3 = vld [vmem:[#allocation3 + $0x30] sm:$0xf] }
 0x2ed   : > { %v6736_v16 = vpop.f32.mrf.mxu0  ;;  %v6410_v62 = vpack.c.b16 %v6391_v35, %v6390_v39  ;;  %v5968_v28 = vrot.slane %v5967_v8, 4  ;;  %v5442_v1 = vunpack.c.l.b16 %v4859_v54  ;;  %v6059_v8 = vld [vmem:[#allocation3 + $0xa8] sm:$0xe]  ;;  %v5984_v39 = vshll.u32 %v12162_v22, 16 }
 0x2ee   : > { %v6737_v20 = vadd.f32 %v6736_v16, %v11877_v0  ;;  %v5970_v0 = vshll.u32 %v12131_v24, 16  ;;  %v4869_v24 = vsel %vm10064_vm11, %v4864_v5, %v4868_v34  ;;  %v4873_v16 = vrot.slane %v4871_v10, 4 }
 0x2ef   : > { %v12167_v40 = vpop.f32.mrf.mxu3  ;;  %v6205_v5 = vrot.slane %v6203_v17, 4  ;;  %v5988_v10 = vshrl.u32 %v12162_v22, 16  ;;  %v4895_v34 = vshrl.u32 %v4758_v3, 16  ;;  %v4898_v54 = vshll.u32 %v4758_v3, 16 }
 0x2f0   : > { %6775 = vmatmul.bf16.gmra.mxu0 %v6345_v42  ;;  %v6826_v44 = vadd.f32 %v12117_v15, %v6737_v20  ;;  %v5957_v15 = vor.u32 %v5956_v21, %v5953_v9  ;;  %v5972_v12 = vrot.slane %v5970_v0, 5  ;;  %v4887_v21 = vor.u32 %v4886_v57, %v12169_v55  ;;  %v9723_v20 = vld [vmem:[#allocation3 + $0x90] sm:$0xff] }
 0x2f1   : > { %v12164_v50 = vpop.f32.mrf.mxu1  ;;  %7136 = vmatmul.bf16.gmra.mxu3 %v5471_v56  ;;  %v5443_v9 = vunpack.c.l.b16 %v4869_v24  ;;  %v12181_v56 = vld [vmem:[#allocation3 + $0xb0] sm:$0x1]  ;;  %v4890_v0 = vshll.u32 %v4785_v41, 16 }
 0x2f2   : > { %v12171_v53 = vadd.f32 %v7058_v11, %v6826_v44  ;;  %v4876_v11 = vrot.slane %v4874_v31, 5  ;;  %v5958_v35 = vrot.slane %v5957_v15, 4  ;;  %v5973_v37 = vsel %vm10064_vm11, %v5968_v28, %v5972_v12  ;;  %v5640_v44 = vld [vmem:[#allocation3 + $0xa8] sm:$0xf] }
 0x2f3   : > { %v7060_v19 = vpop.f32.mrf.mxu2  ;;  %v6206_v15 = vrot.slane %v12181_v56, 5  ;;  %v4888_v28 = vrot.slane %v4887_v21, 4  ;;  %v6327_v22 = vunpack.c.l.b16 %v5973_v37  ;;  %v5472_v45 = vpack.c.b16 %v5443_v9, %v5442_v1 }
 0x2f4   : > { %13501 = vst [vmem:[#allocation12_spill] sm:$0xff] %v12171_v53  ;;  %6869 = vmatmul.bf16.gmra.mxu1 %v6410_v62  ;;  %v5963_v62 = vsel %vm10064_vm11, %v5958_v35, %v12155_v51  ;;  %v5990_v51 = vrot.slane %v5988_v10, 4  ;;  %v7735_v35 = vld [vmem:[#allocation3 + $0x24] sm:$0xe]  ;;  %v4892_v3 = vrot.slane %v4890_v0, 5  ;;  %v4897_v37 = vrot.slane %v4895_v34, 4 }
 0x2f5   : > { %v6738_v42 = vpop.f32.mrf.mxu0  ;;  %v6207_v41 = vsel %vm10106_vm14, %v6205_v5, %v6206_v15  ;;  %v6326_v33 = vunpack.c.l.b16 %v5963_v62  ;;  %v13503_v34 = vrot.slane %v12018_v13, 5 }
 0x2f6   : > { %v6739_v60 = vadd.f32 %v6738_v42, %v11898_v47  ;;  %v4877_v47 = vor.u32 %v4876_v11, %v4873_v16  ;;  %v5975_v42 = vshrl.u32 %v5640_v44, 16  ;;  %v9812_v16 = vld [vmem:[#allocation4 + $0x1a8] sm:$0xff]  ;;  %v4759_v11 = vld [vmem:[#allocation3 + $0x34] sm:$0xf]  ;;  %v4893_v1 = vsel %vm10064_vm11, %v4888_v28, %v4892_v3  ;;  %v4760_v3 = vld [vmem:[#allocation3 + $0x3c] sm:$0xf] }
 0x2f7   : > { %v12194_v4 = vpop.f32.mrf.mxu3  ;;  %8313 = vmatpush.bf16.msra.mxu1 %v9812_v16  ;;  %v6346_v5 = vpack.c.b16 %v6327_v22, %v6326_v33  ;;  %v4908_v0 = vshrl.u32 %v4759_v11, 16  ;;  %v12226_v13 = vunpack.c.l.b16 %v4893_v1 }
 0x2f8   : > { %v6828_v31 = vadd.f32 %v12145_v14, %v6739_v60  ;;  %7102 = vmatmul.bf16.gmra.mxu2 %v9723_v20  ;;  %v9221_v14 = vrot.slane %v6059_v8, 9  ;;  %v5978_v60 = vshll.u32 %v5640_v44, 16  ;;  %v12200_v20 = vrot.slane %v5984_v39, 5 }
 0x2f9   : > { %v12188_v57 = vpop.f32.mrf.mxu1  ;;  %v4878_v21 = vrot.slane %v4877_v47, 4  ;;  %v6393_v44 = vunpack.c.l.b16 %v6207_v41  ;;  %v9481_v39 = vrot.slane %v7735_v35, 9  ;;  %v5977_v15 = vrot.slane %v5975_v42, 4  ;;  %v9811_v42 = vld [vmem:[#allocation4 + $0x1a0] sm:$0xff] }
 0x2fa   : > { %v12196_v24 = vadd.f32 %v7060_v19, %v6828_v31  ;;  %v6204_v8 = vsel %vm10106_vm14, %v9221_v14, %v6203_v17  ;;  %v4900_v31 = vrot.slane %v4898_v54, 5  ;;  %v5980_v10 = vrot.slane %v5978_v60, 5  ;;  %v12209_v17 = vld [vmem:[#allocation3 + $0xb8] sm:$0xf] }
 0x2fb   : > { %v7063_v12 = vpop.f32.mrf.mxu2  ;;  %v5991_v62 = vor.u32 %v5990_v51, %v12200_v20  ;;  %v6392_v47 = vunpack.c.l.b16 %v6204_v8  ;;  %v7808_v33 = vsel %vm10106_vm14, %v9481_v39, %v13503_v34  ;;  %v5994_v54 = vshll.u32 %v12181_v56, 16  ;;  %8314 = vmatpush.bf16.msra.mxu1 %v9811_v42  ;;  %v12244_v39 = vld [vmem:[#allocation4 + $0x228] sm:$0xff] }
 0x2fc   : > { %13502 = vst [vmem:[#allocation13_spill] sm:$0xff] %v12196_v24  ;;  %v4904_v24 = vshll.u32 %v4759_v11, 16  ;;  %v4883_v28 = vsel %vm10064_vm11, %v4878_v21, %v12169_v55  ;;  %v4901_v16 = vor.u32 %v4900_v31, %v4897_v37  ;;  %v5981_v41 = vor.u32 %v5980_v10, %v5977_v15  ;;  %v5642_v21 = vld [vmem:[#allocation3 + $0xb4] sm:$0xf]  ;;  %v9724_v37 = vld [vmem:[#allocation3 + $0x9c] sm:$0xff]  ;;  %9833 = vmatpush.bf16.msra.mxu3 %v12244_v39 }
 0x2fd   : > { %v6741_v19 = vpop.f32.mrf.mxu0  ;;  %v6411_v14 = vpack.c.b16 %v6393_v44, %v6392_v47  ;;  %v5992_v60 = vrot.slane %v5991_v62, 4  ;;  %v6210_v56 = vrot.slane %v12209_v17, 5  ;;  %v8056_v51 = vunpack.c.l.b16 %v7808_v33  ;;  %v6060_v47 = vld [vmem:[#allocation3 + $0xb4] sm:$0xe] }
 0x2fe   : > { %v6742_v53 = vadd.f32 %v6741_v19, %v11920_v18  ;;  %v12229_v35 = vunpack.c.l.b16 %v4883_v28  ;;  %v12231_v55 = vrot.slane %v4904_v24, 5  ;;  %v6008_v24 = vshll.u32 %v12209_v17, 16 }
 0x2ff   : > { %v12218_v22 = vpop.f32.mrf.mxu3  ;;  %v6012_v44 = vshrl.u32 %v12209_v17, 16  ;;  %v5982_v15 = vrot.slane %v5981_v41, 4  ;;  %v6212_v62 = vrot.slane %v6210_v56, 4  ;;  %v12248_v1 = vrot.slane %v4901_v16, 4  ;;  %v4761_v17 = vld [vmem:[#allocation3 + $0x40] sm:$0xf] }
 0x300   : > { %6780 = vmatmul.bf16.gmra.mxu0 %v6346_v5  ;;  %v6831_v9 = vadd.f32 %v12164_v50, %v6742_v53  ;;  %v8057_v50 = vunpack.c.l.b16 %v12068_v7  ;;  %v12233_v7 = vrot.slane %v4908_v0, 4  ;;  %v12240_v5 = vld [vmem:[#allocation3 + $0xbc] sm:$0x1]  ;;  %v4919_v34 = vshrl.u32 %v4760_v3, 16  ;;  %v4786_v16 = vld [vmem:[#allocation3 + $0x38] sm:$0x1] }
 0x301   : > { %v12215_v18 = vpop.f32.mrf.mxu1  ;;  %7141 = vmatmul.bf16.gmra.mxu3 %v5472_v45  ;;  %v5996_v45 = vrot.slane %v5994_v54, 5  ;;  %v4922_v33 = vshll.u32 %v4760_v3, 16  ;;  %v5987_v28 = vsel %vm10064_vm11, %v5982_v15, %v12200_v20  ;;  %v6002_v42 = vshll.u32 %v5642_v21, 16  ;;  %v9819_v3 = vld [vmem:[#allocation4 + $0x1e0] sm:$0xff] }
 0x302   : > { %v12224_v53 = vadd.f32 %v7063_v12, %v6831_v9  ;;  %v12235_v19 = vpack.c.b16 %v8057_v50, %v8056_v51  ;;  %v4911_v0 = vor.u32 %v12233_v7, %v12231_v55  ;;  %v6213_v50 = vrot.slane %v12240_v5, 5  ;;  %8403 = vmatpush.bf16.msra.mxu2 %v9819_v3 }
 0x303   : > { %v7065_v11 = vpop.f32.mrf.mxu2  ;;  %v5997_v10 = vsel %vm10064_vm11, %v5992_v60, %v5996_v45  ;;  %v12264_v51 = vrot.slane %v6008_v24, 5  ;;  %v6014_v7 = vrot.slane %v6012_v44, 4  ;;  %v9809_v45 = vld [vmem:[#allocation4 + $0x190] sm:$0xff]  ;;  %v4928_v15 = vshll.u32 %v4761_v17, 16  ;;  %v12272_v44 = vld [vmem:[#allocation3 + $0x58] sm:$0xf] }
 0x304   : > { %13504 = vst [vmem:[#allocation14_spill] sm:$0xff] %v12224_v53  ;;  %6874 = vmatmul.bf16.gmra.mxu1 %v6411_v14  ;;  %v6329_v60 = vunpack.c.l.b16 %v5997_v10  ;;  %v6214_v20 = vsel %vm10106_vm14, %v6212_v62, %v6213_v50  ;;  %v4932_v31 = vshrl.u32 %v4761_v17, 16  ;;  %v4924_v24 = vrot.slane %v4922_v33, 5  ;;  %v12282_v33 = vld [vmem:[#allocation3 + $0xc4] sm:$0xf] }
 0x305   : > { %v6743_v12 = vpop.f32.mrf.mxu0  ;;  %13505 = vst [vmem:[#allocation15_spill] sm:$0xff] %v12235_v19  ;;  %v6328_v19 = vunpack.c.l.b16 %v5987_v28  ;;  %v6004_v62 = vrot.slane %v6002_v42, 5  ;;  %v6395_v50 = vunpack.c.l.b16 %v6214_v20  ;;  %v12284_v3 = vrot.slane %v4928_v15, 5 }
 0x306   : > { %v6744_v8 = vadd.f32 %v6743_v12, %v11939_v23  ;;  %v9810_v23 = vld [vmem:[#allocation4 + $0x198] sm:$0xff]  ;;  %v9747_v12 = vld [vmem:[#allocation4 + $0xa0] sm:$0xff] }
 0x307   : > { %v12260_v14 = vpop.f32.mrf.mxu3  ;;  %8315 = vmatpush.bf16.msra.mxu1 %v9810_v23  ;;  %7215 = vmatpush.bf16.msra.mxu0 %v9747_v12  ;;  %v6347_v28 = vpack.c.b16 %v6329_v60, %v6328_v19  ;;  %v12278_v12 = vld [vmem:[#allocation3 + $0x18] sm:$0xf]  ;;  %v6018_v19 = vshll.u32 %v12240_v5, 16  ;;  %v9818_v60 = vld [vmem:[#allocation4 + $0x1d8] sm:$0xff] }
 0x308   : > { %v6833_v9 = vadd.f32 %v12188_v57, %v6744_v8  ;;  %7107 = vmatmul.bf16.gmra.mxu2 %v9724_v37  ;;  %v5999_v57 = vshrl.u32 %v5642_v21, 16  ;;  %v9222_v37 = vrot.slane %v6060_v47, 9  ;;  %v4921_v21 = vrot.slane %v4919_v34, 4 }
 0x309   : > { %v12254_v54 = vpop.f32.mrf.mxu1  ;;  %v4914_v47 = vshll.u32 %v4786_v16, 16  ;;  %v12280_v34 = vrot.slane %v4911_v0, 4  ;;  %v9808_v16 = vld [vmem:[#allocation4 + $0x188] sm:$0xff]  ;;  %8404 = vmatpush.bf16.msra.mxu2 %v9818_v60 }
 0x30a   : > { %v12262_v41 = vadd.f32 %v7065_v11, %v6833_v9  ;;  %v4907_v11 = vsel %vm10064_vm11, %v12248_v1, %v12231_v55  ;;  %v6211_v23 = vsel %vm10106_vm14, %v9222_v37, %v6210_v56  ;;  %v6001_v9 = vrot.slane %v5999_v57, 4  ;;  %v4787_v1 = vld [vmem:[#allocation3 + $0x44] sm:$0x1] }
 0x30b   : > { %v7068_v8 = vpop.f32.mrf.mxu2  ;;  %8316 = vmatpush.bf16.msra.mxu1 %v9809_v45  ;;  %v6015_v55 = vor.u32 %v6014_v7, %v12264_v51  ;;  %v4934_v56 = vrot.slane %v4932_v31, 4  ;;  %v13470_v57 = vrot.slane %v12272_v44, 5  ;;  %v9746_v7 = vld [vmem:[#allocation4 + $0x98] sm:$0xff]  ;;  %v4925_v45 = vor.u32 %v4924_v24, %v4921_v21  ;;  %v12299_v21 = vld [vmem:[#allocation3 + $0x5c] sm:$0x1] }
 0x30c   : > { %13506 = vst [vmem:[#allocation16_spill] sm:$0xff] %v12262_v41  ;;  %v6005_v0 = vor.u32 %v6004_v62, %v6001_v9  ;;  %v4938_v15 = vshll.u32 %v4787_v1, 16  ;;  %v7351_v31 = vshrl.u32 %v12278_v12, 16  ;;  %v12301_v9 = vunpack.c.l.b16 %v4907_v11  ;;  %7216 = vmatpush.bf16.msra.mxu0 %v9746_v7  ;;  %v12312_v11 = vld [vmem:[#allocation3 + $0x1c] sm:$0xf] }
 0x30d   : > { %v6746_v10 = vpop.f32.mrf.mxu0  ;;  %v6016_v5 = vrot.slane %v6015_v55, 4  ;;  %v13471_v62 = vrot.slane %v12282_v33, 5  ;;  %v4935_v1 = vor.u32 %v4934_v56, %v12284_v3  ;;  %v7354_v55 = vshll.u32 %v12278_v12, 16 }
 0x30e   : > { %v6747_v17 = vadd.f32 %v6746_v10, %v11953_v38  ;;  %v6394_v38 = vunpack.c.l.b16 %v6211_v23  ;;  %v12315_v60 = vrot.slane %v4938_v15, 5  ;;  %v12317_v56 = vrot.slane %v7351_v31, 4 }
 0x30f   : > { %v12291_v20 = vpop.f32.mrf.mxu3  ;;  %8317 = vmatpush.bf16.msra.mxu1 %v9808_v16  ;;  %v5644_v16 = vld [vmem:[#allocation3 + $0xc0] sm:$0xf]  ;;  %v5300_v7 = vrot.slane %v12299_v21, 5  ;;  %v6036_v12 = vshrl.u32 %v12282_v33, 16  ;;  %v6219_v15 = vrot.slane %v13471_v62, 4  ;;  %v4936_v31 = vrot.slane %v4935_v1, 4 }
 0x310   : > { %6785 = vmatmul.bf16.gmra.mxu0 %v6347_v28  ;;  %v6836_v42 = vadd.f32 %v12215_v18, %v6747_v17  ;;  %v13508_v18 = vpack.c.b16 %v12226_v13, %v12229_v35  ;;  %v6412_v23 = vpack.c.b16 %v6395_v50, %v6394_v38  ;;  %v4916_v17 = vrot.slane %v4914_v47, 5  ;;  %v9807_v28 = vld [vmem:[#allocation4 + $0x180] sm:$0xff]  ;;  %v9744_v62 = vld [vmem:[#allocation4 + $0x88] sm:$0xff]  ;;  %v5189_v1 = vld [vmem:[#allocation3 + $0x54] sm:$0xe] }
 0x311   : > { %v12289_v37 = vpop.f32.mrf.mxu1  ;;  %v5299_v13 = vrot.slane %v13470_v57, 4  ;;  %v6020_v35 = vrot.slane %v6018_v19, 5  ;;  %v12310_v50 = vrot.slane %v4925_v45, 4  ;;  %v6006_v38 = vrot.slane %v6005_v0, 4  ;;  %v12323_v45 = vld [vmem:[#allocation3 + $0xc8] sm:$0x1] }
 0x312   : > { %v12294_v10 = vadd.f32 %v7068_v8, %v6836_v42  ;;  %7146 = vmatmul.bf16.gmra.mxu3 %v13508_v18  ;;  %v9817_v8 = vld [vmem:[#allocation4 + $0x1d0] sm:$0xff]  ;;  %v4917_v47 = vsel %vm10064_vm11, %v12280_v34, %v4916_v17  ;;  %v9816_v17 = vld [vmem:[#allocation4 + $0x1c8] sm:$0xff]  ;;  %v6220_v53 = vrot.slane %v12323_v45, 5  ;;  %v9135_v26 = vrot.slane %v5189_v1, 9 }
 0x313   : > { %v7070_v24 = vpop.f32.mrf.mxu2  ;;  %v9725_v18 = vld [vmem:[#allocation3 + $0xa8] sm:$0xff]  ;;  %v6021_v34 = vsel %vm10064_vm11, %v6016_v5, %v6020_v35  ;;  %8318 = vmatpush.bf16.msra.mxu1 %v9807_v28  ;;  %8405 = vmatpush.bf16.msra.mxu2 %v9817_v8  ;;  %v6011_v28 = vsel %vm10064_vm11, %v6006_v38, %v12264_v51  ;;  %v5447_v35 = vunpack.c.l.b16 %v4917_v47  ;;  %v6061_v57 = vld [vmem:[#allocation3 + $0xc0] sm:$0xe]  ;;  %v7356_v8 = vrot.slane %v7354_v55, 5 }
 0x314   : > { %13507 = vst [vmem:[#allocation17_spill] sm:$0xff] %v12294_v10  ;;  %6879 = vmatmul.bf16.gmra.mxu1 %v6412_v23  ;;  %v6032_v23 = vshll.u32 %v12282_v33, 16  ;;  %v9745_v0 = vld [vmem:[#allocation4 + $0x90] sm:$0xff]  ;;  %v6331_v41 = vunpack.c.l.b16 %v6021_v34  ;;  %v6038_v47 = vrot.slane %v6036_v12, 4  ;;  %v6330_v38 = vunpack.c.l.b16 %v6011_v28  ;;  %v9815_v34 = vld [vmem:[#allocation4 + $0x1c0] sm:$0xff] }
 0x315   : > { %v6748_v42 = vpop.f32.mrf.mxu0  ;;  %7217 = vmatpush.bf16.msra.mxu0 %v9745_v0  ;;  %v9223_v55 = vrot.slane %v6061_v57, 9  ;;  %v6221_v29 = vsel %vm10106_vm14, %v6219_v15, %v6220_v53  ;;  %v5474_v63 = vpack.c.b16 %v5447_v35, %v12301_v9  ;;  %v13509_v53 = vrot.slane %v12282_v33, 5 }
 0x316   : > { %v6749_v19 = vadd.f32 %v6748_v42, %v11969_v59  ;;  %v7360_v59 = vshll.u32 %v12312_v11, 16  ;;  %v12332_v42 = vsel %vm10106_vm14, %v5299_v13, %v5300_v7  ;;  %v6023_v7 = vshrl.u32 %v5644_v16, 16 }
 0x317   : > { %v12341_v13 = vpop.f32.mrf.mxu3  ;;  %v12346_v51 = vrot.slane %v6032_v23, 5  ;;  %8406 = vmatpush.bf16.msra.mxu2 %v9816_v17  ;;  %v6348_v23 = vpack.c.b16 %v6331_v41, %v6330_v38  ;;  %v6218_v12 = vsel %vm10106_vm14, %v9223_v55, %v13509_v53  ;;  %v13510_v9 = vrot.slane %v12272_v44, 5  ;;  %v4763_v38 = vld [vmem:[#allocation3 + $0x4c] sm:$0xf] }
 0x318   : > { %v6838_v5 = vadd.f32 %v12254_v54, %v6749_v19  ;;  %7112 = vmatmul.bf16.gmra.mxu2 %v9725_v18  ;;  %v7364_v54 = vshrl.u32 %v12312_v11, 16  ;;  %v6026_v18 = vshll.u32 %v5644_v16, 16  ;;  %v4941_v11 = vsel %vm10064_vm11, %v4936_v31, %v12315_v60  ;;  %v7334_v16 = vld [vmem:[#allocation3 + $0x20] sm:$0x1]  ;;  %v9743_v60 = vld [vmem:[#allocation4 + $0x80] sm:$0xff] }
 0x319   : > { %v12338_v10 = vpop.f32.mrf.mxu1  ;;  %7218 = vmatpush.bf16.msra.mxu0 %v9744_v62  ;;  %v6025_v15 = vrot.slane %v6023_v7, 4  ;;  %v5298_v17 = vsel %vm10106_vm14, %v9135_v26, %v13510_v9  ;;  %v6039_v62 = vor.u32 %v6038_v47, %v12346_v51  ;;  %v7357_v41 = vor.u32 %v7356_v8, %v12317_v56  ;;  %v12380_v56 = vld [vmem:[#allocation3 + $0x64] sm:$0xf] }
 0x31a   : > { %v12344_v19 = vadd.f32 %v7070_v24, %v6838_v5  ;;  %v4931_v24 = vsel %vm10064_vm11, %v12310_v50, %v12284_v3  ;;  %v6397_v50 = vunpack.c.l.b16 %v6221_v29  ;;  %v6028_v5 = vrot.slane %v6026_v18, 5  ;;  %v12378_v18 = vld [vmem:[#allocation3 + $0x24] sm:$0xf] }
 0x31b   : > { %v7073_v0 = vpop.f32.mrf.mxu2  ;;  %8407 = vmatpush.bf16.msra.mxu2 %v9815_v34  ;;  %v12369_v33 = vrot.slane %v7360_v59, 5  ;;  %v7366_v31 = vrot.slane %v7364_v54, 4  ;;  %v7370_v28 = vshll.u32 %v7334_v16, 16  ;;  %v6396_v1 = vunpack.c.l.b16 %v6218_v12  ;;  %v5191_v12 = vld [vmem:[#allocation3 + $0x6c] sm:$0xe] }
 0x31c   : > { %v6042_v26 = vshll.u32 %v12323_v45, 16  ;;  %v12376_v7 = vunpack.c.l.b16 %v4941_v11  ;;  %v5516_v59 = vunpack.c.l.b16 %v5298_v17  ;;  %v6040_v47 = vrot.slane %v6039_v62, 4  ;;  %v5190_v45 = vld [vmem:[#allocation3 + $0x60] sm:$0xe] }
 0x31d   : > { %v6751_v57 = vpop.f32.mrf.mxu0  ;;  %7219 = vmatpush.bf16.msra.mxu0 %v9743_v60  ;;  %v6413_v54 = vpack.c.b16 %v6397_v50, %v6396_v1  ;;  %v12387_v34 = vunpack.c.l.b16 %v4931_v24  ;;  %v12389_v11 = vrot.slane %v7357_v41, 4  ;;  %v12391_v16 = vrot.slane %v7370_v28, 5  ;;  %v9827_v41 = vld [vmem:[#allocation4 + $0x220] sm:$0xff]  ;;  %v12409_v28 = vld [vmem:[#allocation3 + $0x74] sm:$0x1] }
 0x31e   : > { %v6752_v3 = vadd.f32 %v6751_v57, %v11981_v61  ;;  %v5517_v61 = vunpack.c.l.b16 %v12332_v42  ;;  %v12393_v57 = vld [vmem:[#allocation3 + $0x68] sm:$0x1]  ;;  %v4952_v9 = vshll.u32 %v4763_v38, 16  ;;  %9834 = vmatpush.bf16.msra.mxu3 %v9827_v41 }
 0x31f   : > { %v12385_v55 = vpop.f32.mrf.mxu3 }
 0x320   : > { %6790 = vmatmul.bf16.gmra.mxu0 %v6348_v23  ;;  %v6841_v35 = vadd.f32 %v12289_v37, %v6752_v3  ;;  %v6029_v37 = vor.u32 %v6028_v5, %v6025_v15  ;;  %v12396_v23 = vld [vmem:[#allocation3 + $0x70] sm:$0xf]  ;;  %v12398_v53 = vpack.c.b16 %v5517_v61, %v5516_v59  ;;  %v9136_v3 = vrot.slane %v5190_v45, 9  ;;  %v9726_v5 = vld [vmem:[#allocation3 + $0xb4] sm:$0xff] }
 0x321   : > { %v12374_v29 = vpop.f32.mrf.mxu1  ;;  %8489 = vmatpush.bf16.msrb.mxu0 %v12036_v58  ;;  %v5304_v58 = vrot.slane %v12380_v56, 5  ;;  %v5311_v61 = vrot.slane %v12396_v23, 5 }
 0x322   : > { %v12382_v8 = vadd.f32 %v7073_v0, %v6841_v35  ;;  %7151 = vmatmul.bf16.gmra.mxu3 %v5474_v63  ;;  %v6044_v63 = vrot.slane %v6042_v26, 5  ;;  %v7367_v0 = vor.u32 %v7366_v31, %v12369_v33  ;;  %v6030_v62 = vrot.slane %v6029_v37, 4  ;;  %v4762_v37 = vld [vmem:[#allocation3 + $0x48] sm:$0xf] }
 0x323   : > { %v7075_v42 = vpop.f32.mrf.mxu2  ;;  %v5307_v31 = vrot.slane %v12393_v57, 5  ;;  %v5305_v35 = vsel %vm10106_vm14, %v9136_v3, %v5304_v58  ;;  %v5306_v1 = vrot.slane %v5304_v58, 4  ;;  %v9137_v26 = vrot.slane %v5191_v12, 9 }
 0x324   : > { %13511 = vst [vmem:[#allocation18_spill] sm:$0xff] %v12382_v8  ;;  %6884 = vmatmul.bf16.gmra.mxu1 %v6413_v54  ;;  %v6045_v60 = vsel %vm10064_vm11, %v6040_v47, %v6044_v63  ;;  %v6035_v59 = vsel %vm10064_vm11, %v6030_v62, %v12346_v51  ;;  %v7368_v54 = vrot.slane %v7367_v0, 4  ;;  %v4956_v47 = vshrl.u32 %v4763_v38, 16 }
 0x325   : > { %v6753_v15 = vpop.f32.mrf.mxu0  ;;  %8490 = vmatpush.bf16.msrb.mxu0 %v12133_v36  ;;  %v6333_v45 = vunpack.c.l.b16 %v6045_v60  ;;  %v5308_v63 = vsel %vm10106_vm14, %v5306_v1, %v5307_v31  ;;  %v5518_v58 = vunpack.c.l.b16 %v5305_v35  ;;  %v5312_v12 = vsel %vm10106_vm14, %v9137_v26, %v5311_v61 }
 0x326   : > { %v6754_v50 = vadd.f32 %v6753_v15, %v12001_v6  ;;  %v5519_v15 = vunpack.c.l.b16 %v5308_v63  ;;  %v5313_v3 = vrot.slane %v5311_v61, 4  ;;  %v5314_v51 = vrot.slane %v12409_v28, 5  ;;  %v9871_v61 = vld [vmem:[#allocation3 + $0x4] sm:$0xf]  ;;  %v9872_v63 = vld [vmem:[#allocation3 + $0x28] sm:$0xf] }
 0x327   : > { %v7363_v0 = vsel %vm10064_vm11, %v12389_v11, %v12369_v33  ;;  %v12432_v62 = vrot.slane %v4952_v9, 5  ;;  %v6332_v60 = vunpack.c.l.b16 %v6035_v59  ;;  %v4958_v31 = vrot.slane %v4956_v47, 4  ;;  %v12440_v26 = vpop.f32.mrf.mxu3  ;;  %v5192_v9 = vld [vmem:[#allocation3 + $0x78] sm:$0xe] }
 0x328   : > { %v6843_v6 = vadd.f32 %v12338_v10, %v6754_v50  ;;  %7117 = vmatmul.bf16.gmra.mxu2 %v9726_v5  ;;  %v4943_v50 = vshrl.u32 %v4762_v37, 16  ;;  %v4946_v5 = vshll.u32 %v4762_v37, 16  ;;  %v12436_v35 = vpack.c.b16 %v5519_v15, %v5518_v58  ;;  %v5182_v15 = vld [vmem:[#allocation3] sm:$0xe] }
 0x329   : > { %v12418_v36 = vpop.f32.mrf.mxu1  ;;  %8491 = vmatpush.bf16.msrb.mxu0 %v12244_v39  ;;  %v5315_v1 = vsel %vm10106_vm14, %v5313_v3, %v5314_v51  ;;  %v7384_v33 = vshll.u32 %v9872_v63, 16  ;;  %v5520_v11 = vunpack.c.l.b16 %v5312_v12  ;;  %v6349_v47 = vpack.c.b16 %v6333_v45, %v6332_v60  ;;  %v12446_v3 = vld [vmem:[#allocation3 + $0x80] sm:$0x1]  ;;  %v12452_v45 = vld [vmem:[#allocation3 + $0x50] sm:$0x1] }
 0x32a   : > { %v12424_v10 = vadd.f32 %v7075_v42, %v6843_v6  ;;  %v12434_v42 = vld [vmem:[#allocation3 + $0x7c] sm:$0xf]  ;;  %v5248_v6 = vrot.slane %v9871_v61, 5  ;;  %v5521_v37 = vunpack.c.l.b16 %v5315_v1  ;;  %v7373_v58 = vsel %vm10064_vm11, %v7368_v54, %v12391_v16  ;;  %v9873_v1 = vld [vmem:[#allocation3 + $0x8] sm:$0x1] }
 0x32b   : > { %v7078_v38 = vpop.f32.mrf.mxu2  ;;  %v7388_v17 = vshrl.u32 %v9872_v63, 16  ;;  %v4945_v51 = vrot.slane %v4943_v50, 4  ;;  %v4948_v24 = vrot.slane %v4946_v5, 5  ;;  %v5318_v12 = vrot.slane %v12434_v42, 5 }
 0x32c   : > { %13512 = vst [vmem:[#allocation19_spill] sm:$0xff] %v12424_v10  ;;  %v12448_v61 = vpack.c.b16 %v5521_v37, %v5520_v11  ;;  %v5251_v10 = vrot.slane %v9873_v1, 5  ;;  %v4959_v16 = vor.u32 %v4958_v31, %v12432_v62  ;;  %v9138_v54 = vrot.slane %v5192_v9, 9  ;;  %v9791_v37 = vld [vmem:[#allocation3 + $0x18] sm:$0xff] }
 0x32d   : > { %v6756_v39 = vpop.f32.mrf.mxu0  ;;  %8492 = vmatpush.bf16.msrb.mxu0 %v9827_v41  ;;  %v5250_v41 = vrot.slane %v5248_v6, 4  ;;  %v5320_v50 = vrot.slane %v5318_v12, 4  ;;  %v5321_v5 = vrot.slane %v12446_v3, 5  ;;  %v13515_v11 = vpack.c.b16 %v12376_v7, %v12387_v34 }
 0x32e   : > { %v6757_v59 = vadd.f32 %v6756_v39, %v12030_v27  ;;  %13513 = vst [vmem:[#allocation20_spill] sm:$0xff] %v12448_v61  ;;  %v9128_v39 = vrot.slane %v5182_v15, 9  ;;  %v5319_v31 = vsel %vm10106_vm14, %v9138_v54, %v5318_v12  ;;  %v12467_v15 = vrot.slane %v7384_v33, 5 }
 0x32f   : > { %v7390_v1 = vrot.slane %v7388_v17, 4  ;;  %v4949_v7 = vor.u32 %v4948_v24, %v4945_v51  ;;  %v5252_v12 = vsel %vm10106_vm14, %v5250_v41, %v5251_v10  ;;  %v4960_v54 = vrot.slane %v4959_v16, 4 }
 0x330   : > { %6795 = vmatmul.bf16.gmra.mxu0 %v6349_v47  ;;  %v6846_v27 = vadd.f32 %v12374_v29, %v6757_v59  ;;  %v7991_v29 = vunpack.c.l.b16 %v7373_v58  ;;  %v7378_v59 = vshll.u32 %v12378_v18, 16  ;;  %v4962_v47 = vshll.u32 %v12452_v45, 16 }
 0x331   : > { %v12455_v60 = vpop.f32.mrf.mxu1  ;;  %v5249_v58 = vsel %vm10106_vm14, %v9128_v39, %v5248_v6  ;;  %v13516_v17 = vshrl.u32 %v12378_v18, 16  ;;  %v7391_v51 = vor.u32 %v7390_v1, %v12467_v15  ;;  %v5503_v16 = vunpack.c.l.b16 %v5252_v12  ;;  %v9874_v39 = vld [vmem:[#allocation3 + $0x2c] sm:$0x1] }
 0x332   : > { %v12458_v63 = vadd.f32 %v7078_v38, %v6846_v27  ;;  %7156 = vmatmul.bf16.gmra.mxu3 %v13515_v11  ;;  %v5322_v38 = vsel %vm10106_vm14, %v5320_v50, %v5321_v5  ;;  %v7990_v27 = vunpack.c.l.b16 %v7363_v0  ;;  %v12478_v50 = vpop.f32.mrf.mxu3  ;;  %v4964_v0 = vrot.slane %v4962_v47, 5 }
 0x333   : > { %v7080_v9 = vpop.f32.mrf.mxu2  ;;  %v5523_v34 = vunpack.c.l.b16 %v5322_v38  ;;  %v7377_v8 = vrot.slane %v13516_v17, 4  ;;  %v7380_v24 = vrot.slane %v7378_v59, 5  ;;  %v5502_v10 = vunpack.c.l.b16 %v5249_v58  ;;  %v9875_v17 = vld [vmem:[#allocation3 + $0x10] sm:$0xf] }
 0x334   : > { %13514 = vst [vmem:[#allocation21_spill] sm:$0xff] %v12458_v63  ;;  %8319 = vmatmul.bf16.vlgmr.msra.gmra.mxu1 %v9791_v37  ;;  %v5522_v63 = vunpack.c.l.b16 %v5319_v31  ;;  %v8022_v61 = vpack.c.b16 %v7991_v29, %v7990_v27  ;;  %v7394_v41 = vshll.u32 %v9874_v39, 16  ;;  %v4950_v37 = vrot.slane %v4949_v7, 4 }
 0x335   : > { %v6758_v11 = vpop.f32.mrf.mxu0  ;;  %v4965_v18 = vsel %vm10064_vm11, %v4960_v54, %v4964_v0  ;;  %v4976_v29 = vshll.u32 %v12272_v44, 16  ;;  %v4980_v59 = vshrl.u32 %v12272_v44, 16  ;;  %v7392_v1 = vrot.slane %v7391_v51, 4 }
 0x336   : > { %v6759_v33 = vadd.f32 %v6758_v11, %v12063_v43  ;;  %v12481_v5 = vpack.c.b16 %v5523_v34, %v5522_v63  ;;  %v4764_v63 = vld [vmem:[#allocation3 + $0x54] sm:$0xf]  ;;  %v5534_v38 = vpack.c.b16 %v5503_v16, %v5502_v10  ;;  %v5451_v27 = vunpack.c.l.b16 %v4965_v18 }
 0x337   : > { %v7396_v7 = vrot.slane %v7394_v41, 5  ;;  %v7307_v34 = vld [vmem:[#allocation3 + $0x34] sm:$0xf]  ;;  %v4967_v58 = vshrl.u32 %v4764_v63, 16  ;;  %v4970_v12 = vshll.u32 %v4764_v63, 16  ;;  %v12495_v54 = vrot.slane %v4976_v29, 5 }
 0x338   : > { %v6848_v6 = vadd.f32 %v12418_v36, %v6759_v33  ;;  %8408 = vmatmul.bf16.vlgmr.msra.gmra.mxu2 %v8022_v61  ;;  %v4955_v36 = vsel %vm10064_vm11, %v4950_v37, %v12432_v62  ;;  %v7381_v61 = vor.u32 %v7380_v24, %v7377_v8  ;;  %v4982_v44 = vrot.slane %v4980_v59, 4  ;;  %v7306_v62 = vld [vmem:[#allocation3 + $0x30] sm:$0xf]  ;;  %v9792_v63 = vld [vmem:[#allocation3 + $0x24] sm:$0xff] }
 0x339   : > { %v12484_v43 = vpop.f32.mrf.mxu1  ;;  %v5450_v33 = vunpack.c.l.b16 %v4955_v36  ;;  %v5255_v0 = vrot.slane %v9875_v17, 5  ;;  %v7397_v8 = vsel %vm10064_vm11, %v7392_v1, %v7396_v7  ;;  %v7408_v24 = vshll.u32 %v7307_v34, 16 }
 0x33a   : > { %v12490_v31 = vadd.f32 %v7080_v9, %v6848_v6  ;;  %v7382_v6 = vrot.slane %v7381_v61, 4  ;;  %v7412_v51 = vshrl.u32 %v7307_v34, 16  ;;  %v4969_v37 = vrot.slane %v4967_v58, 4  ;;  %v9876_v58 = vld [vmem:[#allocation3 + $0x14] sm:$0x1] }
 0x33b   : > { %v7083_v47 = vpop.f32.mrf.mxu2  ;;  %v5476_v16 = vpack.c.b16 %v5451_v27, %v5450_v33  ;;  %v4972_v18 = vrot.slane %v4970_v12, 5  ;;  %v4983_v29 = vor.u32 %v4982_v44, %v12495_v54  ;;  %v7993_v36 = vunpack.c.l.b16 %v7397_v8  ;;  %v7336_v33 = vld [vmem:[#allocation3 + $0x38] sm:$0x1] }
 0x33c   : > { %v5257_v61 = vrot.slane %v5255_v0, 4  ;;  %v4986_v27 = vshll.u32 %v12299_v21, 16  ;;  %v7402_v7 = vshll.u32 %v7306_v62, 16  ;;  %v12512_v34 = vrot.slane %v7408_v24, 5  ;;  %v9826_v21 = vld [vmem:[#allocation4 + $0x218] sm:$0xff] }
 0x33d   : > { %v6761_v11 = vpop.f32.mrf.mxu0  ;;  %v12503_v41 = vpop.f32.mrf.mxu3  ;;  %v5258_v12 = vrot.slane %v9876_v58, 5  ;;  %9835 = vmatpush.bf16.msra.mxu3 %v9826_v21  ;;  %8493 = vmatpush.bf16.msrb.mxu0 %v9826_v21 }
 0x33e   : > { %v6762_v9 = vadd.f32 %v6761_v11, %v12100_v2  ;;  %v7387_v2 = vsel %vm10064_vm11, %v7382_v6, %v12467_v15  ;;  %v7414_v11 = vrot.slane %v7412_v51, 4 }
 0x33f   : > { %v7992_v15 = vunpack.c.l.b16 %v7387_v2 }
 0x340   : > { %7220 = vmatmul.bf16.vlgmr.msra.gmra.mxu0 %v5534_v38  ;;  %v6851_v10 = vadd.f32 %v12455_v60, %v6762_v9  ;;  %v7399_v60 = vshrl.u32 %v7306_v62, 16  ;;  %v5183_v38 = vld [vmem:[#allocation3 + $0xc] sm:$0xe]  ;;  %v4984_v9 = vrot.slane %v4983_v29, 4  ;;  %v4988_v62 = vrot.slane %v4986_v27, 5 }
 0x341   : > { %v12501_v39 = vpop.f32.mrf.mxu1  ;;  %v8023_v6 = vpack.c.b16 %v7993_v36, %v7992_v15  ;;  %v9129_v8 = vrot.slane %v5183_v38, 9  ;;  %v7415_v51 = vor.u32 %v7414_v11, %v12512_v34  ;;  %v5000_v36 = vshll.u32 %v12380_v56, 16  ;;  %v9877_v38 = vld [vmem:[#allocation3 + $0x1c] sm:$0xf] }
 0x342   : > { %v12509_v59 = vadd.f32 %v7083_v47, %v6851_v10  ;;  %7161 = vmatmul.bf16.gmra.mxu3 %v5476_v16  ;;  %v4973_v47 = vor.u32 %v4972_v18, %v4969_v37  ;;  %v5259_v10 = vsel %vm10106_vm14, %v5257_v61, %v5258_v12  ;;  %v7401_v24 = vrot.slane %v7399_v60, 4 }
 0x343   : > { %v7085_v1 = vpop.f32.mrf.mxu2  ;;  %v7404_v16 = vrot.slane %v7402_v7, 5  ;;  %v5256_v37 = vsel %vm10106_vm14, %v9129_v8, %v5255_v0  ;;  %v7418_v18 = vshll.u32 %v7336_v33, 16  ;;  %v5004_v61 = vshrl.u32 %v12380_v56, 16  ;;  %v4766_v7 = vld [vmem:[#allocation3 + $0x60] sm:$0xf] }
 0x344   : > { %8324 = vmatmul.bf16.gmra.mxu1 %v9792_v63  ;;  %v4974_v29 = vrot.slane %v4973_v47, 4  ;;  %v4989_v63 = vsel %vm10064_vm11, %v4984_v9, %v4988_v62  ;;  %v5262_v27 = vrot.slane %v9877_v38, 5  ;;  %v7416_v12 = vrot.slane %v7415_v51, 4  ;;  %v7309_v56 = vld [vmem:[#allocation3 + $0x40] sm:$0xf] }
 0x345   : > { %v6763_v44 = vpop.f32.mrf.mxu0  ;;  %v12529_v0 = vpop.f32.mrf.mxu3  ;;  %v7405_v58 = vor.u32 %v7404_v16, %v7401_v24  ;;  %v5453_v47 = vunpack.c.l.b16 %v4989_v63  ;;  %v7420_v9 = vrot.slane %v7418_v18, 5  ;;  %v5006_v8 = vrot.slane %v5004_v61, 4 }
 0x346   : > { %v6764_v17 = vadd.f32 %v6763_v44, %v12119_v25  ;;  %v4979_v15 = vsel %vm10064_vm11, %v4974_v29, %v12495_v54  ;;  %v5504_v44 = vunpack.c.l.b16 %v5256_v37  ;;  %v5264_v38 = vrot.slane %v5262_v27, 4 }
 0x347   : > { %v7421_v54 = vsel %vm10064_vm11, %v7416_v12, %v7420_v9  ;;  %v7432_v24 = vshll.u32 %v7309_v56, 16  ;;  %v7436_v16 = vshrl.u32 %v7309_v56, 16  ;;  %v5184_v12 = vld [vmem:[#allocation3 + $0x18] sm:$0xe]  ;;  %v5010_v9 = vshll.u32 %v12393_v57, 16 }
 0x348   : > { %v6853_v2 = vadd.f32 %v12484_v43, %v6764_v17  ;;  %8413 = vmatmul.bf16.gmra.mxu2 %v8023_v6  ;;  %v5505_v43 = vunpack.c.l.b16 %v5259_v10  ;;  %v4994_v17 = vshll.u32 %v4766_v7, 16  ;;  %v12534_v6 = vrot.slane %v5000_v36, 5  ;;  %v7308_v10 = vld [vmem:[#allocation3 + $0x3c] sm:$0xf] }
 0x349   : > { %v12521_v25 = vpop.f32.mrf.mxu1  ;;  %v7423_v18 = vshrl.u32 %v7308_v10, 16  ;;  %v7426_v29 = vshll.u32 %v7308_v10, 16  ;;  %v12549_v56 = vrot.slane %v7432_v24, 5 }
 0x34a   : > { %v12527_v60 = vadd.f32 %v7085_v1, %v6853_v2  ;;  %v4991_v1 = vshrl.u32 %v4766_v7, 16  ;;  %v5535_v62 = vpack.c.b16 %v5505_v43, %v5504_v44  ;;  %v5452_v2 = vunpack.c.l.b16 %v4979_v15  ;;  %v9793_v15 = vld [vmem:[#allocation3 + $0x30] sm:$0xff]  ;;  %v9878_v44 = vld [vmem:[#allocation3 + $0x20] sm:$0x1] }
 0x34b   : > { %v7088_v11 = vpop.f32.mrf.mxu2  ;;  %v4996_v61 = vrot.slane %v4994_v17, 5  ;;  %v5007_v43 = vor.u32 %v5006_v8, %v12534_v6 }
 0x34c   : > { %13517 = vst [vmem:[#allocation22_spill] sm:$0xff] %v12527_v60  ;;  %v7406_v60 = vrot.slane %v7405_v58, 4  ;;  %v5477_v37 = vpack.c.b16 %v5453_v47, %v5452_v2  ;;  %v4993_v36 = vrot.slane %v4991_v1, 4  ;;  %v7995_v58 = vunpack.c.l.b16 %v7421_v54  ;;  %v7337_v2 = vld [vmem:[#allocation3 + $0x44] sm:$0x1] }
 0x34d   : > { %v6766_v33 = vpop.f32.mrf.mxu0  ;;  %v5265_v47 = vrot.slane %v9878_v44, 5  ;;  %v7428_v1 = vrot.slane %v7426_v29, 5 }
 0x34e   : > { %v6767_v21 = vadd.f32 %v6766_v33, %v12148_v48  ;;  %v7411_v48 = vsel %vm10064_vm11, %v7406_v60, %v12512_v34  ;;  %v7438_v33 = vrot.slane %v7436_v16, 4  ;;  %v7425_v60 = vrot.slane %v7423_v18, 4 }
 0x34f   : > { %v7994_v34 = vunpack.c.l.b16 %v7411_v48  ;;  %v5266_v10 = vsel %vm10106_vm14, %v5264_v38, %v5265_v47  ;;  %v5012_v16 = vrot.slane %v5010_v9, 5 }
 0x350   : > { %7225 = vmatmul.bf16.gmra.mxu0 %v5535_v62  ;;  %v6856_v51 = vadd.f32 %v12501_v39, %v6767_v21  ;;  %v4997_v21 = vor.u32 %v4996_v61, %v4993_v36  ;;  %v5008_v62 = vrot.slane %v5007_v43, 4  ;;  %v5507_v38 = vunpack.c.l.b16 %v5266_v10 }
 0x351   : > { %v12540_v63 = vpop.f32.mrf.mxu1  ;;  %v8024_v57 = vpack.c.b16 %v7995_v58, %v7994_v34  ;;  %v7429_v48 = vor.u32 %v7428_v1, %v7425_v60  ;;  %v7442_v36 = vshll.u32 %v7337_v2, 16  ;;  %v5028_v58 = vshrl.u32 %v12396_v23, 16  ;;  %v9880_v34 = vld [vmem:[#allocation3 + $0x2c] sm:$0x1]  ;;  %v7310_v1 = vld [vmem:[#allocation3 + $0x48] sm:$0xf] }
 0x352   : > { %v12546_v7 = vadd.f32 %v7088_v11, %v6856_v51  ;;  %7166 = vmatmul.bf16.gmra.mxu3 %v5477_v37  ;;  %v9130_v11 = vrot.slane %v5184_v12, 9  ;;  %v7439_v51 = vor.u32 %v7438_v33, %v12549_v56  ;;  %v12559_v37 = vld [vmem:[#allocation3 + $0x28] sm:$0xf]  ;;  %v5013_v43 = vsel %vm10064_vm11, %v5008_v62, %v5012_v16  ;;  %v5193_v16 = vld [vmem:[#allocation3 + $0x84] sm:$0xe] }
 0x353   : > { %v7090_v39 = vpop.f32.mrf.mxu2  ;;  %v13472_v18 = vrot.slane %v12559_v37, 5  ;;  %v5272_v60 = vrot.slane %v9880_v34, 5  ;;  %v7430_v10 = vrot.slane %v7429_v48, 4  ;;  %v7447_v48 = vshrl.u32 %v7310_v1, 16 }
 0x354   : > { %8329 = vmatmul.bf16.gmra.mxu1 %v9793_v15  ;;  %v12551_v8 = vpop.f32.mrf.mxu3  ;;  %v5263_v24 = vsel %vm10106_vm14, %v9130_v11, %v5262_v27  ;;  %v4768_v27 = vld [vmem:[#allocation3 + $0x6c] sm:$0xf]  ;;  %v5024_v15 = vshll.u32 %v12396_v23, 16  ;;  %v7440_v9 = vrot.slane %v7439_v51, 4  ;;  %v5455_v11 = vunpack.c.l.b16 %v5013_v43 }
 0x355   : > { %v6768_v17 = vpop.f32.mrf.mxu0  ;;  %v5506_v44 = vunpack.c.l.b16 %v5263_v24  ;;  %v5271_v33 = vrot.slane %v13472_v18, 4  ;;  %v7311_v23 = vld [vmem:[#allocation3 + $0x4c] sm:$0xf]  ;;  %v5030_v24 = vrot.slane %v5028_v58, 4 }
 0x356   : > { %v6769_v54 = vadd.f32 %v6768_v17, %v12167_v40  ;;  %v4998_v40 = vrot.slane %v4997_v21, 4  ;;  %v5015_v21 = vshrl.u32 %v4768_v27, 16 }
 0x357   : > { %v5536_v17 = vpack.c.b16 %v5507_v38, %v5506_v44  ;;  %v7435_v38 = vsel %vm10064_vm11, %v7430_v10, %v12549_v56  ;;  %v7456_v44 = vshll.u32 %v7311_v23, 16 }
 0x358   : > { %v6858_v29 = vadd.f32 %v12521_v25, %v6769_v54  ;;  %8418 = vmatmul.bf16.gmra.mxu2 %v8024_v57  ;;  %v5003_v25 = vsel %vm10064_vm11, %v4998_v40, %v12534_v6  ;;  %v7444_v54 = vrot.slane %v7442_v36, 5  ;;  %v5018_v57 = vshll.u32 %v4768_v27, 16  ;;  %v12586_v40 = vld [vmem:[#allocation3 + $0x8c] sm:$0x1] }
 0x359   : > { %v12563_v61 = vpop.f32.mrf.mxu1  ;;  %v12580_v6 = vrot.slane %v5024_v15, 5  ;;  %v7460_v36 = vshrl.u32 %v7311_v23, 16  ;;  %v9794_v23 = vld [vmem:[#allocation3 + $0x3c] sm:$0xff] }
 0x35a   : > { %v12569_v12 = vadd.f32 %v7090_v39, %v6858_v29  ;;  %v12576_v39 = vld [vmem:[#allocation3 + $0x88] sm:$0xf]  ;;  %v5454_v29 = vunpack.c.l.b16 %v5003_v25  ;;  %v7445_v43 = vsel %vm10064_vm11, %v7440_v9, %v7444_v54  ;;  %v9139_v25 = vrot.slane %v5193_v16, 9 }
 0x35b   : > { %v7093_v47 = vpop.f32.mrf.mxu2  ;;  %v5325_v27 = vrot.slane %v12576_v39, 5  ;;  %v5020_v56 = vrot.slane %v5018_v57, 5  ;;  %v5031_v10 = vor.u32 %v5030_v24, %v12580_v6  ;;  %v7997_v54 = vunpack.c.l.b16 %v7445_v43 }
 0x35c   : > { %13518 = vst [vmem:[#allocation23_spill] sm:$0xff] %v12569_v12  ;;  %v12578_v2 = vpop.f32.mrf.mxu3  ;;  %v5478_v58 = vpack.c.b16 %v5455_v11, %v5454_v29  ;;  %v5328_v12 = vrot.slane %v12586_v40, 5  ;;  %v12601_v16 = vrot.slane %v7456_v44, 5  ;;  %v7462_v57 = vrot.slane %v7460_v36, 4 }
 0x35d   : > { %v6771_v62 = vpop.f32.mrf.mxu0  ;;  %v5327_v18 = vrot.slane %v5325_v27, 4 }
 0x35e   : > { %v6772_v51 = vadd.f32 %v6771_v62, %v12194_v4  ;;  %v5017_v4 = vrot.slane %v5015_v21, 4  ;;  %v5185_v62 = vld [vmem:[#allocation3 + $0x24] sm:$0xe]  ;;  %v5034_v21 = vshll.u32 %v12409_v28, 16 }
 0x35f   : > { %v5329_v24 = vsel %vm10106_vm14, %v5327_v18, %v5328_v12  ;;  %v7449_v18 = vrot.slane %v7447_v48, 4  ;;  %v9825_v12 = vld [vmem:[#allocation4 + $0x210] sm:$0xff] }
 0x360   : > { %7230 = vmatmul.bf16.gmra.mxu0 %v5536_v17  ;;  %v6861_v15 = vadd.f32 %v12540_v63, %v6772_v51  ;;  %v7450_v17 = vshll.u32 %v7310_v1, 16  ;;  %v5326_v63 = vsel %vm10106_vm14, %v9139_v25, %v5325_v27  ;;  %v7996_v51 = vunpack.c.l.b16 %v7435_v38  ;;  %v7338_v25 = vld [vmem:[#allocation3 + $0x50] sm:$0x1]  ;;  %9836 = vmatpush.bf16.msra.mxu3 %v9825_v12 }
 0x361   : > { %v12592_v34 = vpop.f32.mrf.mxu1  ;;  %v5525_v29 = vunpack.c.l.b16 %v5329_v24  ;;  %v5273_v1 = vsel %vm10106_vm14, %v5271_v33, %v5272_v60  ;;  %v5021_v43 = vor.u32 %v5020_v56, %v5017_v4  ;;  %v5032_v27 = vrot.slane %v5031_v10, 4  ;;  %8494 = vmatpush.bf16.msrb.mxu0 %v9825_v12 }
 0x362   : > { %v12596_v9 = vadd.f32 %v7093_v47, %v6861_v15  ;;  %7171 = vmatmul.bf16.gmra.mxu3 %v5478_v58  ;;  %v9131_v47 = vrot.slane %v5185_v62, 9  ;;  %v8025_v36 = vpack.c.b16 %v7997_v54, %v7996_v51  ;;  %v5036_v38 = vrot.slane %v5034_v21, 5 }
 0x363   : > { %v7095_v11 = vpop.f32.mrf.mxu2  ;;  %v7452_v62 = vrot.slane %v7450_v17, 5  ;;  %v13520_v60 = vrot.slane %v12559_v37, 5  ;;  %v7466_v4 = vshll.u32 %v7338_v25, 16  ;;  %v5022_v48 = vrot.slane %v5021_v43, 4  ;;  %v4770_v37 = vld [vmem:[#allocation3 + $0x78] sm:$0xf] }
 0x364   : > { %13519 = vst [vmem:[#allocation24_spill] sm:$0xff] %v12596_v9  ;;  %8334 = vmatmul.bf16.gmra.mxu1 %v9794_v23  ;;  %v7132_v58 = vpop.f32.mrf.mxu3  ;;  %v5524_v9 = vunpack.c.l.b16 %v5326_v63  ;;  %v7463_v23 = vor.u32 %v7462_v57, %v12601_v16  ;;  %v5037_v56 = vsel %vm10064_vm11, %v5032_v27, %v5036_v38  ;;  %v5048_v10 = vshll.u32 %v12434_v42, 16  ;;  %v7313_v43 = vld [vmem:[#allocation3 + $0x58] sm:$0xf] }
 0x365   : > { %v6773_v15 = vpop.f32.mrf.mxu0  ;;  %v12609_v44 = vadd.f32 %v7132_v58, %v12016_v52  ;;  %v5509_v54 = vunpack.c.l.b16 %v5273_v1  ;;  %v5027_v63 = vsel %vm10064_vm11, %v5022_v48, %v12580_v6  ;;  %v7453_v21 = vor.u32 %v7452_v62, %v7449_v18 }
 0x366   : > { %v6774_v28 = vadd.f32 %v6773_v15, %v12218_v22  ;;  %v12612_v24 = vpack.c.b16 %v5525_v29, %v5524_v9  ;;  %v5270_v22 = vsel %vm10106_vm14, %v9131_v47, %v13520_v60  ;;  %v5052_v9 = vshrl.u32 %v12434_v42, 16  ;;  %v9881_v15 = vld [vmem:[#allocation3 + $0x34] sm:$0xf] }
 0x367   : > { %v7464_v57 = vrot.slane %v7463_v23, 4  ;;  %v5508_v51 = vunpack.c.l.b16 %v5270_v22  ;;  %v5457_v47 = vunpack.c.l.b16 %v5037_v56  ;;  %v7468_v29 = vrot.slane %v7466_v4, 5  ;;  %v7312_v23 = vld [vmem:[#allocation3 + $0x54] sm:$0xf] }
 0x368   : > { %v6863_v33 = vadd.f32 %v12563_v61, %v6774_v28  ;;  %8423 = vmatmul.bf16.gmra.mxu2 %v8025_v36  ;;  %v5276_v58 = vrot.slane %v9881_v15, 5  ;;  %v5039_v25 = vshrl.u32 %v4770_v37, 16  ;;  %v12630_v28 = vrot.slane %v5048_v10, 5 }
 0x369   : > { %v12619_v52 = vpop.f32.mrf.mxu1  ;;  %v5054_v1 = vrot.slane %v5052_v9, 4  ;;  %v5537_v12 = vpack.c.b16 %v5509_v54, %v5508_v51  ;;  %v5456_v18 = vunpack.c.l.b16 %v5027_v63  ;;  %v7454_v38 = vrot.slane %v7453_v21, 4  ;;  %v9795_v63 = vld [vmem:[#allocation3 + $0x48] sm:$0xff] }
 0x36a   : > { %v12625_v61 = vadd.f32 %v7095_v11, %v6863_v33  ;;  %v5042_v11 = vshll.u32 %v4770_v37, 16  ;;  %v7469_v62 = vsel %vm10064_vm11, %v7464_v57, %v7468_v29  ;;  %v7480_v33 = vshll.u32 %v7313_v43, 16  ;;  %v9882_v57 = vld [vmem:[#allocation3 + $0x38] sm:$0x1] }
 0x36b   : > { %v7098_v17 = vpop.f32.mrf.mxu2  ;;  %v7484_v60 = vshrl.u32 %v7313_v43, 16  ;;  %v5479_v4 = vpack.c.b16 %v5457_v47, %v5456_v18  ;;  %v5278_v48 = vrot.slane %v5276_v58, 4  ;;  %v5041_v10 = vrot.slane %v5039_v25, 4 }
 0x36c   : > { %v7134_v42 = vpop.f32.mrf.mxu3  ;;  %v5044_v9 = vrot.slane %v5042_v11, 5  ;;  %v5055_v54 = vor.u32 %v5054_v1, %v12630_v28  ;;  %v7999_v21 = vunpack.c.l.b16 %v7469_v62  ;;  %v7471_v51 = vshrl.u32 %v7312_v23, 16 }
 0x36d   : > { %v6776_v27 = vpop.f32.mrf.mxu0  ;;  %v12634_v6 = vadd.f32 %v7134_v42, %v12049_v32  ;;  %v7459_v32 = vsel %vm10064_vm11, %v7454_v38, %v12601_v16  ;;  %v5058_v29 = vshll.u32 %v12446_v3, 16  ;;  %v7474_v15 = vshll.u32 %v7312_v23, 16 }
 0x36e   : > { %v6777_v36 = vadd.f32 %v6776_v27, %v12260_v14  ;;  %v5186_v14 = vld [vmem:[#allocation3 + $0x30] sm:$0xe]  ;;  %v12648_v43 = vrot.slane %v7480_v33, 5  ;;  %v7486_v16 = vrot.slane %v7484_v60, 4  ;;  %v7998_v27 = vunpack.c.l.b16 %v7459_v32 }
 0x36f   : > { %v9132_v42 = vrot.slane %v5186_v14, 9  ;;  %v5045_v1 = vor.u32 %v5044_v9, %v5041_v10  ;;  %v5060_v23 = vrot.slane %v5058_v29, 5  ;;  %v7473_v33 = vrot.slane %v7471_v51, 4 }
 0x370   : > { %7235 = vmatmul.bf16.gmra.mxu0 %v5537_v12  ;;  %v6866_v22 = vadd.f32 %v12592_v34, %v6777_v36  ;;  %v5279_v34 = vrot.slane %v9882_v57, 5  ;;  %v5056_v36 = vrot.slane %v5055_v54, 4  ;;  %v7339_v12 = vld [vmem:[#allocation3 + $0x5c] sm:$0x1]  ;;  %v8026_v3 = vpack.c.b16 %v7999_v21, %v7998_v27 }
 0x371   : > { %v12639_v56 = vpop.f32.mrf.mxu1  ;;  %v5277_v62 = vsel %vm10106_vm14, %v9132_v42, %v5276_v58  ;;  %v7476_v60 = vrot.slane %v7474_v15, 5  ;;  %v7490_v32 = vshll.u32 %v7339_v12, 16  ;;  %v5072_v10 = vshll.u32 %v12576_v39, 16 }
 0x372   : > { %v12645_v37 = vadd.f32 %v7098_v17, %v6866_v22  ;;  %7176 = vmatmul.bf16.gmra.mxu3 %v5479_v4  ;;  %v5280_v17 = vsel %vm10106_vm14, %v5278_v48, %v5279_v34  ;;  %v7487_v22 = vor.u32 %v7486_v16, %v12648_v43  ;;  %v5076_v58 = vshrl.u32 %v12576_v39, 16  ;;  %v7315_v16 = vld [vmem:[#allocation3 + $0x64] sm:$0xf] }
 0x373   : > { %v7100_v47 = vpop.f32.mrf.mxu2  ;;  %v5511_v48 = vunpack.c.l.b16 %v5280_v17  ;;  %v5510_v54 = vunpack.c.l.b16 %v5277_v62  ;;  %v7477_v57 = vor.u32 %v7476_v60, %v7473_v33  ;;  %v7492_v15 = vrot.slane %v7490_v32, 5 }
 0x374   : > { %8339 = vmatmul.bf16.gmra.mxu1 %v9795_v63  ;;  %v7137_v11 = vpop.f32.mrf.mxu3  ;;  %v4772_v63 = vld [vmem:[#allocation3 + $0x84] sm:$0xf]  ;;  %v7488_v34 = vrot.slane %v7487_v22, 4  ;;  %v12671_v39 = vrot.slane %v5072_v10, 5  ;;  %v7504_v33 = vshll.u32 %v7315_v16, 16  ;;  %v7508_v60 = vshrl.u32 %v7315_v16, 16 }
 0x375   : > { %v6778_v25 = vpop.f32.mrf.mxu0  ;;  %v12654_v38 = vadd.f32 %v7137_v11, %v12076_v30  ;;  %v5061_v30 = vsel %vm10064_vm11, %v5056_v36, %v5060_v23  ;;  %v5538_v51 = vpack.c.b16 %v5511_v48, %v5510_v54  ;;  %v5066_v11 = vshll.u32 %v4772_v63, 16  ;;  %v7314_v23 = vld [vmem:[#allocation3 + $0x60] sm:$0xf]  ;;  %v9884_v16 = vld [vmem:[#allocation3 + $0x44] sm:$0x1] }
 0x376   : > { %v6779_v18 = vadd.f32 %v6778_v25, %v12291_v20  ;;  %v5046_v20 = vrot.slane %v5045_v1, 4  ;;  %v5459_v29 = vunpack.c.l.b16 %v5061_v30  ;;  %v5063_v25 = vshrl.u32 %v4772_v63, 16  ;;  %v13521_v1 = vld [vmem:[#allocation9_spill] sm:$0xff]  ;;  %v5187_v63 = vld [vmem:[#allocation3 + $0x3c] sm:$0xe] }
 0x377   : > { %v7493_v62 = vsel %vm10064_vm11, %v7488_v34, %v7492_v15  ;;  %v5082_v34 = vshll.u32 %v12586_v40, 16  ;;  %v7510_v15 = vrot.slane %v7508_v60, 4 }
 0x378   : > { %v6868_v4 = vadd.f32 %v12619_v52, %v6779_v18  ;;  %8428 = vmatmul.bf16.gmra.mxu2 %v8026_v3  ;;  %v5051_v52 = vsel %vm10064_vm11, %v5046_v20, %v12630_v28  ;;  %v9883_v28 = vld [vmem:[#allocation3 + $0x40] sm:$0xf]  ;;  %v7478_v3 = vrot.slane %v7477_v57, 4  ;;  %v5065_v32 = vrot.slane %v5063_v25, 4 }
 0x379   : > { %v12660_v14 = vpop.f32.mrf.mxu1  ;;  %v5458_v12 = vunpack.c.l.b16 %v5051_v52  ;;  %v5283_v18 = vrot.slane %v9883_v28, 5  ;;  %v5068_v20 = vrot.slane %v5066_v11, 5  ;;  %v8001_v54 = vunpack.c.l.b16 %v7493_v62  ;;  %v12697_v62 = vld [vmem:[#allocation3 + $0x94] sm:$0xf] }
 0x37a   : > { %v12666_v9 = vadd.f32 %v7100_v47, %v6868_v4  ;;  %v5078_v47 = vrot.slane %v5076_v58, 4  ;;  %v9796_v58 = vld [vmem:[#allocation3 + $0x54] sm:$0xff]  ;;  %v7495_v57 = vshrl.u32 %v7314_v23, 16  ;;  %v9133_v25 = vrot.slane %v5187_v63, 9 }
 0x37b   : > { %v7103_v21 = vpop.f32.mrf.mxu2  ;;  %v5480_v4 = vpack.c.b16 %v5459_v29, %v5458_v12  ;;  %v5285_v52 = vrot.slane %v5283_v18, 4  ;;  %v12689_v29 = vrot.slane %v7504_v33, 5  ;;  %v5069_v11 = vor.u32 %v5068_v20, %v5065_v32  ;;  %v13522_v12 = vld [vmem:[#allocation10_spill] sm:$0xff] }
 0x37c   : > { %v7139_v42 = vpop.f32.mrf.mxu3  ;;  %v5079_v30 = vor.u32 %v5078_v47, %v12671_v39  ;;  %v5084_v33 = vrot.slane %v5082_v34, 5  ;;  %v7497_v60 = vrot.slane %v7495_v57, 4  ;;  %v5100_v63 = vshrl.u32 %v12697_v62, 16  ;;  %v4774_v57 = vld [vmem:[#allocation3 + $0x90] sm:$0xf] }
 0x37d   : > { %v6781_v27 = vpop.f32.mrf.mxu0  ;;  %v12675_v36 = vadd.f32 %v7139_v42, %v13521_v1 }
 0x37e   : > { %v6782_v17 = vadd.f32 %v6781_v27, %v12341_v13  ;;  %v7483_v13 = vsel %vm10064_vm11, %v7478_v3, %v12648_v43  ;;  %v5286_v27 = vrot.slane %v9884_v16, 5  ;;  %v5080_v47 = vrot.slane %v5079_v30, 4 }
 0x37f   : > { %v8000_v43 = vunpack.c.l.b16 %v7483_v13  ;;  %v5070_v30 = vrot.slane %v5069_v11, 4 }
 0x380   : > { %7240 = vmatmul.bf16.gmra.mxu0 %v5538_v51  ;;  %v6871_v22 = vadd.f32 %v12639_v56, %v6782_v17  ;;  %v7498_v51 = vshll.u32 %v7314_v23, 16  ;;  %v7340_v17 = vld [vmem:[#allocation3 + $0x68] sm:$0x1]  ;;  %v5287_v3 = vsel %vm10106_vm14, %v5285_v52, %v5286_v27  ;;  %v9824_v23 = vld [vmem:[#allocation4 + $0x208] sm:$0xff] }
 0x381   : > { %v12680_v48 = vpop.f32.mrf.mxu1  ;;  %v8027_v40 = vpack.c.b16 %v8001_v54, %v8000_v43  ;;  %v7514_v32 = vshll.u32 %v7340_v17, 16  ;;  %9837 = vmatpush.bf16.msra.mxu3 %v9824_v23  ;;  %v5096_v54 = vshll.u32 %v12697_v62, 16  ;;  %8495 = vmatpush.bf16.msrb.mxu0 %v9824_v23  ;;  %v5087_v17 = vshrl.u32 %v4774_v57, 16  ;;  %v13523_v23 = vld [vmem:[#allocation11_spill] sm:$0xff] }
 0x382   : > { %v12686_v10 = vadd.f32 %v7103_v21, %v6871_v22  ;;  %7181 = vmatmul.bf16.gmra.mxu3 %v5480_v4  ;;  %v7500_v22 = vrot.slane %v7498_v51, 5  ;;  %v7511_v4 = vor.u32 %v7510_v15, %v12689_v29 }
 0x383   : > { %v7105_v56 = vpop.f32.mrf.mxu2  ;;  %v7516_v27 = vrot.slane %v7514_v32, 5 }
 0x384   : > { %8344 = vmatmul.bf16.gmra.mxu1 %v9796_v58  ;;  %v7142_v21 = vpop.f32.mrf.mxu3  ;;  %v5085_v58 = vsel %vm10064_vm11, %v5080_v47, %v5084_v33  ;;  %v7501_v51 = vor.u32 %v7500_v22, %v7497_v60  ;;  %v7512_v15 = vrot.slane %v7511_v4, 4  ;;  %v7316_v4 = vld [vmem:[#allocation3 + $0x6c] sm:$0xf] }
 0x385   : > { %v6783_v42 = vpop.f32.mrf.mxu0  ;;  %v12693_v28 = vadd.f32 %v7142_v21, %v13522_v12  ;;  %v5461_v16 = vunpack.c.l.b16 %v5085_v58  ;;  %v5102_v12 = vrot.slane %v5100_v63, 4  ;;  %v12723_v58 = vld [vmem:[#allocation3 + $0x98] sm:$0x1]  ;;  %v5089_v63 = vrot.slane %v5087_v17, 4 }
 0x386   : > { %v6784_v1 = vadd.f32 %v6783_v42, %v12385_v55  ;;  %v5284_v55 = vsel %vm10106_vm14, %v9133_v25, %v5283_v18  ;;  %v5075_v18 = vsel %vm10064_vm11, %v5070_v30, %v12671_v39  ;;  %v9885_v42 = vld [vmem:[#allocation3 + $0x4c] sm:$0xf]  ;;  %v7317_v25 = vld [vmem:[#allocation3 + $0x70] sm:$0xf]  ;;  %v7502_v60 = vrot.slane %v7501_v51, 4  ;;  %v9797_v51 = vld [vmem:[#allocation3 + $0x60] sm:$0xff] }
 0x387   : > { %v5512_v43 = vunpack.c.l.b16 %v5284_v55  ;;  %v5290_v21 = vrot.slane %v9885_v42, 5  ;;  %v5460_v33 = vunpack.c.l.b16 %v5075_v18  ;;  %v7517_v22 = vsel %vm10064_vm11, %v7512_v15, %v7516_v27 }
 0x388   : > { %v6873_v13 = vadd.f32 %v12660_v14, %v6784_v1  ;;  %8433 = vmatmul.bf16.gmra.mxu2 %v8027_v40  ;;  %v5513_v14 = vunpack.c.l.b16 %v5287_v3  ;;  %v12714_v1 = vrot.slane %v5096_v54, 5  ;;  %v7532_v55 = vshrl.u32 %v7317_v25, 16 }
 0x389   : > { %v12703_v20 = vpop.f32.mrf.mxu1  ;;  %v5481_v30 = vpack.c.b16 %v5461_v16, %v5460_v33  ;;  %v8003_v15 = vunpack.c.l.b16 %v7517_v22  ;;  %v7519_v16 = vshrl.u32 %v7316_v4, 16  ;;  %v5106_v42 = vshll.u32 %v12723_v58, 16 }
 0x38a   : > { %v12709_v52 = vadd.f32 %v7105_v56, %v6873_v13  ;;  %v5090_v56 = vshll.u32 %v4774_v57, 16  ;;  %v5539_v3 = vpack.c.b16 %v5513_v14, %v5512_v43  ;;  %v7528_v13 = vshll.u32 %v7317_v25, 16  ;;  %v5188_v43 = vld [vmem:[#allocation3 + $0x48] sm:$0xe] }
 0x38b   : > { %v7108_v34 = vpop.f32.mrf.mxu2  ;;  %v5103_v57 = vor.u32 %v5102_v12, %v12714_v1  ;;  %v7522_v25 = vshll.u32 %v7316_v4, 16  ;;  %v5293_v17 = vrot.slane %v12452_v45, 5  ;;  %v9134_v12 = vrot.slane %v5188_v43, 9 }
 0x38c   : > { %v7144_v47 = vpop.f32.mrf.mxu3  ;;  %v5092_v14 = vrot.slane %v5090_v56, 5 }
 0x38d   : > { %v6786_v11 = vpop.f32.mrf.mxu0  ;;  %v12718_v39 = vadd.f32 %v7144_v47, %v13523_v23  ;;  %v7534_v47 = vrot.slane %v7532_v55, 4  ;;  %v7341_v23 = vld [vmem:[#allocation3 + $0x74] sm:$0x1]  ;;  %v5108_v55 = vrot.slane %v5106_v42, 5  ;;  %v7524_v45 = vrot.slane %v7522_v25, 5 }
 0x38e   : > { %v6787_v40 = vadd.f32 %v6786_v11, %v12440_v26  ;;  %v7507_v26 = vsel %vm10064_vm11, %v7502_v60, %v12689_v29  ;;  %v12734_v11 = vrot.slane %v7528_v13, 5  ;;  %v13524_v60 = vld [vmem:[#allocation12_spill] sm:$0xff]  ;;  %v4776_v25 = vld [vmem:[#allocation3 + $0x9c] sm:$0xf] }
 0x38f   : > { %v8002_v29 = vunpack.c.l.b16 %v7507_v26  ;;  %v12743_v13 = vld [vmem:[#allocation3 + $0xa0] sm:$0xf] }
 0x390   : > { %7245 = vmatmul.bf16.gmra.mxu0 %v5539_v3  ;;  %v6876_v32 = vadd.f32 %v12680_v48, %v6787_v40  ;;  %v5292_v48 = vrot.slane %v5290_v21, 4  ;;  %v5093_v40 = vor.u32 %v5092_v14, %v5089_v63  ;;  %v5104_v3 = vrot.slane %v5103_v57, 4 }
 0x391   : > { %v12725_v54 = vpop.f32.mrf.mxu1  ;;  %v7535_v26 = vor.u32 %v7534_v47, %v12734_v11  ;;  %v7538_v14 = vshll.u32 %v7341_v23, 16  ;;  %v5120_v43 = vshll.u32 %v12743_v13, 16  ;;  %v5111_v23 = vshrl.u32 %v4776_v25, 16 }
 0x392   : > { %v12731_v18 = vadd.f32 %v7108_v34, %v6876_v32  ;;  %7186 = vmatmul.bf16.gmra.mxu3 %v5481_v30  ;;  %v8028_v32 = vpack.c.b16 %v8003_v15, %v8002_v29  ;;  %v5294_v4 = vsel %vm10106_vm14, %v5292_v48, %v5293_v17  ;;  %v7521_v30 = vrot.slane %v7519_v16, 4 }
 0x393   : > { %v7110_v27 = vpop.f32.mrf.mxu2  ;;  %v5109_v15 = vsel %vm10064_vm11, %v5104_v3, %v5108_v55  ;;  %v5124_v48 = vshrl.u32 %v12743_v13, 16  ;;  %v5515_v42 = vunpack.c.l.b16 %v5294_v4  ;;  %v7536_v29 = vrot.slane %v7535_v26, 4  ;;  %v13525_v55 = vld [vmem:[#allocation13_spill] sm:$0xff]  ;;  %v7318_v26 = vld [vmem:[#allocation3 + $0x78] sm:$0xf] }
 0x394   : > { %8349 = vmatmul.bf16.gmra.mxu1 %v9797_v51  ;;  %v5094_v51 = vrot.slane %v5093_v40, 4  ;;  %v7525_v47 = vor.u32 %v7524_v45, %v7521_v30 }
 0x395   : > { %v6788_v56 = vpop.f32.mrf.mxu0  ;;  %v7147_v34 = vpop.f32.mrf.mxu3 }
 0x396   : > { %v6789_v33 = vadd.f32 %v6788_v56, %v12478_v50  ;;  %v12739_v22 = vadd.f32 %v7147_v34, %v13524_v60  ;;  %v5291_v50 = vsel %vm10106_vm14, %v9134_v12, %v5290_v21  ;;  %v5099_v21 = vsel %vm10064_vm11, %v5094_v51, %v12714_v1  ;;  %v7319_v12 = vld [vmem:[#allocation3 + $0x7c] sm:$0xf] }
 0x397   : > { %v5514_v17 = vunpack.c.l.b16 %v5291_v50  ;;  %v5463_v56 = vunpack.c.l.b16 %v5109_v15  ;;  %v7540_v34 = vrot.slane %v7538_v14, 5  ;;  %v12760_v60 = vrot.slane %v5120_v43, 5  ;;  %v12769_v43 = vld [vmem:[#allocation3 + $0xa4] sm:$0x1] }
 0x398   : > { %v6878_v63 = vadd.f32 %v12703_v20, %v6789_v33  ;;  %8438 = vmatmul.bf16.gmra.mxu2 %v8028_v32  ;;  %v5114_v33 = vshll.u32 %v4776_v25, 16  ;;  %v5462_v1 = vunpack.c.l.b16 %v5099_v21  ;;  %v7526_v30 = vrot.slane %v7525_v47, 4 }
 0x399   : > { %v12749_v57 = vpop.f32.mrf.mxu1  ;;  %v5540_v4 = vpack.c.b16 %v5515_v42, %v5514_v17  ;;  %v7541_v45 = vsel %vm10064_vm11, %v7536_v29, %v7540_v34  ;;  %v7552_v50 = vshll.u32 %v7319_v12, 16  ;;  %v7556_v14 = vshrl.u32 %v7319_v12, 16  ;;  %v9798_v29 = vld [vmem:[#allocation3 + $0x6c] sm:$0xff] }
 0x39a   : > { %v12755_v16 = vadd.f32 %v7110_v27, %v6878_v63  ;;  %v5126_v27 = vrot.slane %v5124_v48, 4  ;;  %v5482_v15 = vpack.c.b16 %v5463_v56, %v5462_v1  ;;  %v5113_v42 = vrot.slane %v5111_v23, 4 }
 0x39b   : > { %v7113_v20 = vpop.f32.mrf.mxu2  ;;  %v5116_v25 = vrot.slane %v5114_v33, 5  ;;  %v8005_v17 = vunpack.c.l.b16 %v7541_v45  ;;  %v7543_v34 = vshrl.u32 %v7318_v26, 16  ;;  %v5130_v56 = vshll.u32 %v12769_v43, 16  ;;  %v12788_v45 = vld [vmem:[#allocation3 + $0xac] sm:$0xf] }
 0x39c   : > { %v5127_v21 = vor.u32 %v5126_v27, %v12760_v60  ;;  %v7546_v12 = vshll.u32 %v7318_v26, 16  ;;  %v12782_v27 = vld [vmem:[#allocation3 + $0x80] sm:$0x1]  ;;  %v9823_v26 = vld [vmem:[#allocation4 + $0x200] sm:$0xff] }
 0x39d   : > { %v6791_v40 = vpop.f32.mrf.mxu0  ;;  %v7149_v3 = vpop.f32.mrf.mxu3  ;;  %v5117_v33 = vor.u32 %v5116_v25, %v5113_v42  ;;  %13526 = vst [vmem:[#allocation9_spill] sm:$0xff] %v12782_v27  ;;  %v7562_v42 = vshll.u32 %v12782_v27, 16  ;;  %9838 = vmatpush.bf16.msra.mxu3 %v9823_v26  ;;  %8496 = vmatpush.bf16.msrb.mxu0 %v9823_v26 }
 0x39e   : > { %v6792_v32 = vadd.f32 %v6791_v40, %v12503_v41  ;;  %v12764_v63 = vadd.f32 %v7149_v3, %v13525_v55  ;;  %v7531_v41 = vsel %vm10064_vm11, %v7526_v30, %v12734_v11  ;;  %v12780_v40 = vrot.slane %v7552_v50, 5  ;;  %v13527_v55 = vld [vmem:[#allocation14_spill] sm:$0xff] }
 0x39f   : > { %v7558_v3 = vrot.slane %v7556_v14, 4  ;;  %v5132_v50 = vrot.slane %v5130_v56, 5  ;;  %v7548_v14 = vrot.slane %v7546_v12, 5  ;;  %v4778_v56 = vld [vmem:[#allocation3 + $0xa8] sm:$0xf] }
 0x3a0   : > { %7250 = vmatmul.bf16.gmra.mxu0 %v5540_v4  ;;  %v6881_v51 = vadd.f32 %v12725_v54, %v6792_v32  ;;  %v8004_v32 = vunpack.c.l.b16 %v7531_v41  ;;  %v5128_v4 = vrot.slane %v5127_v21, 4 }
 0x3a1   : > { %v12771_v48 = vpop.f32.mrf.mxu1 }
 0x3a2   : > { %v12777_v47 = vadd.f32 %v7113_v20, %v6881_v51  ;;  %7191 = vmatmul.bf16.gmra.mxu3 %v5482_v15  ;;  %v8029_v30 = vpack.c.b16 %v8005_v17, %v8004_v32  ;;  %v7545_v51 = vrot.slane %v7543_v34, 4  ;;  %v7559_v15 = vor.u32 %v7558_v3, %v12780_v40 }
 0x3a3   : > { %v7115_v54 = vpop.f32.mrf.mxu2  ;;  %v5133_v21 = vsel %vm10064_vm11, %v5128_v4, %v5132_v50  ;;  %v5148_v17 = vshrl.u32 %v12788_v45, 16 }
 0x3a4   : > { %8354 = vmatmul.bf16.gmra.mxu1 %v9798_v29  ;;  %v5144_v29 = vshll.u32 %v12788_v45, 16  ;;  %v7549_v3 = vor.u32 %v7548_v14, %v7545_v51  ;;  %v7560_v32 = vrot.slane %v7559_v15, 4  ;;  %v7320_v14 = vld [vmem:[#allocation3 + $0x84] sm:$0xf] }
 0x3a5   : > { %v6793_v11 = vpop.f32.mrf.mxu0  ;;  %v7152_v23 = vpop.f32.mrf.mxu3 }
 0x3a6   : > { %v6794_v20 = vadd.f32 %v6793_v11, %v12529_v0  ;;  %v12786_v1 = vadd.f32 %v7152_v23, %v13527_v55  ;;  %v5118_v0 = vrot.slane %v5117_v33, 4  ;;  %v5465_v11 = vunpack.c.l.b16 %v5133_v21  ;;  %v12804_v33 = vld [vmem:[#allocation3 + $0x88] sm:$0xf] }
 0x3a7   : > { %v7564_v23 = vrot.slane %v7562_v42, 5  ;;  %13529 = vst [vmem:[#allocation11_spill] sm:$0xff] %v12804_v33  ;;  %v5135_v55 = vshrl.u32 %v4778_v56, 16  ;;  %v12806_v50 = vrot.slane %v5144_v29, 5  ;;  %v7576_v15 = vshll.u32 %v12804_v33, 16 }
 0x3a8   : > { %v6883_v41 = vadd.f32 %v12749_v57, %v6794_v20  ;;  %8443 = vmatmul.bf16.gmra.mxu2 %v8029_v30  ;;  %v5123_v57 = vsel %vm10064_vm11, %v5118_v0, %v12760_v60  ;;  %v5138_v30 = vshll.u32 %v4778_v56, 16  ;;  %v7550_v60 = vrot.slane %v7549_v3, 4  ;;  %v12818_v29 = vld [vmem:[#allocation3 + $0xb0] sm:$0x1] }
 0x3a9   : > { %v12793_v25 = vpop.f32.mrf.mxu1  ;;  %v5464_v27 = vunpack.c.l.b16 %v5123_v57  ;;  %v7565_v51 = vsel %vm10064_vm11, %v7560_v32, %v7564_v23  ;;  %v7580_v42 = vshrl.u32 %v12804_v33, 16  ;;  %v5137_v56 = vrot.slane %v5135_v55, 4  ;;  %v9799_v23 = vld [vmem:[#allocation3 + $0x78] sm:$0xff] }
 0x3aa   : > { %v12799_v34 = vadd.f32 %v7115_v54, %v6883_v41  ;;  %v5150_v54 = vrot.slane %v5148_v17, 4  ;;  %v13530_v41 = vld [vmem:[#allocation16_spill] sm:$0xff]  ;;  %v7555_v17 = vsel %vm10064_vm11, %v7550_v60, %v12780_v40  ;;  %v5140_v57 = vrot.slane %v5138_v30, 5 }
 0x3ab   : > { %v7118_v12 = vpop.f32.mrf.mxu2  ;;  %v5483_v21 = vpack.c.b16 %v5465_v11, %v5464_v27  ;;  %v7570_v27 = vshll.u32 %v7320_v14, 16  ;;  %v12827_v11 = vrot.slane %v7576_v15, 5 }
 0x3ac   : > { %13528 = vst [vmem:[#allocation10_spill] sm:$0xff] %v12799_v34  ;;  %v5151_v3 = vor.u32 %v5150_v54, %v12806_v50  ;;  %v5141_v30 = vor.u32 %v5140_v57, %v5137_v56  ;;  %v12829_v54 = vld [vmem:[#allocation3 + $0x8c] sm:$0x1] }
 0x3ad   : > { %v6796_v4 = vpop.f32.mrf.mxu0  ;;  %v7154_v20 = vpop.f32.mrf.mxu3  ;;  %13532 = vst [vmem:[#allocation13_spill] sm:$0xff] %v12829_v54  ;;  %v7572_v33 = vrot.slane %v7570_v27, 5  ;;  %v7586_v56 = vshll.u32 %v12829_v54, 16 }
 0x3ae   : > { %v6797_v26 = vadd.f32 %v6796_v4, %v12551_v8  ;;  %v12810_v34 = vadd.f32 %v7154_v20, %v13530_v41  ;;  %v8007_v4 = vunpack.c.l.b16 %v7565_v51  ;;  %v8006_v41 = vunpack.c.l.b16 %v7555_v17 }
 0x3af   : > { %v5152_v60 = vrot.slane %v5151_v3, 4  ;;  %v5142_v57 = vrot.slane %v5141_v30, 4  ;;  %v7588_v30 = vrot.slane %v7586_v56, 5 }
 0x3b0   : > { %7255 = vmatmul.bf16.gmra.mxu0 %v12398_v53  ;;  %v6886_v0 = vadd.f32 %v12771_v48, %v6797_v26  ;;  %v7567_v53 = vshrl.u32 %v7320_v14, 16  ;;  %v5154_v48 = vshll.u32 %v12818_v29, 16  ;;  %v7582_v26 = vrot.slane %v7580_v42, 4 }
 0x3b1   : > { %v8320_v8 = vpop.f32.mrf.mxu1 }
 0x3b2   : > { %v12824_v32 = vadd.f32 %v7118_v12, %v6886_v0  ;;  %7196 = vmatmul.bf16.gmra.mxu3 %v5483_v21  ;;  %v13533_v0 = vld [vmem:[#allocation17_spill] sm:$0xff]  ;;  %v8030_v21 = vpack.c.b16 %v8007_v4, %v8006_v41  ;;  %v5156_v14 = vrot.slane %v5154_v48, 5  ;;  %v7569_v15 = vrot.slane %v7567_v53, 4  ;;  %v4780_v53 = vld [vmem:[#allocation3 + $0xb4] sm:$0xf] }
 0x3b3   : > { %v7120_v20 = vpop.f32.mrf.mxu2  ;;  %v7583_v42 = vor.u32 %v7582_v26, %v12827_v11 }
 0x3b4   : > { %13531 = vst [vmem:[#allocation12_spill] sm:$0xff] %v12824_v32  ;;  %8359 = vmatmul.bf16.gmra.mxu1 %v9799_v23  ;;  %v12835_v32 = vld [vmem:[#allocation3 + $0xb8] sm:$0xf]  ;;  %v7573_v26 = vor.u32 %v7572_v33, %v7569_v15  ;;  %v7322_v15 = vld [vmem:[#allocation3 + $0x90] sm:$0xf] }
 0x3b5   : > { %v6798_v40 = vpop.f32.mrf.mxu0  ;;  %v7157_v55 = vpop.f32.mrf.mxu3  ;;  %v5168_v3 = vshll.u32 %v12835_v32, 16  ;;  %v5172_v23 = vshrl.u32 %v12835_v32, 16  ;;  %v7584_v41 = vrot.slane %v7583_v42, 4 }
 0x3b6   : > { %v6799_v12 = vadd.f32 %v6798_v40, %v12578_v2  ;;  %v12833_v51 = vadd.f32 %v7157_v55, %v13533_v0  ;;  %v5157_v2 = vsel %vm10064_vm11, %v5152_v60, %v5156_v14  ;;  %v12851_v60 = vld [vmem:[#allocation3 + $0x94] sm:$0xf] }
 0x3b7   : > { %v5467_v55 = vunpack.c.l.b16 %v5157_v2  ;;  %v5170_v14 = vrot.slane %v5168_v3, 5  ;;  %v7600_v42 = vshll.u32 %v12851_v60, 16  ;;  %v7604_v56 = vshrl.u32 %v12851_v60, 16  ;;  %v12864_v2 = vld [vmem:[#allocation3 + $0xbc] sm:$0x1] }
 0x3b8   : > { %v6888_v17 = vadd.f32 %v12793_v25, %v6799_v12  ;;  %8448 = vmatmul.bf16.gmra.mxu2 %v8030_v21  ;;  %v5147_v25 = vsel %vm10064_vm11, %v5142_v57, %v12806_v50  ;;  %v5159_v21 = vshrl.u32 %v4780_v53, 16  ;;  %v7574_v50 = vrot.slane %v7573_v26, 4 }
 0x3b9   : > { %v8322_v48 = vpop.f32.mrf.mxu1  ;;  %v5466_v33 = vunpack.c.l.b16 %v5147_v25  ;;  %v7591_v25 = vshrl.u32 %v7322_v15, 16 }
 0x3ba   : > { %v12844_v4 = vadd.f32 %v7120_v20, %v6888_v17  ;;  %v5162_v20 = vshll.u32 %v4780_v53, 16  ;;  %v5174_v17 = vrot.slane %v5172_v23, 4  ;;  %v9800_v53 = vld [vmem:[#allocation3 + $0x84] sm:$0xff] }
 0x3bb   : > { %v8409_v27 = vpop.f32.mrf.mxu2  ;;  %v5484_v57 = vpack.c.b16 %v5467_v55, %v5466_v33 }
 0x3bc   : > { %13534 = vst [vmem:[#allocation14_spill] sm:$0xff] %v12844_v4  ;;  %v12849_v40 = vadd.f32 %v8409_v27, %v8320_v8  ;;  %v7589_v8 = vsel %vm10064_vm11, %v7584_v41, %v7588_v30  ;;  %v5164_v3 = vrot.slane %v5162_v20, 5  ;;  %v5175_v23 = vor.u32 %v5174_v17, %v5170_v14 }
 0x3bd   : > { %v7221_v12 = vpop.f32.mrf.mxu0  ;;  %v7159_v0 = vpop.f32.mrf.mxu3  ;;  %v8009_v27 = vunpack.c.l.b16 %v7589_v8  ;;  %v5178_v41 = vshll.u32 %v12864_v2, 16  ;;  %v7594_v30 = vshll.u32 %v7322_v15, 16 }
 0x3be   : > { %13535 = vst [vmem:[#allocation16_spill] sm:$0xff] %v12849_v40  ;;  %v12854_v4 = vadd.f32 %v7221_v12, %v12609_v44  ;;  %v12857_v54 = vadd.f32 %v7159_v0, %v12344_v19  ;;  %v7579_v19 = vsel %vm10064_vm11, %v7574_v50, %v12827_v11  ;;  %v5161_v44 = vrot.slane %v5159_v21, 4  ;;  %v13539_v50 = vld [vmem:[#allocation18_spill] sm:$0xff]  ;;  %v12878_v40 = vld [vmem:[#allocation3 + $0x98] sm:$0x1] }
 0x3bf   : > { %v7602_v12 = vrot.slane %v7600_v42, 5  ;;  %v8008_v33 = vunpack.c.l.b16 %v7579_v19  ;;  %v5176_v20 = vrot.slane %v5175_v23, 4  ;;  %v5180_v15 = vrot.slane %v5178_v41, 5  ;;  %v12887_v41 = vld [vmem:[#allocation3 + $0xa0] sm:$0xf] }
 0x3c0   : > { %13536 = vst [vmem:[#allocation17_spill] sm:$0xff] %v12854_v4  ;;  %7260 = vmatmul.bf16.gmra.mxu0 %v12436_v35  ;;  %v7606_v35 = vrot.slane %v7604_v56, 4  ;;  %v5165_v21 = vor.u32 %v5164_v3, %v5161_v44  ;;  %v7593_v42 = vrot.slane %v7591_v25, 4  ;;  %v7596_v56 = vrot.slane %v7594_v30, 5 }
 0x3c1   : > { %v8325_v55 = vpop.f32.mrf.mxu1  ;;  %v5181_v19 = vsel %vm10064_vm11, %v5176_v20, %v5180_v15  ;;  %v7610_v44 = vshll.u32 %v12878_v40, 16  ;;  %13540 = vst [vmem:[#allocation18_spill] sm:$0xff] %v12887_v41  ;;  %v7628_v15 = vshrl.u32 %v12887_v41, 16 }
 0x3c2   : > { %7201 = vmatmul.bf16.gmra.mxu3 %v5484_v57  ;;  %v8031_v57 = vpack.c.b16 %v8009_v27, %v8008_v33 }
 0x3c3   : > { %v8411_v26 = vpop.f32.mrf.mxu2 }
 0x3c4   : > { %8364 = vmatmul.bf16.gmra.mxu1 %v9800_v53  ;;  %v12870_v0 = vadd.f32 %v8411_v26, %v8322_v48  ;;  %v7607_v53 = vor.u32 %v7606_v35, %v7602_v12  ;;  %v5166_v48 = vrot.slane %v5165_v21, 4  ;;  %v5469_v26 = vunpack.c.l.b16 %v5181_v19 }
 0x3c5   : > { %v7223_v4 = vpop.f32.mrf.mxu0  ;;  %v7162_v11 = vpop.f32.mrf.mxu3  ;;  %v7612_v35 = vrot.slane %v7610_v44, 5  ;;  %v13573_v49 = vld [vmem:[#allocation16_spill] sm:$0xff] }
 0x3c6   : > { %13537 = vst [vmem:[#allocation25_spill] sm:$0xff] %v12870_v0  ;;  %v12873_v17 = vadd.f32 %v7223_v4, %v12634_v6  ;;  %v12876_v8 = vadd.f32 %v7162_v11, %v13539_v50  ;;  %v5171_v6 = vsel %vm10064_vm11, %v5166_v48, %v5170_v14  ;;  %v7597_v4 = vor.u32 %v7596_v56, %v7593_v42  ;;  %v13541_v11 = vld [vmem:[#allocation19_spill] sm:$0xff]  ;;  %v13542_v42 = vld [vmem:[#allocation20_spill] sm:$0xff]  ;;  %v9801_v48 = vld [vmem:[#allocation3 + $0x90] sm:$0xff] }
 0x3c7   : > { %v7608_v23 = vrot.slane %v7607_v53, 4  ;;  %v5468_v20 = vunpack.c.l.b16 %v5171_v6  ;;  %v7324_v53 = vld [vmem:[#allocation3 + $0x9c] sm:$0xf] }
 0x3c8   : > { %13538 = vst [vmem:[#allocation26_spill] sm:$0xff] %v12873_v17  ;;  %8453 = vmatmul.bf16.gmra.mxu2 %v8031_v57  ;;  %v7598_v57 = vrot.slane %v7597_v4, 4  ;;  %v7618_v6 = vshll.u32 %v7324_v53, 16 }
 0x3c9   : > { %v8327_v50 = vpop.f32.mrf.mxu1  ;;  %v7613_v14 = vsel %vm10064_vm11, %v7608_v23, %v7612_v35  ;;  %v5485_v56 = vpack.c.b16 %v5469_v26, %v5468_v20  ;;  %v13543_v20 = vld [vmem:[#allocation21_spill] sm:$0xff] }
 0x3ca   : > { %v8011_v19 = vunpack.c.l.b16 %v7613_v14 }
 0x3cb   : > { %v8414_v3 = vpop.f32.mrf.mxu2 }
 0x3cc   : > { %v12885_v27 = vadd.f32 %v8414_v3, %v8325_v55  ;;  %v7624_v55 = vshll.u32 %v12887_v41, 16  ;;  %v7615_v3 = vshrl.u32 %v7324_v53, 16 }
 0x3cd   : > { %v7226_v25 = vpop.f32.mrf.mxu0  ;;  %v7164_v30 = vpop.f32.mrf.mxu3 }
 0x3ce   : > { %v12890_v33 = vadd.f32 %v7226_v25, %v12654_v38  ;;  %v12893_v21 = vadd.f32 %v7164_v30, %v13541_v11  ;;  %v7603_v38 = vsel %vm10064_vm11, %v7598_v57, %v7602_v12  ;;  %v7626_v4 = vrot.slane %v7624_v55, 5  ;;  %v12910_v57 = vld [vmem:[#allocation3 + $0xa4] sm:$0x1] }
 0x3cf   : > { %v7630_v25 = vrot.slane %v7628_v15, 4  ;;  %v8010_v30 = vunpack.c.l.b16 %v7603_v38  ;;  %13544 = vst [vmem:[#allocation19_spill] sm:$0xff] %v12910_v57  ;;  %v7617_v14 = vrot.slane %v7615_v3, 4 }
 0x3d0   : > { %7265 = vmatmul.bf16.gmra.mxu0 %v13542_v42 }
 0x3d1   : > { %v8032_v12 = vpack.c.b16 %v8011_v19, %v8010_v30  ;;  %v7631_v53 = vor.u32 %v7630_v25, %v7626_v4  ;;  %v8330_v55 = vpop.f32.mrf.mxu1 }
 0x3d2   : > { %7206 = vmatmul.bf16.gmra.mxu3 %v5485_v56  ;;  %v7620_v56 = vrot.slane %v7618_v6, 5 }
 0x3d3   : > { %v8416_v44 = vpop.f32.mrf.mxu2 }
 0x3d4   : > { %8369 = vmatmul.bf16.gmra.mxu1 %v9801_v48  ;;  %v12902_v23 = vadd.f32 %v8416_v44, %v8327_v50  ;;  %v7634_v50 = vshll.u32 %v12910_v57, 16  ;;  %v7621_v38 = vor.u32 %v7620_v56, %v7617_v14  ;;  %v7632_v48 = vrot.slane %v7631_v53, 4  ;;  %v7326_v14 = vld [vmem:[#allocation3 + $0xa8] sm:$0xf]  ;;  %v9886_v53 = vld [vmem:[#allocation3 + $0x34] sm:$0xf] }
 0x3d5   : > { %v7228_v35 = vpop.f32.mrf.mxu0  ;;  %v7167_v11 = vpop.f32.mrf.mxu3 }
 0x3d6   : > { %v12905_v26 = vadd.f32 %v7228_v35, %v12675_v36  ;;  %v12908_v42 = vadd.f32 %v7167_v11, %v13543_v20  ;;  %v12915_v36 = vld [vmem:[#allocation3 + $0xac] sm:$0xf]  ;;  %v7636_v20 = vrot.slane %v7634_v50, 5  ;;  %v7622_v6 = vrot.slane %v7621_v38, 4 }
 0x3d7   : > { %v7648_v30 = vshll.u32 %v12915_v36, 16 }
 0x3d8   : > { %8458 = vmatmul.bf16.gmra.mxu2 %v8032_v12  ;;  %v7637_v25 = vsel %vm10064_vm11, %v7632_v48, %v7636_v20  ;;  %v7652_v12 = vshrl.u32 %v12915_v36, 16  ;;  %v7627_v56 = vsel %vm10064_vm11, %v7622_v6, %v7626_v4  ;;  %v7642_v48 = vshll.u32 %v7326_v14, 16 }
 0x3d9   : > { %v8013_v50 = vunpack.c.l.b16 %v7637_v25 }
 0x3da   : > { %v7654_v20 = vrot.slane %v7652_v12, 4 }
 0x3db   : > { %v8419_v15 = vpop.f32.mrf.mxu2 }
 0x3dc   : > { %v12913_v44 = vadd.f32 %v8419_v15, %v8330_v55  ;;  %v13547_v55 = vld [vmem:[#allocation15_spill] sm:$0xff]  ;;  %v8332_v15 = vpop.f32.mrf.mxu1 }
 0x3dd   : > { %v7231_v35 = vpop.f32.mrf.mxu0  ;;  %v7169_v11 = vpop.f32.mrf.mxu3 }
 0x3de   : > { %13545 = vst [vmem:[#allocation20_spill] sm:$0xff] %v12913_v44  ;;  %v12918_v19 = vadd.f32 %v7231_v35, %v12693_v28  ;;  %v12921_v3 = vadd.f32 %v7169_v11, %v12490_v31  ;;  %v7814_v28 = vrot.slane %v9886_v53, 5  ;;  %v9802_v31 = vld [vmem:[#allocation3 + $0x9c] sm:$0xff]  ;;  %v7639_v35 = vshrl.u32 %v7326_v14, 16  ;;  %v7736_v53 = vld [vmem:[#allocation3 + $0x30] sm:$0xe] }
 0x3df   : > { %v7650_v11 = vrot.slane %v7648_v30, 5  ;;  %v9887_v14 = vld [vmem:[#allocation3 + $0x38] sm:$0x1]  ;;  %v5335_v44 = vrot.slane %v12723_v58, 5 }
 0x3e0   : > { %13546 = vst [vmem:[#allocation21_spill] sm:$0xff] %v12918_v19  ;;  %7270 = vmatmul.bf16.gmra.mxu0 %v12481_v5  ;;  %v8012_v5 = vunpack.c.l.b16 %v7627_v56  ;;  %v7816_v57 = vrot.slane %v7814_v28, 4  ;;  %v7817_v30 = vrot.slane %v9887_v14, 5  ;;  %v7641_v12 = vrot.slane %v7639_v35, 4 }
 0x3e1   : > { %v9482_v56 = vrot.slane %v7736_v53, 9 }
 0x3e2   : > { %8502 = vmatmul.bf16.vlgmr.msra.gmra.mxu3 %v13547_v55  ;;  %v8033_v25 = vpack.c.b16 %v8013_v50, %v8012_v5  ;;  %v12939_v55 = vld [vmem:[#allocation3 + $0xb0] sm:$0x1]  ;;  %v12946_v5 = vld [vmem:[#allocation3 + $0xb8] sm:$0xf] }
 0x3e3   : > { %v8421_v38 = vpop.f32.mrf.mxu2 }
 0x3e4   : > { %8374 = vmatmul.bf16.gmra.mxu1 %v9802_v31  ;;  %v12931_v17 = vadd.f32 %v8421_v38, %v8332_v15  ;;  %v7644_v31 = vrot.slane %v7642_v48, 5  ;;  %v7655_v15 = vor.u32 %v7654_v20, %v7650_v11  ;;  %v7818_v38 = vsel %vm10106_vm14, %v7816_v57, %v7817_v30  ;;  %v7328_v30 = vld [vmem:[#allocation3 + $0xb4] sm:$0xf] }
 0x3e5   : > { %v7233_v0 = vpop.f32.mrf.mxu0  ;;  %v7172_v19 = vpop.f32.mrf.mxu3  ;;  %v8059_v50 = vunpack.c.l.b16 %v7818_v38  ;;  %v5332_v48 = vrot.slane %v12697_v62, 5 }
 0x3e6   : > { %13548 = vst [vmem:[#allocation15_spill] sm:$0xff] %v12931_v17  ;;  %v12934_v4 = vadd.f32 %v7233_v0, %v12718_v39  ;;  %v12937_v6 = vadd.f32 %v7172_v19, %v12509_v59  ;;  %v7658_v39 = vshll.u32 %v12939_v55, 16  ;;  %v7815_v59 = vsel %vm10106_vm14, %v9482_v56, %v7814_v28  ;;  %v9888_v56 = vld [vmem:[#allocation3 + $0x40] sm:$0xf] }
 0x3e7   : > { %v7645_v0 = vor.u32 %v7644_v31, %v7641_v12  ;;  %v7656_v19 = vrot.slane %v7655_v15, 4  ;;  %v8058_v53 = vunpack.c.l.b16 %v7815_v59  ;;  %v7672_v12 = vshll.u32 %v12946_v5, 16  ;;  %v7746_v15 = vld [vmem:[#allocation3 + $0xa8] sm:$0xe] }
 0x3e8   : > { %13549 = vst [vmem:[#allocation27_spill] sm:$0xff] %v12934_v4  ;;  %8463 = vmatmul.bf16.gmra.mxu2 %v8033_v25  ;;  %v7660_v35 = vrot.slane %v7658_v39, 5  ;;  %v13551_v25 = vld [vmem:[#allocation22_spill] sm:$0xff]  ;;  %v7676_v31 = vshrl.u32 %v12946_v5, 16  ;;  %v7821_v38 = vrot.slane %v9888_v56, 5  ;;  %v7663_v39 = vshrl.u32 %v7328_v30, 16 }
 0x3e9   : > { %v7646_v17 = vrot.slane %v7645_v0, 4  ;;  %v8088_v62 = vpack.c.b16 %v8059_v50, %v8058_v53  ;;  %v9803_v59 = vld [vmem:[#allocation3 + $0xa8] sm:$0xff]  ;;  %v12964_v50 = vrot.slane %v7672_v12, 5 }
 0x3ea   : > { %v7661_v28 = vsel %vm10064_vm11, %v7656_v19, %v7660_v35  ;;  %v9889_v19 = vld [vmem:[#allocation3 + $0x44] sm:$0x1]  ;;  %v7678_v53 = vrot.slane %v7676_v31, 4  ;;  %v7823_v58 = vrot.slane %v7821_v38, 4 }
 0x3eb   : > { %v8015_v0 = vunpack.c.l.b16 %v7661_v28  ;;  %v7824_v35 = vrot.slane %v9889_v19, 5  ;;  %v7887_v28 = vrot.slane %v12939_v55, 5 }
 0x3ed   : > { %v7236_v4 = vpop.f32.mrf.mxu0  ;;  %v7174_v14 = vpop.f32.mrf.mxu3 }
 0x3ee   : > { %v12950_v20 = vadd.f32 %v7236_v4, %v12739_v22  ;;  %v12953_v57 = vadd.f32 %v7174_v14, %v13551_v25  ;;  %v7651_v22 = vsel %vm10064_vm11, %v7646_v17, %v7650_v11  ;;  %v5334_v4 = vrot.slane %v5332_v48, 4  ;;  %v5194_v14 = vld [vmem:[#allocation3 + $0x90] sm:$0xe] }
 0x3ef   : > { %v9492_v25 = vrot.slane %v7746_v15, 9  ;;  %v8014_v17 = vunpack.c.l.b16 %v7651_v22  ;;  %v9140_v19 = vrot.slane %v5194_v14, 9  ;;  %v7737_v15 = vld [vmem:[#allocation3 + $0x3c] sm:$0xe]  ;;  %v7679_v14 = vor.u32 %v7678_v53, %v12964_v50 }
 0x3f0   : > { %13550 = vst [vmem:[#allocation28_spill] sm:$0xff] %v12950_v20  ;;  %7275 = vmatmul.bf16.gmra.mxu0 %v12612_v24  ;;  %v7884_v20 = vrot.slane %v12915_v36, 5  ;;  %v7666_v24 = vshll.u32 %v7328_v30, 16  ;;  %v5336_v36 = vsel %vm10106_vm14, %v5334_v4, %v5335_v44  ;;  %v7665_v30 = vrot.slane %v7663_v39, 4 }
 0x3f1   : > { %v8034_v22 = vpack.c.b16 %v8015_v0, %v8014_v17  ;;  %v9483_v4 = vrot.slane %v7737_v15, 9  ;;  %v5527_v0 = vunpack.c.l.b16 %v5336_v36  ;;  %v7680_v53 = vrot.slane %v7679_v14, 4 }
 0x3f2   : > { %8507 = vmatmul.bf16.gmra.mxu3 %v8088_v62  ;;  %v7885_v11 = vsel %vm10106_vm14, %v9492_v25, %v7884_v20  ;;  %v7886_v62 = vrot.slane %v7884_v20, 4  ;;  %v7668_v20 = vrot.slane %v7666_v24, 5 }
 0x3f3   : > { %v8078_v25 = vunpack.c.l.b16 %v7885_v11  ;;  %v7822_v24 = vsel %vm10106_vm14, %v9483_v4, %v7821_v38  ;;  %v7330_v38 = vld [vmem:[#allocation3 + $0xc0] sm:$0xf] }
 0x3f4   : > { %8379 = vmatmul.bf16.gmra.mxu1 %v9803_v59  ;;  %v12977_v59 = vld [vmem:[#allocation3 + $0xbc] sm:$0x1]  ;;  %v7888_v55 = vsel %vm10106_vm14, %v7886_v62, %v7887_v28  ;;  %v7669_v17 = vor.u32 %v7668_v20, %v7665_v30  ;;  %v12991_v28 = vld [vmem:[#allocation3 + $0xc4] sm:$0xf] }
 0x3f5   : > { %v7238_v56 = vpop.f32.mrf.mxu0  ;;  %v7177_v41 = vpop.f32.mrf.mxu3  ;;  %v8079_v44 = vunpack.c.l.b16 %v7888_v55  ;;  %v8060_v55 = vunpack.c.l.b16 %v7822_v24  ;;  %v7696_v14 = vshll.u32 %v12991_v28, 16 }
 0x3f6   : > { %v12972_v12 = vadd.f32 %v7238_v56, %v12764_v63  ;;  %v12975_v31 = vadd.f32 %v7177_v41, %v12546_v7  ;;  %v5333_v63 = vsel %vm10106_vm14, %v9140_v19, %v5332_v48  ;;  %v7825_v7 = vsel %vm10106_vm14, %v7823_v58, %v7824_v35 }
 0x3f7   : > { %v7682_v41 = vshll.u32 %v12977_v59, 16  ;;  %v12987_v39 = vpack.c.b16 %v8079_v44, %v8078_v25  ;;  %v5526_v11 = vunpack.c.l.b16 %v5333_v63  ;;  %v8061_v62 = vunpack.c.l.b16 %v7825_v7  ;;  %v7747_v44 = vld [vmem:[#allocation3 + $0xb4] sm:$0xe]  ;;  %v9890_v63 = vld [vmem:[#allocation3 + $0x4c] sm:$0xf] }
 0x3f8   : > { %8468 = vmatmul.bf16.gmra.mxu2 %v8034_v22  ;;  %v5339_v19 = vrot.slane %v12743_v13, 5  ;;  %v13554_v22 = vld [vmem:[#allocation23_spill] sm:$0xff]  ;;  %v7670_v30 = vrot.slane %v7669_v17, 4  ;;  %v7700_v25 = vshrl.u32 %v12991_v28, 16  ;;  %v7828_v7 = vrot.slane %v9890_v63, 5 }
 0x3f9   : > { %13552 = vst [vmem:[#allocation22_spill] sm:$0xff] %v12987_v39  ;;  %v7684_v48 = vrot.slane %v7682_v41, 5  ;;  %v5546_v58 = vpack.c.b16 %v5527_v0, %v5526_v11  ;;  %v8089_v13 = vpack.c.b16 %v8061_v62, %v8060_v55  ;;  %v7687_v41 = vshrl.u32 %v7330_v38, 16  ;;  %v9804_v0 = vld [vmem:[#allocation3 + $0xb4] sm:$0xff]  ;;  %v5195_v17 = vld [vmem:[#allocation3 + $0x9c] sm:$0xe] }
 0x3fa   : > { %v5341_v4 = vrot.slane %v5339_v19, 4  ;;  %v7690_v62 = vshll.u32 %v7330_v38, 16 }
 0x3fb   : > { %v7685_v20 = vsel %vm10064_vm11, %v7680_v53, %v7684_v48  ;;  %v9891_v53 = vld [vmem:[#allocation3 + $0x50] sm:$0x1]  ;;  %v5342_v48 = vrot.slane %v12769_v43, 5  ;;  %v7689_v43 = vrot.slane %v7687_v41, 4 }
 0x3fc   : > { %v8017_v24 = vunpack.c.l.b16 %v7685_v20  ;;  %v7831_v11 = vrot.slane %v9891_v53, 5  ;;  %v7830_v53 = vrot.slane %v7828_v7, 4 }
 0x3fd   : > { %v7241_v56 = vpop.f32.mrf.mxu0  ;;  %v7179_v15 = vpop.f32.mrf.mxu3 }
 0x3fe   : > { %v12995_v35 = vadd.f32 %v7241_v56, %v12786_v1  ;;  %v12998_v36 = vadd.f32 %v7179_v15, %v13554_v22  ;;  %v7675_v1 = vsel %vm10064_vm11, %v7670_v30, %v12964_v50  ;;  %v9493_v56 = vrot.slane %v7747_v44, 9 }
 0x3ff   : > { %v7891_v15 = vrot.slane %v12946_v5, 5  ;;  %v7702_v22 = vrot.slane %v7700_v25, 4  ;;  %v8016_v50 = vunpack.c.l.b16 %v7675_v1  ;;  %v5343_v44 = vsel %vm10106_vm14, %v5341_v4, %v5342_v48  ;;  %v7738_v5 = vld [vmem:[#allocation3 + $0x48] sm:$0xe] }
 0x400   : > { %13553 = vst [vmem:[#allocation29_spill] sm:$0xff] %v12995_v35  ;;  %7280 = vmatmul.bf16.gmra.mxu0 %v5546_v58  ;;  %v7698_v58 = vrot.slane %v7696_v14, 5  ;;  %v9141_v35 = vrot.slane %v5195_v17, 9  ;;  %v13555_v14 = vld [vmem:[#allocation24_spill] sm:$0xff]  ;;  %v9484_v4 = vrot.slane %v7738_v5, 9 }
 0x401   : > { %v7892_v55 = vsel %vm10106_vm14, %v9493_v56, %v7891_v15  ;;  %v7893_v30 = vrot.slane %v7891_v15, 4  ;;  %v8035_v1 = vpack.c.b16 %v8017_v24, %v8016_v50  ;;  %v7692_v56 = vrot.slane %v7690_v62, 5 }
 0x402   : > { %8512 = vmatmul.bf16.gmra.mxu3 %v8089_v13  ;;  %v7894_v13 = vrot.slane %v12977_v59, 5  ;;  %v7703_v15 = vor.u32 %v7702_v22, %v7698_v58  ;;  %v8080_v17 = vunpack.c.l.b16 %v7892_v55  ;;  %v5340_v41 = vsel %vm10106_vm14, %v9141_v35, %v5339_v19 }
 0x403   : > { %v5529_v24 = vunpack.c.l.b16 %v5343_v44  ;;  %v7829_v50 = vsel %vm10106_vm14, %v9484_v4, %v7828_v7  ;;  %v5528_v22 = vunpack.c.l.b16 %v5340_v41  ;;  %v5346_v7 = vrot.slane %v12788_v45, 5 }
 0x404   : > { %8384 = vmatmul.bf16.gmra.mxu1 %v9804_v0  ;;  %v7348_v0 = vld [vmem:[#allocation3 + $0xc8] sm:$0x1]  ;;  %v7895_v59 = vsel %vm10106_vm14, %v7893_v30, %v7894_v13  ;;  %v7693_v30 = vor.u32 %v7692_v56, %v7689_v43  ;;  %v7704_v62 = vrot.slane %v7703_v15, 4  ;;  %v9805_v56 = vld [vmem:[#allocation3 + $0xc0] sm:$0xff] }
 0x405   : > { %v7243_v20 = vpop.f32.mrf.mxu0  ;;  %v7182_v63 = vpop.f32.mrf.mxu3  ;;  %v8081_v39 = vunpack.c.l.b16 %v7895_v59  ;;  %v7706_v48 = vshll.u32 %v7348_v0, 16  ;;  %v5547_v19 = vpack.c.b16 %v5529_v24, %v5528_v22  ;;  %v9892_v59 = vld [vmem:[#allocation3 + $0x58] sm:$0xf]  ;;  %v5348_v4 = vrot.slane %v5346_v7, 4  ;;  %v9893_v22 = vld [vmem:[#allocation3 + $0x5c] sm:$0x1] }
 0x406   : > { %v13015_v38 = vadd.f32 %v7243_v20, %v12810_v34  ;;  %v13018_v25 = vadd.f32 %v7182_v63, %v13555_v14  ;;  %v7832_v34 = vsel %vm10106_vm14, %v7830_v53, %v7831_v11  ;;  %v7694_v11 = vrot.slane %v7693_v30, 4  ;;  %v7748_v53 = vld [vmem:[#allocation3 + $0xc0] sm:$0xe] }
 0x407   : > { %v13026_v20 = vpack.c.b16 %v8081_v39, %v8080_v17  ;;  %v8063_v55 = vunpack.c.l.b16 %v7832_v34  ;;  %v7708_v5 = vrot.slane %v7706_v48, 5  ;;  %v8062_v39 = vunpack.c.l.b16 %v7829_v50  ;;  %v5196_v34 = vld [vmem:[#allocation3 + $0xa8] sm:$0xe] }
 0x408   : > { %8473 = vmatmul.bf16.gmra.mxu2 %v8035_v1  ;;  %v7699_v1 = vsel %vm10064_vm11, %v7694_v11, %v7698_v58  ;;  %v7898_v17 = vrot.slane %v12991_v28, 5  ;;  %v7901_v24 = vrot.slane %v7348_v0, 5  ;;  %v5349_v58 = vrot.slane %v12818_v29, 5 }
 0x409   : > { %v7709_v44 = vsel %vm10064_vm11, %v7704_v62, %v7708_v5  ;;  %v8090_v43 = vpack.c.b16 %v8063_v55, %v8062_v39  ;;  %v8018_v41 = vunpack.c.l.b16 %v7699_v1  ;;  %v7838_v55 = vrot.slane %v9893_v22, 5  ;;  %v7739_v5 = vld [vmem:[#allocation3 + $0x54] sm:$0xe] }
 0x40a   : > { %v8019_v15 = vunpack.c.l.b16 %v7709_v44  ;;  %v7900_v48 = vrot.slane %v7898_v17, 4  ;;  %v9142_v39 = vrot.slane %v5196_v34, 9  ;;  %v5350_v0 = vsel %vm10106_vm14, %v5348_v4, %v5349_v58 }
 0x40b   : > { %v5353_v34 = vrot.slane %v12835_v32, 5 }
 0x40c   : > { %v5347_v44 = vsel %vm10106_vm14, %v9142_v39, %v5346_v7 }
 0x40d   : > { %v7246_v13 = vpop.f32.mrf.mxu0  ;;  %v7184_v63 = vpop.f32.mrf.mxu3 }
 0x40e   : > { %v13031_v14 = vadd.f32 %v7246_v13, %v12833_v51  ;;  %v13034_v35 = vadd.f32 %v7184_v63, %v12625_v61  ;;  %v7835_v51 = vrot.slane %v9892_v59, 5  ;;  %v9494_v61 = vrot.slane %v7748_v53, 9 }
 0x40f   : > { %v8036_v63 = vpack.c.b16 %v8019_v15, %v8018_v41  ;;  %v5530_v59 = vunpack.c.l.b16 %v5347_v44 }
 0x410   : > { %7285 = vmatmul.bf16.gmra.mxu0 %v5547_v19  ;;  %v7899_v45 = vsel %vm10106_vm14, %v9494_v61, %v7898_v17  ;;  %v7837_v62 = vrot.slane %v7835_v51, 4  ;;  %v7902_v19 = vsel %vm10106_vm14, %v7900_v48, %v7901_v24  ;;  %v9894_v48 = vld [vmem:[#allocation3 + $0x64] sm:$0xf] }
 0x411   : > { %v8082_v11 = vunpack.c.l.b16 %v7899_v45  ;;  %v8083_v29 = vunpack.c.l.b16 %v7902_v19  ;;  %v7842_v24 = vrot.slane %v9894_v48, 5 }
 0x412   : > { %8517 = vmatmul.bf16.gmra.mxu3 %v8090_v43  ;;  %v5531_v43 = vunpack.c.l.b16 %v5350_v0 }
 0x413   : > { %v13059_v53 = vpack.c.b16 %v8083_v29, %v8082_v11 }
 0x414   : > { %8389 = vmatmul.bf16.gmra.mxu1 %v9805_v56  ;;  %v5548_v4 = vpack.c.b16 %v5531_v43, %v5530_v59 }
 0x415   : > { %v7248_v50 = vpop.f32.mrf.mxu0  ;;  %v7187_v30 = vpop.f32.mrf.mxu3 }
 0x416   : > { %v13046_v13 = vadd.f32 %v7248_v50, %v12857_v54  ;;  %v13049_v28 = vadd.f32 %v7187_v30, %v12645_v37  ;;  %v9485_v54 = vrot.slane %v7739_v5, 9  ;;  %v7839_v37 = vsel %vm10106_vm14, %v7837_v62, %v7838_v55  ;;  %v5197_v50 = vld [vmem:[#allocation3 + $0xb4] sm:$0xe]  ;;  %v7740_v55 = vld [vmem:[#allocation3 + $0x60] sm:$0xe] }
 0x417   : > { %v8065_v56 = vunpack.c.l.b16 %v7839_v37  ;;  %v5356_v62 = vrot.slane %v12864_v2, 5  ;;  %v9143_v32 = vrot.slane %v5197_v50, 9  ;;  %v9895_v5 = vld [vmem:[#allocation3 + $0x68] sm:$0x1]  ;;  %v9486_v0 = vrot.slane %v7740_v55, 9 }
 0x418   : > { %8478 = vmatmul.bf16.gmra.mxu2 %v8036_v63  ;;  %v7836_v1 = vsel %vm10106_vm14, %v9485_v54, %v7835_v51  ;;  %v5355_v51 = vrot.slane %v5353_v34, 4  ;;  %v7845_v19 = vrot.slane %v9895_v5, 5  ;;  %v9899_v55 = vld [vmem:[#allocation3 + $0x74] sm:$0x1] }
 0x419   : > { %v8064_v41 = vunpack.c.l.b16 %v7836_v1  ;;  %v5354_v39 = vsel %vm10106_vm14, %v9143_v32, %v5353_v34  ;;  %v7852_v32 = vrot.slane %v9899_v55, 5  ;;  %v13130_v55 = vpop.f32.mrf.mxu2 }
 0x41a   : > { %v5357_v63 = vsel %vm10106_vm14, %v5355_v51, %v5356_v62  ;;  %v9898_v51 = vld [vmem:[#allocation3 + $0x20] sm:$0x1] }
 0x41b   : > { %v8091_v45 = vpack.c.b16 %v8065_v56, %v8064_v41  ;;  %v5533_v11 = vunpack.c.l.b16 %v5357_v63  ;;  %v9896_v56 = vld [vmem:[#allocation3 + $0x1c] sm:$0xf]  ;;  %v7803_v50 = vrot.slane %v9898_v51, 5 }
 0x41d   : > { %v7251_v15 = vpop.f32.mrf.mxu0  ;;  %v7189_v61 = vpop.f32.mrf.mxu3 }
 0x41e   : > { %v13064_v17 = vadd.f32 %v7251_v15, %v12876_v8  ;;  %v13067_v7 = vadd.f32 %v7189_v61, %v12666_v9  ;;  %v7844_v8 = vrot.slane %v7842_v24, 4  ;;  %v7800_v15 = vrot.slane %v9896_v56, 5 }
 0x420   : > { %7290 = vmatmul.bf16.gmra.mxu0 %v5548_v4  ;;  %v7846_v2 = vsel %vm10106_vm14, %v7844_v8, %v7845_v19  ;;  %v9897_v4 = vld [vmem:[#allocation3 + $0x70] sm:$0xf]  ;;  %v7802_v34 = vrot.slane %v7800_v15, 4 }
 0x421   : > { %v8067_v29 = vunpack.c.l.b16 %v7846_v2  ;;  %v7849_v41 = vrot.slane %v9897_v4, 5 }
 0x422   : > { %8522 = vmatmul.bf16.gmra.mxu3 %v8091_v45  ;;  %v7734_v45 = vld [vmem:[#allocation3 + $0x18] sm:$0xe]  ;;  %v7804_v8 = vsel %vm10106_vm14, %v7802_v34, %v7803_v50  ;;  %v13556_v34 = vld [vmem:[#allocation9_spill] sm:$0xff] }
 0x423   : > { %v9480_v62 = vrot.slane %v7734_v45, 9  ;;  %v7859_v45 = vrot.slane %v13556_v34, 5  ;;  %v13561_v34 = vld [vmem:[#allocation14_spill] sm:$0xff] }
 0x425   : > { %v7253_v30 = vpop.f32.mrf.mxu0  ;;  %v7192_v58 = vpop.f32.mrf.mxu3  ;;  %v7801_v63 = vsel %vm10106_vm14, %v9480_v62, %v7800_v15 }
 0x426   : > { %v13072_v22 = vadd.f32 %v7253_v30, %v12893_v21  ;;  %v13075_v9 = vadd.f32 %v7192_v58, %v12686_v10  ;;  %v7843_v21 = vsel %vm10106_vm14, %v9486_v0, %v7842_v24  ;;  %v5532_v10 = vunpack.c.l.b16 %v5354_v39  ;;  %v7741_v58 = vld [vmem:[#allocation3 + $0x6c] sm:$0xe] }
 0x427   : > { %v8066_v59 = vunpack.c.l.b16 %v7843_v21  ;;  %v9487_v5 = vrot.slane %v7741_v58, 9  ;;  %v8055_v39 = vunpack.c.l.b16 %v7804_v8  ;;  %v13128_v8 = vpop.f32.mrf.mxu1 }
 0x428   : > { %v5549_v43 = vpack.c.b16 %v5533_v11, %v5532_v10 }
 0x429   : > { %v8092_v61 = vpack.c.b16 %v8067_v29, %v8066_v59 }
 0x42d   : > { %v7256_v44 = vpop.f32.mrf.mxu0  ;;  %v7194_v54 = vpop.f32.mrf.mxu3 }
 0x42e   : > { %v13086_v37 = vadd.f32 %v7256_v44, %v12908_v42  ;;  %v13089_v1 = vadd.f32 %v7194_v54, %v12709_v52  ;;  %v7851_v42 = vrot.slane %v7849_v41, 4 }
 0x430   : > { %7295 = vmatmul.bf16.gmra.mxu0 %v5549_v43  ;;  %v7853_v19 = vsel %vm10106_vm14, %v7851_v42, %v7852_v32  ;;  %v9900_v43 = vld [vmem:[#allocation3 + $0x7c] sm:$0xf] }
 0x431   : > { %v8069_v0 = vunpack.c.l.b16 %v7853_v19  ;;  %v7856_v59 = vrot.slane %v9900_v43, 5  ;;  %v13142_v43 = vpop.f32.mrf.mxu1 }
 0x432   : > { %8527 = vmatmul.bf16.gmra.mxu3 %v8092_v61 }
 0x433   : > { %v7858_v61 = vrot.slane %v7856_v59, 4 }
 0x435   : > { %v7258_v48 = vpop.f32.mrf.mxu0  ;;  %v7197_v24 = vpop.f32.mrf.mxu3 }
 0x436   : > { %v13092_v30 = vadd.f32 %v7258_v48, %v12921_v3  ;;  %v13095_v52 = vadd.f32 %v7197_v24, %v12731_v18  ;;  %v7850_v3 = vsel %vm10106_vm14, %v9487_v5, %v7849_v41  ;;  %v8054_v18 = vunpack.c.l.b16 %v7801_v63  ;;  %v13558_v63 = vld [vmem:[#allocation11_spill] sm:$0xff] }
 0x437   : > { %v8068_v44 = vunpack.c.l.b16 %v7850_v3  ;;  %v7860_v48 = vsel %vm10106_vm14, %v7858_v61, %v7859_v45  ;;  %v7863_v5 = vrot.slane %v13558_v63, 5  ;;  %v13166_v63 = vld [vmem:[%s13464_s5] ss:$0 sm:$0xff] }
 0x438   : > { %v8086_v10 = vpack.c.b16 %v8055_v39, %v8054_v18  ;;  %v8071_v51 = vunpack.c.l.b16 %v7860_v48 }
 0x439   : > { %v8093_v54 = vpack.c.b16 %v8069_v0, %v8068_v44  ;;  %v7865_v3 = vrot.slane %v7863_v5, 4 }
 0x43d   : > { %v7261_v2 = vpop.f32.mrf.mxu0  ;;  %v7199_v11 = vpop.f32.mrf.mxu3 }
 0x43e   : > { %v13106_v21 = vadd.f32 %v7261_v2, %v12937_v6  ;;  %v13109_v29 = vadd.f32 %v7199_v11, %v12755_v16  ;;  %v7742_v6 = vld [vmem:[#allocation3 + $0x78] sm:$0xe]  ;;  %v7743_v2 = vld [vmem:[#allocation3 + $0x84] sm:$0xe]  ;;  %v13560_v11 = vld [vmem:[#allocation13_spill] sm:$0xff] }
 0x43f   : > { %v9488_v16 = vrot.slane %v7742_v6, 9  ;;  %v9489_v44 = vrot.slane %v7743_v2, 9 }
 0x440   : > { %8497 = vmatmul.bf16.vlgmr.msrb.gmra.mxu0 %v8086_v10  ;;  %v7866_v10 = vrot.slane %v13560_v11, 5 }
 0x441   : > { %v7857_v24 = vsel %vm10106_vm14, %v9488_v16, %v7856_v59  ;;  %v13144_v59 = vpop.f32.mrf.mxu2 }
 0x442   : > { %8532 = vmatmul.bf16.gmra.mxu3 %v8093_v54  ;;  %v7867_v54 = vsel %vm10106_vm14, %v7865_v3, %v7866_v10 }
 0x445   : > { %v7263_v56 = vpop.f32.mrf.mxu0  ;;  %v7202_v15 = vpop.f32.mrf.mxu3 }
 0x446   : > { %v13112_v4 = vadd.f32 %v7263_v56, %v12953_v57  ;;  %v13115_v41 = vadd.f32 %v7202_v15, %v12777_v47  ;;  %v13557_v57 = vld [vmem:[#allocation10_spill] sm:$0xff]  ;;  %v8070_v47 = vunpack.c.l.b16 %v7857_v24  ;;  %v7864_v56 = vsel %vm10106_vm14, %v9489_v44, %v7863_v5 }
 0x447   : > { %v8073_v15 = vunpack.c.l.b16 %v7867_v54  ;;  %v8072_v16 = vunpack.c.l.b16 %v7864_v56  ;;  %v7870_v24 = vrot.slane %v12851_v60, 5  ;;  %v7744_v60 = vld [vmem:[#allocation3 + $0x90] sm:$0xe]  ;;  %v7873_v5 = vrot.slane %v12878_v40, 5 }
 0x448   : > { %v8094_v32 = vpack.c.b16 %v8071_v51, %v8070_v47  ;;  %v13155_v51 = vpop.f32.mrf.mxu1  ;;  %v9490_v3 = vrot.slane %v7744_v60, 9  ;;  %v13563_v60 = vld [vmem:[#allocation20_spill] sm:$0xff] }
 0x449   : > { %v8095_v48 = vpack.c.b16 %v8073_v15, %v8072_v16  ;;  %v7872_v47 = vrot.slane %v7870_v24, 4  ;;  %v13562_v16 = vld [vmem:[#allocation18_spill] sm:$0xff] }
 0x44d   : > { %v7266_v50 = vpop.f32.mrf.mxu0  ;;  %v7204_v42 = vpop.f32.mrf.mxu3 }
 0x44e   : > { %v13123_v58 = vadd.f32 %v7266_v50, %v12975_v31  ;;  %v13126_v62 = vadd.f32 %v7204_v42, %v13557_v57  ;;  %v13559_v31 = vld [vmem:[#allocation12_spill] sm:$0xff]  ;;  %v13157_v50 = vpop.f32.mrf.mxu2 }
 0x450   : > { %v13187_v10 = vpop.f32.mrf.mxu1 }
 0x452   : > { %8537 = vmatmul.bf16.gmra.mxu3 %v8094_v32 }
 0x455   : > { %v7268_v19 = vpop.f32.mrf.mxu0  ;;  %v7207_v39 = vpop.f32.mrf.mxu3 }
 0x456   : > { %v13134_v18 = vadd.f32 %v7268_v19, %v12998_v36  ;;  %v13137_v0 = vadd.f32 %v7207_v39, %v13559_v31  ;;  %v13173_v39 = vld [vmem:[%s13465_s6] ss:$0 sm:$0xff]  ;;  %v7871_v31 = vsel %vm10106_vm14, %v9490_v3, %v7870_v24  ;;  %v13189_v44 = vpop.f32.mrf.mxu2 }
 0x45d   : > { %v7271_v36 = vpop.f32.mrf.mxu0  ;;  %v7209_v61 = vpop.f32.mrf.mxu3 }
 0x45e   : > { %v13149_v6 = vadd.f32 %v7271_v36, %v13018_v25  ;;  %v13152_v45 = vadd.f32 %v7209_v61, %v13561_v34  ;;  %v8074_v36 = vunpack.c.l.b16 %v7871_v31  ;;  %v13565_v31 = vld [vmem:[#allocation21_spill] sm:$0xff] }
 0x462   : > { %8542 = vmatmul.bf16.gmra.mxu3 %v8095_v48  ;;  %v7877_v48 = vrot.slane %v13562_v16, 5 }
 0x465   : > { %v7273_v42 = vpop.f32.mrf.mxu0  ;;  %v8503_v57 = vpop.f32.mrf.mxu3 }
 0x466   : > { %v13160_v32 = vadd.f32 %v7273_v42, %v13034_v35  ;;  %v8504_v25 = vadd.f32 %v8503_v57, %v12885_v27  ;;  %v7874_v35 = vsel %vm10106_vm14, %v7872_v47, %v7873_v5 }
 0x467   : > { %v8075_v40 = vunpack.c.l.b16 %v7874_v35  ;;  %v13206_v35 = vpop.f32.mrf.mxu1 }
 0x468   : > { %v8580_v19 = vadd.f32 %v8504_v25, %v12890_v33 }
 0x469   : > { %v8096_v34 = vpack.c.b16 %v8075_v40, %v8074_v36 }
 0x46a   : > { %v8616_v27 = vmul.f32 %v13166_v63, %v8580_v19  ;;  %v7745_v19 = vld [vmem:[#allocation3 + $0x9c] sm:$0xe] }
 0x46b   : > { %v9491_v40 = vrot.slane %v7745_v19, 9 }
 0x46c   : > { %v8652_v2 = vadd.f32 %v13173_v39, %v8616_v27  ;;  %v13208_v27 = vpop.f32.mrf.mxu2 }
 0x46d   : > { %v7276_v33 = vpop.f32.mrf.mxu0  ;;  %v8505_v11 = vpop.f32.mrf.mxu3 }
 0x46e   : > { %v8684_v54 = vmax.f32 %v8652_v2, 0.0  ;;  %v13192_v56 = vadd.f32 %v7276_v33, %v13049_v28  ;;  %v8506_v15 = vadd.f32 %v8505_v11, %v12902_v23  ;;  %v7879_v28 = vrot.slane %v7877_v48, 4 }
 0x46f   : > { %v7878_v11 = vsel %vm10106_vm14, %v9491_v40, %v7877_v48 }
 0x470   : > { %8716 = vst.msk [vmem:[%s13185_s27 + $0x10] sm:$0xff] %vm1892_vm6, %v8684_v54  ;;  %v8581_v61 = vadd.f32 %v8506_v15, %v12905_v26  ;;  %v13564_v26 = vld [vmem:[#allocation19_spill] sm:$0xff] }
 0x471   : > { %v7880_v3 = vrot.slane %v13564_v26, 5 }
 0x472   : > { %v8617_v24 = vmul.f32 %v13166_v63, %v8581_v61  ;;  %8547 = vmatmul.bf16.gmra.mxu3 %v8096_v34 }
 0x473   : > { %v7881_v33 = vsel %vm10106_vm14, %v7879_v28, %v7880_v3 }
 0x474   : > { %v8653_v42 = vadd.f32 %v13173_v39, %v8617_v24  ;;  %v8077_v15 = vunpack.c.l.b16 %v7881_v33  ;;  %v13566_v24 = vld [vmem:[#allocation15_spill] sm:$0xff]  ;;  %v13228_v48 = vpop.f32.mrf.mxu2  ;;  %v13568_v33 = vld [vmem:[#allocation28_spill] sm:$0xff] }
 0x475   : > { %v7278_v57 = vpop.f32.mrf.mxu0  ;;  %v8508_v47 = vpop.f32.mrf.mxu3 }
 0x476   : > { %v8685_v25 = vmax.f32 %v8653_v42, 0.0  ;;  %v13202_v23 = vadd.f32 %v7278_v57, %v13067_v7  ;;  %v8509_v5 = vadd.f32 %v8508_v47, %v13563_v60  ;;  %v8076_v57 = vunpack.c.l.b16 %v7878_v11  ;;  %v13567_v47 = vld [vmem:[#allocation27_spill] sm:$0xff]  ;;  %v13226_v60 = vpop.f32.mrf.mxu1 }
 0x478   : > { %8717 = vst.msk [vmem:[%s13185_s27 + $0x18] sm:$0xff] %vm1892_vm6, %v8685_v25  ;;  %v8582_v2 = vadd.f32 %v8509_v5, %v13565_v31  ;;  %v8097_v25 = vpack.c.b16 %v8077_v15, %v8076_v57  ;;  %v8430_v57 = vadd.f32 %v13157_v50, %v13155_v51  ;;  %v8432_v50 = vadd.f32 %v13189_v44, %v13187_v10 }
 0x47a   : > { %v8618_v7 = vmul.f32 %v13166_v63, %v8582_v2 }
 0x47c   : > { %v8654_v54 = vadd.f32 %v13173_v39, %v8618_v7 }
 0x47d   : > { %v7281_v36 = vpop.f32.mrf.mxu0  ;;  %v8510_v61 = vpop.f32.mrf.mxu3 }
 0x47e   : > { %v8686_v34 = vmax.f32 %v8654_v54, 0.0  ;;  %v13220_v16 = vadd.f32 %v7281_v36, %v13075_v9  ;;  %v8511_v42 = vadd.f32 %v8510_v61, %v13566_v24  ;;  %v8425_v9 = vadd.f32 %v13130_v55, %v13128_v8  ;;  %v13243_v8 = vpop.f32.mrf.mxu1  ;;  %v13245_v55 = vpop.f32.mrf.mxu2 }
 0x47f   : > { %v8427_v54 = vadd.f32 %v13144_v59, %v13142_v43  ;;  %v13569_v59 = vld [vmem:[#allocation22_spill] sm:$0xff] }
 0x480   : > { %8718 = vst.msk [vmem:[%s13185_s27 + $0x20] sm:$0xff] %vm1892_vm6, %v8686_v34  ;;  %v8583_v28 = vadd.f32 %v8511_v42, %v13567_v47 }
 0x482   : > { %v8619_v5 = vmul.f32 %v13166_v63, %v8583_v28  ;;  %8552 = vmatmul.bf16.gmra.mxu3 %v8097_v25 }
 0x484   : > { %v8655_v19 = vadd.f32 %v13173_v39, %v8619_v5 }
 0x485   : > { %v7283_v26 = vpop.f32.mrf.mxu0  ;;  %v8513_v3 = vpop.f32.mrf.mxu3 }
 0x486   : > { %v8687_v31 = vmax.f32 %v8655_v19, 0.0  ;;  %v13235_v2 = vadd.f32 %v7283_v26, %v13089_v1  ;;  %v8514_v40 = vadd.f32 %v8513_v3, %v8425_v9  ;;  %v13259_v5 = vpop.f32.mrf.mxu1  ;;  %v13570_v26 = vld [vmem:[#allocation29_spill] sm:$0xff] }
 0x488   : > { %8719 = vst.msk [vmem:[%s13185_s27 + $0x28] sm:$0xff] %vm1892_vm6, %v8687_v31  ;;  %v8584_v7 = vadd.f32 %v8514_v40, %v13568_v33 }
 0x48a   : > { %v8620_v11 = vmul.f32 %v13166_v63, %v8584_v7 }
 0x48c   : > { %v8656_v15 = vadd.f32 %v13173_v39, %v8620_v11 }
 0x48d   : > { %v7286_v36 = vpop.f32.mrf.mxu0  ;;  %v8515_v61 = vpop.f32.mrf.mxu3 }
 0x48e   : > { %v8688_v1 = vmax.f32 %v8656_v15, 0.0  ;;  %v13249_v34 = vadd.f32 %v7286_v36, %v13095_v52  ;;  %v8516_v24 = vadd.f32 %v8515_v61, %v8427_v54  ;;  %v13261_v52 = vpop.f32.mrf.mxu2  ;;  %v13276_v54 = vpop.f32.mrf.mxu1  ;;  %v478_v61 = vld [vmem:[#allocation3 + $0xcc] sm:$0x1] }
 0x48f   : > { %v479_v44 = vsel %vm11343_vm4, 0, %v478_v61 }
 0x490   : > { %8720 = vst.msk [vmem:[%s13185_s27 + $0x30] sm:$0xff] %vm1892_vm6, %v8688_v1  ;;  %v8585_v42 = vadd.f32 %v8516_v24, %v12972_v12  ;;  %v533_v1 = vld [vmem:[#allocation3 + $0xd4] sm:$0x1] }
 0x491   : > { %480 = vst [vmem:[#allocation3 + $0xcc] sm:$0x1] %v479_v44 }
 0x492   : > { %v8621_v43 = vmul.f32 %v13166_v63, %v8585_v42  ;;  %8557 = vmatmul.bf16.gmra.mxu3 %v13569_v59  ;;  %v534_v42 = vsel %vm11362_vm5, 0, %v533_v1  ;;  %v8437_v1 = vadd.f32 %v13228_v48, %v13226_v60 }
 0x493   : > { %535 = vst [vmem:[#allocation3 + $0xd4] sm:$0x1] %v534_v42 }
 0x494   : > { %v8657_v47 = vadd.f32 %v13173_v39, %v8621_v43  ;;  %v13287_v43 = vld [vmem:[#allocation3 + $0xd0] sm:$0xf] }
 0x495   : > { %v7288_v28 = vpop.f32.mrf.mxu0  ;;  %v8518_v25 = vpop.f32.mrf.mxu3  ;;  %v7720_v59 = vshll.u32 %v13287_v43, 16 }
 0x496   : > { %v8689_v9 = vmax.f32 %v8657_v47, 0.0  ;;  %v13264_v19 = vadd.f32 %v7288_v28, %v13109_v29  ;;  %v8519_v12 = vadd.f32 %v8518_v25, %v8430_v57  ;;  %v13278_v15 = vpop.f32.mrf.mxu2  ;;  %v8435_v57 = vadd.f32 %v13208_v27, %v13206_v35 }
 0x497   : > { %v7722_v28 = vrot.slane %v7720_v59, 5 }
 0x498   : > { %8721 = vst.msk [vmem:[%s13185_s27 + $0x38] sm:$0xff] %vm1892_vm6, %v8689_v9  ;;  %v8586_v3 = vadd.f32 %v8519_v12, %v13570_v26 }
 0x49a   : > { %v8622_v51 = vmul.f32 %v13166_v63, %v8586_v3 }
 0x49c   : > { %v8658_v31 = vadd.f32 %v13173_v39, %v8622_v51 }
 0x49d   : > { %v7291_v40 = vpop.f32.mrf.mxu0  ;;  %v8520_v33 = vpop.f32.mrf.mxu3 }
 0x49e   : > { %v8690_v7 = vmax.f32 %v8658_v31, 0.0  ;;  %v13274_v11 = vadd.f32 %v7291_v40, %v13115_v41  ;;  %v8521_v29 = vadd.f32 %v8520_v33, %v8432_v50  ;;  %v7332_v31 = vld [vmem:[#allocation3 + $0xcc] sm:$0xf]  ;;  %v13302_v33 = vpop.f32.mrf.mxu1  ;;  %v13304_v35 = vpop.f32.mrf.mxu2 }
 0x49f   : > { %v9806_v40 = vld [vmem:[#allocation3 + $0xcc] sm:$0xff] }
 0x4a0   : > { %8722 = vst.msk [vmem:[%s13185_s27 + $0x40] sm:$0xff] %vm1892_vm6, %v8690_v7  ;;  %v8587_v36 = vadd.f32 %v8521_v29, %v13015_v38  ;;  %v7724_v38 = vshrl.u32 %v13287_v43, 16  ;;  %v7349_v7 = vld [vmem:[#allocation3 + $0xd4] sm:$0x1]  ;;  %v7711_v29 = vshrl.u32 %v7332_v31, 16  ;;  %8394 = vmatmul.bf16.gmra.mxu1 %v9806_v40 }
 0x4a1   : > { %v7730_v61 = vshll.u32 %v7349_v7, 16  ;;  %v7908_v40 = vrot.slane %v7349_v7, 5 }
 0x4a2   : > { %v8623_v41 = vmul.f32 %v13166_v63, %v8587_v36  ;;  %8562 = vmatmul.bf16.gmra.mxu3 %v13026_v20  ;;  %v7726_v25 = vrot.slane %v7724_v38, 4  ;;  %v7714_v36 = vshll.u32 %v7332_v31, 16  ;;  %v7713_v10 = vrot.slane %v7711_v29, 4 }
 0x4a4   : > { %v8659_v47 = vadd.f32 %v13173_v39, %v8623_v41  ;;  %v7727_v51 = vor.u32 %v7726_v25, %v7722_v28  ;;  %v7716_v44 = vrot.slane %v7714_v36, 5  ;;  %v7732_v41 = vrot.slane %v7730_v61, 5 }
 0x4a5   : > { %v7293_v9 = vpop.f32.mrf.mxu0  ;;  %v8523_v12 = vpop.f32.mrf.mxu3 }
 0x4a6   : > { %v8691_v26 = vmax.f32 %v8659_v47, 0.0  ;;  %v13297_v3 = vadd.f32 %v7293_v9, %v13126_v62  ;;  %v8524_v20 = vadd.f32 %v8523_v12, %v8435_v57  ;;  %v7728_v62 = vrot.slane %v7727_v51, 4  ;;  %v7749_v9 = vld [vmem:[#allocation3 + $0xcc] sm:$0xe]  ;;  %v8449_v29 = vpop.f32.mrf.mxu2 }
 0x4a7   : > { %v7717_v47 = vor.u32 %v7716_v44, %v7713_v10  ;;  %v7905_v12 = vrot.slane %v13287_v43, 5 }
 0x4a8   : > { %8723 = vst.msk [vmem:[%s13185_s27 + $0x48] sm:$0xff] %vm1892_vm6, %v8691_v26  ;;  %v8588_v50 = vadd.f32 %v8524_v20, %v13031_v14  ;;  %v7733_v25 = vsel %vm10064_vm11, %v7728_v62, %v7732_v41 }
 0x4a9   : > { %v7718_v48 = vrot.slane %v7717_v47, 4  ;;  %v8021_v26 = vunpack.c.l.b16 %v7733_v25  ;;  %v7907_v31 = vrot.slane %v7905_v12, 4 }
 0x4aa   : > { %v8624_v27 = vmul.f32 %v13166_v63, %v8588_v50  ;;  %v9495_v50 = vrot.slane %v7749_v9, 9 }
 0x4ac   : > { %v8660_v14 = vadd.f32 %v13173_v39, %v8624_v27  ;;  %v13325_v27 = vpop.f32.mrf.mxu1  ;;  %v7906_v7 = vsel %vm10106_vm14, %v9495_v50, %v7905_v12  ;;  %v8445_v12 = vadd.f32 %v13278_v15, %v13276_v54 }
 0x4ad   : > { %v7296_v24 = vpop.f32.mrf.mxu0  ;;  %v8525_v42 = vpop.f32.mrf.mxu3 }
 0x4ae   : > { %v8692_v59 = vmax.f32 %v8660_v14, 0.0  ;;  %v13311_v38 = vadd.f32 %v7296_v24, %v13137_v0  ;;  %v8526_v57 = vadd.f32 %v8525_v42, %v8437_v1  ;;  %v7723_v0 = vsel %vm10064_vm11, %v7718_v48, %v7722_v28 }
 0x4af   : > { %v8020_v51 = vunpack.c.l.b16 %v7723_v0  ;;  %v8084_v14 = vunpack.c.l.b16 %v7906_v7 }
 0x4b0   : > { %8724 = vst.msk [vmem:[%s13185_s27 + $0x50] sm:$0xff] %vm1892_vm6, %v8692_v59  ;;  %v8589_v60 = vadd.f32 %v8526_v57, %v13046_v13  ;;  %v8440_v13 = vadd.f32 %v13245_v55, %v13243_v8  ;;  %v7909_v8 = vsel %vm10106_vm14, %v7907_v31, %v7908_v40  ;;  %v13575_v40 = vld [vmem:[#allocation25_spill] sm:$0xff] }
 0x4b1   : > { %v8037_v61 = vpack.c.b16 %v8021_v26, %v8020_v51  ;;  %v8085_v10 = vunpack.c.l.b16 %v7909_v8 }
 0x4b2   : > { %v8625_v20 = vmul.f32 %v13166_v63, %v8589_v60  ;;  %8567 = vmatmul.bf16.gmra.mxu3 %v13059_v53  ;;  %v8451_v60 = vpop.f32.mrf.mxu2 }
 0x4b3   : > { %8483 = vmatmul.bf16.gmra.mxu2 %v8037_v61  ;;  %v8101_v25 = vpack.c.b16 %v8085_v10, %v8084_v14 }
 0x4b4   : > { %v8661_v43 = vadd.f32 %v13173_v39, %v8625_v20  ;;  %v8362_v41 = vpop.f32.mrf.mxu1 }
 0x4b5   : > { %v7298_v36 = vpop.f32.mrf.mxu0  ;;  %v8528_v62 = vpop.f32.mrf.mxu3 }
 0x4b6   : > { %v8693_v53 = vmax.f32 %v8661_v43, 0.0  ;;  %v13329_v46 = vadd.f32 %v7298_v36, %v13152_v45  ;;  %v8529_v28 = vadd.f32 %v8528_v62, %v8440_v13  ;;  %v8442_v45 = vadd.f32 %v13261_v52, %v13259_v5  ;;  %v13576_v36 = vld [vmem:[#allocation26_spill] sm:$0xff] }
 0x4b8   : > { %8725 = vst.msk [vmem:[%s13185_s27 + $0x58] sm:$0xff] %vm1892_vm6, %v8693_v53  ;;  %v8590_v55 = vadd.f32 %v8529_v28, %v13064_v17  ;;  %v13574_v17 = vld [vmem:[#allocation17_spill] sm:$0xff]  ;;  %v8447_v28 = vadd.f32 %v13304_v35, %v13302_v33  ;;  %v8450_v33 = vadd.f32 %v8449_v29, %v13325_v27 }
 0x4ba   : > { %v8626_v1 = vmul.f32 %v13166_v63, %v8590_v55  ;;  %v8454_v15 = vpop.f32.mrf.mxu2 }
 0x4bc   : > { %v8662_v44 = vadd.f32 %v13173_v39, %v8626_v1  ;;  %v8365_v43 = vpop.f32.mrf.mxu1 }
 0x4bd   : > { %v8498_v24 = vpop.f32.mrf.mxu0  ;;  %v8530_v42 = vpop.f32.mrf.mxu3 }
 0x4be   : > { %v8694_v59 = vmax.f32 %v8662_v44, 0.0  ;;  %v8499_v57 = vadd.f32 %v8498_v24, %v13573_v49  ;;  %v8531_v47 = vadd.f32 %v8530_v42, %v8442_v45 }
 0x4c0   : > { %8726 = vst.msk [vmem:[%s13185_s27 + $0x60] sm:$0xff] %vm1892_vm6, %v8694_v59  ;;  %v8578_v48 = vadd.f32 %v8499_v57, %v13574_v17  ;;  %v8591_v9 = vadd.f32 %v8531_v47, %v13072_v22  ;;  %v8452_v47 = vadd.f32 %v8451_v60, %v8362_v41 }
 0x4c2   : > { %v8614_v5 = vmul.f32 %v13166_v63, %v8578_v48  ;;  %v8627_v52 = vmul.f32 %v13166_v63, %v8591_v9  ;;  %8572 = vmatmul.bf16.gmra.mxu3 %v8101_v25  ;;  %v8456_v24 = vpop.f32.mrf.mxu2 }
 0x4c4   : > { %v8650_v26 = vadd.f32 %v13173_v39, %v8614_v5  ;;  %v8663_v20 = vadd.f32 %v13173_v39, %v8627_v52  ;;  %v8367_v45 = vpop.f32.mrf.mxu1 }
 0x4c5   : > { %v8500_v0 = vpop.f32.mrf.mxu0  ;;  %v8533_v51 = vpop.f32.mrf.mxu3 }
 0x4c6   : > { %v8682_v50 = vmax.f32 %v8650_v26, 0.0  ;;  %v8695_v31 = vmax.f32 %v8663_v20, 0.0  ;;  %v8501_v13 = vadd.f32 %v8500_v0, %v13575_v40  ;;  %v8534_v22 = vadd.f32 %v8533_v51, %v8445_v12 }
 0x4c7   : > { %v8455_v12 = vadd.f32 %v8454_v15, %v8365_v43 }
 0x4c8   : > { %8714 = vst.msk [vmem:[%s13185_s27] sm:$0xff] %vm1892_vm6, %v8682_v50  ;;  %v8579_v62 = vadd.f32 %v8501_v13, %v13576_v36  ;;  %v8592_v54 = vadd.f32 %v8534_v22, %v13086_v37 }
 0x4c9   : > { %8727 = vst.msk [vmem:[%s13185_s27 + $0x68] sm:$0xff] %vm1892_vm6, %v8695_v31  ;;  %v8457_v31 = vadd.f32 %v8456_v24, %v8367_v45 }
 0x4ca   : > { %v8615_v61 = vmul.f32 %v13166_v63, %v8579_v62  ;;  %v8628_v53 = vmul.f32 %v13166_v63, %v8592_v54  ;;  %v8459_v48 = vpop.f32.mrf.mxu2 }
 0x4cc   : > { %v8651_v7 = vadd.f32 %v13173_v39, %v8615_v61  ;;  %v8664_v8 = vadd.f32 %v13173_v39, %v8628_v53  ;;  %v8370_v25 = vpop.f32.mrf.mxu1 }
 0x4cd   : > { %v8535_v55 = vpop.f32.mrf.mxu3  ;;  %v8460_v15 = vadd.f32 %v8459_v48, %v8370_v25 }
 0x4ce   : > { %v8683_v1 = vmax.f32 %v8651_v7, 0.0  ;;  %v8696_v14 = vmax.f32 %v8664_v8, 0.0  ;;  %v8536_v10 = vadd.f32 %v8535_v55, %v8447_v28 }
 0x4d0   : > { %8715 = vst.msk [vmem:[%s13185_s27 + $0x8] sm:$0xff] %vm1892_vm6, %v8683_v1  ;;  %v8593_v37 = vadd.f32 %v8536_v10, %v13092_v30 }
 0x4d1   : > { %8728 = vst.msk [vmem:[%s13185_s27 + $0x70] sm:$0xff] %vm1892_vm6, %v8696_v14 }
 0x4d2   : > { %v8629_v44 = vmul.f32 %v13166_v63, %v8593_v37  ;;  %v8461_v0 = vpop.f32.mrf.mxu2 }
 0x4d4   : > { %v8665_v35 = vadd.f32 %v13173_v39, %v8629_v44  ;;  %v8372_v41 = vpop.f32.mrf.mxu1 }
 0x4d5   : > { %v8538_v42 = vpop.f32.mrf.mxu3 }
 0x4d6   : > { %v8697_v59 = vmax.f32 %v8665_v35, 0.0  ;;  %v8539_v49 = vadd.f32 %v8538_v42, %v8450_v33 }
 0x4d8   : > { %8729 = vst.msk [vmem:[%s13185_s27 + $0x78] sm:$0xff] %vm1892_vm6, %v8697_v59  ;;  %v8594_v57 = vadd.f32 %v8539_v49, %v13106_v21 }
 0x4da   : > { %v8630_v30 = vmul.f32 %v13166_v63, %v8594_v57  ;;  %v8464_v62 = vpop.f32.mrf.mxu2 }
 0x4dc   : > { %v8666_v17 = vadd.f32 %v13173_v39, %v8630_v30  ;;  %v8375_v43 = vpop.f32.mrf.mxu1 }
 0x4dd   : > { %v8540_v9 = vpop.f32.mrf.mxu3  ;;  %v8465_v33 = vadd.f32 %v8464_v62, %v8375_v43 }
 0x4de   : > { %v8698_v5 = vmax.f32 %v8666_v17, 0.0  ;;  %v8541_v27 = vadd.f32 %v8540_v9, %v8452_v47 }
 0x4e0   : > { %8730 = vst.msk [vmem:[%s13185_s27 + $0x80] sm:$0xff] %vm1892_vm6, %v8698_v5  ;;  %v8595_v29 = vadd.f32 %v8541_v27, %v13112_v4 }
 0x4e2   : > { %v8631_v52 = vmul.f32 %v13166_v63, %v8595_v29  ;;  %v8466_v1 = vpop.f32.mrf.mxu2 }
 0x4e4   : > { %v8667_v21 = vadd.f32 %v13173_v39, %v8631_v52  ;;  %v8377_v8 = vpop.f32.mrf.mxu1 }
 0x4e5   : > { %v8543_v26 = vpop.f32.mrf.mxu3  ;;  %v8467_v25 = vadd.f32 %v8466_v1, %v8377_v8 }
 0x4e6   : > { %v8699_v60 = vmax.f32 %v8667_v21, 0.0  ;;  %v8544_v20 = vadd.f32 %v8543_v26, %v8455_v12 }
 0x4e8   : > { %8731 = vst.msk [vmem:[%s13185_s27 + $0x88] sm:$0xff] %vm1892_vm6, %v8699_v60  ;;  %v8596_v51 = vadd.f32 %v8544_v20, %v13123_v58 }
 0x4ea   : > { %v8632_v50 = vmul.f32 %v13166_v63, %v8596_v51  ;;  %v8469_v42 = vpop.f32.mrf.mxu2 }
 0x4ec   : > { %v8668_v4 = vadd.f32 %v13173_v39, %v8632_v50  ;;  %v8380_v35 = vpop.f32.mrf.mxu1 }
 0x4ed   : > { %v8545_v40 = vpop.f32.mrf.mxu3  ;;  %v8470_v12 = vadd.f32 %v8469_v42, %v8380_v35 }
 0x4ee   : > { %v8700_v13 = vmax.f32 %v8668_v4, 0.0  ;;  %v8546_v22 = vadd.f32 %v8545_v40, %v8457_v31 }
 0x4f0   : > { %8732 = vst.msk [vmem:[%s13185_s27 + $0x90] sm:$0xff] %vm1892_vm6, %v8700_v13  ;;  %v8597_v36 = vadd.f32 %v8546_v22, %v13134_v18  ;;  %v8462_v18 = vadd.f32 %v8461_v0, %v8372_v41 }
 0x4f2   : > { %v8633_v54 = vmul.f32 %v13166_v63, %v8597_v36  ;;  %v8471_v27 = vpop.f32.mrf.mxu2 }
 0x4f4   : > { %v8669_v58 = vadd.f32 %v13173_v39, %v8633_v54  ;;  %v8382_v48 = vpop.f32.mrf.mxu1 }
 0x4f5   : > { %v8548_v61 = vpop.f32.mrf.mxu3  ;;  %v8472_v50 = vadd.f32 %v8471_v27, %v8382_v48 }
 0x4f6   : > { %v8701_v53 = vmax.f32 %v8669_v58, 0.0  ;;  %v8549_v28 = vadd.f32 %v8548_v61, %v8460_v15 }
 0x4f8   : > { %8733 = vst.msk [vmem:[%s13185_s27 + $0x98] sm:$0xff] %vm1892_vm6, %v8701_v53  ;;  %v8598_v7 = vadd.f32 %v8549_v28, %v13149_v6 }
 0x4fa   : > { %v8634_v55 = vmul.f32 %v13166_v63, %v8598_v7  ;;  %v8474_v0 = vpop.f32.mrf.mxu2 }
 0x4fc   : > { %v8670_v14 = vadd.f32 %v13173_v39, %v8634_v55  ;;  %v8385_v60 = vpop.f32.mrf.mxu1 }
 0x4fd   : > { %v8550_v10 = vpop.f32.mrf.mxu3 }
 0x4fe   : > { %v8702_v37 = vmax.f32 %v8670_v14, 0.0  ;;  %v8551_v45 = vadd.f32 %v8550_v10, %v8462_v18 }
 0x500   : > { %8734 = vst.msk [vmem:[%s13185_s27 + $0xa0] sm:$0xff] %vm1892_vm6, %v8702_v37  ;;  %v8599_v44 = vadd.f32 %v8551_v45, %v13160_v32 }
 0x502   : > { %v8635_v24 = vmul.f32 %v13166_v63, %v8599_v44  ;;  %v8476_v36 = vpop.f32.mrf.mxu2 }
 0x504   : > { %v8671_v6 = vadd.f32 %v13173_v39, %v8635_v24  ;;  %v8387_v22 = vpop.f32.mrf.mxu1 }
 0x505   : > { %v8553_v59 = vpop.f32.mrf.mxu3  ;;  %v8477_v7 = vadd.f32 %v8476_v36, %v8387_v22 }
 0x506   : > { %v8703_v49 = vmax.f32 %v8671_v6, 0.0  ;;  %v8554_v57 = vadd.f32 %v8553_v59, %v8465_v33 }
 0x508   : > { %8735 = vst.msk [vmem:[%s13185_s27 + $0xa8] sm:$0xff] %vm1892_vm6, %v8703_v49  ;;  %v8600_v30 = vadd.f32 %v8554_v57, %v13192_v56 }
 0x50a   : > { %v8636_v47 = vmul.f32 %v13166_v63, %v8600_v30  ;;  %v8479_v8 = vpop.f32.mrf.mxu2 }
 0x50c   : > { %v8672_v32 = vadd.f32 %v13173_v39, %v8636_v47  ;;  %v8390_v28 = vpop.f32.mrf.mxu1 }
 0x50d   : > { %v8555_v17 = vpop.f32.mrf.mxu3  ;;  %v8480_v37 = vadd.f32 %v8479_v8, %v8390_v28 }
 0x50e   : > { %v8704_v9 = vmax.f32 %v8672_v32, 0.0  ;;  %v8556_v5 = vadd.f32 %v8555_v17, %v8467_v25 }
 0x510   : > { %8736 = vst.msk [vmem:[%s13185_s27 + $0xb0] sm:$0xff] %vm1892_vm6, %v8704_v9  ;;  %v8601_v29 = vadd.f32 %v8556_v5, %v13202_v23 }
 0x512   : > { %v8637_v52 = vmul.f32 %v13166_v63, %v8601_v29  ;;  %v8481_v35 = vpop.f32.mrf.mxu2 }
 0x514   : > { %v8673_v56 = vadd.f32 %v13173_v39, %v8637_v52  ;;  %v8392_v33 = vpop.f32.mrf.mxu1 }
 0x515   : > { %v8558_v21 = vpop.f32.mrf.mxu3  ;;  %v8482_v59 = vadd.f32 %v8481_v35, %v8392_v33 }
 0x516   : > { %v8705_v26 = vmax.f32 %v8673_v56, 0.0  ;;  %v8559_v41 = vadd.f32 %v8558_v21, %v8470_v12 }
 0x518   : > { %8737 = vst.msk [vmem:[%s13185_s27 + $0xb8] sm:$0xff] %vm1892_vm6, %v8705_v26  ;;  %v8602_v20 = vadd.f32 %v8559_v41, %v13220_v16  ;;  %v8475_v16 = vadd.f32 %v8474_v0, %v8385_v60 }
 0x51a   : > { %v8638_v51 = vmul.f32 %v13166_v63, %v8602_v20 }
 0x51c   : > { %v8674_v23 = vadd.f32 %v13173_v39, %v8638_v51 }
 0x51d   : > { %v8560_v31 = vpop.f32.mrf.mxu3  ;;  %v8395_v47 = vpop.f32.mrf.mxu1 }
 0x51e   : > { %v8706_v4 = vmax.f32 %v8674_v23, 0.0  ;;  %v8561_v40 = vadd.f32 %v8560_v31, %v8472_v50 }
 0x520   : > { %8738 = vst.msk [vmem:[%s13185_s27 + $0xc0] sm:$0xff] %vm1892_vm6, %v8706_v4  ;;  %v8603_v13 = vadd.f32 %v8561_v40, %v13235_v2 }
 0x522   : > { %v8639_v43 = vmul.f32 %v13166_v63, %v8603_v13 }
 0x524   : > { %v8675_v62 = vadd.f32 %v13173_v39, %v8639_v43 }
 0x525   : > { %v8563_v54 = vpop.f32.mrf.mxu3  ;;  %v8397_v52 = vpop.f32.mrf.mxu1 }
 0x526   : > { %v8707_v15 = vmax.f32 %v8675_v62, 0.0  ;;  %v8564_v58 = vadd.f32 %v8563_v54, %v8475_v16 }
 0x528   : > { %8739 = vst.msk [vmem:[%s13185_s27 + $0xc8] sm:$0xff] %vm1892_vm6, %v8707_v15  ;;  %v8604_v61 = vadd.f32 %v8564_v58, %v13249_v34 }
 0x52a   : > { %v8640_v53 = vmul.f32 %v13166_v63, %v8604_v61 }
 0x52c   : > { %v8676_v2 = vadd.f32 %v13173_v39, %v8640_v53 }
 0x52d   : > { %v8565_v55 = vpop.f32.mrf.mxu3 }
 0x52e   : > { %v8708_v1 = vmax.f32 %v8676_v2, 0.0  ;;  %v8566_v18 = vadd.f32 %v8565_v55, %v8477_v7 }
 0x530   : > { %8740 = vst.msk [vmem:[%s13185_s27 + $0xd0] sm:$0xff] %vm1892_vm6, %v8708_v1  ;;  %v8605_v14 = vadd.f32 %v8566_v18, %v13264_v19 }
 0x532   : > { %v8641_v10 = vmul.f32 %v13166_v63, %v8605_v14 }
 0x534   : > { %v8677_v34 = vadd.f32 %v13173_v39, %v8641_v10 }
 0x535   : > { %v8568_v45 = vpop.f32.mrf.mxu3 }
 0x536   : > { %v8709_v44 = vmax.f32 %v8677_v34, 0.0  ;;  %v8569_v24 = vadd.f32 %v8568_v45, %v8480_v37  ;;  %v8484_v25 = vpop.f32.mrf.mxu2 }
 0x537   : > { %v8485_v17 = vadd.f32 %v8484_v25, %v8395_v47 }
 0x538   : > { %8741 = vst.msk [vmem:[%s13185_s27 + $0xd8] sm:$0xff] %vm1892_vm6, %v8709_v44  ;;  %v8606_v6 = vadd.f32 %v8569_v24, %v13274_v11 }
 0x53a   : > { %v8642_v42 = vmul.f32 %v13166_v63, %v8606_v6 }
 0x53c   : > { %v8678_v19 = vadd.f32 %v13173_v39, %v8642_v42 }
 0x53d   : > { %v8570_v49 = vpop.f32.mrf.mxu3 }
 0x53e   : > { %v8710_v57 = vmax.f32 %v8678_v19, 0.0  ;;  %v8571_v30 = vadd.f32 %v8570_v49, %v8482_v59  ;;  %v8486_v12 = vpop.f32.mrf.mxu2 }
 0x53f   : > { %v8487_v21 = vadd.f32 %v8486_v12, %v8397_v52 }
 0x540   : > { %8742 = vst.msk [vmem:[%s13185_s27 + $0xe0] sm:$0xff] %vm1892_vm6, %v8710_v57  ;;  %v8607_v32 = vadd.f32 %v8571_v30, %v13297_v3 }
 0x542   : > { %v8643_v48 = vmul.f32 %v13166_v63, %v8607_v32 }
 0x544   : > { %v8679_v11 = vadd.f32 %v13173_v39, %v8643_v48 }
 0x545   : > { %v8573_v9 = vpop.f32.mrf.mxu3 }
 0x546   : > { %v8711_v5 = vmax.f32 %v8679_v11, 0.0  ;;  %v8574_v27 = vadd.f32 %v8573_v9, %v8485_v17 }
 0x548   : > { %8743 = vst.msk [vmem:[%s13185_s27 + $0xe8] sm:$0xff] %vm1892_vm6, %v8711_v5  ;;  %v8608_v29 = vadd.f32 %v8574_v27, %v13311_v38 }
 0x54a   : > { %v8644_v56 = vmul.f32 %v13166_v63, %v8608_v29 }
 0x54c   : > { %v8680_v3 = vadd.f32 %v13173_v39, %v8644_v56 }
 0x54d   : > { %v8575_v26 = vpop.f32.mrf.mxu3 }
 0x54e   : > { %v8712_v41 = vmax.f32 %v8680_v3, 0.0  ;;  %v8576_v60 = vadd.f32 %v8575_v26, %v8487_v21 }
 0x550   : > { %8744 = vst.msk [vmem:[%s13185_s27 + $0xf0] sm:$0xff] %vm1892_vm6, %v8712_v41  ;;  %v8609_v20 = vadd.f32 %v8576_v60, %v13329_v46 }
 0x552   : > { %v8645_v0 = vmul.f32 %v13166_v63, %v8609_v20 }
 0x554   : > { %v8681_v51 = vadd.f32 %v13173_v39, %v8645_v0 }
 0x556   : > { %v8713_v50 = vmax.f32 %v8681_v51, 0.0 }
 0x558   : > { %8745 = vst.msk [vmem:[%s13185_s27 + $0xf8] sm:$0xff] %vm1892_vm6, %v8713_v50 }
 0x559 PF: > { %s18_s24 = sadd.s32 1, %s9941_s24  }
 0x55a   : > { %p15_p7 = scmp.ge.s32.totalorder %s18_s24, 4  }
 0x55c   :  { %17 = sbr.rel (!%p15_p7) target bundleno = 1 (0x1), region = 93 }
 0x561   :  { %8767 = vsyncpa [#allocation5], 1 }
 0x562   :  { %8769 = vsyncpa [#allocation5 + $0x1], 1 }

</bundles_post_ra>
